<compile_context>
chip_gen: v5e
topology: v5e:2x2
jax: 0.10.0
libtpu: 0.0.40
codegen_flags: <defaults>
</compile_context>

<pallas_src>
import jax
import jax.numpy as jnp
import numpy as np
from jax import lax
from jax.experimental import pallas as pl
from jax.experimental.pallas import tpu as pltpu


# ----------------------------------------------------------------------------
# Fused forward kernel: one batch tile per grid step, four dense ops, no scratch.
# ----------------------------------------------------------------------------
def conv_critic_kernel(x_ref, m1_ref, b1_ref, m2_ref, b2_ref,
                       fc1_ref, fb1_ref, fc2_ref, fb2_ref, o_ref):
    # x_ref   : (TB, H*W)            bf16  flattened input images (Cin = 1)
    # m1_ref  : (H*W, H*W*C1)        bf16  conv1 folded (taps + padding) weight
    # b1_ref  : (1,   H*W*C1)        f32   conv1 bias tiled per spatial position
    # m2_ref  : (H*W*C1, H*W*C2)     bf16  conv2 folded block-banded weight
    # b2_ref  : (1,   H*W*C2)        f32
    # fc1_ref : (H*W*C2, Kp=128)     bf16  fc1 weight, NCHW-flatten order baked in,
    #                                      out-features zero-padded 64 -> 128
    # fb1_ref : (1, Kp)              f32
    # fc2_ref : (1, Kp)              f32   fc2 weight row, zero-padded to 128
    # fb2_ref : (1, 1)               f32
    # o_ref   : (TB, 128)            f32   per-row result broadcast across lanes
    f32 = jnp.float32

    # conv1 (+bias+ReLU): one (TB, 64) @ (64, 1024) MXU matmul, K folded over taps.
    h1 = jnp.dot(x_ref[...], m1_ref[...], preferred_element_type=f32)
    h1 = jnp.maximum(h1 + b1_ref[...], 0.0)                     # (TB, H*W*C1) f32

    # conv2 (+bias+ReLU): one (TB, 1024) @ (1024, 2048) matmul, full-depth K.
    h2 = jnp.dot(h1.astype(jnp.bfloat16), m2_ref[...],
                 preferred_element_type=f32)
    h2 = jnp.maximum(h2 + b2_ref[...], 0.0)                     # (TB, H*W*C2) f32

    # flatten + fc1 (+ReLU): flatten is free (h2 is already the flat layout the
    # host-permuted fc1 weight expects); one (TB, 2048) @ (2048, 128) matmul.
    hid = jnp.dot(h2.astype(jnp.bfloat16), fc1_ref[...],
                  preferred_element_type=f32)
    hid = jnp.maximum(hid + fb1_ref[...], 0.0)                  # (TB, Kp) f32

    # fc2: VPU multiply-reduce (no MXU); broadcast the scalar across 128 lanes so
    # the output store is a full unmasked lane-dense store.
    y = jnp.sum(hid * fc2_ref[...], axis=-1, keepdims=True) + fb2_ref[...]  # (TB, 1)
    o_ref[...] = jnp.broadcast_to(y, o_ref.shape)


# ----------------------------------------------------------------------------
# Wrapper
# ----------------------------------------------------------------------------
def conv_critic_forward(x_nchw, kp, *, batch_tile=None):
    B, Cin, H, W = x_nchw.shape
    assert Cin == 1
    HW = H * W
    F1 = kp["m1"].shape[-1]          # H*W*C1
    F2 = kp["m2"].shape[-1]          # H*W*C2
    Kp = kp["fb1"].shape[-1]         # padded fc1 width (128)
    assert kp["m1"].shape[0] == HW, "kernel params were packed for a different H,W"

    # Flatten (free reshape, no transpose) and cast to bf16 for the MXU.
    x = x_nchw.reshape(B, HW).astype(jnp.bfloat16)

    if batch_tile is None:
        # >=2 grid steps for large B (v7x has 2 TensorCores on the "parallel"
        # axis); up to 256 rows/step to amortize per-step overhead; multiple of
        # 16 so bf16 sublane tiling stays clean.
        TB = min(256, 16 * pl.cdiv(pl.cdiv(B, 2), 16))
    else:
        TB = int(batch_tile)
    nt = pl.cdiv(B, TB)
    Bp = nt * TB
    if Bp != B:
        x = jnp.pad(x, ((0, Bp - B), (0, 0)))

    flops = 2 * Bp * (HW * F1 + F1 * F2 + F2 * Kp + Kp)
    weight_bytes = sum(int(kp[k].size) * kp[k].dtype.itemsize
                       for k in ("m1", "b1", "m2", "b2", "fc1", "fb1", "fc2", "fb2"))
    bytes_accessed = int(x.size) * x.dtype.itemsize + weight_bytes + Bp * 128 * 4

    out = pl.pallas_call(
        conv_critic_kernel,
        out_shape=jax.ShapeDtypeStruct((Bp, 128), jnp.float32),
        grid=(nt,),
        in_specs=[
            pl.BlockSpec((TB, HW), lambda i: (i, 0)),
            pl.BlockSpec((HW, F1), lambda i: (0, 0)),
            pl.BlockSpec((1, F1), lambda i: (0, 0)),
            pl.BlockSpec((F1, F2), lambda i: (0, 0)),
            pl.BlockSpec((1, F2), lambda i: (0, 0)),
            pl.BlockSpec((F2, Kp), lambda i: (0, 0)),
            pl.BlockSpec((1, Kp), lambda i: (0, 0)),
            pl.BlockSpec((1, Kp), lambda i: (0, 0)),
            pl.BlockSpec((1, 1), lambda i: (0, 0)),
        ],
        out_specs=pl.BlockSpec((TB, 128), lambda i: (i, 0)),
        compiler_params=pltpu.CompilerParams(
            dimension_semantics=("parallel",),
            vmem_limit_bytes=32 * 1024 * 1024),
        cost_estimate=pl.CostEstimate(flops=flops, transcendentals=0,
                                      bytes_accessed=bytes_accessed),
    )(x, kp["m1"], kp["b1"], kp["m2"], kp["b2"],
      kp["fc1"], kp["fb1"], kp["fc2"], kp["fb2"])
    return out[:B, 0]                                    # squeeze(-1) -> (B,)


# ----------------------------------------------------------------------------
# Parameters (PyTorch layouts) and one-time host-side repacking
# ----------------------------------------------------------------------------
def init_params(key, height, width):
    """PyTorch layouts: Conv2d weight (Cout, Cin, kh, kw); Linear weight (out, in)."""
    ks = jax.random.split(key, 8)
    f = 32 * height * width
    s = 0.05
    return {
        "conv1_w": s * jax.random.normal(ks[0], (16, 1, 3, 3), jnp.float32),
        "conv1_b": s * jax.random.normal(ks[1], (16,), jnp.float32),
        "conv2_w": s * jax.random.normal(ks[2], (32, 16, 3, 3), jnp.float32),
        "conv2_b": s * jax.random.normal(ks[3], (32,), jnp.float32),
        "fc1_w": s * jax.random.normal(ks[4], (64, f), jnp.float32),
        "fc1_b": s * jax.random.normal(ks[5], (64,), jnp.float32),
        "fc2_w": s * jax.random.normal(ks[6], (1, 64), jnp.float32),
        "fc2_b": s * jax.random.normal(ks[7], (1,), jnp.float32),
    }


def prepare_kernel_params(params, height, width):
    """One-time host-side repack of PyTorch-layout weights into kernel layouts.

    Works for any H, W (lane dims are H*W*C1 / H*W*C2; full-array blocks are
    legal even when they are not 128-multiples, just less lane-efficient)."""
    H, W = height, width
    HW = H * W
    w1 = np.asarray(params["conv1_w"], np.float32)       # (C1, 1, 3, 3)
    w2 = np.asarray(params["conv2_w"], np.float32)       # (C2, C1, 3, 3)
    C1, C2 = w1.shape[0], w2.shape[0]

    # conv1/conv2 folded weights: vertical+horizontal taps AND the zero padding
    # are all folded into the contraction, so each conv is ONE matmul in-kernel.
    #   M1[hi*W+wi, (ho*W+wo)*C1 + c ]           = w1[c, 0, dy, dx]
    #   M2[(hi*W+wi)*C1 + ci, (ho*W+wo)*C2 + co] = w2[co, ci, dy, dx]
    M1 = np.zeros((HW, HW * C1), np.float32)
    M2 = np.zeros((HW * C1, HW * C2), np.float32)
    for ho in range(H):
        for wo in range(W):
            o = ho * W + wo
            for dy in range(3):
                for dx in range(3):
                    hi, wi = ho + dy - 1, wo + dx - 1
                    if 0 <= hi < H and 0 <= wi < W:
                        i_ = hi * W + wi
                        M1[i_, o * C1:(o + 1) * C1] = w1[:, 0, dy, dx]
                        M2[i_ * C1:(i_ + 1) * C1,
                           o * C2:(o + 1) * C2] = w2[:, :, dy, dx].T
    b1 = np.tile(np.asarray(params["conv1_b"], np.float32), HW)[None, :]  # (1, HW*C1)
    b2 = np.tile(np.asarray(params["conv2_b"], np.float32), HW)[None, :]  # (1, HW*C2)

    # fc1: torch (K, C2*H*W) in NCHW flatten order -> (H*W*C2, Kp) matching the
    # kernel's flat activation layout (index = (h*W+w)*C2 + c), out-features
    # zero-padded 64 -> 128 so fc1's output is lane-dense.
    fc1_t = np.asarray(params["fc1_w"], np.float32)                       # (K, F)
    K = fc1_t.shape[0]
    Kp = max(128, -(-K // 128) * 128)
    fc1_hwc = (fc1_t.T.reshape(C2, H, W, K).transpose(1, 2, 0, 3)
               .reshape(HW * C2, K))
    FC1 = np.zeros((HW * C2, Kp), np.float32)
    FC1[:, :K] = fc1_hwc
    fb1 = np.zeros((1, Kp), np.float32)
    fb1[0, :K] = np.asarray(params["fc1_b"], np.float32)
    fc2 = np.zeros((1, Kp), np.float32)
    fc2[0, :K] = np.asarray(params["fc2_w"], np.float32)[0]
    fb2 = np.asarray(params["fc2_b"], np.float32).reshape(1, 1)

    # bf16 for MXU operands (f32 accumulation in-kernel); f32 for biases / fc2 VPU op.
    return {
        "m1": jnp.asarray(M1, jnp.bfloat16),
        "b1": jnp.asarray(b1, jnp.float32),
        "m2": jnp.asarray(M2, jnp.bfloat16),
        "b2": jnp.asarray(b2, jnp.float32),
        "fc1": jnp.asarray(FC1, jnp.bfloat16),
        "fb1": jnp.asarray(fb1, jnp.float32),
        "fc2": jnp.asarray(fc2, jnp.float32),
        "fb2": jnp.asarray(fb2, jnp.float32),
    }


# ----------------------------------------------------------------------------
# Pure-JAX reference (mirrors the PyTorch module exactly)
# ----------------------------------------------------------------------------
def conv_critic_reference(x_nchw, params):
    hp = lax.Precision.HIGHEST
    y = lax.conv_general_dilated(
        x_nchw, params["conv1_w"], (1, 1), [(1, 1), (1, 1)],
        dimension_numbers=("NCHW", "OIHW", "NCHW"), precision=hp)
    y = jax.nn.relu(y + params["conv1_b"][None, :, None, None])
    y = lax.conv_general_dilated(
        y, params["conv2_w"], (1, 1), [(1, 1), (1, 1)],
        dimension_numbers=("NCHW", "OIHW", "NCHW"), precision=hp)
    y = jax.nn.relu(y + params["conv2_b"][None, :, None, None])
    feat = y.reshape(y.shape[0], -1)                       # NCHW flatten
    h = jax.nn.relu(jnp.dot(feat, params["fc1_w"].T, precision=hp)
                    + params["fc1_b"])
    out = jnp.dot(h, params["fc2_w"].T, precision=hp) + params["fc2_b"]
    return out[:, 0]


if __name__ == "__main__":
    B, H, W = 2, 8, 8
    key = jax.random.PRNGKey(0)
    k_x, k_p = jax.random.split(key)

    x = jax.random.uniform(k_x, (B, 1, H, W), jnp.float32)   # NCHW like PyTorch
    params = init_params(k_p, H, W)
    kparams = prepare_kernel_params(params, H, W)

    out = jax.jit(conv_critic_forward)(x, kparams)
    out = jax.block_until_ready(out)
    assert out.shape == (B,) and out.dtype == jnp.float32

    ref = jax.block_until_ready(conv_critic_reference(x, params))
    assert jnp.allclose(out, ref, atol=5e-3, rtol=5e-3), (out, ref)
    print("KERNEL_OK")
</pallas_src>

<mosaic_0001>
module attributes {stable_mosaic.version = 11 : i64} {
  func.func @conv_critic_kernel(%arg0: i32, %arg1: memref<16x64xbf16, #tpu.memory_space<vmem>>, %arg2: memref<64x1024xbf16, #tpu.memory_space<vmem>>, %arg3: memref<1x1024xf32, #tpu.memory_space<vmem>>, %arg4: memref<1024x2048xbf16, #tpu.memory_space<vmem>>, %arg5: memref<1x2048xf32, #tpu.memory_space<vmem>>, %arg6: memref<2048x128xbf16, #tpu.memory_space<vmem>>, %arg7: memref<1x128xf32, #tpu.memory_space<vmem>>, %arg8: memref<1x128xf32, #tpu.memory_space<vmem>>, %arg9: memref<1x1xf32, #tpu.memory_space<vmem>>, %arg10: memref<16x128xf32, #tpu.memory_space<vmem>>) attributes {dimension_semantics = [#tpu.dimension_semantics<parallel>], iteration_bounds = array<i64: 1>, scalar_prefetch = 0 : i64, scratch_operands = 0 : i64, tpu.core_type = #tpu.core_type<tc>, window_params = [{transform_indices = @transform_0, window_bounds = array<i64: 16, 64>}, {pipeline_mode = #tpu.pipeline_mode<synchronous>, transform_indices = @transform_1, window_bounds = array<i64: 64, 1024>}, {pipeline_mode = #tpu.pipeline_mode<synchronous>, transform_indices = @transform_2, window_bounds = array<i64: 1, 1024>}, {pipeline_mode = #tpu.pipeline_mode<synchronous>, transform_indices = @transform_3, window_bounds = array<i64: 1024, 2048>}, {pipeline_mode = #tpu.pipeline_mode<synchronous>, transform_indices = @transform_4, window_bounds = array<i64: 1, 2048>}, {pipeline_mode = #tpu.pipeline_mode<synchronous>, transform_indices = @transform_5, window_bounds = array<i64: 2048, 128>}, {pipeline_mode = #tpu.pipeline_mode<synchronous>, transform_indices = @transform_6, window_bounds = array<i64: 1, 128>}, {pipeline_mode = #tpu.pipeline_mode<synchronous>, transform_indices = @transform_7, window_bounds = array<i64: 1, 128>}, {pipeline_mode = #tpu.pipeline_mode<synchronous>, transform_indices = @transform_8, window_bounds = array<i64: 1, 1>}, {transform_indices = @transform_9, window_bounds = array<i64: 16, 128>}]} {
    %c0 = arith.constant 0 : index
    %c0_0 = arith.constant 0 : index
    %0 = vector.load %arg1[%c0, %c0_0] : memref<16x64xbf16, #tpu.memory_space<vmem>>, vector<16x64xbf16>
    %c0_1 = arith.constant 0 : index
    %c0_2 = arith.constant 0 : index
    %1 = vector.load %arg2[%c0_1, %c0_2] : memref<64x1024xbf16, #tpu.memory_space<vmem>>, vector<64x1024xbf16>
    %cst = arith.constant dense<0.000000e+00> : vector<16x1024xf32>
    %2 = tpu.matmul %0, %1, %cst {dimension_numbers = #tpu.dot_dimension_numbers<[1], [0], [0], [1], [0, 0, 1, 1], [], []>} : vector<16x64xbf16>, vector<64x1024xbf16>, vector<16x1024xf32> -> vector<16x1024xf32>
    %c0_3 = arith.constant 0 : index
    %c0_4 = arith.constant 0 : index
    %3 = vector.load %arg3[%c0_3, %c0_4] : memref<1x1024xf32, #tpu.memory_space<vmem>>, vector<1x1024xf32>
    %4 = vector.broadcast %3 : vector<1x1024xf32> to vector<16x1024xf32>
    %5 = arith.addf %2, %4 : vector<16x1024xf32>
    %cst_5 = arith.constant 0.000000e+00 : f32
    %6 = vector.broadcast %cst_5 : f32 to vector<16x1024xf32>
    %7 = arith.maximumf %5, %6 : vector<16x1024xf32>
    %8 = arith.truncf %7 : vector<16x1024xf32> to vector<16x1024xbf16>
    %c0_6 = arith.constant 0 : index
    %c0_7 = arith.constant 0 : index
    %9 = vector.load %arg4[%c0_6, %c0_7] : memref<1024x2048xbf16, #tpu.memory_space<vmem>>, vector<1024x2048xbf16>
    %cst_8 = arith.constant dense<0.000000e+00> : vector<16x2048xf32>
    %10 = tpu.matmul %8, %9, %cst_8 {dimension_numbers = #tpu.dot_dimension_numbers<[1], [0], [0], [1], [0, 0, 1, 1], [], []>} : vector<16x1024xbf16>, vector<1024x2048xbf16>, vector<16x2048xf32> -> vector<16x2048xf32>
    %c0_9 = arith.constant 0 : index
    %c0_10 = arith.constant 0 : index
    %11 = vector.load %arg5[%c0_9, %c0_10] : memref<1x2048xf32, #tpu.memory_space<vmem>>, vector<1x2048xf32>
    %12 = vector.broadcast %11 : vector<1x2048xf32> to vector<16x2048xf32>
    %13 = arith.addf %10, %12 : vector<16x2048xf32>
    %cst_11 = arith.constant 0.000000e+00 : f32
    %14 = vector.broadcast %cst_11 : f32 to vector<16x2048xf32>
    %15 = arith.maximumf %13, %14 : vector<16x2048xf32>
    %16 = arith.truncf %15 : vector<16x2048xf32> to vector<16x2048xbf16>
    %c0_12 = arith.constant 0 : index
    %c0_13 = arith.constant 0 : index
    %17 = vector.load %arg6[%c0_12, %c0_13] : memref<2048x128xbf16, #tpu.memory_space<vmem>>, vector<2048x128xbf16>
    %cst_14 = arith.constant dense<0.000000e+00> : vector<16x128xf32>
    %18 = tpu.matmul %16, %17, %cst_14 {dimension_numbers = #tpu.dot_dimension_numbers<[1], [0], [0], [1], [0, 0, 1, 1], [], []>} : vector<16x2048xbf16>, vector<2048x128xbf16>, vector<16x128xf32> -> vector<16x128xf32>
    %c0_15 = arith.constant 0 : index
    %c0_16 = arith.constant 0 : index
    %19 = vector.load %arg7[%c0_15, %c0_16] : memref<1x128xf32, #tpu.memory_space<vmem>>, vector<1x128xf32>
    %20 = vector.broadcast %19 : vector<1x128xf32> to vector<16x128xf32>
    %21 = arith.addf %18, %20 : vector<16x128xf32>
    %cst_17 = arith.constant 0.000000e+00 : f32
    %22 = vector.broadcast %cst_17 : f32 to vector<16x128xf32>
    %23 = arith.maximumf %21, %22 : vector<16x128xf32>
    %c0_18 = arith.constant 0 : index
    %c0_19 = arith.constant 0 : index
    %24 = vector.load %arg8[%c0_18, %c0_19] : memref<1x128xf32, #tpu.memory_space<vmem>>, vector<1x128xf32>
    %25 = vector.broadcast %24 : vector<1x128xf32> to vector<16x128xf32>
    %26 = arith.mulf %23, %25 : vector<16x128xf32>
    %cst_20 = arith.constant dense<0.000000e+00> : vector<16xf32>
    %27 = vector.multi_reduction <add>, %26, %cst_20 [1] : vector<16x128xf32> to vector<16xf32>
    %28 = vector.shape_cast %27 : vector<16xf32> to vector<16x1xf32>
    %c0_21 = arith.constant 0 : index
    %c0_22 = arith.constant 0 : index
    %29 = vector.load %arg9[%c0_21, %c0_22] : memref<1x1xf32, #tpu.memory_space<vmem>>, vector<1x1xf32>
    %30 = vector.broadcast %29 : vector<1x1xf32> to vector<16x1xf32>
    %31 = arith.addf %28, %30 : vector<16x1xf32>
    %32 = vector.shape_cast %31 : vector<16x1xf32> to vector<16x1xf32>
    %33 = vector.broadcast %32 : vector<16x1xf32> to vector<16x128xf32>
    %c0_23 = arith.constant 0 : index
    %c0_24 = arith.constant 0 : index
    %34 = vector.load %arg10[%c0_23, %c0_24] : memref<16x128xf32, #tpu.memory_space<vmem>>, vector<16x128xf32>
    tpu.vector_store %arg10[%c0_23, %c0_24], %33 {strides = array<i32>} : memref<16x128xf32, #tpu.memory_space<vmem>>, vector<16x128xf32>,
    return
  }
  func.func @transform_0(%arg0: i32) -> (i32, i32) {
    %c0_i32 = arith.constant 0 : i32
    %c0_i32_0 = arith.constant 0 : i32
    return %arg0, %c0_i32 : i32, i32
  }
  func.func @transform_1(%arg0: i32) -> (i32, i32) {
    %c0_i32 = arith.constant 0 : i32
    %c0_i32_0 = arith.constant 0 : i32
    %c0_i32_1 = arith.constant 0 : i32
    return %c0_i32, %c0_i32_0 : i32, i32
  }
  func.func @transform_2(%arg0: i32) -> (i32, i32) {
    %c0_i32 = arith.constant 0 : i32
    %c0_i32_0 = arith.constant 0 : i32
    %c0_i32_1 = arith.constant 0 : i32
    return %c0_i32, %c0_i32_0 : i32, i32
  }
  func.func @transform_3(%arg0: i32) -> (i32, i32) {
    %c0_i32 = arith.constant 0 : i32
    %c0_i32_0 = arith.constant 0 : i32
    %c0_i32_1 = arith.constant 0 : i32
    return %c0_i32, %c0_i32_0 : i32, i32
  }
  func.func @transform_4(%arg0: i32) -> (i32, i32) {
    %c0_i32 = arith.constant 0 : i32
    %c0_i32_0 = arith.constant 0 : i32
    %c0_i32_1 = arith.constant 0 : i32
    return %c0_i32, %c0_i32_0 : i32, i32
  }
  func.func @transform_5(%arg0: i32) -> (i32, i32) {
    %c0_i32 = arith.constant 0 : i32
    %c0_i32_0 = arith.constant 0 : i32
    %c0_i32_1 = arith.constant 0 : i32
    return %c0_i32, %c0_i32_0 : i32, i32
  }
  func.func @transform_6(%arg0: i32) -> (i32, i32) {
    %c0_i32 = arith.constant 0 : i32
    %c0_i32_0 = arith.constant 0 : i32
    %c0_i32_1 = arith.constant 0 : i32
    return %c0_i32, %c0_i32_0 : i32, i32
  }
  func.func @transform_7(%arg0: i32) -> (i32, i32) {
    %c0_i32 = arith.constant 0 : i32
    %c0_i32_0 = arith.constant 0 : i32
    %c0_i32_1 = arith.constant 0 : i32
    return %c0_i32, %c0_i32_0 : i32, i32
  }
  func.func @transform_8(%arg0: i32) -> (i32, i32) {
    %c0_i32 = arith.constant 0 : i32
    %c0_i32_0 = arith.constant 0 : i32
    %c0_i32_1 = arith.constant 0 : i32
    return %c0_i32, %c0_i32_0 : i32, i32
  }
  func.func @transform_9(%arg0: i32) -> (i32, i32) {
    %c0_i32 = arith.constant 0 : i32
    %c0_i32_0 = arith.constant 0 : i32
    return %arg0, %c0_i32 : i32, i32
  }
}

</mosaic_0001>

<bundles_post_ra>
// kernel: conv_critic_forward.1
= control target key start
LH: loop header
LB: loop body
LE: loop exit
PB: predicated region body
PF: predicated region fallthrough
CT: control target
= control target key end

     0   :  { %s16713_s0 = inlined_call_operand.vmem [shape: bf16[16,64], index: 0, kind: input, shape index: {}]   ;;  %s16714_s1 = inlined_call_operand.hbm [shape: bf16[64,1024], index: 1, kind: input, shape index: {}]   ;;  %s16715_s2 = inlined_call_operand.hbm [shape: f32[1,1024], index: 2, kind: input, shape index: {}]   ;;  %s16716_s3 = inlined_call_operand.hbm [shape: bf16[1024,2048], index: 3, kind: input, shape index: {}]   ;;  %s16717_s4 = inlined_call_operand.hbm [shape: f32[1,2048], index: 4, kind: input, shape index: {}]   ;;  %s16718_s5 = inlined_call_operand.hbm [shape: bf16[2048,128], index: 5, kind: input, shape index: {}]   ;;  %s16719_s6 = inlined_call_operand.hbm [shape: f32[1,128], index: 6, kind: input, shape index: {}]   ;;  %s16720_s7 = inlined_call_operand.hbm [shape: f32[1,128], index: 7, kind: input, shape index: {}]   ;;  %s16721_s8 = inlined_call_operand.<no memory space> [shape: f32[1,1], index: 8, kind: input, shape index: {}]   ;;  %s16722_s9 = inlined_call_operand.vmem [shape: f32[16,128], index: 9, kind: output, shape index: {}]  }
   0x1   :  { %v14_v0 = vstv %s16721_s8 }
   0x2   :  { %15 = vst [vmem:[#allocation2] sm:$0x1] %v14_v0 }
   0x3   :  { %16 = vsyncpa [#allocation4], 0 }
   0x4   :  { %17 = vsyncpa [#allocation6], 0 }
   0x5   :  { %18 = vsyncpa [#allocation9], 0  ;;  %s40_s13 = sshll.u32 %s16715_s2, 4  ;;  %s41_s13 = int_to_ptr.hbm [resolvable:$true] %s40_s13 }
   0x6   :  { %19 = vsyncpa [#allocation12], 0  ;;  %s15936_s14 = smov [#allocation5]   ;;  %s64_s18 = sshll.u32 %s16717_s4, 4  ;;  %s65_s18 = int_to_ptr.hbm [resolvable:$true] %s64_s18 }
   0x7   :  { %s42_s15 = sshll.u32 %s15936_s14, 4  ;;  %s15937_s8 = smov [#allocation8]   ;;  %s43_s15 = int_to_ptr.vmem [resolvable:$true] %s42_s15 }
   0x8   :  { %45 = dma.hbm_to_vmem [thread:$0]  %s41_s13, 128, %s43_s15, [#allocation6]  }
   0x9   :  { %s66_s19 = sshll.u32 %s15937_s8, 4  ;;  %s88_s22 = sshll.u32 %s16719_s6, 4  ;;  %s67_s19 = int_to_ptr.vmem [resolvable:$true] %s66_s19  ;;  %s89_s22 = int_to_ptr.hbm [resolvable:$true] %s88_s22 }
   0xa   :  { %69 = dma.hbm_to_vmem [thread:$0]  %s65_s18, 256, %s67_s19, [#allocation9]  }
   0xb   :  { %s26_s24 = sshll.u32 %s16714_s1, 4  ;;  %s15938_s25 = smov [#allocation11]   ;;  %s27_s24 = int_to_ptr.hbm [resolvable:$true] %s26_s24 }
   0xc   :  { %s90_s26 = sshll.u32 %s15938_s25, 4  ;;  %s15939_s4 = smov [#allocation3]   ;;  %s91_s26 = int_to_ptr.vmem [resolvable:$true] %s90_s26 }
   0xd   :  { %93 = dma.hbm_to_vmem [thread:$0]  %s89_s22, 16, %s91_s26, [#allocation12]  }
   0xe   :  { %s28_s27 = sshll.u32 %s15939_s4, 4  ;;  %s15940_s28 = smov 512   ;;  %s29_s27 = int_to_ptr.vmem [resolvable:$true] %s28_s27 }
   0xf   :  { %s15941_s29 = smov 32   ;;  %s50_s10 = sshll.u32 %s16716_s3, 4  ;;  %s51_s10 = int_to_ptr.hbm [resolvable:$true] %s50_s10 }
  0x10   :  { %34 = dma.hbm_to_vmem [thread:$0]  %s27_s24, 4096, %s29_s27, [#allocation4], %s15940_s28, %s15940_s28, %s15941_s29  }
  0x11   :  { %s15942_s11 = smov [#allocation7]   ;;  %s74_s14 = sshll.u32 %s16718_s5, 4  ;;  %s75_s14 = int_to_ptr.hbm [resolvable:$true] %s74_s14 }
  0x12   :  { %s52_s12 = sshll.u32 %s15942_s11, 4  ;;  %s15943_s15 = smov 1024   ;;  %s53_s12 = int_to_ptr.vmem [resolvable:$true] %s52_s12 }
  0x13   :  { %s15944_s16 = smov 64   ;;  %s15945_s17 = smov [#allocation10]  }
  0x14   :  { %58 = dma.hbm_to_vmem [thread:$0]  %s51_s10, 131072, %s53_s12, [#allocation6], %s15943_s15, %s15943_s15, %s15944_s16  }
  0x15   :  { %s76_s18 = sshll.u32 %s15945_s17, 4  ;;  %s99_s20 = sshll.u32 %s16720_s7, 4  ;;  %s77_s18 = int_to_ptr.vmem [resolvable:$true] %s76_s18  ;;  %s100_s20 = int_to_ptr.hbm [resolvable:$true] %s99_s20 }
  0x16   :  { %s15946_s3 = smov 4   ;;  %s15947_s21 = smov [#allocation13]  }
  0x17   :  { %82 = dma.hbm_to_vmem [thread:$0]  %s75_s14, 16384, %s77_s18, [#allocation9], %s15944_s16, %s15944_s16, %s15946_s3  }
  0x18   :  { %s101_s22 = sshll.u32 %s15947_s21, 4  ;;  %s102_s22 = int_to_ptr.vmem [resolvable:$true] %s101_s22 }
  0x19   :  { %104 = dma.hbm_to_vmem [thread:$0]  %s100_s20, 16, %s102_s22, [#allocation12]  }
  0x1a   :  { %15928 = dma.done.wait [#allocation4], 4096  }
  0x1b   :  { %15929 = vsyncadd [#allocation4], 4294963200 }
  0x1c   :  { %15930 = dma.done.wait [#allocation6], 131200  }
  0x1d   :  { %15931 = vsyncadd [#allocation6], 4294836096 }
  0x1e   :  { %15932 = dma.done.wait [#allocation9], 16640  }
  0x1f   :  { %15933 = vsyncadd [#allocation9], 4294950656 }
  0x20   :  { %15934 = dma.done.wait [#allocation12], 32  }
  0x21   :  { %15935 = vsyncadd [#allocation12], 4294967264  ;;  %v9905_v1 = vld [vmem:[#allocation3 + $0xc0] sm:$0xf]  ;;  %v14576_v3 = vld [vmem:[#allocation3 + $0xc4] sm:$0xf] }
  0x22   :  { %v14580_v2 = vld [vmem:[#allocation3 + $0xdc] sm:$0xf0]  ;;  %v9907_v5 = vld [vmem:[#allocation3 + $0xe0] sm:$0xf0]  ;;  %v9913_v6 = vld [vmem:[#allocation3 + $0xc8] sm:$0xf] }
  0x23   :  { %v9906_v4 = vor.u32 %v14580_v2, %v9905_v1  ;;  %v14581_v7 = vld [vmem:[#allocation3 + $0xe4] sm:$0xf0]  ;;  %v9910_v8 = vor.u32 %v14576_v3, %v9907_v5  ;;  %v14577_v10 = vld [vmem:[#allocation3 + $0xcc] sm:$0xf]  ;;  %v9873_v12 = vld [vmem:[#allocation3 + $0x80] sm:$0xf] }
  0x24   :  { %v9914_v9 = vor.u32 %v14581_v7, %v9913_v6  ;;  %v9915_v11 = vld [vmem:[#allocation3 + $0xe8] sm:$0xf0]  ;;  %v14572_v14 = vld [vmem:[#allocation3 + $0x9c] sm:$0xf0]  ;;  %v14568_v15 = vld [vmem:[#allocation3 + $0x84] sm:$0xf] }
  0x25   :  { %361 = vmatpush.bf16.msra.mxu0 %v9906_v4  ;;  %v9918_v13 = vor.u32 %v14577_v10, %v9915_v11  ;;  %v9875_v16 = vld [vmem:[#allocation3 + $0xa0] sm:$0xf0]  ;;  %375 = vmatpush.bf16.msra.mxu1 %v9910_v8  ;;  %v9874_v17 = vor.u32 %v14572_v14, %v9873_v12  ;;  %v9881_v19 = vld [vmem:[#allocation3 + $0x88] sm:$0xf]  ;;  %v14569_v21 = vld [vmem:[#allocation3 + $0x8c] sm:$0xf] }
  0x26   :  { %389 = vmatpush.bf16.msra.mxu2 %v9914_v9  ;;  %v9878_v18 = vor.u32 %v14568_v15, %v9875_v16  ;;  %v14573_v20 = vld [vmem:[#allocation3 + $0xa4] sm:$0xf0]  ;;  %v9883_v23 = vld [vmem:[#allocation3 + $0xa8] sm:$0xf0]  ;;  %v9841_v24 = vld [vmem:[#allocation3 + $0x40] sm:$0xf] }
  0x27   :  { %403 = vmatpush.bf16.msra.mxu3 %v9918_v13  ;;  %v9882_v22 = vor.u32 %v14573_v20, %v9881_v19  ;;  %v14564_v25 = vld [vmem:[#allocation3 + $0x5c] sm:$0xf0]  ;;  %v9886_v26 = vor.u32 %v14569_v21, %v9883_v23  ;;  %v14560_v27 = vld [vmem:[#allocation3 + $0x44] sm:$0xf]  ;;  %v9849_v29 = vld [vmem:[#allocation3 + $0x48] sm:$0xf] }
  0x28   :  { %v9843_v28 = vld [vmem:[#allocation3 + $0x60] sm:$0xf0]  ;;  %v9842_v30 = vor.u32 %v14564_v25, %v9841_v24  ;;  %v14565_v31 = vld [vmem:[#allocation3 + $0x64] sm:$0xf0]  ;;  %v14561_v32 = vld [vmem:[#allocation3 + $0x4c] sm:$0xf] }
  0x29   :  { %362 = vmatpush.bf16.msra.mxu0 %v9874_v17  ;;  %v9851_v33 = vld [vmem:[#allocation3 + $0x68] sm:$0xf0]  ;;  %376 = vmatpush.bf16.msra.mxu1 %v9878_v18  ;;  %v9846_v34 = vor.u32 %v14560_v27, %v9843_v28  ;;  %v9850_v35 = vor.u32 %v14565_v31, %v9849_v29  ;;  %v9809_v36 = vld [vmem:[#allocation3] sm:$0xf]  ;;  %v14552_v38 = vld [vmem:[#allocation3 + $0x4] sm:$0xf] }
  0x2a   :  { %390 = vmatpush.bf16.msra.mxu2 %v9882_v22  ;;  %v14556_v37 = vld [vmem:[#allocation3 + $0x1c] sm:$0xf0]  ;;  %v9854_v39 = vor.u32 %v14561_v32, %v9851_v33  ;;  %v9811_v40 = vld [vmem:[#allocation3 + $0x20] sm:$0xf0]  ;;  %v9817_v41 = vld [vmem:[#allocation3 + $0x8] sm:$0xf] }
  0x2b   :  { %404 = vmatpush.bf16.msra.mxu3 %v9886_v26  ;;  %v14557_v42 = vld [vmem:[#allocation3 + $0x24] sm:$0xf0]  ;;  %v14553_v43 = vld [vmem:[#allocation3 + $0xc] sm:$0xf]  ;;  %v9810_v45 = vor.u32 %v14556_v37, %v9809_v36  ;;  %v9921_v46 = vld [vmem:[#allocation3 + $0xd0] sm:$0xf]  ;;  %v9814_v49 = vor.u32 %v14552_v38, %v9811_v40 }
  0x2c   :  { %v9819_v44 = vld [vmem:[#allocation3 + $0x28] sm:$0xf0]  ;;  %v14582_v47 = vld [vmem:[#allocation3 + $0xec] sm:$0xf0]  ;;  %v14578_v48 = vld [vmem:[#allocation3 + $0xd4] sm:$0xf]  ;;  %v9818_v50 = vor.u32 %v14557_v42, %v9817_v41 }
  0x2d   :  { %363 = vmatpush.bf16.msra.mxu0 %v9842_v30  ;;  %377 = vmatpush.bf16.msra.mxu1 %v9846_v34  ;;  %v16026_v51 = vld [vmem:[%s16713_s0] sm:$0xff]  ;;  %v9923_v52 = vld [vmem:[#allocation3 + $0xf0] sm:$0xf0]  ;;  %v9822_v53 = vor.u32 %v14553_v43, %v9819_v44  ;;  %v9922_v54 = vor.u32 %v14582_v47, %v9921_v46  ;;  %v9929_v55 = vld [vmem:[#allocation3 + $0xd8] sm:$0xf]  ;;  %vm353_vm0 = vcmask 523264  }
  0x2e   :  { %391 = vmatpush.bf16.msra.mxu2 %v9850_v35  ;;  %v14583_v56 = vld [vmem:[#allocation3 + $0xf4] sm:$0xf0]  ;;  %v14579_v57 = vld [vmem:[#allocation3 + $0xdc] sm:$0xf]  ;;  %v9926_v58 = vor.u32 %v14578_v48, %v9923_v52  ;;  %v9889_v60 = vld [vmem:[#allocation3 + $0x90] sm:$0xf] }
  0x2f   :  { %405 = vmatpush.bf16.msra.mxu3 %v9854_v39  ;;  %v9931_v59 = vld [vmem:[#allocation3 + $0xf8] sm:$0xf0]  ;;  %v14574_v61 = vld [vmem:[#allocation3 + $0xac] sm:$0xf0]  ;;  %v14570_v62 = vld [vmem:[#allocation3 + $0x94] sm:$0xf]  ;;  %v9930_v0 = vor.u32 %v14583_v56, %v9929_v55 }
  0x30   :  { %v9891_v63 = vld [vmem:[#allocation3 + $0xb0] sm:$0xf0]  ;;  %v9934_v1 = vor.u32 %v14579_v57, %v9931_v59  ;;  %v9890_v2 = vor.u32 %v14574_v61, %v9889_v60  ;;  %v9897_v3 = vld [vmem:[#allocation3 + $0x98] sm:$0xf]  ;;  %v14571_v5 = vld [vmem:[#allocation3 + $0x9c] sm:$0xf] }
  0x31   :  { %364 = vmatpush.bf16.msra.mxu0 %v9810_v45  ;;  %378 = vmatpush.bf16.msra.mxu1 %v9814_v49  ;;  %v14575_v4 = vld [vmem:[#allocation3 + $0xb4] sm:$0xf0]  ;;  %v9894_v6 = vor.u32 %v14570_v62, %v9891_v63  ;;  %v9899_v7 = vld [vmem:[#allocation3 + $0xb8] sm:$0xf0]  ;;  %v9857_v8 = vld [vmem:[#allocation3 + $0x50] sm:$0xf] }
  0x32   :  { %392 = vmatpush.bf16.msra.mxu2 %v9818_v50  ;;  %v14566_v9 = vld [vmem:[#allocation3 + $0x6c] sm:$0xf0]  ;;  %v14562_v10 = vld [vmem:[#allocation3 + $0x54] sm:$0xf]  ;;  %v9898_v12 = vor.u32 %v14575_v4, %v9897_v3  ;;  %v9865_v13 = vld [vmem:[#allocation3 + $0x58] sm:$0xf]  ;;  %v9902_v14 = vor.u32 %v14571_v5, %v9899_v7 }
  0x33   :  { %406 = vmatpush.bf16.msra.mxu3 %v9822_v53  ;;  %v9859_v11 = vld [vmem:[#allocation3 + $0x70] sm:$0xf0]  ;;  %v9858_v15 = vor.u32 %v14566_v9, %v9857_v8  ;;  %v14567_v16 = vld [vmem:[#allocation3 + $0x74] sm:$0xf0]  ;;  %v14563_v17 = vld [vmem:[#allocation3 + $0x5c] sm:$0xf] }
  0x34   :  { %9935 = vmatmul.msk.bf16.vlgmr.msra.gmra.mxu0 %vm353_vm0, %v16026_v51  ;;  %9936 = vmatmul.msk.bf16.vlgmr.msra.gmra.mxu1 %vm353_vm0, %v16026_v51  ;;  %v9867_v18 = vld [vmem:[#allocation3 + $0x78] sm:$0xf0]  ;;  %v9862_v19 = vor.u32 %v14562_v10, %v9859_v11  ;;  %v9825_v20 = vld [vmem:[#allocation3 + $0x10] sm:$0xf]  ;;  %v14554_v22 = vld [vmem:[#allocation3 + $0x14] sm:$0xf]  ;;  %v9866_v26 = vor.u32 %v14567_v16, %v9865_v13 }
  0x35   :  { %417 = vmatpush.bf16.msrb.mxu0 %v9922_v54  ;;  %431 = vmatpush.bf16.msrb.mxu1 %v9926_v58  ;;  %v14558_v21 = vld [vmem:[#allocation3 + $0x2c] sm:$0xf0]  ;;  %v9827_v23 = vld [vmem:[#allocation3 + $0x30] sm:$0xf0]  ;;  %v10393_v24 = vld [vmem:[#allocation7 + $0x380] sm:$0xf]  ;;  %v9870_v29 = vor.u32 %v14563_v17, %v9867_v18 }
  0x36   :  { %9937 = vmatmul.msk.bf16.vlgmr.msra.gmra.mxu2 %vm353_vm0, %v16026_v51  ;;  %9938 = vmatmul.msk.bf16.vlgmr.msra.gmra.mxu3 %vm353_vm0, %v16026_v51  ;;  %v14704_v25 = vld [vmem:[#allocation7 + $0x3bc] sm:$0xf0]  ;;  %v9826_v30 = vor.u32 %v14558_v21, %v9825_v20  ;;  %v9833_v31 = vld [vmem:[#allocation3 + $0x18] sm:$0xf]  ;;  %v14555_v33 = vld [vmem:[#allocation3 + $0x1c] sm:$0xf]  ;;  %v9830_v34 = vor.u32 %v14554_v22, %v9827_v23 }
  0x37   :  { %445 = vmatpush.bf16.msrb.mxu2 %v9930_v0  ;;  %459 = vmatpush.bf16.msrb.mxu3 %v9934_v1  ;;  %v10905_v27 = vld [vmem:[#allocation7 + $0x780] sm:$0xf]  ;;  %v14559_v32 = vld [vmem:[#allocation3 + $0x34] sm:$0xf0]  ;;  %v9835_v35 = vld [vmem:[#allocation3 + $0x38] sm:$0xf0]  ;;  %v10394_v36 = vor.u32 %v14704_v25, %v10393_v24 }
  0x38   :  { %v14832_v28 = vld [vmem:[#allocation7 + $0x7bc] sm:$0xf0]  ;;  %v9834_v42 = vor.u32 %v14559_v32, %v9833_v31  ;;  %v9838_v43 = vor.u32 %v14555_v33, %v9835_v35 }
  0x39   :  { %418 = vmatpush.bf16.msrb.mxu0 %v9890_v2  ;;  %432 = vmatpush.bf16.msrb.mxu1 %v9894_v6  ;;  %v11417_v37 = vld [vmem:[#allocation7 + $0xb80] sm:$0xf]  ;;  %v10906_v39 = vor.u32 %v14832_v28, %v10905_v27 }
  0x3a   :  { %v14960_v38 = vld [vmem:[#allocation7 + $0xbbc] sm:$0xf0] }
  0x3b   :  { %446 = vmatpush.bf16.msrb.mxu2 %v9898_v12  ;;  %460 = vmatpush.bf16.msrb.mxu3 %v9902_v14  ;;  %v11929_v40 = vld [vmem:[#allocation7 + $0xf80] sm:$0xf]  ;;  %v11418_v47 = vor.u32 %v14960_v38, %v11417_v37 }
  0x3c   :  { %v15088_v41 = vld [vmem:[#allocation7 + $0xfbc] sm:$0xf0] }
  0x3d   :  { %419 = vmatpush.bf16.msrb.mxu0 %v9858_v15  ;;  %433 = vmatpush.bf16.msrb.mxu1 %v9862_v19  ;;  %v10329_v44 = vld [vmem:[#allocation7 + $0x300] sm:$0xf]  ;;  %v11930_v49 = vor.u32 %v15088_v41, %v11929_v40 }
  0x3e   :  { %v14688_v45 = vld [vmem:[#allocation7 + $0x33c] sm:$0xf0] }
  0x3f   :  { %447 = vmatpush.bf16.msrb.mxu2 %v9866_v26  ;;  %461 = vmatpush.bf16.msrb.mxu3 %v9870_v29  ;;  %v10841_v46 = vld [vmem:[#allocation7 + $0x700] sm:$0xf]  ;;  %v10330_v55 = vor.u32 %v14688_v45, %v10329_v44 }
  0x40   :  { %v14816_v48 = vld [vmem:[#allocation7 + $0x73c] sm:$0xf0] }
  0x41   :  { %420 = vmatpush.bf16.msrb.mxu0 %v9826_v30  ;;  %434 = vmatpush.bf16.msrb.mxu1 %v9830_v34  ;;  %v11353_v50 = vld [vmem:[#allocation7 + $0xb00] sm:$0xf]  ;;  %v10842_v56 = vor.u32 %v14816_v48, %v10841_v46 }
  0x42   :  { %v14944_v52 = vld [vmem:[#allocation7 + $0xb3c] sm:$0xf0] }
  0x43   :  { %v11865_v53 = vld [vmem:[#allocation7 + $0xf00] sm:$0xf]  ;;  %448 = vmatpush.bf16.msrb.mxu2 %v9834_v42  ;;  %462 = vmatpush.bf16.msrb.mxu3 %v9838_v43  ;;  %v11354_v60 = vor.u32 %v14944_v52, %v11353_v50 }
  0x44   :  { %v15072_v54 = vld [vmem:[#allocation7 + $0xf3c] sm:$0xf0]  ;;  %9939 = vmatmul.msk.bf16.vlgmr.msrb.gmra.mxu0 %vm353_vm0, %v16026_v51  ;;  %9940 = vmatmul.msk.bf16.vlgmr.msrb.gmra.mxu1 %vm353_vm0, %v16026_v51 }
  0x45   :  { %6673 = vmatpush.bf16.msra.mxu0 %v10394_v36  ;;  %6687 = vmatpush.bf16.msra.mxu1 %v10906_v39  ;;  %v10265_v57 = vld [vmem:[#allocation7 + $0x280] sm:$0xf]  ;;  %v11866_v62 = vor.u32 %v15072_v54, %v11865_v53 }
  0x46   :  { %v14672_v58 = vld [vmem:[#allocation7 + $0x2bc] sm:$0xf0]  ;;  %9941 = vmatmul.msk.bf16.vlgmr.msrb.gmra.mxu2 %vm353_vm0, %v16026_v51  ;;  %9942 = vmatmul.msk.bf16.vlgmr.msrb.gmra.mxu3 %vm353_vm0, %v16026_v51 }
  0x47   :  { %6701 = vmatpush.bf16.msra.mxu2 %v11418_v47  ;;  %v10777_v59 = vld [vmem:[#allocation7 + $0x680] sm:$0xf]  ;;  %6715 = vmatpush.bf16.msra.mxu3 %v11930_v49  ;;  %v10266_v3 = vor.u32 %v14672_v58, %v10265_v57 }
  0x48   :  { %v14800_v61 = vld [vmem:[#allocation7 + $0x6bc] sm:$0xf0] }
  0x49   :  { %v11289_v63 = vld [vmem:[#allocation7 + $0xa80] sm:$0xf]  ;;  %6674 = vmatpush.bf16.msra.mxu0 %v10330_v55  ;;  %6688 = vmatpush.bf16.msra.mxu1 %v10842_v56  ;;  %v10778_v4 = vor.u32 %v14800_v61, %v10777_v59 }
  0x4a   :  { %v14928_v0 = vld [vmem:[#allocation7 + $0xabc] sm:$0xf0] }
  0x4b   :  { %v11801_v1 = vld [vmem:[#allocation7 + $0xe80] sm:$0xf]  ;;  %6702 = vmatpush.bf16.msra.mxu2 %v11354_v60  ;;  %v11290_v8 = vor.u32 %v14928_v0, %v11289_v63  ;;  %6716 = vmatpush.bf16.msra.mxu3 %v11866_v62 }
  0x4c   :  { %v15056_v2 = vld [vmem:[#allocation7 + $0xebc] sm:$0xf0] }
  0x4d   :  { %v10201_v5 = vld [vmem:[#allocation7 + $0x200] sm:$0xf]  ;;  %v11802_v10 = vor.u32 %v15056_v2, %v11801_v1  ;;  %6675 = vmatpush.bf16.msra.mxu0 %v10266_v3  ;;  %6689 = vmatpush.bf16.msra.mxu1 %v10778_v4 }
  0x4e   :  { %v14656_v6 = vld [vmem:[#allocation7 + $0x23c] sm:$0xf0] }
  0x4f   :  { %v10713_v7 = vld [vmem:[#allocation7 + $0x600] sm:$0xf]  ;;  %v10202_v15 = vor.u32 %v14656_v6, %v10201_v5  ;;  %6703 = vmatpush.bf16.msra.mxu2 %v11290_v8  ;;  %6717 = vmatpush.bf16.msra.mxu3 %v11802_v10 }
  0x50   :  { %v14784_v9 = vld [vmem:[#allocation7 + $0x63c] sm:$0xf0] }
  0x51   :  { %v11225_v11 = vld [vmem:[#allocation7 + $0xa00] sm:$0xf]  ;;  %v10714_v51 = vor.u32 %v14784_v9, %v10713_v7  ;;  %6676 = vmatpush.bf16.msra.mxu0 %v10202_v15 }
  0x52   :  { %v14912_v12 = vld [vmem:[#allocation7 + $0xa3c] sm:$0xf0] }
  0x53   :  { %v11737_v13 = vld [vmem:[#allocation7 + $0xe00] sm:$0xf]  ;;  %v11226_v19 = vor.u32 %v14912_v12, %v11225_v11  ;;  %6690 = vmatpush.bf16.msra.mxu1 %v10714_v51 }
  0x54   :  { %v15040_v14 = vld [vmem:[#allocation7 + $0xe3c] sm:$0xf0] }
  0x55   :  { %v10137_v16 = vld [vmem:[#allocation7 + $0x180] sm:$0xf]  ;;  %v11738_v21 = vor.u32 %v15040_v14, %v11737_v13  ;;  %6704 = vmatpush.bf16.msra.mxu2 %v11226_v19 }
  0x56   :  { %v14640_v17 = vld [vmem:[#allocation7 + $0x1bc] sm:$0xf0] }
  0x57   :  { %v10649_v18 = vld [vmem:[#allocation7 + $0x580] sm:$0xf]  ;;  %v10138_v26 = vor.u32 %v14640_v17, %v10137_v16  ;;  %6718 = vmatpush.bf16.msra.mxu3 %v11738_v21 }
  0x58   :  { %v14768_v20 = vld [vmem:[#allocation7 + $0x5bc] sm:$0xf0] }
  0x59   :  { %v11161_v22 = vld [vmem:[#allocation7 + $0x980] sm:$0xf]  ;;  %v10650_v27 = vor.u32 %v14768_v20, %v10649_v18  ;;  %6677 = vmatpush.bf16.msra.mxu0 %v10138_v26 }
  0x5a   :  { %v14896_v23 = vld [vmem:[#allocation7 + $0x9bc] sm:$0xf0] }
  0x5b   :  { %v11673_v24 = vld [vmem:[#allocation7 + $0xd80] sm:$0xf]  ;;  %v11162_v31 = vor.u32 %v14896_v23, %v11161_v22  ;;  %6691 = vmatpush.bf16.msra.mxu1 %v10650_v27 }
  0x5c   :  { %v15024_v25 = vld [vmem:[#allocation7 + $0xdbc] sm:$0xf0] }
  0x5d   :  { %v10073_v28 = vld [vmem:[#allocation7 + $0x100] sm:$0xf]  ;;  %v11674_v33 = vor.u32 %v15024_v25, %v11673_v24  ;;  %6705 = vmatpush.bf16.msra.mxu2 %v11162_v31 }
  0x5e   :  { %v14624_v29 = vld [vmem:[#allocation7 + $0x13c] sm:$0xf0] }
  0x5f   :  { %v10585_v30 = vld [vmem:[#allocation7 + $0x500] sm:$0xf]  ;;  %v10074_v38 = vor.u32 %v14624_v29, %v10073_v28  ;;  %6719 = vmatpush.bf16.msra.mxu3 %v11674_v33 }
  0x60   :  { %v14752_v32 = vld [vmem:[#allocation7 + $0x53c] sm:$0xf0] }
  0x61   :  { %v11097_v34 = vld [vmem:[#allocation7 + $0x900] sm:$0xf]  ;;  %v10586_v40 = vor.u32 %v14752_v32, %v10585_v30  ;;  %6678 = vmatpush.bf16.msra.mxu0 %v10074_v38 }
  0x62   :  { %v14880_v35 = vld [vmem:[#allocation7 + $0x93c] sm:$0xf0] }
  0x63   :  { %v11609_v36 = vld [vmem:[#allocation7 + $0xd00] sm:$0xf]  ;;  %v11098_v44 = vor.u32 %v14880_v35, %v11097_v34  ;;  %6692 = vmatpush.bf16.msra.mxu1 %v10586_v40 }
  0x64   :  { %v15008_v37 = vld [vmem:[#allocation7 + $0xd3c] sm:$0xf0] }
  0x65   :  { %v10009_v39 = vld [vmem:[#allocation7 + $0x80] sm:$0xf]  ;;  %v11610_v45 = vor.u32 %v15008_v37, %v11609_v36  ;;  %6706 = vmatpush.bf16.msra.mxu2 %v11098_v44 }
  0x66   :  { %v14608_v41 = vld [vmem:[#allocation7 + $0xbc] sm:$0xf0] }
  0x67   :  { %v10521_v42 = vld [vmem:[#allocation7 + $0x480] sm:$0xf]  ;;  %v10010_v50 = vor.u32 %v14608_v41, %v10009_v39  ;;  %6720 = vmatpush.bf16.msra.mxu3 %v11610_v45 }
  0x68   :  { %v14736_v43 = vld [vmem:[#allocation7 + $0x4bc] sm:$0xf0] }
  0x69   :  { %v11033_v46 = vld [vmem:[#allocation7 + $0x880] sm:$0xf]  ;;  %v10522_v54 = vor.u32 %v14736_v43, %v10521_v42  ;;  %6679 = vmatpush.bf16.msra.mxu0 %v10010_v50 }
  0x6a   :  { %v14864_v47 = vld [vmem:[#allocation7 + $0x8bc] sm:$0xf0] }
  0x6b   :  { %v11545_v48 = vld [vmem:[#allocation7 + $0xc80] sm:$0xf]  ;;  %v11034_v58 = vor.u32 %v14864_v47, %v11033_v46  ;;  %6693 = vmatpush.bf16.msra.mxu1 %v10522_v54 }
  0x6c   :  { %v14992_v49 = vld [vmem:[#allocation7 + $0xcbc] sm:$0xf0] }
  0x6d   :  { %v9945_v52 = vld [vmem:[#allocation7] sm:$0xf]  ;;  %v11546_v62 = vor.u32 %v14992_v49, %v11545_v48  ;;  %6707 = vmatpush.bf16.msra.mxu2 %v11034_v58 }
  0x6e   :  { %v14592_v53 = vld [vmem:[#allocation7 + $0x3c] sm:$0xf0] }
  0x6f   :  { %v10457_v55 = vld [vmem:[#allocation7 + $0x400] sm:$0xf]  ;;  %v9946_v2 = vor.u32 %v14592_v53, %v9945_v52  ;;  %6721 = vmatpush.bf16.msra.mxu3 %v11546_v62 }
  0x70   :  { %v14720_v56 = vld [vmem:[#allocation7 + $0x43c] sm:$0xf0] }
  0x71   :  { %v12441_v57 = vld [vmem:[#allocation7 + $0x1380] sm:$0xf]  ;;  %v10458_v6 = vor.u32 %v14720_v56, %v10457_v55  ;;  %6680 = vmatpush.bf16.msra.mxu0 %v9946_v2 }
  0x72   :  { %v15216_v59 = vld [vmem:[#allocation7 + $0x13bc] sm:$0xf0] }
  0x73   :  { %v12953_v60 = vld [vmem:[#allocation7 + $0x1780] sm:$0xf]  ;;  %v12442_v7 = vor.u32 %v15216_v59, %v12441_v57  ;;  %6694 = vmatpush.bf16.msra.mxu1 %v10458_v6 }
  0x74   :  { %v15344_v61 = vld [vmem:[#allocation7 + $0x17bc] sm:$0xf0] }
  0x75   :  { %v10969_v63 = vld [vmem:[#allocation7 + $0x800] sm:$0xf]  ;;  %v12954_v10 = vor.u32 %v15344_v61, %v12953_v60  ;;  %6729 = vmatpush.bf16.msrb.mxu0 %v12442_v7 }
  0x76   :  { %v14848_v0 = vld [vmem:[#allocation7 + $0x83c] sm:$0xf0] }
  0x77   :  { %v11481_v1 = vld [vmem:[#allocation7 + $0xc00] sm:$0xf]  ;;  %v10970_v13 = vor.u32 %v14848_v0, %v10969_v63  ;;  %6743 = vmatpush.bf16.msrb.mxu1 %v12954_v10 }
  0x78   :  { %v14976_v3 = vld [vmem:[#allocation7 + $0xc3c] sm:$0xf0] }
  0x79   :  { %v13465_v4 = vld [vmem:[#allocation7 + $0x1b80] sm:$0xf]  ;;  %v11482_v51 = vor.u32 %v14976_v3, %v11481_v1  ;;  %6708 = vmatpush.bf16.msra.mxu2 %v10970_v13 }
  0x7a   :  { %v15472_v5 = vld [vmem:[#allocation7 + $0x1bbc] sm:$0xf0] }
  0x7b   :  { %v13977_v8 = vld [vmem:[#allocation7 + $0x1f80] sm:$0xf]  ;;  %v13466_v16 = vor.u32 %v15472_v5, %v13465_v4  ;;  %6722 = vmatpush.bf16.msra.mxu3 %v11482_v51 }
  0x7c   :  { %v15600_v9 = vld [vmem:[#allocation7 + $0x1fbc] sm:$0xf0] }
  0x7d   :  { %v12377_v11 = vld [vmem:[#allocation7 + $0x1300] sm:$0xf]  ;;  %v13978_v17 = vor.u32 %v15600_v9, %v13977_v8  ;;  %6757 = vmatpush.bf16.msrb.mxu2 %v13466_v16 }
  0x7e   :  { %v15200_v12 = vld [vmem:[#allocation7 + $0x133c] sm:$0xf0] }
  0x7f   :  { %v12889_v14 = vld [vmem:[#allocation7 + $0x1700] sm:$0xf]  ;;  %v12378_v20 = vor.u32 %v15200_v12, %v12377_v11  ;;  %6771 = vmatpush.bf16.msrb.mxu3 %v13978_v17 }
  0x80   :  { %v15328_v15 = vld [vmem:[#allocation7 + $0x173c] sm:$0xf0] }
  0x81   :  { %v13401_v18 = vld [vmem:[#allocation7 + $0x1b00] sm:$0xf]  ;;  %v12890_v23 = vor.u32 %v15328_v15, %v12889_v14  ;;  %6730 = vmatpush.bf16.msrb.mxu0 %v12378_v20 }
  0x82   :  { %v15456_v19 = vld [vmem:[#allocation7 + $0x1b3c] sm:$0xf0] }
  0x83   :  { %v13913_v21 = vld [vmem:[#allocation7 + $0x1f00] sm:$0xf]  ;;  %v13402_v28 = vor.u32 %v15456_v19, %v13401_v18  ;;  %6744 = vmatpush.bf16.msrb.mxu1 %v12890_v23 }
  0x84   :  { %v15584_v22 = vld [vmem:[#allocation7 + $0x1f3c] sm:$0xf0] }
  0x85   :  { %v12313_v24 = vld [vmem:[#allocation7 + $0x1280] sm:$0xf]  ;;  %v13914_v29 = vor.u32 %v15584_v22, %v13913_v21  ;;  %6758 = vmatpush.bf16.msrb.mxu2 %v13402_v28 }
  0x86   :  { %v15184_v25 = vld [vmem:[#allocation7 + $0x12bc] sm:$0xf0] }
  0x87   :  { %v12825_v26 = vld [vmem:[#allocation7 + $0x1680] sm:$0xf]  ;;  %v12314_v30 = vor.u32 %v15184_v25, %v12313_v24  ;;  %6772 = vmatpush.bf16.msrb.mxu3 %v13914_v29 }
  0x88   :  { %v15312_v27 = vld [vmem:[#allocation7 + $0x16bc] sm:$0xf0] }
  0x89   :  { %v12826_v31 = vor.u32 %v15312_v27, %v12825_v26  ;;  %v12249_v32 = vld [vmem:[#allocation7 + $0x1200] sm:$0xf]  ;;  %6731 = vmatpush.bf16.msrb.mxu0 %v12314_v30 }
  0x8a   :  { %v15168_v33 = vld [vmem:[#allocation7 + $0x123c] sm:$0xf0] }
  0x8b   :  { %v12761_v34 = vld [vmem:[#allocation7 + $0x1600] sm:$0xf]  ;;  %v12250_v36 = vor.u32 %v15168_v33, %v12249_v32  ;;  %6745 = vmatpush.bf16.msrb.mxu1 %v12826_v31 }
  0x8c   :  { %v15296_v35 = vld [vmem:[#allocation7 + $0x163c] sm:$0xf0] }
  0x8d   :  { %v12762_v37 = vor.u32 %v15296_v35, %v12761_v34  ;;  %6732 = vmatpush.bf16.msrb.mxu0 %v12250_v36  ;;  %v13337_v38 = vld [vmem:[#allocation7 + $0x1a80] sm:$0xf]  ;;  %v16044_v34 = vld [vmem:[#allocation5] sm:$0xff] }
  0x8e   :  { %v15440_v39 = vld [vmem:[#allocation7 + $0x1abc] sm:$0xf0]  ;;  %v172_v36 = vperm.slane %v16044_v34, 0 }
  0x8f   :  { %6746 = vmatpush.bf16.msrb.mxu1 %v12762_v37  ;;  %v13849_v40 = vld [vmem:[#allocation7 + $0x1e80] sm:$0xf]  ;;  %v13338_v41 = vor.u32 %v15440_v39, %v13337_v38  ;;  %v173_v38 = vperm.slane %v16044_v34, 1 }
  0x90   :  { %v15568_v42 = vld [vmem:[#allocation7 + $0x1ebc] sm:$0xf0] }
  0x91   :  { %v13850_v43 = vor.u32 %v15568_v42, %v13849_v40  ;;  %v12185_v44 = vld [vmem:[#allocation7 + $0x1180] sm:$0xf]  ;;  %6759 = vmatpush.bf16.msrb.mxu2 %v13338_v41 }
  0x92   :  { %v15152_v45 = vld [vmem:[#allocation7 + $0x11bc] sm:$0xf0] }
  0x93   :  { %v12697_v46 = vld [vmem:[#allocation7 + $0x1580] sm:$0xf]  ;;  %v12186_v47 = vor.u32 %v15152_v45, %v12185_v44  ;;  %6773 = vmatpush.bf16.msrb.mxu3 %v13850_v43 }
  0x94   :  { %v15280_v48 = vld [vmem:[#allocation7 + $0x15bc] sm:$0xf0] }
  0x95   :  { %v12698_v49 = vor.u32 %v15280_v48, %v12697_v46  ;;  %v13273_v50 = vld [vmem:[#allocation7 + $0x1a00] sm:$0xf]  ;;  %6733 = vmatpush.bf16.msrb.mxu0 %v12186_v47  ;;  %v14696_v47 = vld [vmem:[#allocation7 + $0x384] sm:$0xf] }
  0x96   :  { %v15424_v52 = vld [vmem:[#allocation7 + $0x1a3c] sm:$0xf0]  ;;  %v10395_v48 = vld [vmem:[#allocation7 + $0x3c0] sm:$0xf0] }
  0x97   :  { %v13274_v53 = vor.u32 %v15424_v52, %v13273_v50  ;;  %v13785_v54 = vld [vmem:[#allocation7 + $0x1e00] sm:$0xf]  ;;  %6747 = vmatpush.bf16.msrb.mxu1 %v12698_v49  ;;  %v174_v50 = vperm.slane %v16044_v34, 2 }
  0x98   :  { %v15552_v55 = vld [vmem:[#allocation7 + $0x1e3c] sm:$0xf0] }
  0x99   :  { %v13786_v56 = vor.u32 %v15552_v55, %v13785_v54  ;;  %v12121_v57 = vld [vmem:[#allocation7 + $0x1100] sm:$0xf]  ;;  %6760 = vmatpush.bf16.msrb.mxu2 %v13274_v53  ;;  %v14824_v53 = vld [vmem:[#allocation7 + $0x784] sm:$0xf]  ;;  %v175_v55 = vperm.slane %v16044_v34, 3 }
  0x9a   :  { %v15136_v58 = vld [vmem:[#allocation7 + $0x113c] sm:$0xf0]  ;;  %v10907_v54 = vld [vmem:[#allocation7 + $0x7c0] sm:$0xf0] }
  0x9b   :  { %v12633_v59 = vld [vmem:[#allocation7 + $0x1500] sm:$0xf]  ;;  %v12122_v60 = vor.u32 %v15136_v58, %v12121_v57  ;;  %6774 = vmatpush.bf16.msrb.mxu3 %v13786_v56  ;;  %v10398_v58 = vor.u32 %v14696_v47, %v10395_v48 }
  0x9c   :  { %v15264_v61 = vld [vmem:[#allocation7 + $0x153c] sm:$0xf0] }
  0x9d   :  { %v12634_v62 = vor.u32 %v15264_v61, %v12633_v59  ;;  %v13209_v63 = vld [vmem:[#allocation7 + $0x1980] sm:$0xf]  ;;  %6734 = vmatpush.bf16.msrb.mxu0 %v12122_v60  ;;  %v10910_v60 = vor.u32 %v14824_v53, %v10907_v54  ;;  %v14680_v61 = vld [vmem:[#allocation7 + $0x304] sm:$0xf] }
  0x9e   :  { %v15408_v0 = vld [vmem:[#allocation7 + $0x19bc] sm:$0xf0]  ;;  %v11803_v53 = vld [vmem:[#allocation7 + $0xec0] sm:$0xf0] }
  0x9f   :  { %v13721_v1 = vld [vmem:[#allocation7 + $0x1d80] sm:$0xf]  ;;  %v13210_v2 = vor.u32 %v15408_v0, %v13209_v63  ;;  %6748 = vmatpush.bf16.msrb.mxu1 %v12634_v62  ;;  %v10331_v62 = vld [vmem:[#allocation7 + $0x340] sm:$0xf0] }
  0xa0   :  { %v15536_v3 = vld [vmem:[#allocation7 + $0x1dbc] sm:$0xf0] }
  0xa1   :  { %v13722_v4 = vor.u32 %v15536_v3, %v13721_v1  ;;  %v12057_v5 = vld [vmem:[#allocation7 + $0x1080] sm:$0xf]  ;;  %6761 = vmatpush.bf16.msrb.mxu2 %v13210_v2  ;;  %v14808_v1 = vld [vmem:[#allocation7 + $0x704] sm:$0xf] }
  0xa2   :  { %v15120_v6 = vld [vmem:[#allocation7 + $0x10bc] sm:$0xf0]  ;;  %v10843_v2 = vld [vmem:[#allocation7 + $0x740] sm:$0xf0] }
  0xa3   :  { %v12058_v7 = vor.u32 %v15120_v6, %v12057_v5  ;;  %v12569_v8 = vld [vmem:[#allocation7 + $0x1480] sm:$0xf]  ;;  %6775 = vmatpush.bf16.msrb.mxu3 %v13722_v4  ;;  %v14952_v5 = vld [vmem:[#allocation7 + $0xb84] sm:$0xf] }
  0xa4   :  { %v15248_v9 = vld [vmem:[#allocation7 + $0x14bc] sm:$0xf0] }
  0xa5   :  { %v12570_v10 = vor.u32 %v15248_v9, %v12569_v8  ;;  %v13145_v11 = vld [vmem:[#allocation7 + $0x1900] sm:$0xf]  ;;  %6735 = vmatpush.bf16.msrb.mxu0 %v12058_v7  ;;  %v176_v8 = vperm.slane %v16044_v34, 4 }
  0xa6   :  { %v15392_v12 = vld [vmem:[#allocation7 + $0x193c] sm:$0xf0] }
  0xa7   :  { %v13657_v13 = vld [vmem:[#allocation7 + $0x1d00] sm:$0xf]  ;;  %v13146_v14 = vor.u32 %v15392_v12, %v13145_v11  ;;  %6749 = vmatpush.bf16.msrb.mxu1 %v12570_v10  ;;  %v177_v10 = vperm.slane %v16044_v34, 5  ;;  %v10334_v11 = vor.u32 %v14680_v61, %v10331_v62  ;;  %v11419_v12 = vld [vmem:[#allocation7 + $0xbc0] sm:$0xf0] }
  0xa8   :  { %v15520_v15 = vld [vmem:[#allocation7 + $0x1d3c] sm:$0xf0]  ;;  %v10139_v61 = vld [vmem:[#allocation7 + $0x1c0] sm:$0xf0] }
  0xa9   :  { %v13658_v51 = vor.u32 %v15520_v15, %v13657_v13  ;;  %v11993_v16 = vld [vmem:[#allocation7 + $0x1000] sm:$0xf]  ;;  %6762 = vmatpush.bf16.msrb.mxu2 %v13146_v14  ;;  %v15080_v13 = vld [vmem:[#allocation7 + $0xf84] sm:$0xf] }
  0xaa   :  { %v15104_v17 = vld [vmem:[#allocation7 + $0x103c] sm:$0xf0] }
  0xab   :  { %v12505_v18 = vld [vmem:[#allocation7 + $0x1400] sm:$0xf]  ;;  %v11994_v19 = vor.u32 %v15104_v17, %v11993_v16  ;;  %6776 = vmatpush.bf16.msrb.mxu3 %v13658_v51  ;;  %v10846_v51 = vor.u32 %v14808_v1, %v10843_v2  ;;  %v11931_v16 = vld [vmem:[#allocation7 + $0xfc0] sm:$0xf0] }
  0xac   :  { %v15232_v20 = vld [vmem:[#allocation7 + $0x143c] sm:$0xf0]  ;;  %v14664_v17 = vld [vmem:[#allocation7 + $0x284] sm:$0xf] }
  0xad   :  { %v12506_v21 = vor.u32 %v15232_v20, %v12505_v18  ;;  %v13081_v22 = vld [vmem:[#allocation7 + $0x1880] sm:$0xf]  ;;  %6736 = vmatpush.bf16.msrb.mxu0 %v11994_v19  ;;  %v10267_v18 = vld [vmem:[#allocation7 + $0x2c0] sm:$0xf0] }
  0xae   :  { %v15376_v23 = vld [vmem:[#allocation7 + $0x18bc] sm:$0xf0]  ;;  %v14760_v1 = vld [vmem:[#allocation7 + $0x584] sm:$0xf] }
  0xaf   :  { %v13593_v24 = vld [vmem:[#allocation7 + $0x1c80] sm:$0xf]  ;;  %6750 = vmatpush.bf16.msrb.mxu1 %v12506_v21  ;;  %v13082_v26 = vor.u32 %v15376_v23, %v13081_v22  ;;  %v14792_v21 = vld [vmem:[#allocation7 + $0x684] sm:$0xf] }
  0xb0   :  { %v15504_v25 = vld [vmem:[#allocation7 + $0x1cbc] sm:$0xf0]  ;;  %v10779_v22 = vld [vmem:[#allocation7 + $0x6c0] sm:$0xf0] }
  0xb1   :  { %v13594_v27 = vor.u32 %v15504_v25, %v13593_v24  ;;  %6763 = vmatpush.bf16.msrb.mxu2 %v13082_v26  ;;  %v13017_v28 = vld [vmem:[#allocation7 + $0x1800] sm:$0xf]  ;;  %v366_v35 = vpop.f32.mrf.mxu0  ;;  %v380_v37 = vpop.f32.mrf.mxu1  ;;  %v11422_v25 = vor.u32 %v14952_v5, %v11419_v12  ;;  %v10651_v2 = vld [vmem:[#allocation7 + $0x5c0] sm:$0xf0] }
  0xb2   :  { %v15360_v29 = vld [vmem:[#allocation7 + $0x183c] sm:$0xf0]  ;;  %v367_v39 = vadd.f32 %v366_v35, %v172_v36  ;;  %v381_v40 = vadd.f32 %v380_v37, %v173_v38  ;;  %v10782_v35 = vor.u32 %v14792_v21, %v10779_v22  ;;  %v14648_v37 = vld [vmem:[#allocation7 + $0x204] sm:$0xf] }
  0xb3   :  { %6777 = vmatpush.bf16.msrb.mxu3 %v13594_v27  ;;  %v13018_v30 = vor.u32 %v15360_v29, %v13017_v28  ;;  %v13529_v31 = vld [vmem:[#allocation7 + $0x1c00] sm:$0xf]  ;;  %v11934_v27 = vor.u32 %v15080_v13, %v11931_v16  ;;  %v10270_v28 = vor.u32 %v14664_v17, %v10267_v18  ;;  %v14936_v29 = vld [vmem:[#allocation7 + $0xb04] sm:$0xf]  ;;  %v10654_v13 = vor.u32 %v14760_v1, %v10651_v2 }
  0xb4   :  { %v15488_v32 = vld [vmem:[#allocation7 + $0x1c3c] sm:$0xf0]  ;;  %v469_v44 = vmax.f32 %v367_v39, 0.0  ;;  %v470_v49 = vmax.f32 %v381_v40, 0.0  ;;  %v14776_v40 = vld [vmem:[#allocation7 + $0x604] sm:$0xf] }
  0xb5   :  { %v13530_v33 = vor.u32 %v15488_v32, %v13529_v31  ;;  %6764 = vmatpush.bf16.msrb.mxu2 %v13018_v30  ;;  %v11355_v30 = vld [vmem:[#allocation7 + $0xb40] sm:$0xf0] }
  0xb6   :  { %v15064_v31 = vld [vmem:[#allocation7 + $0xf04] sm:$0xf] }
  0xb7   :  { %6778 = vmatpush.bf16.msrb.mxu3 %v13530_v33  ;;  %v10075_v16 = vld [vmem:[#allocation7 + $0x140] sm:$0xf0] }
  0xb8   :  { %v14744_v17 = vld [vmem:[#allocation7 + $0x504] sm:$0xf] }
  0xb9   :  { %v394_v41 = vpop.f32.mrf.mxu2  ;;  %v408_v42 = vpop.f32.mrf.mxu3  ;;  %v10587_v18 = vld [vmem:[#allocation7 + $0x540] sm:$0xf0] }
  0xba   :  { %v368_v43 = vpop.f32.mrf.mxu0  ;;  %v382_v46 = vpop.f32.mrf.mxu1  ;;  %v395_v63 = vadd.f32 %v394_v41, %v174_v50  ;;  %v409_v3 = vadd.f32 %v408_v42, %v175_v55  ;;  %v10715_v41 = vld [vmem:[#allocation7 + $0x640] sm:$0xf0]  ;;  %v178_v42 = vperm.slane %v16044_v34, 6 }
  0xbb   :  { %v369_v45 = vadd.f32 %v368_v43, %v172_v36  ;;  %v383_v52 = vadd.f32 %v382_v46, %v173_v38  ;;  %v11867_v36 = vld [vmem:[#allocation7 + $0xf40] sm:$0xf0] }
  0xbc   :  { %v471_v19 = vmax.f32 %v395_v63, 0.0  ;;  %v472_v23 = vmax.f32 %v409_v3, 0.0  ;;  %v10203_v38 = vld [vmem:[#allocation7 + $0x240] sm:$0xf0]  ;;  %v11870_v48 = vor.u32 %v15064_v31, %v11867_v36 }
  0xbd   :  { %v477_v56 = vmax.f32 %v369_v45, 0.0  ;;  %v478_v57 = vmax.f32 %v383_v52, 0.0  ;;  %v14920_v45 = vld [vmem:[#allocation7 + $0xa84] sm:$0xf] }
  0xbe   :  { %v15048_v52 = vld [vmem:[#allocation7 + $0xe84] sm:$0xf] }
  0xbf   :  { %v16050_v59 = vpack.c.bf16 %v477_v56, %v469_v44  ;;  %v16052_v0 = vpack.c.bf16 %v478_v57, %v470_v49  ;;  %v11358_v44 = vor.u32 %v14936_v29, %v11355_v30  ;;  %v10206_v49 = vor.u32 %v14648_v37, %v10203_v38  ;;  %v14888_v21 = vld [vmem:[#allocation7 + $0x984] sm:$0xf] }
  0xc0   :  { %v11163_v22 = vld [vmem:[#allocation7 + $0x9c0] sm:$0xf0] }
  0xc1   :  { %v396_v4 = vpop.f32.mrf.mxu2  ;;  %6681 = vmatmul.bf16.vlgmr.msra.gmra.mxu0 %v16050_v59  ;;  %v410_v7 = vpop.f32.mrf.mxu3  ;;  %6695 = vmatmul.bf16.vlgmr.msra.gmra.mxu1 %v16052_v0  ;;  %v11675_v29 = vld [vmem:[#allocation7 + $0xdc0] sm:$0xf0] }
  0xc2   :  { %v397_v6 = vadd.f32 %v396_v4, %v174_v50  ;;  %6785 = vmatpush.bf16.msra.mxu0 %v10398_v58  ;;  %v422_v9 = vpop.f32.mrf.mxu0  ;;  %v411_v14 = vadd.f32 %v410_v7, %v175_v55  ;;  %6799 = vmatpush.bf16.msra.mxu1 %v10910_v60  ;;  %v436_v15 = vpop.f32.mrf.mxu1  ;;  %v11291_v50 = vld [vmem:[#allocation7 + $0xac0] sm:$0xf0]  ;;  %v179_v55 = vperm.slane %v16044_v34, 7  ;;  %v10718_v58 = vor.u32 %v14776_v40, %v10715_v41 }
  0xc3   :  { %v423_v33 = vadd.f32 %v422_v9, %v176_v8  ;;  %v437_v39 = vadd.f32 %v436_v15, %v177_v10  ;;  %v14632_v60 = vld [vmem:[#allocation7 + $0x184] sm:$0xf]  ;;  %v11294_v4 = vor.u32 %v14920_v45, %v11291_v50  ;;  %v11806_v7 = vor.u32 %v15048_v52, %v11803_v53 }
  0xc4   :  { %v479_v20 = vmax.f32 %v397_v6, 0.0  ;;  %v480_v24 = vmax.f32 %v411_v14, 0.0  ;;  %v14904_v9 = vld [vmem:[#allocation7 + $0xa04] sm:$0xf]  ;;  %v10142_v12 = vor.u32 %v14632_v60, %v10139_v61 }
  0xc5   :  { %v473_v54 = vmax.f32 %v423_v33, 0.0  ;;  %v474_v62 = vmax.f32 %v437_v39, 0.0  ;;  %v11227_v34 = vld [vmem:[#allocation7 + $0xa40] sm:$0xf0] }
  0xc6   :  { %v16058_v26 = vpack.c.bf16 %v479_v20, %v471_v19  ;;  %6786 = vmatpush.bf16.msra.mxu0 %v10334_v11  ;;  %v16060_v32 = vpack.c.bf16 %v480_v24, %v472_v23  ;;  %6800 = vmatpush.bf16.msra.mxu1 %v10846_v51  ;;  %v15032_v14 = vld [vmem:[#allocation7 + $0xe04] sm:$0xf]  ;;  %v11230_v20 = vor.u32 %v14904_v9, %v11227_v34 }
  0xc7   :  { %v14616_v15 = vld [vmem:[#allocation7 + $0x104] sm:$0xf] }
  0xc8   :  { %6709 = vmatmul.bf16.vlgmr.msra.gmra.mxu2 %v16058_v26  ;;  %6723 = vmatmul.bf16.vlgmr.msra.gmra.mxu3 %v16060_v32  ;;  %v10078_v33 = vor.u32 %v14616_v15, %v10075_v16  ;;  %v14600_v36 = vld [vmem:[#allocation7 + $0x84] sm:$0xf] }
  0xc9   :  { %6813 = vmatpush.bf16.msra.mxu2 %v11422_v25  ;;  %v450_v43 = vpop.f32.mrf.mxu2  ;;  %6827 = vmatpush.bf16.msra.mxu3 %v11934_v27  ;;  %v464_v46 = vpop.f32.mrf.mxu3  ;;  %v10011_v37 = vld [vmem:[#allocation7 + $0xc0] sm:$0xf0] }
  0xca   :  { %6787 = vmatpush.bf16.msra.mxu0 %v10270_v28  ;;  %v424_v47 = vpop.f32.mrf.mxu0  ;;  %6801 = vmatpush.bf16.msra.mxu1 %v10782_v35  ;;  %v438_v57 = vpop.f32.mrf.mxu1  ;;  %v451_v5 = vadd.f32 %v450_v43, %v178_v42  ;;  %v465_v11 = vadd.f32 %v464_v46, %v179_v55  ;;  %v15016_v28 = vld [vmem:[#allocation7 + $0xd84] sm:$0xf]  ;;  %v10590_v35 = vor.u32 %v14744_v17, %v10587_v18 }
  0xcb   :  { %v425_v56 = vadd.f32 %v424_v47, %v176_v8  ;;  %v439_v63 = vadd.f32 %v438_v57, %v177_v10  ;;  %v11739_v10 = vld [vmem:[#allocation7 + $0xe40] sm:$0xf0] }
  0xcc   :  { %v475_v23 = vmax.f32 %v451_v5, 0.0  ;;  %v11742_v27 = vor.u32 %v15032_v14, %v11739_v10  ;;  %v476_v30 = vmax.f32 %v465_v11, 0.0  ;;  %v14728_v39 = vld [vmem:[#allocation7 + $0x484] sm:$0xf] }
  0xcd   :  { %v481_v3 = vmax.f32 %v425_v56, 0.0  ;;  %6814 = vmatpush.bf16.msra.mxu2 %v11358_v44  ;;  %v482_v6 = vmax.f32 %v439_v63, 0.0  ;;  %6828 = vmatpush.bf16.msra.mxu3 %v11870_v48  ;;  %v10523_v40 = vld [vmem:[#allocation7 + $0x4c0] sm:$0xf0]  ;;  %v11678_v44 = vor.u32 %v15016_v28, %v11675_v29 }
  0xce   :  { %6788 = vmatpush.bf16.msra.mxu0 %v10206_v49  ;;  %6802 = vmatpush.bf16.msra.mxu1 %v10718_v58  ;;  %v14872_v45 = vld [vmem:[#allocation7 + $0x904] sm:$0xf]  ;;  %v10014_v49 = vor.u32 %v14600_v36, %v10011_v37  ;;  %v10526_v50 = vor.u32 %v14728_v39, %v10523_v40 }
  0xcf   :  { %v16066_v8 = vpack.c.bf16 %v481_v3, %v473_v54  ;;  %v16068_v51 = vpack.c.bf16 %v482_v6, %v474_v62  ;;  %v11099_v46 = vld [vmem:[#allocation7 + $0x940] sm:$0xf0] }
  0xd0   :  { %v15000_v47 = vld [vmem:[#allocation7 + $0xd04] sm:$0xf]  ;;  %v11102_v58 = vor.u32 %v14872_v45, %v11099_v46 }
  0xd1   :  { %6815 = vmatpush.bf16.msra.mxu2 %v11294_v4  ;;  %v452_v19 = vpop.f32.mrf.mxu2  ;;  %6737 = vmatmul.bf16.vlgmr.msrb.gmra.mxu0 %v16066_v8  ;;  %v466_v25 = vpop.f32.mrf.mxu3  ;;  %v11611_v52 = vld [vmem:[#allocation7 + $0xd40] sm:$0xf0] }
  0xd2   :  { %6829 = vmatpush.bf16.msra.mxu3 %v11806_v7  ;;  %v453_v24 = vadd.f32 %v452_v19, %v178_v42  ;;  %6751 = vmatmul.bf16.vlgmr.msrb.gmra.mxu1 %v16068_v51  ;;  %v467_v31 = vadd.f32 %v466_v25, %v179_v55  ;;  %v11166_v42 = vor.u32 %v14888_v21, %v11163_v22  ;;  %v14584_v53 = vld [vmem:[#allocation7 + $0x4] sm:$0xf] }
  0xd3   :  { %6789 = vmatpush.bf16.msra.mxu0 %v10142_v12  ;;  %6803 = vmatpush.bf16.msra.mxu1 %v10654_v13  ;;  %v9947_v54 = vld [vmem:[#allocation7 + $0x40] sm:$0xf0]  ;;  %v11614_v63 = vor.u32 %v15000_v47, %v11611_v52 }
  0xd4   :  { %v483_v38 = vmax.f32 %v453_v24, 0.0  ;;  %v484_v41 = vmax.f32 %v467_v31, 0.0  ;;  %v14712_v55 = vld [vmem:[#allocation7 + $0x404] sm:$0xf]  ;;  %v9950_v3 = vor.u32 %v14584_v53, %v9947_v54 }
  0xd5   :  { %6816 = vmatpush.bf16.msra.mxu2 %v11230_v20  ;;  %v10459_v56 = vld [vmem:[#allocation7 + $0x440] sm:$0xf0] }
  0xd6   :  { %v16072_v43 = vpack.c.bf16 %v483_v38, %v475_v23  ;;  %6830 = vmatpush.bf16.msra.mxu3 %v11742_v27  ;;  %v16074_v48 = vpack.c.bf16 %v484_v41, %v476_v30  ;;  %v15208_v57 = vld [vmem:[#allocation7 + $0x1384] sm:$0xf]  ;;  %v10462_v4 = vor.u32 %v14712_v55, %v10459_v56 }
  0xd7   :  { %6790 = vmatpush.bf16.msra.mxu0 %v10078_v33  ;;  %6804 = vmatpush.bf16.msra.mxu1 %v10590_v35  ;;  %v12443_v60 = vld [vmem:[#allocation7 + $0x13c0] sm:$0xf0] }
  0xd8   :  { %6765 = vmatmul.bf16.vlgmr.msrb.gmra.mxu2 %v16072_v43  ;;  %6779 = vmatmul.bf16.vlgmr.msrb.gmra.mxu3 %v16074_v48  ;;  %v15336_v61 = vld [vmem:[#allocation7 + $0x1784] sm:$0xf]  ;;  %v12446_v7 = vor.u32 %v15208_v57, %v12443_v60 }
  0xd9   :  { %6817 = vmatpush.bf16.msra.mxu2 %v11166_v42  ;;  %v12955_v62 = vld [vmem:[#allocation7 + $0x17c0] sm:$0xf0] }
  0xda   :  { %6831 = vmatpush.bf16.msra.mxu3 %v11678_v44  ;;  %v14856_v1 = vld [vmem:[#allocation7 + $0x884] sm:$0xf]  ;;  %v12958_v9 = vor.u32 %v15336_v61, %v12955_v62 }
  0xdb   :  { %v11035_v2 = vld [vmem:[#allocation7 + $0x8c0] sm:$0xf0]  ;;  %6791 = vmatpush.bf16.msra.mxu0 %v10014_v49  ;;  %6805 = vmatpush.bf16.msra.mxu1 %v10526_v50 }
  0xdc   :  { %v14984_v5 = vld [vmem:[#allocation7 + $0xc84] sm:$0xf]  ;;  %v11038_v11 = vor.u32 %v14856_v1, %v11035_v2 }
  0xdd   :  { %v11547_v6 = vld [vmem:[#allocation7 + $0xcc0] sm:$0xf0]  ;;  %6818 = vmatpush.bf16.msra.mxu2 %v11102_v58 }
  0xde   :  { %v15192_v34 = vld [vmem:[#allocation7 + $0x1304] sm:$0xf]  ;;  %6832 = vmatpush.bf16.msra.mxu3 %v11614_v63  ;;  %v11550_v10 = vor.u32 %v14984_v5, %v11547_v6 }
  0xdf   :  { %v12379_v12 = vld [vmem:[#allocation7 + $0x1340] sm:$0xf0]  ;;  %6792 = vmatpush.bf16.msra.mxu0 %v9950_v3  ;;  %6806 = vmatpush.bf16.msra.mxu1 %v10462_v4 }
  0xe0   :  { %v15320_v13 = vld [vmem:[#allocation7 + $0x1704] sm:$0xf]  ;;  %v12382_v21 = vor.u32 %v15192_v34, %v12379_v12 }
  0xe1   :  { %v12891_v14 = vld [vmem:[#allocation7 + $0x1740] sm:$0xf0]  ;;  %6819 = vmatpush.bf16.msra.mxu2 %v11038_v11 }
  0xe2   :  { %v14840_v15 = vld [vmem:[#allocation7 + $0x804] sm:$0xf]  ;;  %v12894_v22 = vor.u32 %v15320_v13, %v12891_v14  ;;  %6833 = vmatpush.bf16.msra.mxu3 %v11550_v10  ;;  %6793 = vmatmul.bf16.vlgmr.msra.gmra.mxu0 %v16050_v59 }
  0xe3   :  { %v10971_v16 = vld [vmem:[#allocation7 + $0x840] sm:$0xf0]  ;;  %6841 = vmatpush.bf16.msrb.mxu0 %v12446_v7  ;;  %6855 = vmatpush.bf16.msrb.mxu1 %v12958_v9 }
  0xe4   :  { %v14968_v17 = vld [vmem:[#allocation7 + $0xc04] sm:$0xf]  ;;  %v10974_v27 = vor.u32 %v14840_v15, %v10971_v16  ;;  %6807 = vmatmul.bf16.vlgmr.msra.gmra.mxu1 %v16052_v0 }
  0xe5   :  { %v11483_v18 = vld [vmem:[#allocation7 + $0xc40] sm:$0xf0] }
  0xe6   :  { %v15464_v19 = vld [vmem:[#allocation7 + $0x1b84] sm:$0xf]  ;;  %v11486_v31 = vor.u32 %v14968_v17, %v11483_v18  ;;  %6820 = vmatpush.bf16.msra.mxu2 %v10974_v27 }
  0xe7   :  { %v13467_v20 = vld [vmem:[#allocation7 + $0x1bc0] sm:$0xf0]  ;;  %6842 = vmatpush.bf16.msrb.mxu0 %v12382_v21  ;;  %6856 = vmatpush.bf16.msrb.mxu1 %v12894_v22 }
  0xe8   :  { %v15592_v23 = vld [vmem:[#allocation7 + $0x1f84] sm:$0xf]  ;;  %v13470_v33 = vor.u32 %v15464_v19, %v13467_v20  ;;  %6834 = vmatpush.bf16.msra.mxu3 %v11486_v31 }
  0xe9   :  { %v13979_v24 = vld [vmem:[#allocation7 + $0x1fc0] sm:$0xf0]  ;;  %6821 = vmatmul.bf16.vlgmr.msra.gmra.mxu2 %v16058_v26 }
  0xea   :  { %v15176_v25 = vld [vmem:[#allocation7 + $0x1284] sm:$0xf]  ;;  %v13982_v35 = vor.u32 %v15592_v23, %v13979_v24  ;;  %6869 = vmatpush.bf16.msrb.mxu2 %v13470_v33 }
  0xeb   :  { %v12315_v28 = vld [vmem:[#allocation7 + $0x12c0] sm:$0xf0]  ;;  %6835 = vmatmul.bf16.vlgmr.msra.gmra.mxu3 %v16060_v32 }
  0xec   :  { %v15304_v29 = vld [vmem:[#allocation7 + $0x1684] sm:$0xf]  ;;  %v12318_v38 = vor.u32 %v15176_v25, %v12315_v28  ;;  %6883 = vmatpush.bf16.msrb.mxu3 %v13982_v35 }
  0xed   :  { %v12827_v30 = vld [vmem:[#allocation7 + $0x16c0] sm:$0xf0] }
  0xee   :  { %v15448_v36 = vld [vmem:[#allocation7 + $0x1b04] sm:$0xf]  ;;  %v12830_v39 = vor.u32 %v15304_v29, %v12827_v30  ;;  %6843 = vmatpush.bf16.msrb.mxu0 %v12318_v38  ;;  %v10401_v38 = vld [vmem:[#allocation7 + $0x388] sm:$0xf] }
  0xef   :  { %v13403_v37 = vld [vmem:[#allocation7 + $0x1b40] sm:$0xf0] }
  0xf0   :  { %v15576_v40 = vld [vmem:[#allocation7 + $0x1f04] sm:$0xf]  ;;  %v13406_v47 = vor.u32 %v15448_v36, %v13403_v37  ;;  %6857 = vmatpush.bf16.msrb.mxu1 %v12830_v39 }
  0xf1   :  { %v13915_v41 = vld [vmem:[#allocation7 + $0x1f40] sm:$0xf0] }
  0xf2   :  { %v15160_v42 = vld [vmem:[#allocation7 + $0x1204] sm:$0xf]  ;;  %v13918_v49 = vor.u32 %v15576_v40, %v13915_v41  ;;  %6870 = vmatpush.bf16.msrb.mxu2 %v13406_v47  ;;  %v14705_v40 = vld [vmem:[#allocation7 + $0x3c4] sm:$0xf0] }
  0xf3   :  { %v12251_v44 = vld [vmem:[#allocation7 + $0x1240] sm:$0xf0]  ;;  %v10913_v41 = vld [vmem:[#allocation7 + $0x788] sm:$0xf] }
  0xf4   :  { %v15288_v45 = vld [vmem:[#allocation7 + $0x1604] sm:$0xf]  ;;  %v12254_v53 = vor.u32 %v15160_v42, %v12251_v44  ;;  %6884 = vmatpush.bf16.msrb.mxu3 %v13918_v49  ;;  %v14833_v42 = vld [vmem:[#allocation7 + $0x7c4] sm:$0xf0] }
  0xf5   :  { %v12763_v46 = vld [vmem:[#allocation7 + $0x1640] sm:$0xf0] }
  0xf6   :  { %v15432_v50 = vld [vmem:[#allocation7 + $0x1a84] sm:$0xf]  ;;  %v12766_v54 = vor.u32 %v15288_v45, %v12763_v46  ;;  %6844 = vmatpush.bf16.msrb.mxu0 %v12254_v53  ;;  %v10402_v53 = vor.u32 %v14705_v40, %v10401_v38  ;;  %v10145_v38 = vld [vmem:[#allocation7 + $0x188] sm:$0xf] }
  0xf7   :  { %v13339_v52 = vld [vmem:[#allocation7 + $0x1ac0] sm:$0xf0] }
  0xf8   :  { %v15560_v55 = vld [vmem:[#allocation7 + $0x1e84] sm:$0xf]  ;;  %v13342_v62 = vor.u32 %v15432_v50, %v13339_v52  ;;  %6858 = vmatpush.bf16.msrb.mxu1 %v12766_v54  ;;  %v10914_v54 = vor.u32 %v14833_v42, %v10913_v41  ;;  %v10657_v41 = vld [vmem:[#allocation7 + $0x588] sm:$0xf] }
  0xf9   :  { %v13851_v56 = vld [vmem:[#allocation7 + $0x1ec0] sm:$0xf0]  ;;  %v14769_v42 = vld [vmem:[#allocation7 + $0x5c4] sm:$0xf0] }
  0xfa   :  { %v15144_v57 = vld [vmem:[#allocation7 + $0x1184] sm:$0xf]  ;;  %v13854_v63 = vor.u32 %v15560_v55, %v13851_v56  ;;  %6871 = vmatpush.bf16.msrb.mxu2 %v13342_v62  ;;  %v10337_v55 = vld [vmem:[#allocation7 + $0x308] sm:$0xf] }
  0xfb   :  { %v12187_v58 = vld [vmem:[#allocation7 + $0x11c0] sm:$0xf0] }
  0xfc   :  { %v15272_v60 = vld [vmem:[#allocation7 + $0x1584] sm:$0xf]  ;;  %v12190_v3 = vor.u32 %v15144_v57, %v12187_v58  ;;  %6885 = vmatpush.bf16.msrb.mxu3 %v13854_v63  ;;  %v14689_v57 = vld [vmem:[#allocation7 + $0x344] sm:$0xf0] }
  0xfd   :  { %v12699_v61 = vld [vmem:[#allocation7 + $0x15c0] sm:$0xf0]  ;;  %v10849_v58 = vld [vmem:[#allocation7 + $0x708] sm:$0xf] }
  0xfe   :  { %v15416_v1 = vld [vmem:[#allocation7 + $0x1a04] sm:$0xf]  ;;  %v12702_v4 = vor.u32 %v15272_v60, %v12699_v61  ;;  %6845 = vmatpush.bf16.msrb.mxu0 %v12190_v3  ;;  %v14817_v60 = vld [vmem:[#allocation7 + $0x744] sm:$0xf0] }
  0xff   :  { %v13275_v2 = vld [vmem:[#allocation7 + $0x1a40] sm:$0xf0]  ;;  %v11425_v3 = vld [vmem:[#allocation7 + $0xb88] sm:$0xf] }
 0x100   :  { %v15544_v5 = vld [vmem:[#allocation7 + $0x1e04] sm:$0xf]  ;;  %v13278_v12 = vor.u32 %v15416_v1, %v13275_v2  ;;  %6859 = vmatpush.bf16.msrb.mxu1 %v12702_v4  ;;  %v14961_v4 = vld [vmem:[#allocation7 + $0xbc4] sm:$0xf0] }
 0x101   :  { %v13787_v6 = vld [vmem:[#allocation7 + $0x1e40] sm:$0xf0] }
 0x102   :  { %v15128_v7 = vld [vmem:[#allocation7 + $0x1104] sm:$0xf]  ;;  %v13790_v13 = vor.u32 %v15544_v5, %v13787_v6  ;;  %6872 = vmatpush.bf16.msrb.mxu2 %v13278_v12  ;;  %v10338_v5 = vor.u32 %v14689_v57, %v10337_v55  ;;  %v10850_v6 = vor.u32 %v14817_v60, %v10849_v58  ;;  %v14673_v12 = vld [vmem:[#allocation7 + $0x2c4] sm:$0xf0] }
 0x103   :  { %v12123_v9 = vld [vmem:[#allocation7 + $0x1140] sm:$0xf0]  ;;  %v14753_v57 = vld [vmem:[#allocation7 + $0x544] sm:$0xf0] }
 0x104   :  { %v15256_v34 = vld [vmem:[#allocation7 + $0x1504] sm:$0xf]  ;;  %v12126_v15 = vor.u32 %v15128_v7, %v12123_v9  ;;  %6886 = vmatpush.bf16.msrb.mxu3 %v13790_v13  ;;  %v11937_v7 = vld [vmem:[#allocation7 + $0xf88] sm:$0xf] }
 0x105   :  { %v12635_v11 = vld [vmem:[#allocation7 + $0x1540] sm:$0xf0]  ;;  %v15089_v9 = vld [vmem:[#allocation7 + $0xfc4] sm:$0xf0] }
 0x106   :  { %v15400_v14 = vld [vmem:[#allocation7 + $0x1984] sm:$0xf]  ;;  %v12638_v16 = vor.u32 %v15256_v34, %v12635_v11  ;;  %6846 = vmatpush.bf16.msrb.mxu0 %v12126_v15  ;;  %v10273_v11 = vld [vmem:[#allocation7 + $0x288] sm:$0xf] }
 0x107   :  { %v13211_v10 = vld [vmem:[#allocation7 + $0x19c0] sm:$0xf0]  ;;  %v14801_v15 = vld [vmem:[#allocation7 + $0x6c4] sm:$0xf0] }
 0x108   :  { %v15528_v17 = vld [vmem:[#allocation7 + $0x1d84] sm:$0xf]  ;;  %v13214_v23 = vor.u32 %v15400_v14, %v13211_v10  ;;  %6860 = vmatpush.bf16.msrb.mxu1 %v12638_v16  ;;  %v11426_v14 = vor.u32 %v14961_v4, %v11425_v3  ;;  %v10785_v10 = vld [vmem:[#allocation7 + $0x688] sm:$0xf]  ;;  %v11938_v16 = vor.u32 %v15089_v9, %v11937_v7 }
 0x109   :  { %v13723_v18 = vld [vmem:[#allocation7 + $0x1dc0] sm:$0xf0]  ;;  %v11169_v60 = vld [vmem:[#allocation7 + $0x988] sm:$0xf] }
 0x10a   :  { %v15112_v19 = vld [vmem:[#allocation7 + $0x1084] sm:$0xf]  ;;  %v13726_v24 = vor.u32 %v15528_v17, %v13723_v18  ;;  %6873 = vmatpush.bf16.msrb.mxu2 %v13214_v23  ;;  %v11361_v17 = vld [vmem:[#allocation7 + $0xb08] sm:$0xf] }
 0x10b   :  { %v12059_v20 = vld [vmem:[#allocation7 + $0x10c0] sm:$0xf0]  ;;  %v14945_v18 = vld [vmem:[#allocation7 + $0xb44] sm:$0xf0] }
 0x10c   :  { %v15240_v21 = vld [vmem:[#allocation7 + $0x1484] sm:$0xf]  ;;  %v12062_v29 = vor.u32 %v15112_v19, %v12059_v20  ;;  %6887 = vmatpush.bf16.msrb.mxu3 %v13726_v24  ;;  %v10274_v19 = vor.u32 %v14673_v12, %v10273_v11  ;;  %v11873_v20 = vld [vmem:[#allocation7 + $0xf08] sm:$0xf] }
 0x10d   :  { %v12571_v22 = vld [vmem:[#allocation7 + $0x14c0] sm:$0xf0]  ;;  %v10209_v23 = vld [vmem:[#allocation7 + $0x208] sm:$0xf] }
 0x10e   :  { %v15384_v25 = vld [vmem:[#allocation7 + $0x1904] sm:$0xf]  ;;  %v12574_v30 = vor.u32 %v15240_v21, %v12571_v22  ;;  %6847 = vmatpush.bf16.msrb.mxu0 %v12062_v29  ;;  %v15073_v21 = vld [vmem:[#allocation7 + $0xf44] sm:$0xf0]  ;;  %v10786_v22 = vor.u32 %v14801_v15, %v10785_v10 }
 0x10f   :  { %v13147_v27 = vld [vmem:[#allocation7 + $0x1940] sm:$0xf0]  ;;  %v14657_v24 = vld [vmem:[#allocation7 + $0x244] sm:$0xf0]  ;;  %v11874_v29 = vor.u32 %v15073_v21, %v11873_v20 }
 0x110   :  { %v15512_v28 = vld [vmem:[#allocation7 + $0x1d04] sm:$0xf]  ;;  %v13150_v39 = vor.u32 %v15384_v25, %v13147_v27  ;;  %6861 = vmatpush.bf16.msrb.mxu1 %v12574_v30  ;;  %v11362_v25 = vor.u32 %v14945_v18, %v11361_v17  ;;  %v10721_v27 = vld [vmem:[#allocation7 + $0x608] sm:$0xf] }
 0x111   :  { %v13659_v31 = vld [vmem:[#allocation7 + $0x1d40] sm:$0xf0]  ;;  %v11297_v30 = vld [vmem:[#allocation7 + $0xa88] sm:$0xf] }
 0x112   :  { %v15096_v33 = vld [vmem:[#allocation7 + $0x1004] sm:$0xf]  ;;  %v13662_v44 = vor.u32 %v15512_v28, %v13659_v31  ;;  %6874 = vmatpush.bf16.msrb.mxu2 %v13150_v39  ;;  %v14785_v28 = vld [vmem:[#allocation7 + $0x644] sm:$0xf0] }
 0x113   :  { %v11995_v35 = vld [vmem:[#allocation7 + $0x1040] sm:$0xf0]  ;;  %v14929_v31 = vld [vmem:[#allocation7 + $0xac4] sm:$0xf0] }
 0x114   :  { %v15224_v36 = vld [vmem:[#allocation7 + $0x1404] sm:$0xf]  ;;  %v11998_v47 = vor.u32 %v15096_v33, %v11995_v35  ;;  %6888 = vmatpush.bf16.msrb.mxu3 %v13662_v44  ;;  %v10210_v33 = vor.u32 %v14657_v24, %v10209_v23  ;;  %v11809_v35 = vld [vmem:[#allocation7 + $0xe88] sm:$0xf]  ;;  %v11298_v40 = vor.u32 %v14929_v31, %v11297_v30 }
 0x115   :  { %v12507_v37 = vld [vmem:[#allocation7 + $0x1440] sm:$0xf0]  ;;  %v14641_v39 = vld [vmem:[#allocation7 + $0x1c4] sm:$0xf0] }
 0x116   :  { %v15368_v45 = vld [vmem:[#allocation7 + $0x1884] sm:$0xf]  ;;  %v12510_v49 = vor.u32 %v15224_v36, %v12507_v37  ;;  %6848 = vmatpush.bf16.msrb.mxu0 %v11998_v47  ;;  %v15057_v36 = vld [vmem:[#allocation7 + $0xec4] sm:$0xf0]  ;;  %v10722_v37 = vor.u32 %v14785_v28, %v10721_v27  ;;  %v10146_v47 = vor.u32 %v14641_v39, %v10145_v38 }
 0x117   :  { %v13083_v46 = vld [vmem:[#allocation7 + $0x18c0] sm:$0xf0]  ;;  %v11810_v44 = vor.u32 %v15057_v36, %v11809_v35  ;;  %v10017_v3 = vld [vmem:[#allocation7 + $0x88] sm:$0xf] }
 0x118   :  { %v15496_v50 = vld [vmem:[#allocation7 + $0x1c84] sm:$0xf]  ;;  %v13086_v56 = vor.u32 %v15368_v45, %v13083_v46  ;;  %6862 = vmatpush.bf16.msrb.mxu1 %v12510_v49  ;;  %v11233_v45 = vld [vmem:[#allocation7 + $0xa08] sm:$0xf] }
 0x119   :  { %v13595_v52 = vld [vmem:[#allocation7 + $0x1cc0] sm:$0xf0]  ;;  %6849 = vmatmul.bf16.vlgmr.msrb.gmra.mxu0 %v16066_v8  ;;  %v14913_v46 = vld [vmem:[#allocation7 + $0xa44] sm:$0xf0] }
 0x11a   :  { %v13598_v61 = vor.u32 %v15496_v50, %v13595_v52  ;;  %v15352_v62 = vld [vmem:[#allocation7 + $0x1804] sm:$0xf]  ;;  %6897 = vmatpush.bf16.msra.mxu0 %v10402_v53  ;;  %6875 = vmatpush.bf16.msrb.mxu2 %v13086_v56  ;;  %v11745_v49 = vld [vmem:[#allocation7 + $0xe08] sm:$0xf]  ;;  %v10658_v52 = vor.u32 %v14769_v42, %v10657_v41  ;;  %v11234_v55 = vor.u32 %v14913_v46, %v11233_v45 }
 0x11b   :  { %v13019_v63 = vld [vmem:[#allocation7 + $0x1840] sm:$0xf0]  ;;  %6863 = vmatmul.bf16.vlgmr.msrb.gmra.mxu1 %v16068_v51  ;;  %v15041_v50 = vld [vmem:[#allocation7 + $0xe44] sm:$0xf0] }
 0x11c   :  { %v15480_v1 = vld [vmem:[#allocation7 + $0x1c04] sm:$0xf]  ;;  %6911 = vmatpush.bf16.msra.mxu1 %v10914_v54  ;;  %v13022_v34 = vor.u32 %v15352_v62, %v13019_v63  ;;  %6889 = vmatpush.bf16.msrb.mxu3 %v13598_v61  ;;  %v10081_v53 = vld [vmem:[#allocation7 + $0x108] sm:$0xf]  ;;  %v11746_v58 = vor.u32 %v15041_v50, %v11745_v49 }
 0x11d   :  { %v13531_v2 = vld [vmem:[#allocation7 + $0x1c40] sm:$0xf0]  ;;  %v14625_v54 = vld [vmem:[#allocation7 + $0x144] sm:$0xf0] }
 0x11e   :  { %v13534_v13 = vor.u32 %v15480_v1, %v13531_v2  ;;  %6898 = vmatpush.bf16.msra.mxu0 %v10338_v5  ;;  %6876 = vmatpush.bf16.msrb.mxu2 %v13022_v34  ;;  %v10593_v56 = vld [vmem:[#allocation7 + $0x508] sm:$0xf]  ;;  %v10082_v62 = vor.u32 %v14625_v54, %v10081_v53 }
 0x11f   :  { %v14897_v61 = vld [vmem:[#allocation7 + $0x9c4] sm:$0xf0]  ;;  %v10594_v2 = vor.u32 %v14753_v57, %v10593_v56 }
 0x120   :  { %6912 = vmatpush.bf16.msra.mxu1 %v10850_v6  ;;  %6890 = vmatpush.bf16.msrb.mxu3 %v13534_v13  ;;  %v11681_v63 = vld [vmem:[#allocation7 + $0xd88] sm:$0xf]  ;;  %v11170_v5 = vor.u32 %v14897_v61, %v11169_v60 }
 0x121   :  { %6877 = vmatmul.bf16.vlgmr.msrb.gmra.mxu2 %v16072_v43  ;;  %v15025_v1 = vld [vmem:[#allocation7 + $0xdc4] sm:$0xf0] }
 0x122   :  { %6925 = vmatpush.bf16.msra.mxu2 %v11426_v14  ;;  %6899 = vmatpush.bf16.msra.mxu0 %v10274_v19  ;;  %v14609_v4 = vld [vmem:[#allocation7 + $0xc4] sm:$0xf0]  ;;  %v11682_v9 = vor.u32 %v15025_v1, %v11681_v63 }
 0x123   :  { %6891 = vmatmul.bf16.vlgmr.msrb.gmra.mxu3 %v16074_v48  ;;  %v10529_v6 = vld [vmem:[#allocation7 + $0x488] sm:$0xf]  ;;  %v10018_v12 = vor.u32 %v14609_v4, %v10017_v3 }
 0x124   :  { %6939 = vmatpush.bf16.msra.mxu3 %v11938_v16  ;;  %6913 = vmatpush.bf16.msra.mxu1 %v10786_v22  ;;  %v14737_v7 = vld [vmem:[#allocation7 + $0x4c4] sm:$0xf0] }
 0x125   :  { %v11105_v34 = vld [vmem:[#allocation7 + $0x908] sm:$0xf]  ;;  %v10530_v15 = vor.u32 %v14737_v7, %v10529_v6 }
 0x126   :  { %6926 = vmatpush.bf16.msra.mxu2 %v11362_v25  ;;  %6900 = vmatpush.bf16.msra.mxu0 %v10210_v33  ;;  %v14881_v11 = vld [vmem:[#allocation7 + $0x944] sm:$0xf0] }
 0x127   :  { %v11617_v13 = vld [vmem:[#allocation7 + $0xd08] sm:$0xf]  ;;  %v11106_v19 = vor.u32 %v14881_v11, %v11105_v34 }
 0x128   :  { %6940 = vmatpush.bf16.msra.mxu3 %v11874_v29  ;;  %6914 = vmatpush.bf16.msra.mxu1 %v10722_v37  ;;  %v15009_v14 = vld [vmem:[#allocation7 + $0xd44] sm:$0xf0] }
 0x129   :  { %v9953_v10 = vld [vmem:[#allocation7 + $0x8] sm:$0xf]  ;;  %v11618_v23 = vor.u32 %v15009_v14, %v11617_v13 }
 0x12a   :  { %6927 = vmatpush.bf16.msra.mxu2 %v11298_v40  ;;  %6901 = vmatpush.bf16.msra.mxu0 %v10146_v47  ;;  %v14593_v16 = vld [vmem:[#allocation7 + $0x44] sm:$0xf0] }
 0x12b   :  { %v10465_v17 = vld [vmem:[#allocation7 + $0x408] sm:$0xf]  ;;  %v9954_v28 = vor.u32 %v14593_v16, %v9953_v10 }
 0x12c   :  { %6941 = vmatpush.bf16.msra.mxu3 %v11810_v44  ;;  %6915 = vmatpush.bf16.msra.mxu1 %v10658_v52  ;;  %v14721_v18 = vld [vmem:[#allocation7 + $0x444] sm:$0xf0] }
 0x12d   :  { %v12449_v20 = vld [vmem:[#allocation7 + $0x1388] sm:$0xf]  ;;  %v10466_v31 = vor.u32 %v14721_v18, %v10465_v17 }
 0x12e   :  { %6928 = vmatpush.bf16.msra.mxu2 %v11234_v55  ;;  %6902 = vmatpush.bf16.msra.mxu0 %v10082_v62  ;;  %v15217_v21 = vld [vmem:[#allocation7 + $0x13c4] sm:$0xf0] }
 0x12f   :  { %v12961_v22 = vld [vmem:[#allocation7 + $0x1788] sm:$0xf]  ;;  %v12450_v33 = vor.u32 %v15217_v21, %v12449_v20 }
 0x130   :  { %6942 = vmatpush.bf16.msra.mxu3 %v11746_v58  ;;  %6916 = vmatpush.bf16.msra.mxu1 %v10594_v2  ;;  %v15345_v24 = vld [vmem:[#allocation7 + $0x17c4] sm:$0xf0] }
 0x131   :  { %v11041_v25 = vld [vmem:[#allocation7 + $0x888] sm:$0xf]  ;;  %v12962_v36 = vor.u32 %v15345_v24, %v12961_v22 }
 0x132   :  { %6929 = vmatpush.bf16.msra.mxu2 %v11170_v5  ;;  %v14865_v27 = vld [vmem:[#allocation7 + $0x8c4] sm:$0xf0]  ;;  %6903 = vmatpush.bf16.msra.mxu0 %v10018_v12 }
 0x133   :  { %v11553_v29 = vld [vmem:[#allocation7 + $0xc88] sm:$0xf]  ;;  %v11042_v37 = vor.u32 %v14865_v27, %v11041_v25 }
 0x134   :  { %6943 = vmatpush.bf16.msra.mxu3 %v11682_v9  ;;  %v14993_v30 = vld [vmem:[#allocation7 + $0xcc4] sm:$0xf0]  ;;  %6917 = vmatpush.bf16.msra.mxu1 %v10530_v15 }
 0x135   :  { %v12385_v35 = vld [vmem:[#allocation7 + $0x1308] sm:$0xf]  ;;  %v11554_v41 = vor.u32 %v14993_v30, %v11553_v29 }
 0x136   :  { %6930 = vmatpush.bf16.msra.mxu2 %v11106_v19  ;;  %v15201_v38 = vld [vmem:[#allocation7 + $0x1344] sm:$0xf0]  ;;  %6904 = vmatpush.bf16.msra.mxu0 %v9954_v28 }
 0x137   :  { %v12897_v39 = vld [vmem:[#allocation7 + $0x1708] sm:$0xf]  ;;  %v12386_v50 = vor.u32 %v15201_v38, %v12385_v35 }
 0x138   :  { %v15329_v40 = vld [vmem:[#allocation7 + $0x1744] sm:$0xf0]  ;;  %6944 = vmatpush.bf16.msra.mxu3 %v11618_v23  ;;  %6918 = vmatpush.bf16.msra.mxu1 %v10466_v31 }
 0x139   :  { %v10977_v42 = vld [vmem:[#allocation7 + $0x808] sm:$0xf]  ;;  %v12898_v54 = vor.u32 %v15329_v40, %v12897_v39  ;;  %6905 = vmatmul.bf16.vlgmr.msra.gmra.mxu0 %v16050_v59 }
 0x13a   :  { %v14849_v44 = vld [vmem:[#allocation7 + $0x844] sm:$0xf0]  ;;  %6953 = vmatpush.bf16.msrb.mxu0 %v12450_v33  ;;  %6931 = vmatpush.bf16.msra.mxu2 %v11042_v37 }
 0x13b   :  { %v11489_v45 = vld [vmem:[#allocation7 + $0xc08] sm:$0xf]  ;;  %v10978_v55 = vor.u32 %v14849_v44, %v10977_v42  ;;  %6919 = vmatmul.bf16.vlgmr.msra.gmra.mxu1 %v16052_v0 }
 0x13c   :  { %v14977_v46 = vld [vmem:[#allocation7 + $0xc44] sm:$0xf0]  ;;  %6967 = vmatpush.bf16.msrb.mxu1 %v12962_v36  ;;  %6945 = vmatpush.bf16.msra.mxu3 %v11554_v41 }
 0x13d   :  { %v13473_v47 = vld [vmem:[#allocation7 + $0x1b88] sm:$0xf]  ;;  %v11490_v58 = vor.u32 %v14977_v46, %v11489_v45 }
 0x13e   :  { %v15473_v49 = vld [vmem:[#allocation7 + $0x1bc4] sm:$0xf0]  ;;  %6954 = vmatpush.bf16.msrb.mxu0 %v12386_v50  ;;  %6932 = vmatpush.bf16.msra.mxu2 %v10978_v55 }
 0x13f   :  { %v13985_v52 = vld [vmem:[#allocation7 + $0x1f88] sm:$0xf]  ;;  %v13474_v60 = vor.u32 %v15473_v49, %v13473_v47 }
 0x140   :  { %v15601_v53 = vld [vmem:[#allocation7 + $0x1fc4] sm:$0xf0]  ;;  %6968 = vmatpush.bf16.msrb.mxu1 %v12898_v54  ;;  %6946 = vmatpush.bf16.msra.mxu3 %v11490_v58 }
 0x141   :  { %v12321_v56 = vld [vmem:[#allocation7 + $0x1288] sm:$0xf]  ;;  %v13986_v63 = vor.u32 %v15601_v53, %v13985_v52  ;;  %6933 = vmatmul.bf16.vlgmr.msra.gmra.mxu2 %v16058_v26 }
 0x142   :  { %v15185_v57 = vld [vmem:[#allocation7 + $0x12c4] sm:$0xf0]  ;;  %6981 = vmatpush.bf16.msrb.mxu2 %v13474_v60 }
 0x143   :  { %v12833_v61 = vld [vmem:[#allocation7 + $0x1688] sm:$0xf]  ;;  %v12322_v3 = vor.u32 %v15185_v57, %v12321_v56  ;;  %6947 = vmatmul.bf16.vlgmr.msra.gmra.mxu3 %v16060_v32 }
 0x144   :  { %v15313_v62 = vld [vmem:[#allocation7 + $0x16c4] sm:$0xf0]  ;;  %6995 = vmatpush.bf16.msrb.mxu3 %v13986_v63 }
 0x145   :  { %v13409_v1 = vld [vmem:[#allocation7 + $0x1b08] sm:$0xf]  ;;  %v12834_v6 = vor.u32 %v15313_v62, %v12833_v61  ;;  %6955 = vmatpush.bf16.msrb.mxu0 %v12322_v3 }
 0x146   :  { %v15457_v2 = vld [vmem:[#allocation7 + $0x1b44] sm:$0xf0] }
 0x147   :  { %v13921_v4 = vld [vmem:[#allocation7 + $0x1f08] sm:$0xf]  ;;  %v13410_v34 = vor.u32 %v15457_v2, %v13409_v1  ;;  %6969 = vmatpush.bf16.msrb.mxu1 %v12834_v6  ;;  %v14825_v6 = vld [vmem:[#allocation7 + $0x78c] sm:$0xf] }
 0x148   :  { %v15585_v5 = vld [vmem:[#allocation7 + $0x1f44] sm:$0xf0] }
 0x149   :  { %v12257_v7 = vld [vmem:[#allocation7 + $0x1208] sm:$0xf]  ;;  %v13922_v13 = vor.u32 %v15585_v5, %v13921_v4  ;;  %6982 = vmatpush.bf16.msrb.mxu2 %v13410_v34  ;;  %v14697_v4 = vld [vmem:[#allocation7 + $0x38c] sm:$0xf] }
 0x14a   :  { %v15169_v9 = vld [vmem:[#allocation7 + $0x1244] sm:$0xf0]  ;;  %v10403_v5 = vld [vmem:[#allocation7 + $0x3c8] sm:$0xf0] }
 0x14b   :  { %v12769_v11 = vld [vmem:[#allocation7 + $0x1608] sm:$0xf]  ;;  %v12258_v15 = vor.u32 %v15169_v9, %v12257_v7  ;;  %6996 = vmatpush.bf16.msrb.mxu3 %v13922_v13  ;;  %v10915_v9 = vld [vmem:[#allocation7 + $0x7c8] sm:$0xf0] }
 0x14c   :  { %v15297_v12 = vld [vmem:[#allocation7 + $0x1644] sm:$0xf0] }
 0x14d   :  { %v13345_v14 = vld [vmem:[#allocation7 + $0x1a88] sm:$0xf]  ;;  %v12770_v18 = vor.u32 %v15297_v12, %v12769_v11  ;;  %6956 = vmatpush.bf16.msrb.mxu0 %v12258_v15  ;;  %v10406_v15 = vor.u32 %v14697_v4, %v10403_v5  ;;  %v15049_v5 = vld [vmem:[#allocation7 + $0xe8c] sm:$0xf] }
 0x14e   :  { %v15441_v10 = vld [vmem:[#allocation7 + $0x1ac4] sm:$0xf0] }
 0x14f   :  { %v13857_v16 = vld [vmem:[#allocation7 + $0x1e88] sm:$0xf]  ;;  %v13346_v21 = vor.u32 %v15441_v10, %v13345_v14  ;;  %6970 = vmatpush.bf16.msrb.mxu1 %v12770_v18 }
 0x150   :  { %v15569_v17 = vld [vmem:[#allocation7 + $0x1ec4] sm:$0xf0] }
 0x151   :  { %v12193_v19 = vld [vmem:[#allocation7 + $0x1188] sm:$0xf]  ;;  %v13858_v24 = vor.u32 %v15569_v17, %v13857_v16  ;;  %6983 = vmatpush.bf16.msrb.mxu2 %v13346_v21  ;;  %v14681_v16 = vld [vmem:[#allocation7 + $0x30c] sm:$0xf]  ;;  %v10918_v17 = vor.u32 %v14825_v6, %v10915_v9 }
 0x152   :  { %v15153_v20 = vld [vmem:[#allocation7 + $0x11c4] sm:$0xf0]  ;;  %v10851_v21 = vld [vmem:[#allocation7 + $0x748] sm:$0xf0] }
 0x153   :  { %v12705_v22 = vld [vmem:[#allocation7 + $0x1588] sm:$0xf]  ;;  %v12194_v28 = vor.u32 %v15153_v20, %v12193_v19  ;;  %6997 = vmatpush.bf16.msrb.mxu3 %v13858_v24  ;;  %v10339_v19 = vld [vmem:[#allocation7 + $0x348] sm:$0xf0] }
 0x154   :  { %v15281_v23 = vld [vmem:[#allocation7 + $0x15c4] sm:$0xf0]  ;;  %v14809_v20 = vld [vmem:[#allocation7 + $0x70c] sm:$0xf] }
 0x155   :  { %v13281_v25 = vld [vmem:[#allocation7 + $0x1a08] sm:$0xf]  ;;  %v12706_v31 = vor.u32 %v15281_v23, %v12705_v22  ;;  %6957 = vmatpush.bf16.msrb.mxu0 %v12194_v28  ;;  %v14953_v28 = vld [vmem:[#allocation7 + $0xb8c] sm:$0xf] }
 0x156   :  { %v15425_v27 = vld [vmem:[#allocation7 + $0x1a44] sm:$0xf0]  ;;  %v11811_v6 = vld [vmem:[#allocation7 + $0xec8] sm:$0xf0] }
 0x157   :  { %v13793_v29 = vld [vmem:[#allocation7 + $0x1e08] sm:$0xf]  ;;  %v13282_v36 = vor.u32 %v15425_v27, %v13281_v25  ;;  %6971 = vmatpush.bf16.msrb.mxu1 %v12706_v31  ;;  %v15081_v31 = vld [vmem:[#allocation7 + $0xf8c] sm:$0xf] }
 0x158   :  { %v15553_v30 = vld [vmem:[#allocation7 + $0x1e44] sm:$0xf0]  ;;  %v14633_v9 = vld [vmem:[#allocation7 + $0x18c] sm:$0xf] }
 0x159   :  { %v12129_v33 = vld [vmem:[#allocation7 + $0x1108] sm:$0xf]  ;;  %v13794_v39 = vor.u32 %v15553_v30, %v13793_v29  ;;  %6984 = vmatpush.bf16.msrb.mxu2 %v13282_v36  ;;  %v11427_v29 = vld [vmem:[#allocation7 + $0xbc8] sm:$0xf0]  ;;  %v10342_v30 = vor.u32 %v14681_v16, %v10339_v19 }
 0x15a   :  { %v15137_v35 = vld [vmem:[#allocation7 + $0x1144] sm:$0xf0]  ;;  %v11235_v16 = vld [vmem:[#allocation7 + $0xa48] sm:$0xf0] }
 0x15b   :  { %v12641_v37 = vld [vmem:[#allocation7 + $0x1508] sm:$0xf]  ;;  %v12130_v42 = vor.u32 %v15137_v35, %v12129_v33  ;;  %6998 = vmatpush.bf16.msrb.mxu3 %v13794_v39  ;;  %v11939_v33 = vld [vmem:[#allocation7 + $0xfc8] sm:$0xf0]  ;;  %v10854_v35 = vor.u32 %v14809_v20, %v10851_v21  ;;  %v16090_v39 = vld [vmem:[#allocation8] sm:$0xff] }
 0x15c   :  { %v15265_v38 = vld [vmem:[#allocation7 + $0x1544] sm:$0xf0]  ;;  %v11747_v19 = vld [vmem:[#allocation7 + $0xe48] sm:$0xf0] }
 0x15d   :  { %v13217_v40 = vld [vmem:[#allocation7 + $0x1988] sm:$0xf]  ;;  %v12642_v46 = vor.u32 %v15265_v38, %v12641_v37  ;;  %6958 = vmatpush.bf16.msrb.mxu0 %v12130_v42  ;;  %v14665_v37 = vld [vmem:[#allocation7 + $0x28c] sm:$0xf] }
 0x15e   :  { %v15409_v41 = vld [vmem:[#allocation7 + $0x19c4] sm:$0xf0]  ;;  %v10275_v38 = vld [vmem:[#allocation7 + $0x2c8] sm:$0xf0] }
 0x15f   :  { %v13729_v44 = vld [vmem:[#allocation7 + $0x1d88] sm:$0xf]  ;;  %v13218_v50 = vor.u32 %v15409_v41, %v13217_v40  ;;  %6972 = vmatpush.bf16.msrb.mxu1 %v12642_v46  ;;  %v11430_v41 = vor.u32 %v14953_v28, %v11427_v29  ;;  %v14793_v42 = vld [vmem:[#allocation7 + $0x68c] sm:$0xf] }
 0x160   :  { %v15537_v45 = vld [vmem:[#allocation7 + $0x1dc4] sm:$0xf0]  ;;  %v14937_v46 = vld [vmem:[#allocation7 + $0xb0c] sm:$0xf] }
 0x161   :  { %v12065_v47 = vld [vmem:[#allocation7 + $0x1088] sm:$0xf]  ;;  %v13730_v54 = vor.u32 %v15537_v45, %v13729_v44  ;;  %6985 = vmatpush.bf16.msrb.mxu2 %v13218_v50  ;;  %v10787_v44 = vld [vmem:[#allocation7 + $0x6c8] sm:$0xf0]  ;;  %v11942_v45 = vor.u32 %v15081_v31, %v11939_v33  ;;  %v16726_v50 = vperm.slane %v16090_v39, 0 }
 0x162   :  { %v15121_v49 = vld [vmem:[#allocation7 + $0x10c4] sm:$0xf0]  ;;  %v14617_v21 = vld [vmem:[#allocation7 + $0x10c] sm:$0xf] }
 0x163   :  { %v12577_v52 = vld [vmem:[#allocation7 + $0x1488] sm:$0xf]  ;;  %v12066_v57 = vor.u32 %v15121_v49, %v12065_v47  ;;  %6999 = vmatpush.bf16.msrb.mxu3 %v13730_v54  ;;  %v11363_v47 = vld [vmem:[#allocation7 + $0xb48] sm:$0xf0]  ;;  %v10278_v49 = vor.u32 %v14665_v37, %v10275_v38  ;;  %v10790_v54 = vor.u32 %v14793_v42, %v10787_v44 }
 0x164   :  { %v15249_v53 = vld [vmem:[#allocation7 + $0x14c4] sm:$0xf0]  ;;  %v14889_v29 = vld [vmem:[#allocation7 + $0x98c] sm:$0xf] }
 0x165   :  { %v13153_v55 = vld [vmem:[#allocation7 + $0x1908] sm:$0xf]  ;;  %v12578_v62 = vor.u32 %v15249_v53, %v12577_v52  ;;  %6959 = vmatpush.bf16.msrb.mxu0 %v12066_v57  ;;  %v15065_v52 = vld [vmem:[#allocation7 + $0xf0c] sm:$0xf]  ;;  %v11366_v57 = vor.u32 %v14937_v46, %v11363_v47 }
 0x166   :  { %v15393_v56 = vld [vmem:[#allocation7 + $0x1944] sm:$0xf0]  ;;  %v11875_v53 = vld [vmem:[#allocation7 + $0xf48] sm:$0xf0] }
 0x167   :  { %v13665_v58 = vld [vmem:[#allocation7 + $0x1d08] sm:$0xf]  ;;  %v13154_v3 = vor.u32 %v15393_v56, %v13153_v55  ;;  %6973 = vmatpush.bf16.msrb.mxu1 %v12578_v62  ;;  %v14649_v55 = vld [vmem:[#allocation7 + $0x20c] sm:$0xf]  ;;  %v11878_v62 = vor.u32 %v15065_v52, %v11875_v53 }
 0x168   :  { %v15521_v60 = vld [vmem:[#allocation7 + $0x1d44] sm:$0xf0]  ;;  %v10211_v56 = vld [vmem:[#allocation7 + $0x248] sm:$0xf0] }
 0x169   :  { %v12001_v61 = vld [vmem:[#allocation7 + $0x1008] sm:$0xf]  ;;  %v13666_v7 = vor.u32 %v15521_v60, %v13665_v58  ;;  %6986 = vmatpush.bf16.msrb.mxu2 %v13154_v3  ;;  %v14777_v58 = vld [vmem:[#allocation7 + $0x60c] sm:$0xf]  ;;  %v6696_v3 = vpop.f32.mrf.mxu1  ;;  %v10214_v4 = vor.u32 %v14649_v55, %v10211_v56 }
 0x16a   :  { %v15105_v63 = vld [vmem:[#allocation7 + $0x1044] sm:$0xf0]  ;;  %v10723_v60 = vld [vmem:[#allocation7 + $0x648] sm:$0xf0] }
 0x16b   :  { %v12513_v1 = vld [vmem:[#allocation7 + $0x1408] sm:$0xf]  ;;  %v12002_v12 = vor.u32 %v15105_v63, %v12001_v61  ;;  %7000 = vmatpush.bf16.msrb.mxu3 %v13666_v7  ;;  %v6682_v61 = vpop.f32.mrf.mxu0  ;;  %v14921_v63 = vld [vmem:[#allocation7 + $0xa8c] sm:$0xf]  ;;  %v10726_v7 = vor.u32 %v14777_v58, %v10723_v60 }
 0x16c   :  { %v15233_v2 = vld [vmem:[#allocation7 + $0x1444] sm:$0xf0]  ;;  %v14601_v38 = vld [vmem:[#allocation7 + $0x8c] sm:$0xf] }
 0x16d   :  { %v13089_v34 = vld [vmem:[#allocation7 + $0x1888] sm:$0xf]  ;;  %v12514_v10 = vor.u32 %v15233_v2, %v12513_v1  ;;  %6960 = vmatpush.bf16.msrb.mxu0 %v12002_v12  ;;  %v11299_v1 = vld [vmem:[#allocation7 + $0xac8] sm:$0xf0]  ;;  %v6683_v2 = vadd.f32 %v6682_v61, %v16726_v50  ;;  %v15370_v50 = vld [vmem:[#allocation7 + $0x1894] sm:$0xf] }
 0x16e   :  { %v15377_v11 = vld [vmem:[#allocation7 + $0x18c4] sm:$0xf0]  ;;  %v11302_v12 = vor.u32 %v14921_v63, %v11299_v1  ;;  %v14729_v42 = vld [vmem:[#allocation7 + $0x48c] sm:$0xf] }
 0x16f   :  { %v13601_v13 = vld [vmem:[#allocation7 + $0x1c88] sm:$0xf]  ;;  %v13090_v18 = vor.u32 %v15377_v11, %v13089_v34  ;;  %6974 = vmatpush.bf16.msrb.mxu1 %v12514_v10  ;;  %v10147_v34 = vld [vmem:[#allocation7 + $0x1c8] sm:$0xf0]  ;;  %v6697_v11 = vadd.f32 %v6696_v3, %v6683_v2  ;;  %v11814_v10 = vor.u32 %v15049_v5, %v11811_v6 }
 0x170   :  { %v15505_v14 = vld [vmem:[#allocation7 + $0x1cc4] sm:$0xf0]  ;;  %6961 = vmatmul.bf16.vlgmr.msrb.gmra.mxu0 %v16066_v8  ;;  %v10531_v44 = vld [vmem:[#allocation7 + $0x4c8] sm:$0xf0] }
 0x171   :  { %v13602_v22 = vor.u32 %v15505_v14, %v13601_v13  ;;  %v13025_v23 = vld [vmem:[#allocation7 + $0x1808] sm:$0xf]  ;;  %7009 = vmatpush.bf16.msra.mxu0 %v10406_v15  ;;  %6987 = vmatpush.bf16.msrb.mxu2 %v13090_v18  ;;  %v14761_v13 = vld [vmem:[#allocation7 + $0x58c] sm:$0xf]  ;;  %v16101_v31 = vpop.f32.mrf.mxu1  ;;  %v10534_v58 = vor.u32 %v14729_v42, %v10531_v44 }
 0x172   :  { %v15361_v24 = vld [vmem:[#allocation7 + $0x1844] sm:$0xf0]  ;;  %6975 = vmatmul.bf16.vlgmr.msrb.gmra.mxu1 %v16068_v51  ;;  %v10659_v14 = vld [vmem:[#allocation7 + $0x5c8] sm:$0xf0] }
 0x173   :  { %v13537_v25 = vld [vmem:[#allocation7 + $0x1c08] sm:$0xf]  ;;  %7023 = vmatpush.bf16.msra.mxu1 %v10918_v17  ;;  %v13026_v36 = vor.u32 %v15361_v24, %v13025_v23  ;;  %7001 = vmatpush.bf16.msrb.mxu3 %v13602_v22  ;;  %v14905_v15 = vld [vmem:[#allocation7 + $0xa0c] sm:$0xf]  ;;  %v10150_v17 = vor.u32 %v14633_v9, %v10147_v34  ;;  %v10662_v20 = vor.u32 %v14761_v13, %v10659_v14 }
 0x174   :  { %v15489_v27 = vld [vmem:[#allocation7 + $0x1c44] sm:$0xf0]  ;;  %v15033_v18 = vld [vmem:[#allocation7 + $0xe0c] sm:$0xf]  ;;  %v11238_v23 = vor.u32 %v14905_v15, %v11235_v16 }
 0x175   :  { %v13538_v40 = vor.u32 %v15489_v27, %v13537_v25  ;;  %7010 = vmatpush.bf16.msra.mxu0 %v10342_v30  ;;  %6988 = vmatpush.bf16.msrb.mxu2 %v13026_v36  ;;  %v10083_v22 = vld [vmem:[#allocation7 + $0x148] sm:$0xf0]  ;;  %v16099_v27 = vpop.f32.mrf.mxu0  ;;  %v11750_v28 = vor.u32 %v15033_v18, %v11747_v19 }
 0x176   :  { %v14745_v24 = vld [vmem:[#allocation7 + $0x50c] sm:$0xf]  ;;  %v10086_v33 = vor.u32 %v14617_v21, %v10083_v22 }
 0x177   :  { %7024 = vmatpush.bf16.msra.mxu1 %v10854_v35  ;;  %7002 = vmatpush.bf16.msrb.mxu3 %v13538_v40  ;;  %v10595_v25 = vld [vmem:[#allocation7 + $0x548] sm:$0xf0] }
 0x178   :  { %6989 = vmatmul.bf16.vlgmr.msrb.gmra.mxu2 %v16072_v43  ;;  %v11171_v30 = vld [vmem:[#allocation7 + $0x9c8] sm:$0xf0]  ;;  %v10598_v37 = vor.u32 %v14745_v24, %v10595_v25 }
 0x179   :  { %7037 = vmatpush.bf16.msra.mxu2 %v11430_v41  ;;  %7011 = vmatpush.bf16.msra.mxu0 %v10278_v49  ;;  %v15017_v35 = vld [vmem:[#allocation7 + $0xd8c] sm:$0xf]  ;;  %v11174_v41 = vor.u32 %v14889_v29, %v11171_v30  ;;  %v6710_v49 = vpop.f32.mrf.mxu2 }
 0x17a   :  { %7003 = vmatmul.bf16.vlgmr.msrb.gmra.mxu3 %v16074_v48  ;;  %v11683_v36 = vld [vmem:[#allocation7 + $0xdc8] sm:$0xf0]  ;;  %v6711_v56 = vadd.f32 %v6710_v49, %v6697_v11 }
 0x17b   :  { %7051 = vmatpush.bf16.msra.mxu3 %v11942_v45  ;;  %7025 = vmatpush.bf16.msra.mxu1 %v10790_v54  ;;  %v10019_v40 = vld [vmem:[#allocation7 + $0xc8] sm:$0xf0]  ;;  %v11686_v45 = vor.u32 %v15017_v35, %v11683_v36 }
 0x17c   :  { %v14873_v46 = vld [vmem:[#allocation7 + $0x90c] sm:$0xf]  ;;  %v10022_v52 = vor.u32 %v14601_v38, %v10019_v40 }
 0x17d   :  { %7038 = vmatpush.bf16.msra.mxu2 %v11366_v57  ;;  %7012 = vmatpush.bf16.msra.mxu0 %v10214_v4  ;;  %v11107_v47 = vld [vmem:[#allocation7 + $0x948] sm:$0xf0]  ;;  %v6724_v57 = vpop.f32.mrf.mxu3  ;;  %v6738_v5 = vpop.f32.mrf.mxu0 }
 0x17e   :  { %v15001_v53 = vld [vmem:[#allocation7 + $0xd0c] sm:$0xf]  ;;  %v11110_v63 = vor.u32 %v14873_v46, %v11107_v47  ;;  %v6725_v4 = vadd.f32 %v6724_v57, %v6711_v56 }
 0x17f   :  { %7052 = vmatpush.bf16.msra.mxu3 %v11878_v62  ;;  %7026 = vmatpush.bf16.msra.mxu1 %v10726_v7  ;;  %v11619_v54 = vld [vmem:[#allocation7 + $0xd48] sm:$0xf0] }
 0x180   :  { %v14585_v55 = vld [vmem:[#allocation7 + $0xc] sm:$0xf]  ;;  %v11622_v6 = vor.u32 %v15001_v53, %v11619_v54 }
 0x181   :  { %7039 = vmatpush.bf16.msra.mxu2 %v11302_v12  ;;  %7013 = vmatpush.bf16.msra.mxu0 %v10150_v17  ;;  %v9955_v60 = vld [vmem:[#allocation7 + $0x48] sm:$0xf0]  ;;  %v6752_v12 = vpop.f32.mrf.mxu1  ;;  %v16103_v30 = vpop.f32.mrf.mxu2 }
 0x182   :  { %v14713_v61 = vld [vmem:[#allocation7 + $0x40c] sm:$0xf]  ;;  %v9958_v11 = vor.u32 %v14585_v55, %v9955_v60 }
 0x183   :  { %7053 = vmatpush.bf16.msra.mxu3 %v11814_v10  ;;  %7027 = vmatpush.bf16.msra.mxu1 %v10662_v20  ;;  %v10467_v62 = vld [vmem:[#allocation7 + $0x448] sm:$0xf0]  ;;  %v6739_v10 = vadd.f32 %v6738_v5, %v6725_v4 }
 0x184   :  { %v15209_v1 = vld [vmem:[#allocation7 + $0x138c] sm:$0xf]  ;;  %v10470_v15 = vor.u32 %v14713_v61, %v10467_v62 }
 0x185   :  { %7040 = vmatpush.bf16.msra.mxu2 %v11238_v23  ;;  %7014 = vmatpush.bf16.msra.mxu0 %v10086_v33  ;;  %v12451_v2 = vld [vmem:[#allocation7 + $0x13c8] sm:$0xf0]  ;;  %v6753_v23 = vadd.f32 %v6752_v12, %v6739_v10  ;;  %v16108_v47 = vpop.f32.mrf.mxu0 }
 0x186   :  { %v15337_v3 = vld [vmem:[#allocation7 + $0x178c] sm:$0xf]  ;;  %v12454_v16 = vor.u32 %v15209_v1, %v12451_v2 }
 0x187   :  { %7054 = vmatpush.bf16.msra.mxu3 %v11750_v28  ;;  %7028 = vmatpush.bf16.msra.mxu1 %v10598_v37  ;;  %v12963_v7 = vld [vmem:[#allocation7 + $0x17c8] sm:$0xf0]  ;;  %v16105_v37 = vpop.f32.mrf.mxu3 }
 0x188   :  { %v14857_v9 = vld [vmem:[#allocation7 + $0x88c] sm:$0xf]  ;;  %v12966_v18 = vor.u32 %v15337_v3, %v12963_v7 }
 0x189   :  { %7041 = vmatpush.bf16.msra.mxu2 %v11174_v41  ;;  %v11043_v34 = vld [vmem:[#allocation7 + $0x8c8] sm:$0xf0]  ;;  %7015 = vmatpush.bf16.msra.mxu0 %v10022_v52  ;;  %v16111_v55 = vpop.f32.mrf.mxu1 }
 0x18a   :  { %v14985_v13 = vld [vmem:[#allocation7 + $0xc8c] sm:$0xf]  ;;  %v11046_v19 = vor.u32 %v14857_v9, %v11043_v34 }
 0x18b   :  { %7055 = vmatpush.bf16.msra.mxu3 %v11686_v45  ;;  %v11555_v14 = vld [vmem:[#allocation7 + $0xcc8] sm:$0xf0]  ;;  %7029 = vmatpush.bf16.msra.mxu1 %v10534_v58 }
 0x18c   :  { %v15193_v17 = vld [vmem:[#allocation7 + $0x130c] sm:$0xf]  ;;  %v11558_v24 = vor.u32 %v14985_v13, %v11555_v14  ;;  %v16725_v13 = vperm.slane %v16090_v39, 1 }
 0x18d   :  { %7042 = vmatpush.bf16.msra.mxu2 %v11110_v63  ;;  %v12387_v20 = vld [vmem:[#allocation7 + $0x1348] sm:$0xf0]  ;;  %7016 = vmatpush.bf16.msra.mxu0 %v9958_v11 }
 0x18e   :  { %v15321_v21 = vld [vmem:[#allocation7 + $0x170c] sm:$0xf]  ;;  %v12390_v38 = vor.u32 %v15193_v17, %v12387_v20 }
 0x18f   :  { %v12899_v22 = vld [vmem:[#allocation7 + $0x1748] sm:$0xf0]  ;;  %7056 = vmatpush.bf16.msra.mxu3 %v11622_v6  ;;  %7030 = vmatpush.bf16.msra.mxu1 %v10470_v15  ;;  %v6766_v6 = vpop.f32.mrf.mxu2  ;;  %v6780_v11 = vpop.f32.mrf.mxu3 }
 0x190   :  { %v14841_v25 = vld [vmem:[#allocation7 + $0x80c] sm:$0xf]  ;;  %v12902_v42 = vor.u32 %v15321_v21, %v12899_v22  ;;  %7017 = vmatmul.bf16.vlgmr.msra.gmra.mxu0 %v16050_v59  ;;  %v6767_v12 = vadd.f32 %v6766_v6, %v6753_v23  ;;  %v6794_v23 = vpop.f32.mrf.mxu0 }
 0x191   :  { %v10979_v28 = vld [vmem:[#allocation7 + $0x848] sm:$0xf0]  ;;  %7065 = vmatpush.bf16.msrb.mxu0 %v12454_v16  ;;  %7043 = vmatpush.bf16.msra.mxu2 %v11046_v19 }
 0x192   :  { %v14969_v29 = vld [vmem:[#allocation7 + $0xc0c] sm:$0xf]  ;;  %v10982_v44 = vor.u32 %v14841_v25, %v10979_v28  ;;  %7031 = vmatmul.bf16.vlgmr.msra.gmra.mxu1 %v16052_v0  ;;  %v16116_v19 = vadd.f32 %v6780_v11, %v6767_v12 }
 0x193   :  { %v11491_v33 = vld [vmem:[#allocation7 + $0xc48] sm:$0xf0]  ;;  %7079 = vmatpush.bf16.msrb.mxu1 %v12966_v18  ;;  %7057 = vmatpush.bf16.msra.mxu3 %v11558_v24 }
 0x194   :  { %v15465_v35 = vld [vmem:[#allocation7 + $0x1b8c] sm:$0xf]  ;;  %v11494_v49 = vor.u32 %v14969_v29, %v11491_v33  ;;  %16742 = vst [vmem:[#allocation18_spill] sm:$0xff] %v16116_v19  ;;  %v6795_v29 = vadd.f32 %v6794_v23, %v16725_v13  ;;  %v14834_v23 = vld [vmem:[#allocation7 + $0x7cc] sm:$0xf0] }
 0x195   :  { %v13475_v36 = vld [vmem:[#allocation7 + $0x1bc8] sm:$0xf0]  ;;  %7066 = vmatpush.bf16.msrb.mxu0 %v12390_v38  ;;  %7044 = vmatpush.bf16.msra.mxu2 %v10982_v44  ;;  %v6808_v38 = vpop.f32.mrf.mxu1  ;;  %v12011_v13 = vld [vmem:[#allocation7 + $0x1050] sm:$0xf0] }
 0x196   :  { %v15593_v40 = vld [vmem:[#allocation7 + $0x1f8c] sm:$0xf]  ;;  %v13478_v52 = vor.u32 %v15465_v35, %v13475_v36  ;;  %v6809_v44 = vadd.f32 %v6808_v38, %v6795_v29 }
 0x197   :  { %v13987_v41 = vld [vmem:[#allocation7 + $0x1fc8] sm:$0xf0]  ;;  %7080 = vmatpush.bf16.msrb.mxu1 %v12902_v42  ;;  %7058 = vmatpush.bf16.msra.mxu3 %v11494_v49 }
 0x198   :  { %v15177_v45 = vld [vmem:[#allocation7 + $0x128c] sm:$0xf]  ;;  %v13990_v56 = vor.u32 %v15593_v40, %v13987_v41  ;;  %7045 = vmatmul.bf16.vlgmr.msra.gmra.mxu2 %v16058_v26 }
 0x199   :  { %v12323_v46 = vld [vmem:[#allocation7 + $0x12c8] sm:$0xf0]  ;;  %7093 = vmatpush.bf16.msrb.mxu2 %v13478_v52  ;;  %v16120_v52 = vpop.f32.mrf.mxu2 }
 0x19a   :  { %v15305_v53 = vld [vmem:[#allocation7 + $0x168c] sm:$0xf]  ;;  %v12326_v60 = vor.u32 %v15177_v45, %v12323_v46  ;;  %7059 = vmatmul.bf16.vlgmr.msra.gmra.mxu3 %v16060_v32 }
 0x19b   :  { %v12835_v54 = vld [vmem:[#allocation7 + $0x16c8] sm:$0xf0]  ;;  %7107 = vmatpush.bf16.msrb.mxu3 %v13990_v56 }
 0x19c   :  { %v15449_v57 = vld [vmem:[#allocation7 + $0x1b0c] sm:$0xf]  ;;  %v12838_v63 = vor.u32 %v15305_v53, %v12835_v54  ;;  %7067 = vmatpush.bf16.msrb.mxu0 %v12326_v60 }
 0x19d   :  { %v13411_v58 = vld [vmem:[#allocation7 + $0x1b48] sm:$0xf0] }
 0x19e   :  { %v15577_v61 = vld [vmem:[#allocation7 + $0x1f0c] sm:$0xf]  ;;  %v13414_v3 = vor.u32 %v15449_v57, %v13411_v58  ;;  %7081 = vmatpush.bf16.msrb.mxu1 %v12838_v63  ;;  %v16122_v57 = vpop.f32.mrf.mxu3 }
 0x19f   :  { %v13923_v62 = vld [vmem:[#allocation7 + $0x1f48] sm:$0xf0]  ;;  %16743 = vst [vmem:[#allocation19_spill] sm:$0xff] %v16122_v57 }
 0x1a0   :  { %v15161_v1 = vld [vmem:[#allocation7 + $0x120c] sm:$0xf]  ;;  %v13926_v7 = vor.u32 %v15577_v61, %v13923_v62  ;;  %7094 = vmatpush.bf16.msrb.mxu2 %v13414_v3 }
 0x1a1   :  { %v12259_v2 = vld [vmem:[#allocation7 + $0x1248] sm:$0xf0] }
 0x1a2   :  { %v15289_v4 = vld [vmem:[#allocation7 + $0x160c] sm:$0xf]  ;;  %v12262_v14 = vor.u32 %v15161_v1, %v12259_v2  ;;  %7108 = vmatpush.bf16.msrb.mxu3 %v13926_v7 }
 0x1a3   :  { %v12771_v5 = vld [vmem:[#allocation7 + $0x1648] sm:$0xf0] }
 0x1a4   :  { %v15433_v9 = vld [vmem:[#allocation7 + $0x1a8c] sm:$0xf]  ;;  %v12774_v16 = vor.u32 %v15289_v4, %v12771_v5  ;;  %7068 = vmatpush.bf16.msrb.mxu0 %v12262_v14 }
 0x1a5   :  { %v13347_v34 = vld [vmem:[#allocation7 + $0x1ac8] sm:$0xf0] }
 0x1a6   :  { %v15561_v10 = vld [vmem:[#allocation7 + $0x1e8c] sm:$0xf]  ;;  %v13350_v20 = vor.u32 %v15433_v9, %v13347_v34  ;;  %7082 = vmatpush.bf16.msrb.mxu1 %v12774_v16 }
 0x1a7   :  { %v13859_v15 = vld [vmem:[#allocation7 + $0x1ec8] sm:$0xf0] }
 0x1a8   :  { %v15145_v17 = vld [vmem:[#allocation7 + $0x118c] sm:$0xf]  ;;  %v13862_v24 = vor.u32 %v15561_v10, %v13859_v15  ;;  %7095 = vmatpush.bf16.msrb.mxu2 %v13350_v20  ;;  %v14706_v20 = vld [vmem:[#allocation7 + $0x3cc] sm:$0xf0] }
 0x1a9   :  { %v12195_v18 = vld [vmem:[#allocation7 + $0x11c8] sm:$0xf0] }
 0x1aa   :  { %v15273_v21 = vld [vmem:[#allocation7 + $0x158c] sm:$0xf]  ;;  %v12198_v33 = vor.u32 %v15145_v17, %v12195_v18  ;;  %7109 = vmatpush.bf16.msrb.mxu3 %v13862_v24  ;;  %v10409_v18 = vld [vmem:[#allocation7 + $0x390] sm:$0xf] }
 0x1ab   :  { %v12707_v22 = vld [vmem:[#allocation7 + $0x15c8] sm:$0xf0] }
 0x1ac   :  { %v15417_v25 = vld [vmem:[#allocation7 + $0x1a0c] sm:$0xf]  ;;  %v12710_v40 = vor.u32 %v15273_v21, %v12707_v22  ;;  %7069 = vmatpush.bf16.msrb.mxu0 %v12198_v33  ;;  %v10921_v21 = vld [vmem:[#allocation7 + $0x790] sm:$0xf] }
 0x1ad   :  { %v13283_v28 = vld [vmem:[#allocation7 + $0x1a48] sm:$0xf0] }
 0x1ae   :  { %v15545_v35 = vld [vmem:[#allocation7 + $0x1e0c] sm:$0xf]  ;;  %v13286_v45 = vor.u32 %v15417_v25, %v13283_v28  ;;  %7083 = vmatpush.bf16.msrb.mxu1 %v12710_v40  ;;  %v6822_v28 = vpop.f32.mrf.mxu2  ;;  %v10410_v40 = vor.u32 %v14706_v20, %v10409_v18  ;;  %v11881_v20 = vld [vmem:[#allocation7 + $0xf10] sm:$0xf] }
 0x1af   :  { %v13795_v36 = vld [vmem:[#allocation7 + $0x1e48] sm:$0xf0] }
 0x1b0   :  { %v15129_v41 = vld [vmem:[#allocation7 + $0x110c] sm:$0xf]  ;;  %v13798_v53 = vor.u32 %v15545_v35, %v13795_v36  ;;  %7096 = vmatpush.bf16.msrb.mxu2 %v13286_v45  ;;  %v6823_v36 = vadd.f32 %v6822_v28, %v6809_v44  ;;  %v10922_v45 = vor.u32 %v14834_v23, %v10921_v21  ;;  %v15074_v21 = vld [vmem:[#allocation7 + $0xf4c] sm:$0xf0] }
 0x1b1   :  { %v12131_v42 = vld [vmem:[#allocation7 + $0x1148] sm:$0xf0] }
 0x1b2   :  { %v15257_v46 = vld [vmem:[#allocation7 + $0x150c] sm:$0xf]  ;;  %v12134_v58 = vor.u32 %v15129_v41, %v12131_v42  ;;  %7110 = vmatpush.bf16.msrb.mxu3 %v13798_v53  ;;  %v10345_v41 = vld [vmem:[#allocation7 + $0x310] sm:$0xf]  ;;  %v6836_v42 = vpop.f32.mrf.mxu3 }
 0x1b3   :  { %v12643_v49 = vld [vmem:[#allocation7 + $0x1548] sm:$0xf0]  ;;  %v10857_v53 = vld [vmem:[#allocation7 + $0x710] sm:$0xf] }
 0x1b4   :  { %v15401_v54 = vld [vmem:[#allocation7 + $0x198c] sm:$0xf]  ;;  %v12646_v62 = vor.u32 %v15257_v46, %v12643_v49  ;;  %7070 = vmatpush.bf16.msrb.mxu0 %v12134_v58  ;;  %v14690_v49 = vld [vmem:[#allocation7 + $0x34c] sm:$0xf0] }
 0x1b5   :  { %v13219_v56 = vld [vmem:[#allocation7 + $0x19c8] sm:$0xf0] }
 0x1b6   :  { %v15529_v60 = vld [vmem:[#allocation7 + $0x1d8c] sm:$0xf]  ;;  %v13222_v2 = vor.u32 %v15401_v54, %v13219_v56  ;;  %7084 = vmatpush.bf16.msrb.mxu1 %v12646_v62  ;;  %v14818_v54 = vld [vmem:[#allocation7 + $0x74c] sm:$0xf0]  ;;  %v16124_v56 = vadd.f32 %v6836_v42, %v6823_v36 }
 0x1b7   :  { %v13731_v61 = vld [vmem:[#allocation7 + $0x1dc8] sm:$0xf0]  ;;  %v11305_v36 = vld [vmem:[#allocation7 + $0xa90] sm:$0xf] }
 0x1b8   :  { %v15113_v63 = vld [vmem:[#allocation7 + $0x108c] sm:$0xf]  ;;  %v13734_v5 = vor.u32 %v15529_v60, %v13731_v61  ;;  %7097 = vmatpush.bf16.msrb.mxu2 %v13222_v2  ;;  %v10346_v2 = vor.u32 %v14690_v49, %v10345_v41  ;;  %v11817_v41 = vld [vmem:[#allocation7 + $0xe90] sm:$0xf] }
 0x1b9   :  { %v12067_v1 = vld [vmem:[#allocation7 + $0x10c8] sm:$0xf0]  ;;  %v15058_v42 = vld [vmem:[#allocation7 + $0xecc] sm:$0xf0] }
 0x1ba   :  { %v15241_v3 = vld [vmem:[#allocation7 + $0x148c] sm:$0xf]  ;;  %v12070_v9 = vor.u32 %v15113_v63, %v12067_v1  ;;  %7111 = vmatpush.bf16.msrb.mxu3 %v13734_v5  ;;  %v11433_v63 = vld [vmem:[#allocation7 + $0xb90] sm:$0xf]  ;;  %v10858_v5 = vor.u32 %v14818_v54, %v10857_v53 }
 0x1bb   :  { %v12579_v4 = vld [vmem:[#allocation7 + $0x14c8] sm:$0xf0]  ;;  %v14962_v1 = vld [vmem:[#allocation7 + $0xbcc] sm:$0xf0] }
 0x1bc   :  { %v15385_v6 = vld [vmem:[#allocation7 + $0x190c] sm:$0xf]  ;;  %v12582_v14 = vor.u32 %v15241_v3, %v12579_v4  ;;  %7071 = vmatpush.bf16.msrb.mxu0 %v12070_v9  ;;  %v11945_v3 = vld [vmem:[#allocation7 + $0xf90] sm:$0xf] }
 0x1bd   :  { %v13155_v7 = vld [vmem:[#allocation7 + $0x1948] sm:$0xf0]  ;;  %v15090_v4 = vld [vmem:[#allocation7 + $0xfcc] sm:$0xf0] }
 0x1be   :  { %v15513_v34 = vld [vmem:[#allocation7 + $0x1d0c] sm:$0xf]  ;;  %v13158_v17 = vor.u32 %v15385_v6, %v13155_v7  ;;  %7085 = vmatpush.bf16.msrb.mxu1 %v12582_v14  ;;  %v10281_v7 = vld [vmem:[#allocation7 + $0x290] sm:$0xf] }
 0x1bf   :  { %v13667_v12 = vld [vmem:[#allocation7 + $0x1d48] sm:$0xf0]  ;;  %v14674_v9 = vld [vmem:[#allocation7 + $0x2cc] sm:$0xf0] }
 0x1c0   :  { %v15097_v11 = vld [vmem:[#allocation7 + $0x100c] sm:$0xf]  ;;  %v13670_v22 = vor.u32 %v15513_v34, %v13667_v12  ;;  %7098 = vmatpush.bf16.msrb.mxu2 %v13158_v17  ;;  %v11434_v12 = vor.u32 %v14962_v1, %v11433_v63  ;;  %v14802_v14 = vld [vmem:[#allocation7 + $0x6cc] sm:$0xf0]  ;;  %v10282_v18 = vor.u32 %v14674_v9, %v10281_v7 }
 0x1c1   :  { %v12003_v10 = vld [vmem:[#allocation7 + $0x1048] sm:$0xf0]  ;;  %v14946_v17 = vld [vmem:[#allocation7 + $0xb4c] sm:$0xf0] }
 0x1c2   :  { %v15225_v15 = vld [vmem:[#allocation7 + $0x140c] sm:$0xf]  ;;  %v12006_v29 = vor.u32 %v15097_v11, %v12003_v10  ;;  %7112 = vmatpush.bf16.msrb.mxu3 %v13670_v22  ;;  %v10793_v11 = vld [vmem:[#allocation7 + $0x690] sm:$0xf]  ;;  %v16127_v10 = vpop.f32.mrf.mxu0  ;;  %v16130_v22 = vpop.f32.mrf.mxu1 }
 0x1c3   :  { %v12515_v16 = vld [vmem:[#allocation7 + $0x1448] sm:$0xf0]  ;;  %v10794_v23 = vor.u32 %v14802_v14, %v10793_v11  ;;  %v14642_v49 = vld [vmem:[#allocation7 + $0x1cc] sm:$0xf0]  ;;  %v16135_v14 = vpop.f32.mrf.mxu2 }
 0x1c4   :  { %v15369_v24 = vld [vmem:[#allocation7 + $0x188c] sm:$0xf]  ;;  %v12518_v38 = vor.u32 %v15225_v15, %v12515_v16  ;;  %7072 = vmatpush.bf16.msrb.mxu0 %v12006_v29  ;;  %v11946_v15 = vor.u32 %v15090_v4, %v11945_v3  ;;  %v11369_v16 = vld [vmem:[#allocation7 + $0xb10] sm:$0xf] }
 0x1c5   :  { %v13091_v25 = vld [vmem:[#allocation7 + $0x18c8] sm:$0xf0]  ;;  %v11370_v28 = vor.u32 %v14946_v17, %v11369_v16  ;;  %v10729_v29 = vld [vmem:[#allocation7 + $0x610] sm:$0xf] }
 0x1c6   :  { %v15497_v33 = vld [vmem:[#allocation7 + $0x1c8c] sm:$0xf]  ;;  %v13094_v46 = vor.u32 %v15369_v24, %v13091_v25  ;;  %7086 = vmatpush.bf16.msrb.mxu1 %v12518_v38  ;;  %v10217_v24 = vld [vmem:[#allocation7 + $0x210] sm:$0xf] }
 0x1c7   :  { %v13603_v35 = vld [vmem:[#allocation7 + $0x1cc8] sm:$0xf0]  ;;  %7073 = vmatmul.bf16.vlgmr.msrb.gmra.mxu0 %v16066_v8  ;;  %v14658_v25 = vld [vmem:[#allocation7 + $0x24c] sm:$0xf0] }
 0x1c8   :  { %v13606_v58 = vor.u32 %v15497_v33, %v13603_v35  ;;  %v15353_v60 = vld [vmem:[#allocation7 + $0x180c] sm:$0xf]  ;;  %7121 = vmatpush.bf16.msra.mxu0 %v10410_v40  ;;  %7099 = vmatpush.bf16.msrb.mxu2 %v13094_v46  ;;  %v14786_v33 = vld [vmem:[#allocation7 + $0x64c] sm:$0xf0]  ;;  %v11882_v35 = vor.u32 %v15074_v21, %v11881_v20  ;;  %v10218_v40 = vor.u32 %v14658_v25, %v10217_v24  ;;  %v16137_v21 = vpop.f32.mrf.mxu3 }
 0x1c9   :  { %v13027_v61 = vld [vmem:[#allocation7 + $0x1848] sm:$0xf0]  ;;  %7087 = vmatmul.bf16.vlgmr.msrb.gmra.mxu1 %v16068_v51  ;;  %v14930_v38 = vld [vmem:[#allocation7 + $0xacc] sm:$0xf0] }
 0x1ca   :  { %v15481_v62 = vld [vmem:[#allocation7 + $0x1c0c] sm:$0xf]  ;;  %7135 = vmatpush.bf16.msra.mxu1 %v10922_v45  ;;  %v13030_v6 = vor.u32 %v15353_v60, %v13027_v61  ;;  %7113 = vmatpush.bf16.msrb.mxu3 %v13606_v58  ;;  %v10730_v45 = vor.u32 %v14786_v33, %v10729_v29  ;;  %v10153_v46 = vld [vmem:[#allocation7 + $0x190] sm:$0xf]  ;;  %v11306_v53 = vor.u32 %v14930_v38, %v11305_v36  ;;  %v6850_v60 = vpop.f32.mrf.mxu0  ;;  %v6864_v4 = vpop.f32.mrf.mxu1 }
 0x1cb   :  { %v13539_v44 = vld [vmem:[#allocation7 + $0x1c48] sm:$0xf0]  ;;  %v10665_v54 = vld [vmem:[#allocation7 + $0x590] sm:$0xf]  ;;  %v11818_v61 = vor.u32 %v15058_v42, %v11817_v41  ;;  %v6851_v63 = vadd.f32 %v6850_v60, %v16124_v56  ;;  %v10154_v1 = vor.u32 %v14642_v49, %v10153_v46 }
 0x1cc   :  { %v13542_v34 = vor.u32 %v15481_v62, %v13539_v44  ;;  %7122 = vmatpush.bf16.msra.mxu0 %v10346_v2  ;;  %7100 = vmatpush.bf16.msrb.mxu2 %v13030_v6  ;;  %v14770_v58 = vld [vmem:[#allocation7 + $0x5cc] sm:$0xf0] }
 0x1cd   :  { %v11241_v62 = vld [vmem:[#allocation7 + $0xa10] sm:$0xf]  ;;  %v6865_v9 = vadd.f32 %v6864_v4, %v6851_v63 }
 0x1ce   :  { %7136 = vmatpush.bf16.msra.mxu1 %v10858_v5  ;;  %7114 = vmatpush.bf16.msrb.mxu3 %v13542_v34  ;;  %v14914_v44 = vld [vmem:[#allocation7 + $0xa4c] sm:$0xf0]  ;;  %v10666_v5 = vor.u32 %v14770_v58, %v10665_v54 }
 0x1cf   :  { %7101 = vmatmul.bf16.vlgmr.msrb.gmra.mxu2 %v16072_v43  ;;  %v11753_v2 = vld [vmem:[#allocation7 + $0xe10] sm:$0xf]  ;;  %v11242_v34 = vor.u32 %v14914_v44, %v11241_v62  ;;  %v6878_v44 = vpop.f32.mrf.mxu2 }
 0x1d0   :  { %7149 = vmatpush.bf16.msra.mxu2 %v11434_v12  ;;  %7123 = vmatpush.bf16.msra.mxu0 %v10282_v18  ;;  %v15042_v3 = vld [vmem:[#allocation7 + $0xe4c] sm:$0xf0]  ;;  %v6879_v4 = vadd.f32 %v6878_v44, %v6865_v9 }
 0x1d1   :  { %7115 = vmatmul.bf16.vlgmr.msrb.gmra.mxu3 %v16074_v48  ;;  %v10089_v6 = vld [vmem:[#allocation7 + $0x110] sm:$0xf] }
 0x1d2   :  { %7163 = vmatpush.bf16.msra.mxu3 %v11946_v15  ;;  %7137 = vmatpush.bf16.msra.mxu1 %v10794_v23  ;;  %v14626_v7 = vld [vmem:[#allocation7 + $0x14c] sm:$0xf0]  ;;  %v11754_v15 = vor.u32 %v15042_v3, %v11753_v2 }
 0x1d3   :  { %v10601_v12 = vld [vmem:[#allocation7 + $0x510] sm:$0xf]  ;;  %v10090_v17 = vor.u32 %v14626_v7, %v10089_v6 }
 0x1d4   :  { %7150 = vmatpush.bf16.msra.mxu2 %v11370_v28  ;;  %7124 = vmatpush.bf16.msra.mxu0 %v10218_v40  ;;  %v14754_v11 = vld [vmem:[#allocation7 + $0x54c] sm:$0xf0] }
 0x1d5   :  { %v11177_v16 = vld [vmem:[#allocation7 + $0x990] sm:$0xf]  ;;  %v10602_v23 = vor.u32 %v14754_v11, %v10601_v12 }
 0x1d6   :  { %7164 = vmatpush.bf16.msra.mxu3 %v11882_v35  ;;  %7138 = vmatpush.bf16.msra.mxu1 %v10730_v45  ;;  %v14898_v56 = vld [vmem:[#allocation7 + $0x9cc] sm:$0xf0] }
 0x1d7   :  { %v11689_v18 = vld [vmem:[#allocation7 + $0xd90] sm:$0xf]  ;;  %v11178_v28 = vor.u32 %v14898_v56, %v11177_v16 }
 0x1d8   :  { %7151 = vmatpush.bf16.msra.mxu2 %v11306_v53  ;;  %7125 = vmatpush.bf16.msra.mxu0 %v10154_v1  ;;  %v15026_v20 = vld [vmem:[#allocation7 + $0xdcc] sm:$0xf0] }
 0x1d9   :  { %v10025_v24 = vld [vmem:[#allocation7 + $0x90] sm:$0xf]  ;;  %v11690_v35 = vor.u32 %v15026_v20, %v11689_v18 }
 0x1da   :  { %7165 = vmatpush.bf16.msra.mxu3 %v11818_v61  ;;  %7139 = vmatpush.bf16.msra.mxu1 %v10666_v5  ;;  %v14610_v25 = vld [vmem:[#allocation7 + $0xcc] sm:$0xf0] }
 0x1db   :  { %v10537_v29 = vld [vmem:[#allocation7 + $0x490] sm:$0xf]  ;;  %v10026_v40 = vor.u32 %v14610_v25, %v10025_v24 }
 0x1dc   :  { %7152 = vmatpush.bf16.msra.mxu2 %v11242_v34  ;;  %v14738_v33 = vld [vmem:[#allocation7 + $0x4cc] sm:$0xf0]  ;;  %7126 = vmatpush.bf16.msra.mxu0 %v10090_v17  ;;  %v6892_v34 = vpop.f32.mrf.mxu3 }
 0x1dd   :  { %v11113_v36 = vld [vmem:[#allocation7 + $0x910] sm:$0xf]  ;;  %v10538_v46 = vor.u32 %v14738_v33, %v10537_v29  ;;  %v16139_v16 = vadd.f32 %v6892_v34, %v6879_v4 }
 0x1de   :  { %7166 = vmatpush.bf16.msra.mxu3 %v11754_v15  ;;  %v14882_v38 = vld [vmem:[#allocation7 + $0x94c] sm:$0xf0]  ;;  %7140 = vmatpush.bf16.msra.mxu1 %v10602_v23 }
 0x1df   :  { %v11625_v41 = vld [vmem:[#allocation7 + $0xd10] sm:$0xf]  ;;  %v11114_v58 = vor.u32 %v14882_v38, %v11113_v36  ;;  %16744 = vst [vmem:[#allocation20_spill] sm:$0xff] %v16139_v16 }
 0x1e0   :  { %v15010_v42 = vld [vmem:[#allocation7 + $0xd4c] sm:$0xf0]  ;;  %7153 = vmatpush.bf16.msra.mxu2 %v11178_v28  ;;  %7127 = vmatpush.bf16.msra.mxu0 %v10026_v40 }
 0x1e1   :  { %v9961_v45 = vld [vmem:[#allocation7 + $0x10] sm:$0xf]  ;;  %v11626_v63 = vor.u32 %v15010_v42, %v11625_v41 }
 0x1e2   :  { %v14594_v49 = vld [vmem:[#allocation7 + $0x4c] sm:$0xf0]  ;;  %7167 = vmatpush.bf16.msra.mxu3 %v11690_v35  ;;  %7141 = vmatpush.bf16.msra.mxu1 %v10538_v46 }
 0x1e3   :  { %v10473_v53 = vld [vmem:[#allocation7 + $0x410] sm:$0xf]  ;;  %v9962_v5 = vor.u32 %v14594_v49, %v9961_v45 }
 0x1e4   :  { %v14722_v54 = vld [vmem:[#allocation7 + $0x44c] sm:$0xf0]  ;;  %7154 = vmatpush.bf16.msra.mxu2 %v11114_v58 }
 0x1e5   :  { %v12457_v60 = vld [vmem:[#allocation7 + $0x1390] sm:$0xf]  ;;  %v10474_v12 = vor.u32 %v14722_v54, %v10473_v53  ;;  %7128 = vmatpush.bf16.msra.mxu0 %v9962_v5 }
 0x1e6   :  { %v15218_v61 = vld [vmem:[#allocation7 + $0x13cc] sm:$0xf0]  ;;  %7168 = vmatpush.bf16.msra.mxu3 %v11626_v63 }
 0x1e7   :  { %v12969_v62 = vld [vmem:[#allocation7 + $0x1790] sm:$0xf]  ;;  %v12458_v11 = vor.u32 %v15218_v61, %v12457_v60  ;;  %7142 = vmatpush.bf16.msra.mxu1 %v10474_v12  ;;  %v16142_v60 = vpop.f32.mrf.mxu0 }
 0x1e8   :  { %v15346_v1 = vld [vmem:[#allocation7 + $0x17cc] sm:$0xf0]  ;;  %7129 = vmatmul.bf16.vlgmr.msra.gmra.mxu0 %v16050_v59 }
 0x1e9   :  { %v11049_v2 = vld [vmem:[#allocation7 + $0x890] sm:$0xf]  ;;  %v12970_v56 = vor.u32 %v15346_v1, %v12969_v62  ;;  %7177 = vmatpush.bf16.msrb.mxu0 %v12458_v11 }
 0x1ea   :  { %v14866_v3 = vld [vmem:[#allocation7 + $0x8cc] sm:$0xf0]  ;;  %7143 = vmatmul.bf16.vlgmr.msra.gmra.mxu1 %v16052_v0 }
 0x1eb   :  { %v11561_v6 = vld [vmem:[#allocation7 + $0xc90] sm:$0xf]  ;;  %v11050_v17 = vor.u32 %v14866_v3, %v11049_v2  ;;  %7191 = vmatpush.bf16.msrb.mxu1 %v12970_v56  ;;  %v16145_v3 = vpop.f32.mrf.mxu1 }
 0x1ec   :  { %v14994_v7 = vld [vmem:[#allocation7 + $0xccc] sm:$0xf0] }
 0x1ed   :  { %v12393_v15 = vld [vmem:[#allocation7 + $0x1310] sm:$0xf]  ;;  %v11562_v24 = vor.u32 %v14994_v7, %v11561_v6  ;;  %7155 = vmatpush.bf16.msra.mxu2 %v11050_v17  ;;  %v16723_v17 = vperm.slane %v16090_v39, 2 }
 0x1ee   :  { %v15202_v18 = vld [vmem:[#allocation7 + $0x134c] sm:$0xf0] }
 0x1ef   :  { %v12905_v20 = vld [vmem:[#allocation7 + $0x1710] sm:$0xf]  ;;  %v12394_v36 = vor.u32 %v15202_v18, %v12393_v15  ;;  %7169 = vmatpush.bf16.msra.mxu3 %v11562_v24 }
 0x1f0   :  { %v15330_v23 = vld [vmem:[#allocation7 + $0x174c] sm:$0xf0] }
 0x1f1   :  { %v10985_v9 = vld [vmem:[#allocation7 + $0x810] sm:$0xf]  ;;  %v12906_v41 = vor.u32 %v15330_v23, %v12905_v20  ;;  %7178 = vmatpush.bf16.msrb.mxu0 %v12394_v36 }
 0x1f2   :  { %v14850_v25 = vld [vmem:[#allocation7 + $0x84c] sm:$0xf0] }
 0x1f3   :  { %v11497_v28 = vld [vmem:[#allocation7 + $0xc10] sm:$0xf]  ;;  %v10986_v42 = vor.u32 %v14850_v25, %v10985_v9  ;;  %7192 = vmatpush.bf16.msrb.mxu1 %v12906_v41 }
 0x1f4   :  { %v14978_v29 = vld [vmem:[#allocation7 + $0xc4c] sm:$0xf0] }
 0x1f5   :  { %v13481_v33 = vld [vmem:[#allocation7 + $0x1b90] sm:$0xf]  ;;  %v11498_v49 = vor.u32 %v14978_v29, %v11497_v28  ;;  %7156 = vmatpush.bf16.msra.mxu2 %v10986_v42 }
 0x1f6   :  { %v15474_v35 = vld [vmem:[#allocation7 + $0x1bcc] sm:$0xf0] }
 0x1f7   :  { %v13993_v38 = vld [vmem:[#allocation7 + $0x1f90] sm:$0xf]  ;;  %v13482_v53 = vor.u32 %v15474_v35, %v13481_v33  ;;  %7170 = vmatpush.bf16.msra.mxu3 %v11498_v49  ;;  %v6906_v35 = vpop.f32.mrf.mxu0  ;;  %v6920_v49 = vpop.f32.mrf.mxu1 }
 0x1f8   :  { %v15602_v40 = vld [vmem:[#allocation7 + $0x1fcc] sm:$0xf0]  ;;  %7157 = vmatmul.bf16.vlgmr.msra.gmra.mxu2 %v16058_v26  ;;  %v6907_v41 = vadd.f32 %v6906_v35, %v16723_v17 }
 0x1f9   :  { %v12329_v45 = vld [vmem:[#allocation7 + $0x1290] sm:$0xf]  ;;  %v13994_v61 = vor.u32 %v15602_v40, %v13993_v38  ;;  %7205 = vmatpush.bf16.msrb.mxu2 %v13482_v53 }
 0x1fa   :  { %v15186_v46 = vld [vmem:[#allocation7 + $0x12cc] sm:$0xf0]  ;;  %7171 = vmatmul.bf16.vlgmr.msra.gmra.mxu3 %v16060_v32 }
 0x1fb   :  { %v12841_v54 = vld [vmem:[#allocation7 + $0x1690] sm:$0xf]  ;;  %v12330_v63 = vor.u32 %v15186_v46, %v12329_v45  ;;  %7219 = vmatpush.bf16.msrb.mxu3 %v13994_v61  ;;  %v6921_v61 = vadd.f32 %v6920_v49, %v6907_v41  ;;  %v14826_v49 = vld [vmem:[#allocation7 + $0x794] sm:$0xf] }
 0x1fc   :  { %v15314_v58 = vld [vmem:[#allocation7 + $0x16cc] sm:$0xf0] }
 0x1fd   :  { %v13417_v62 = vld [vmem:[#allocation7 + $0x1b10] sm:$0xf]  ;;  %v12842_v4 = vor.u32 %v15314_v58, %v12841_v54  ;;  %7179 = vmatpush.bf16.msrb.mxu0 %v12330_v63 }
 0x1fe   :  { %v15458_v44 = vld [vmem:[#allocation7 + $0x1b4c] sm:$0xf0] }
 0x1ff   :  { %v13929_v1 = vld [vmem:[#allocation7 + $0x1f10] sm:$0xf]  ;;  %v13418_v7 = vor.u32 %v15458_v44, %v13417_v62  ;;  %7193 = vmatpush.bf16.msrb.mxu1 %v12842_v4 }
 0x200   :  { %v15586_v2 = vld [vmem:[#allocation7 + $0x1f4c] sm:$0xf0] }
 0x201   :  { %v12265_v5 = vld [vmem:[#allocation7 + $0x1210] sm:$0xf]  ;;  %v13930_v11 = vor.u32 %v15586_v2, %v13929_v1  ;;  %7206 = vmatpush.bf16.msrb.mxu2 %v13418_v7  ;;  %v16152_v1 = vpop.f32.mrf.mxu2 }
 0x202   :  { %v15170_v6 = vld [vmem:[#allocation7 + $0x124c] sm:$0xf0]  ;;  %16745 = vst [vmem:[#allocation21_spill] sm:$0xff] %v16152_v1 }
 0x203   :  { %v12777_v34 = vld [vmem:[#allocation7 + $0x1610] sm:$0xf]  ;;  %v12266_v18 = vor.u32 %v15170_v6, %v12265_v5  ;;  %7220 = vmatpush.bf16.msrb.mxu3 %v13930_v11 }
 0x204   :  { %v15298_v12 = vld [vmem:[#allocation7 + $0x164c] sm:$0xf0] }
 0x205   :  { %v13353_v15 = vld [vmem:[#allocation7 + $0x1a90] sm:$0xf]  ;;  %v12778_v24 = vor.u32 %v15298_v12, %v12777_v34  ;;  %7180 = vmatpush.bf16.msrb.mxu0 %v12266_v18  ;;  %v16154_v12 = vpop.f32.mrf.mxu3 }
 0x206   :  { %v15442_v56 = vld [vmem:[#allocation7 + $0x1acc] sm:$0xf0]  ;;  %16746 = vst [vmem:[#allocation22_spill] sm:$0xff] %v16154_v12 }
 0x207   :  { %v13865_v20 = vld [vmem:[#allocation7 + $0x1e90] sm:$0xf]  ;;  %v13354_v28 = vor.u32 %v15442_v56, %v13353_v15  ;;  %7194 = vmatpush.bf16.msrb.mxu1 %v12778_v24 }
 0x208   :  { %v15570_v23 = vld [vmem:[#allocation7 + $0x1ecc] sm:$0xf0] }
 0x209   :  { %v12201_v9 = vld [vmem:[#allocation7 + $0x1190] sm:$0xf]  ;;  %v13866_v36 = vor.u32 %v15570_v23, %v13865_v20  ;;  %7207 = vmatpush.bf16.msrb.mxu2 %v13354_v28 }
 0x20a   :  { %v15154_v25 = vld [vmem:[#allocation7 + $0x11cc] sm:$0xf0] }
 0x20b   :  { %v12713_v29 = vld [vmem:[#allocation7 + $0x1590] sm:$0xf]  ;;  %v12202_v42 = vor.u32 %v15154_v25, %v12201_v9  ;;  %7221 = vmatpush.bf16.msrb.mxu3 %v13866_v36 }
 0x20c   :  { %v15282_v33 = vld [vmem:[#allocation7 + $0x15cc] sm:$0xf0] }
 0x20d   :  { %v13289_v38 = vld [vmem:[#allocation7 + $0x1a10] sm:$0xf]  ;;  %v12714_v53 = vor.u32 %v15282_v33, %v12713_v29  ;;  %7181 = vmatpush.bf16.msrb.mxu0 %v12202_v42 }
 0x20e   :  { %v15426_v40 = vld [vmem:[#allocation7 + $0x1a4c] sm:$0xf0] }
 0x20f   :  { %v13801_v45 = vld [vmem:[#allocation7 + $0x1e10] sm:$0xf]  ;;  %v13290_v62 = vor.u32 %v15426_v40, %v13289_v38  ;;  %7195 = vmatpush.bf16.msrb.mxu1 %v12714_v53  ;;  %v6934_v53 = vpop.f32.mrf.mxu2 }
 0x210   :  { %v15554_v46 = vld [vmem:[#allocation7 + $0x1e4c] sm:$0xf0] }
 0x211   :  { %v12137_v54 = vld [vmem:[#allocation7 + $0x1110] sm:$0xf]  ;;  %v13802_v2 = vor.u32 %v15554_v46, %v13801_v45  ;;  %7208 = vmatpush.bf16.msrb.mxu2 %v13290_v62  ;;  %v14698_v45 = vld [vmem:[#allocation7 + $0x394] sm:$0xf] }
 0x212   :  { %v15138_v58 = vld [vmem:[#allocation7 + $0x114c] sm:$0xf0]  ;;  %v10411_v46 = vld [vmem:[#allocation7 + $0x3d0] sm:$0xf0] }
 0x213   :  { %v12649_v44 = vld [vmem:[#allocation7 + $0x1510] sm:$0xf]  ;;  %v12138_v6 = vor.u32 %v15138_v58, %v12137_v54  ;;  %7222 = vmatpush.bf16.msrb.mxu3 %v13802_v2  ;;  %v10923_v58 = vld [vmem:[#allocation7 + $0x7d0] sm:$0xf0] }
 0x214   :  { %v15266_v63 = vld [vmem:[#allocation7 + $0x154c] sm:$0xf0] }
 0x215   :  { %v13225_v4 = vld [vmem:[#allocation7 + $0x1990] sm:$0xf]  ;;  %v12650_v11 = vor.u32 %v15266_v63, %v12649_v44  ;;  %7182 = vmatpush.bf16.msrb.mxu0 %v12138_v6  ;;  %v6935_v63 = vadd.f32 %v6934_v53, %v6921_v61  ;;  %v6948_v6 = vpop.f32.mrf.mxu3 }
 0x216   :  { %v15410_v5 = vld [vmem:[#allocation7 + $0x19cc] sm:$0xf0] }
 0x217   :  { %v13737_v7 = vld [vmem:[#allocation7 + $0x1d90] sm:$0xf]  ;;  %v13226_v18 = vor.u32 %v15410_v5, %v13225_v4  ;;  %7196 = vmatpush.bf16.msrb.mxu1 %v12650_v11  ;;  %v14682_v11 = vld [vmem:[#allocation7 + $0x314] sm:$0xf] }
 0x218   :  { %v15538_v34 = vld [vmem:[#allocation7 + $0x1dcc] sm:$0xf0] }
 0x219   :  { %v12073_v15 = vld [vmem:[#allocation7 + $0x1090] sm:$0xf]  ;;  %v13738_v24 = vor.u32 %v15538_v34, %v13737_v7  ;;  %7209 = vmatpush.bf16.msrb.mxu2 %v13226_v18  ;;  %v10414_v34 = vor.u32 %v14698_v45, %v10411_v46  ;;  %v14666_v45 = vld [vmem:[#allocation7 + $0x294] sm:$0xf] }
 0x21a   :  { %v15122_v56 = vld [vmem:[#allocation7 + $0x10cc] sm:$0xf0]  ;;  %v10283_v46 = vld [vmem:[#allocation7 + $0x2d0] sm:$0xf0] }
 0x21b   :  { %v12585_v20 = vld [vmem:[#allocation7 + $0x1490] sm:$0xf]  ;;  %v12074_v28 = vor.u32 %v15122_v56, %v12073_v15  ;;  %7223 = vmatpush.bf16.msrb.mxu3 %v13738_v24  ;;  %v16156_v15 = vadd.f32 %v6948_v6, %v6935_v63  ;;  %v10926_v56 = vor.u32 %v14826_v49, %v10923_v58  ;;  %v10859_v24 = vld [vmem:[#allocation7 + $0x750] sm:$0xf0] }
 0x21c   :  { %v15250_v23 = vld [vmem:[#allocation7 + $0x14cc] sm:$0xf0]  ;;  %v10795_v58 = vld [vmem:[#allocation7 + $0x6d0] sm:$0xf0] }
 0x21d   :  { %v13161_v9 = vld [vmem:[#allocation7 + $0x1910] sm:$0xf]  ;;  %v12586_v36 = vor.u32 %v15250_v23, %v12585_v20  ;;  %7183 = vmatpush.bf16.msrb.mxu0 %v12074_v28  ;;  %v10347_v20 = vld [vmem:[#allocation7 + $0x350] sm:$0xf0] }
 0x21e   :  { %v15394_v25 = vld [vmem:[#allocation7 + $0x194c] sm:$0xf0]  ;;  %v14810_v23 = vld [vmem:[#allocation7 + $0x714] sm:$0xf] }
 0x21f   :  { %v13673_v29 = vld [vmem:[#allocation7 + $0x1d10] sm:$0xf]  ;;  %v13162_v42 = vor.u32 %v15394_v25, %v13161_v9  ;;  %7197 = vmatpush.bf16.msrb.mxu1 %v12586_v36  ;;  %v10350_v36 = vor.u32 %v14682_v11, %v10347_v20  ;;  %v14938_v63 = vld [vmem:[#allocation7 + $0xb14] sm:$0xf] }
 0x220   :  { %v15522_v33 = vld [vmem:[#allocation7 + $0x1d4c] sm:$0xf0]  ;;  %v11883_v6 = vld [vmem:[#allocation7 + $0xf50] sm:$0xf0] }
 0x221   :  { %v12009_v35 = vld [vmem:[#allocation7 + $0x1010] sm:$0xf]  ;;  %v13674_v54 = vor.u32 %v15522_v33, %v13673_v29  ;;  %7210 = vmatpush.bf16.msrb.mxu2 %v13162_v42  ;;  %v14954_v33 = vld [vmem:[#allocation7 + $0xb94] sm:$0xf] }
 0x222   :  { %v15106_v38 = vld [vmem:[#allocation7 + $0x104c] sm:$0xf0]  ;;  %v14650_v11 = vld [vmem:[#allocation7 + $0x214] sm:$0xf] }
 0x223   :  { %v12521_v40 = vld [vmem:[#allocation7 + $0x1410] sm:$0xf]  ;;  %v12010_v2 = vor.u32 %v15106_v38, %v12009_v35  ;;  %7224 = vmatpush.bf16.msrb.mxu3 %v13674_v54  ;;  %v11435_v35 = vld [vmem:[#allocation7 + $0xbd0] sm:$0xf0] }
 0x224   :  { %v15234_v41 = vld [vmem:[#allocation7 + $0x144c] sm:$0xf0]  ;;  %v15082_v38 = vld [vmem:[#allocation7 + $0xf94] sm:$0xf]  ;;  %v11438_v53 = vor.u32 %v14954_v33, %v11435_v35 }
 0x225   :  { %v13097_v62 = vld [vmem:[#allocation7 + $0x1890] sm:$0xf]  ;;  %v12522_v7 = vor.u32 %v15234_v41, %v12521_v40  ;;  %7184 = vmatpush.bf16.msrb.mxu0 %v12010_v2  ;;  %v11947_v40 = vld [vmem:[#allocation7 + $0xfd0] sm:$0xf0]  ;;  %v10862_v41 = vor.u32 %v14810_v23, %v10859_v24 }
 0x226   :  { %v15378_v44 = vld [vmem:[#allocation7 + $0x18cc] sm:$0xf0]  ;;  %v14794_v54 = vld [vmem:[#allocation7 + $0x694] sm:$0xf] }
 0x227   :  { %v13609_v4 = vld [vmem:[#allocation7 + $0x1c90] sm:$0xf]  ;;  %v13098_v18 = vor.u32 %v15378_v44, %v13097_v62  ;;  %7198 = vmatpush.bf16.msrb.mxu1 %v12522_v7  ;;  %v16159_v62 = vpop.f32.mrf.mxu0  ;;  %v11950_v44 = vor.u32 %v15082_v38, %v11947_v40  ;;  %v11371_v2 = vld [vmem:[#allocation7 + $0xb50] sm:$0xf0]  ;;  %v16162_v7 = vpop.f32.mrf.mxu1 }
 0x228   :  { %v15506_v5 = vld [vmem:[#allocation7 + $0x1ccc] sm:$0xf0]  ;;  %7185 = vmatmul.bf16.vlgmr.msrb.gmra.mxu0 %v16066_v8  ;;  %v14778_v20 = vld [vmem:[#allocation7 + $0x614] sm:$0xf] }
 0x229   :  { %v13610_v9 = vor.u32 %v15506_v5, %v13609_v4  ;;  %v13033_v61 = vld [vmem:[#allocation7 + $0x1810] sm:$0xf]  ;;  %7233 = vmatpush.bf16.msra.mxu0 %v10414_v34  ;;  %7211 = vmatpush.bf16.msrb.mxu2 %v13098_v18  ;;  %v10286_v4 = vor.u32 %v14666_v45, %v10283_v46  ;;  %v15066_v5 = vld [vmem:[#allocation7 + $0xf14] sm:$0xf]  ;;  %v10798_v34 = vor.u32 %v14794_v54, %v10795_v58 }
 0x22a   :  { %v15362_v25 = vld [vmem:[#allocation7 + $0x184c] sm:$0xf0]  ;;  %7199 = vmatmul.bf16.vlgmr.msrb.gmra.mxu1 %v16068_v51  ;;  %v11374_v18 = vor.u32 %v14938_v63, %v11371_v2  ;;  %v10731_v23 = vld [vmem:[#allocation7 + $0x650] sm:$0xf0]  ;;  %v11886_v24 = vor.u32 %v15066_v5, %v11883_v6 }
 0x22b   :  { %v13545_v28 = vld [vmem:[#allocation7 + $0x1c10] sm:$0xf]  ;;  %7247 = vmatpush.bf16.msra.mxu1 %v10926_v56  ;;  %v13034_v42 = vor.u32 %v15362_v25, %v13033_v61  ;;  %7225 = vmatpush.bf16.msrb.mxu3 %v13610_v9  ;;  %v10219_v56 = vld [vmem:[#allocation7 + $0x250] sm:$0xf0]  ;;  %v10734_v33 = vor.u32 %v14778_v20, %v10731_v23 }
 0x22c   :  { %v15490_v29 = vld [vmem:[#allocation7 + $0x1c4c] sm:$0xf0]  ;;  %v14922_v9 = vld [vmem:[#allocation7 + $0xa94] sm:$0xf]  ;;  %v10222_v25 = vor.u32 %v14650_v11, %v10219_v56 }
 0x22d   :  { %v13546_v49 = vor.u32 %v15490_v29, %v13545_v28  ;;  %7234 = vmatpush.bf16.msra.mxu0 %v10350_v36  ;;  %7212 = vmatpush.bf16.msrb.mxu2 %v13034_v42  ;;  %v11307_v61 = vld [vmem:[#allocation7 + $0xad0] sm:$0xf0] }
 0x22e   :  { %v15050_v28 = vld [vmem:[#allocation7 + $0xe94] sm:$0xf]  ;;  %v11310_v38 = vor.u32 %v14922_v9, %v11307_v61 }
 0x22f   :  { %7248 = vmatpush.bf16.msra.mxu1 %v10862_v41  ;;  %7226 = vmatpush.bf16.msrb.mxu3 %v13546_v49  ;;  %v11819_v29 = vld [vmem:[#allocation7 + $0xed0] sm:$0xf0]  ;;  %v6962_v42 = vpop.f32.mrf.mxu0  ;;  %v6976_v63 = vpop.f32.mrf.mxu1 }
 0x230   :  { %7213 = vmatmul.bf16.vlgmr.msrb.gmra.mxu2 %v16072_v43  ;;  %v14634_v35 = vld [vmem:[#allocation7 + $0x194] sm:$0xf]  ;;  %v11822_v45 = vor.u32 %v15050_v28, %v11819_v29 }
 0x231   :  { %7261 = vmatpush.bf16.msra.mxu2 %v11438_v53  ;;  %7235 = vmatpush.bf16.msra.mxu0 %v10286_v4  ;;  %v10155_v36 = vld [vmem:[#allocation7 + $0x1d0] sm:$0xf0]  ;;  %v6963_v53 = vadd.f32 %v6962_v42, %v16156_v15 }
 0x232   :  { %7227 = vmatmul.bf16.vlgmr.msrb.gmra.mxu3 %v16074_v48  ;;  %v14762_v40 = vld [vmem:[#allocation7 + $0x594] sm:$0xf]  ;;  %v10158_v54 = vor.u32 %v14634_v35, %v10155_v36 }
 0x233   :  { %7275 = vmatpush.bf16.msra.mxu3 %v11950_v44  ;;  %7249 = vmatpush.bf16.msra.mxu1 %v10798_v34  ;;  %v10667_v41 = vld [vmem:[#allocation7 + $0x5d0] sm:$0xf0]  ;;  %v6977_v6 = vadd.f32 %v6976_v63, %v6963_v53 }
 0x234   :  { %v14906_v46 = vld [vmem:[#allocation7 + $0xa14] sm:$0xf]  ;;  %v10670_v2 = vor.u32 %v14762_v40, %v10667_v41 }
 0x235   :  { %7262 = vmatpush.bf16.msra.mxu2 %v11374_v18  ;;  %v11243_v49 = vld [vmem:[#allocation7 + $0xa50] sm:$0xf0]  ;;  %7236 = vmatpush.bf16.msra.mxu0 %v10222_v25  ;;  %v16167_v18 = vpop.f32.mrf.mxu2  ;;  %v16169_v25 = vpop.f32.mrf.mxu3 }
 0x236   :  { %v15034_v58 = vld [vmem:[#allocation7 + $0xe14] sm:$0xf]  ;;  %v11246_v34 = vor.u32 %v14906_v46, %v11243_v49 }
 0x237   :  { %7276 = vmatpush.bf16.msra.mxu3 %v11886_v24  ;;  %v11755_v44 = vld [vmem:[#allocation7 + $0xe50] sm:$0xf0]  ;;  %7250 = vmatpush.bf16.msra.mxu1 %v10734_v33 }
 0x238   :  { %v14618_v4 = vld [vmem:[#allocation7 + $0x114] sm:$0xf]  ;;  %v11758_v20 = vor.u32 %v15034_v58, %v11755_v44 }
 0x239   :  { %v10091_v5 = vld [vmem:[#allocation7 + $0x150] sm:$0xf0]  ;;  %7263 = vmatpush.bf16.msra.mxu2 %v11310_v38  ;;  %7237 = vmatpush.bf16.msra.mxu0 %v10158_v54 }
 0x23a   :  { %v14746_v11 = vld [vmem:[#allocation7 + $0x514] sm:$0xf]  ;;  %v10094_v24 = vor.u32 %v14618_v4, %v10091_v5 }
 0x23b   :  { %v10603_v56 = vld [vmem:[#allocation7 + $0x550] sm:$0xf0]  ;;  %7277 = vmatpush.bf16.msra.mxu3 %v11822_v45  ;;  %7251 = vmatpush.bf16.msra.mxu1 %v10670_v2 }
 0x23c   :  { %v14890_v23 = vld [vmem:[#allocation7 + $0x994] sm:$0xf]  ;;  %v10606_v28 = vor.u32 %v14746_v11, %v10603_v56 }
 0x23d   :  { %v11179_v15 = vld [vmem:[#allocation7 + $0x9d0] sm:$0xf0]  ;;  %7264 = vmatpush.bf16.msra.mxu2 %v11246_v34  ;;  %7238 = vmatpush.bf16.msra.mxu0 %v10094_v24  ;;  %v6990_v11 = vpop.f32.mrf.mxu2 }
 0x23e   :  { %v15018_v9 = vld [vmem:[#allocation7 + $0xd94] sm:$0xf]  ;;  %v11182_v35 = vor.u32 %v14890_v23, %v11179_v15  ;;  %v6991_v24 = vadd.f32 %v6990_v11, %v6977_v6 }
 0x23f   :  { %v11691_v61 = vld [vmem:[#allocation7 + $0xdd0] sm:$0xf0]  ;;  %7278 = vmatpush.bf16.msra.mxu3 %v11758_v20  ;;  %7252 = vmatpush.bf16.msra.mxu1 %v10606_v28 }
 0x240   :  { %v14602_v29 = vld [vmem:[#allocation7 + $0x94] sm:$0xf]  ;;  %v11694_v40 = vor.u32 %v15018_v9, %v11691_v61 }
 0x241   :  { %v10027_v33 = vld [vmem:[#allocation7 + $0xd0] sm:$0xf0]  ;;  %7265 = vmatpush.bf16.msra.mxu2 %v11182_v35 }
 0x242   :  { %v14730_v36 = vld [vmem:[#allocation7 + $0x494] sm:$0xf]  ;;  %v10030_v45 = vor.u32 %v14602_v29, %v10027_v33  ;;  %v7004_v29 = vpop.f32.mrf.mxu3 }
 0x243   :  { %v10539_v38 = vld [vmem:[#allocation7 + $0x4d0] sm:$0xf0]  ;;  %7279 = vmatpush.bf16.msra.mxu3 %v11694_v40 }
 0x244   :  { %v14874_v41 = vld [vmem:[#allocation7 + $0x914] sm:$0xf]  ;;  %v10542_v54 = vor.u32 %v14730_v36, %v10539_v38  ;;  %7239 = vmatpush.bf16.msra.mxu0 %v10030_v45  ;;  %v16171_v38 = vadd.f32 %v7004_v29, %v6991_v24 }
 0x245   :  { %v11115_v42 = vld [vmem:[#allocation7 + $0x950] sm:$0xf0] }
 0x246   :  { %v15002_v46 = vld [vmem:[#allocation7 + $0xd14] sm:$0xf]  ;;  %v11118_v2 = vor.u32 %v14874_v41, %v11115_v42  ;;  %7253 = vmatpush.bf16.msra.mxu1 %v10542_v54  ;;  %16747 = vst [vmem:[#allocation23_spill] sm:$0xff] %v16171_v38 }
 0x247   :  { %v11627_v49 = vld [vmem:[#allocation7 + $0xd50] sm:$0xf0] }
 0x248   :  { %v14586_v53 = vld [vmem:[#allocation7 + $0x14] sm:$0xf]  ;;  %v11630_v56 = vor.u32 %v15002_v46, %v11627_v49  ;;  %7266 = vmatpush.bf16.msra.mxu2 %v11118_v2 }
 0x249   :  { %v9963_v58 = vld [vmem:[#allocation7 + $0x50] sm:$0xf0] }
 0x24a   :  { %v14714_v44 = vld [vmem:[#allocation7 + $0x414] sm:$0xf]  ;;  %v9966_v9 = vor.u32 %v14586_v53, %v9963_v58  ;;  %7280 = vmatpush.bf16.msra.mxu3 %v11630_v56 }
 0x24b   :  { %v10475_v63 = vld [vmem:[#allocation7 + $0x450] sm:$0xf0] }
 0x24c   :  { %v15210_v4 = vld [vmem:[#allocation7 + $0x1394] sm:$0xf]  ;;  %v10478_v33 = vor.u32 %v14714_v44, %v10475_v63  ;;  %7240 = vmatpush.bf16.msra.mxu0 %v9966_v9  ;;  %v16174_v9 = vpop.f32.mrf.mxu0 }
 0x24d   :  { %v12459_v5 = vld [vmem:[#allocation7 + $0x13d0] sm:$0xf0]  ;;  %16748 = vst [vmem:[#allocation24_spill] sm:$0xff] %v16174_v9  ;;  %v12947_v9 = vld [vmem:[#allocation7 + $0x1778] sm:$0xf0] }
 0x24e   :  { %v15338_v34 = vld [vmem:[#allocation7 + $0x1794] sm:$0xf]  ;;  %v12462_v36 = vor.u32 %v15210_v4, %v12459_v5  ;;  %7254 = vmatpush.bf16.msra.mxu1 %v10478_v33 }
 0x24f   :  { %v12971_v20 = vld [vmem:[#allocation7 + $0x17d0] sm:$0xf0]  ;;  %7241 = vmatmul.bf16.vlgmr.msra.gmra.mxu0 %v16050_v59 }
 0x250   :  { %v14858_v23 = vld [vmem:[#allocation7 + $0x894] sm:$0xf]  ;;  %v12974_v41 = vor.u32 %v15338_v34, %v12971_v20  ;;  %7289 = vmatpush.bf16.msrb.mxu0 %v12462_v36 }
 0x251   :  { %v11051_v15 = vld [vmem:[#allocation7 + $0x8d0] sm:$0xf0]  ;;  %7255 = vmatmul.bf16.vlgmr.msra.gmra.mxu1 %v16052_v0 }
 0x252   :  { %v14986_v61 = vld [vmem:[#allocation7 + $0xc94] sm:$0xf]  ;;  %v11054_v40 = vor.u32 %v14858_v23, %v11051_v15  ;;  %7303 = vmatpush.bf16.msrb.mxu1 %v12974_v41  ;;  %v16177_v41 = vpop.f32.mrf.mxu1 }
 0x253   :  { %v11563_v28 = vld [vmem:[#allocation7 + $0xcd0] sm:$0xf0]  ;;  %16749 = vst [vmem:[#allocation25_spill] sm:$0xff] %v16177_v41  ;;  %v15203_v41 = vld [vmem:[#allocation7 + $0x1354] sm:$0xf0] }
 0x254   :  { %v15194_v35 = vld [vmem:[#allocation7 + $0x1314] sm:$0xf]  ;;  %v11566_v17 = vor.u32 %v14986_v61, %v11563_v28  ;;  %7267 = vmatpush.bf16.msra.mxu2 %v11054_v40 }
 0x255   :  { %v12395_v42 = vld [vmem:[#allocation7 + $0x1350] sm:$0xf0] }
 0x256   :  { %v15322_v46 = vld [vmem:[#allocation7 + $0x1714] sm:$0xf]  ;;  %v12398_v44 = vor.u32 %v15194_v35, %v12395_v42  ;;  %7281 = vmatpush.bf16.msra.mxu3 %v11566_v17 }
 0x257   :  { %v12907_v49 = vld [vmem:[#allocation7 + $0x1750] sm:$0xf0] }
 0x258   :  { %v14842_v6 = vld [vmem:[#allocation7 + $0x814] sm:$0xf]  ;;  %v12910_v2 = vor.u32 %v15322_v46, %v12907_v49  ;;  %7290 = vmatpush.bf16.msrb.mxu0 %v12398_v44 }
 0x259   :  { %v10987_v45 = vld [vmem:[#allocation7 + $0x850] sm:$0xf0] }
 0x25a   :  { %v14970_v53 = vld [vmem:[#allocation7 + $0xc14] sm:$0xf]  ;;  %v10990_v5 = vor.u32 %v14842_v6, %v10987_v45  ;;  %7304 = vmatpush.bf16.msrb.mxu1 %v12910_v2 }
 0x25b   :  { %v11499_v58 = vld [vmem:[#allocation7 + $0xc50] sm:$0xf0] }
 0x25c   :  { %v15466_v11 = vld [vmem:[#allocation7 + $0x1b94] sm:$0xf]  ;;  %v11502_v56 = vor.u32 %v14970_v53, %v11499_v58  ;;  %7268 = vmatpush.bf16.msra.mxu2 %v10990_v5 }
 0x25d   :  { %v13483_v54 = vld [vmem:[#allocation7 + $0x1bd0] sm:$0xf0] }
 0x25e   :  { %v15594_v63 = vld [vmem:[#allocation7 + $0x1f94] sm:$0xf]  ;;  %v13486_v23 = vor.u32 %v15466_v11, %v13483_v54  ;;  %7282 = vmatpush.bf16.msra.mxu3 %v11502_v56  ;;  %v16180_v11 = vld [vmem:[#allocation8] sm:$0xff] }
 0x25f   :  { %v13995_v4 = vld [vmem:[#allocation7 + $0x1fd0] sm:$0xf0]  ;;  %7269 = vmatmul.bf16.vlgmr.msra.gmra.mxu2 %v16058_v26  ;;  %v16724_v54 = vperm.slane %v16180_v11, 3 }
 0x260   :  { %v15178_v34 = vld [vmem:[#allocation7 + $0x1294] sm:$0xf]  ;;  %v13998_v61 = vor.u32 %v15594_v63, %v13995_v4  ;;  %7317 = vmatpush.bf16.msrb.mxu2 %v13486_v23 }
 0x261   :  { %v12331_v20 = vld [vmem:[#allocation7 + $0x12d0] sm:$0xf0]  ;;  %7283 = vmatmul.bf16.vlgmr.msra.gmra.mxu3 %v16060_v32 }
 0x262   :  { %v15306_v15 = vld [vmem:[#allocation7 + $0x1694] sm:$0xf]  ;;  %v12334_v33 = vor.u32 %v15178_v34, %v12331_v20  ;;  %7331 = vmatpush.bf16.msrb.mxu3 %v13998_v61 }
 0x263   :  { %v12843_v24 = vld [vmem:[#allocation7 + $0x16d0] sm:$0xf0] }
 0x264   :  { %v15450_v28 = vld [vmem:[#allocation7 + $0x1b14] sm:$0xf]  ;;  %v12846_v17 = vor.u32 %v15306_v15, %v12843_v24  ;;  %7291 = vmatpush.bf16.msrb.mxu0 %v12334_v33  ;;  %v7018_v15 = vpop.f32.mrf.mxu0 }
 0x265   :  { %v13419_v29 = vld [vmem:[#allocation7 + $0x1b50] sm:$0xf0] }
 0x266   :  { %v15578_v36 = vld [vmem:[#allocation7 + $0x1f14] sm:$0xf]  ;;  %v13422_v46 = vor.u32 %v15450_v28, %v13419_v29  ;;  %7305 = vmatpush.bf16.msrb.mxu1 %v12846_v17  ;;  %v7019_v29 = vadd.f32 %v7018_v15, %v16724_v54  ;;  %v7032_v17 = vpop.f32.mrf.mxu1  ;;  %v16188_v54 = vpop.f32.mrf.mxu3 }
 0x267   :  { %v13931_v35 = vld [vmem:[#allocation7 + $0x1f50] sm:$0xf0]  ;;  %16751 = vst [vmem:[#allocation27_spill] sm:$0xff] %v16188_v54  ;;  %v14691_v54 = vld [vmem:[#allocation7 + $0x354] sm:$0xf0] }
 0x268   :  { %v15162_v40 = vld [vmem:[#allocation7 + $0x1214] sm:$0xf]  ;;  %v13934_v45 = vor.u32 %v15578_v36, %v13931_v35  ;;  %7318 = vmatpush.bf16.msrb.mxu2 %v13422_v46 }
 0x269   :  { %v12267_v42 = vld [vmem:[#allocation7 + $0x1250] sm:$0xf0] }
 0x26a   :  { %v15290_v49 = vld [vmem:[#allocation7 + $0x1614] sm:$0xf]  ;;  %v12270_v44 = vor.u32 %v15162_v40, %v12267_v42  ;;  %7332 = vmatpush.bf16.msrb.mxu3 %v13934_v45 }
 0x26b   :  { %v12779_v6 = vld [vmem:[#allocation7 + $0x1650] sm:$0xf0] }
 0x26c   :  { %v15434_v53 = vld [vmem:[#allocation7 + $0x1a94] sm:$0xf]  ;;  %v12782_v2 = vor.u32 %v15290_v49, %v12779_v6  ;;  %7292 = vmatpush.bf16.msrb.mxu0 %v12270_v44  ;;  %v7033_v49 = vadd.f32 %v7032_v17, %v7019_v29 }
 0x26d   :  { %v13355_v58 = vld [vmem:[#allocation7 + $0x1ad0] sm:$0xf0] }
 0x26e   :  { %v15562_v63 = vld [vmem:[#allocation7 + $0x1e94] sm:$0xf]  ;;  %v13358_v20 = vor.u32 %v15434_v53, %v13355_v58  ;;  %7306 = vmatpush.bf16.msrb.mxu1 %v12782_v2  ;;  %v16186_v58 = vpop.f32.mrf.mxu2 }
 0x26f   :  { %v13867_v4 = vld [vmem:[#allocation7 + $0x1ed0] sm:$0xf0]  ;;  %16750 = vst [vmem:[#allocation26_spill] sm:$0xff] %v16186_v58  ;;  %v11569_v58 = vld [vmem:[#allocation7 + $0xc98] sm:$0xf] }
 0x270   :  { %v15146_v5 = vld [vmem:[#allocation7 + $0x1194] sm:$0xf]  ;;  %v13870_v24 = vor.u32 %v15562_v63, %v13867_v4  ;;  %7319 = vmatpush.bf16.msrb.mxu2 %v13358_v20 }
 0x271   :  { %v12203_v34 = vld [vmem:[#allocation7 + $0x11d0] sm:$0xf0] }
 0x272   :  { %v15274_v56 = vld [vmem:[#allocation7 + $0x1594] sm:$0xf]  ;;  %v12206_v33 = vor.u32 %v15146_v5, %v12203_v34  ;;  %7333 = vmatpush.bf16.msrb.mxu3 %v13870_v24 }
 0x273   :  { %v12715_v23 = vld [vmem:[#allocation7 + $0x15d0] sm:$0xf0] }
 0x274   :  { %v15418_v61 = vld [vmem:[#allocation7 + $0x1a14] sm:$0xf]  ;;  %v12718_v40 = vor.u32 %v15274_v56, %v12715_v23  ;;  %7293 = vmatpush.bf16.msrb.mxu0 %v12206_v33 }
 0x275   :  { %v13291_v28 = vld [vmem:[#allocation7 + $0x1a50] sm:$0xf0] }
 0x276   :  { %v15546_v36 = vld [vmem:[#allocation7 + $0x1e14] sm:$0xf]  ;;  %v13294_v6 = vor.u32 %v15418_v61, %v13291_v28  ;;  %7307 = vmatpush.bf16.msrb.mxu1 %v12718_v40 }
 0x277   :  { %v13803_v35 = vld [vmem:[#allocation7 + $0x1e50] sm:$0xf0] }
 0x278   :  { %v15130_v42 = vld [vmem:[#allocation7 + $0x1114] sm:$0xf]  ;;  %v13806_v63 = vor.u32 %v15546_v36, %v13803_v35  ;;  %7320 = vmatpush.bf16.msrb.mxu2 %v13294_v6  ;;  %v10417_v6 = vld [vmem:[#allocation7 + $0x398] sm:$0xf] }
 0x279   :  { %v12139_v46 = vld [vmem:[#allocation7 + $0x1150] sm:$0xf0] }
 0x27a   :  { %v15258_v45 = vld [vmem:[#allocation7 + $0x1514] sm:$0xf]  ;;  %v12142_v44 = vor.u32 %v15130_v42, %v12139_v46  ;;  %7334 = vmatpush.bf16.msrb.mxu3 %v13806_v63  ;;  %v7046_v63 = vpop.f32.mrf.mxu2 }
 0x27b   :  { %v12651_v53 = vld [vmem:[#allocation7 + $0x1550] sm:$0xf0] }
 0x27c   :  { %v15402_v4 = vld [vmem:[#allocation7 + $0x1994] sm:$0xf]  ;;  %v12654_v2 = vor.u32 %v15258_v45, %v12651_v53  ;;  %7294 = vmatpush.bf16.msrb.mxu0 %v12142_v44 }
 0x27d   :  { %v13227_v15 = vld [vmem:[#allocation7 + $0x19d0] sm:$0xf0] }
 0x27e   :  { %v15530_v5 = vld [vmem:[#allocation7 + $0x1d94] sm:$0xf]  ;;  %v13230_v20 = vor.u32 %v15402_v4, %v13227_v15  ;;  %7308 = vmatpush.bf16.msrb.mxu1 %v12654_v2  ;;  %v14707_v4 = vld [vmem:[#allocation7 + $0x3d4] sm:$0xf0] }
 0x27f   :  { %v13739_v34 = vld [vmem:[#allocation7 + $0x1dd0] sm:$0xf0]  ;;  %v10929_v15 = vld [vmem:[#allocation7 + $0x798] sm:$0xf]  ;;  %v10418_v16 = vor.u32 %v14707_v4, %v10417_v6 }
 0x280   :  { %v15114_v56 = vld [vmem:[#allocation7 + $0x1094] sm:$0xf]  ;;  %v13742_v29 = vor.u32 %v15530_v5, %v13739_v34  ;;  %7321 = vmatpush.bf16.msrb.mxu2 %v13230_v20  ;;  %v14835_v34 = vld [vmem:[#allocation7 + $0x7d4] sm:$0xf0] }
 0x281   :  { %v12075_v23 = vld [vmem:[#allocation7 + $0x10d0] sm:$0xf0]  ;;  %v10353_v20 = vld [vmem:[#allocation7 + $0x318] sm:$0xf] }
 0x282   :  { %v15242_v61 = vld [vmem:[#allocation7 + $0x1494] sm:$0xf]  ;;  %v12078_v35 = vor.u32 %v15114_v56, %v12075_v23  ;;  %7335 = vmatpush.bf16.msrb.mxu3 %v13742_v29  ;;  %v7047_v56 = vadd.f32 %v7046_v63, %v7033_v49  ;;  %v11441_v63 = vld [vmem:[#allocation7 + $0xb98] sm:$0xf] }
 0x283   :  { %v12587_v28 = vld [vmem:[#allocation7 + $0x14d0] sm:$0xf0]  ;;  %v15091_v6 = vld [vmem:[#allocation7 + $0xfd4] sm:$0xf0] }
 0x284   :  { %v15386_v24 = vld [vmem:[#allocation7 + $0x1914] sm:$0xf]  ;;  %v12590_v46 = vor.u32 %v15242_v61, %v12587_v28  ;;  %7295 = vmatpush.bf16.msrb.mxu0 %v12078_v35  ;;  %v7060_v61 = vpop.f32.mrf.mxu3  ;;  %v10289_v4 = vld [vmem:[#allocation7 + $0x298] sm:$0xf] }
 0x285   :  { %v13163_v36 = vld [vmem:[#allocation7 + $0x1950] sm:$0xf0] }
 0x286   :  { %v15514_v33 = vld [vmem:[#allocation7 + $0x1d14] sm:$0xf]  ;;  %v13166_v53 = vor.u32 %v15386_v24, %v13163_v36  ;;  %7309 = vmatpush.bf16.msrb.mxu1 %v12590_v46  ;;  %v16190_v24 = vadd.f32 %v7060_v61, %v7047_v56  ;;  %v10930_v36 = vor.u32 %v14835_v34, %v10929_v15  ;;  %v14963_v46 = vld [vmem:[#allocation7 + $0xbd4] sm:$0xf0]  ;;  %v16193_v56 = vpop.f32.mrf.mxu0 }
 0x287   :  { %v13675_v17 = vld [vmem:[#allocation7 + $0x1d50] sm:$0xf0]  ;;  %v14675_v15 = vld [vmem:[#allocation7 + $0x2d4] sm:$0xf0] }
 0x288   :  { %v15098_v42 = vld [vmem:[#allocation7 + $0x1014] sm:$0xf]  ;;  %v13678_v5 = vor.u32 %v15514_v33, %v13675_v17  ;;  %7322 = vmatpush.bf16.msrb.mxu2 %v13166_v53  ;;  %v10865_v33 = vld [vmem:[#allocation7 + $0x718] sm:$0xf] }
 0x289   :  { %v15226_v40 = vld [vmem:[#allocation7 + $0x1414] sm:$0xf]  ;;  %v12014_v23 = vor.u32 %v15098_v42, %v12011_v13  ;;  %v14819_v17 = vld [vmem:[#allocation7 + $0x754] sm:$0xf0] }
 0x28a   :  { %v12523_v45 = vld [vmem:[#allocation7 + $0x1450] sm:$0xf0]  ;;  %7336 = vmatpush.bf16.msrb.mxu3 %v13678_v5  ;;  %v11442_v5 = vor.u32 %v14963_v46, %v11441_v63  ;;  %v10801_v34 = vld [vmem:[#allocation7 + $0x698] sm:$0xf] }
 0x28b   :  { %v13099_v44 = vld [vmem:[#allocation7 + $0x18d0] sm:$0xf0]  ;;  %v12526_v28 = vor.u32 %v15226_v40, %v12523_v45  ;;  %7296 = vmatpush.bf16.msrb.mxu0 %v12014_v23  ;;  %v10354_v40 = vor.u32 %v14691_v54, %v10353_v20  ;;  %v11953_v45 = vld [vmem:[#allocation7 + $0xf98] sm:$0xf]  ;;  %v16196_v20 = vpop.f32.mrf.mxu1 }
 0x28c   :  { %v15498_v38 = vld [vmem:[#allocation7 + $0x1c94] sm:$0xf]  ;;  %v13102_v29 = vor.u32 %v15370_v50, %v13099_v44  ;;  %v10866_v50 = vor.u32 %v14819_v17, %v10865_v33  ;;  %v14803_v44 = vld [vmem:[#allocation7 + $0x6d4] sm:$0xf0] }
 0x28d   :  { %v13611_v2 = vld [vmem:[#allocation7 + $0x1cd0] sm:$0xf0]  ;;  %7310 = vmatpush.bf16.msrb.mxu1 %v12526_v28  ;;  %v11377_v54 = vld [vmem:[#allocation7 + $0xb18] sm:$0xf] }
 0x28e   :  { %v13614_v19 = vor.u32 %v15498_v38, %v13611_v2  ;;  %v15354_v49 = vld [vmem:[#allocation7 + $0x1814] sm:$0xf]  ;;  %7323 = vmatpush.bf16.msrb.mxu2 %v13102_v29  ;;  %7297 = vmatmul.bf16.vlgmr.msrb.gmra.mxu0 %v16066_v8  ;;  %v14947_v23 = vld [vmem:[#allocation7 + $0xb54] sm:$0xf0]  ;;  %v10290_v2 = vor.u32 %v14675_v15, %v10289_v4 }
 0x28f   :  { %v13035_v35 = vld [vmem:[#allocation7 + $0x1850] sm:$0xf0]  ;;  %7345 = vmatpush.bf16.msra.mxu0 %v10418_v16  ;;  %v11954_v16 = vor.u32 %v15091_v6, %v11953_v45  ;;  %v11889_v61 = vld [vmem:[#allocation7 + $0xf18] sm:$0xf]  ;;  %v11378_v33 = vor.u32 %v14947_v23, %v11377_v54 }
 0x290   :  { %v15482_v13 = vld [vmem:[#allocation7 + $0x1c14] sm:$0xf]  ;;  %v13038_v53 = vor.u32 %v15354_v49, %v13035_v35  ;;  %7337 = vmatpush.bf16.msrb.mxu3 %v13614_v19  ;;  %7311 = vmatmul.bf16.vlgmr.msrb.gmra.mxu1 %v16068_v51  ;;  %v15075_v28 = vld [vmem:[#allocation7 + $0xf54] sm:$0xf0]  ;;  %v10802_v19 = vor.u32 %v14803_v44, %v10801_v34 }
 0x291   :  { %v13547_v42 = vld [vmem:[#allocation7 + $0x1c50] sm:$0xf0]  ;;  %7359 = vmatpush.bf16.msra.mxu1 %v10930_v36  ;;  %v10225_v36 = vld [vmem:[#allocation7 + $0x218] sm:$0xf]  ;;  %v11890_v35 = vor.u32 %v15075_v28, %v11889_v61 }
 0x292   :  { %v13550_v38 = vor.u32 %v15482_v13, %v13547_v42  ;;  %7324 = vmatpush.bf16.msrb.mxu2 %v13038_v53  ;;  %v14659_v29 = vld [vmem:[#allocation7 + $0x254] sm:$0xf0] }
 0x293   :  { %7346 = vmatpush.bf16.msra.mxu0 %v10354_v40  ;;  %v10737_v17 = vld [vmem:[#allocation7 + $0x618] sm:$0xf]  ;;  %v10226_v63 = vor.u32 %v14659_v29, %v10225_v36  ;;  %v7088_v61 = vpop.f32.mrf.mxu1 }
 0x294   :  { %7338 = vmatpush.bf16.msrb.mxu3 %v13550_v38  ;;  %v14787_v49 = vld [vmem:[#allocation7 + $0x654] sm:$0xf0]  ;;  %v7074_v38 = vpop.f32.mrf.mxu0 }
 0x295   :  { %7360 = vmatpush.bf16.msra.mxu1 %v10866_v50  ;;  %v11313_v13 = vld [vmem:[#allocation7 + $0xa98] sm:$0xf]  ;;  %7325 = vmatmul.bf16.vlgmr.msrb.gmra.mxu2 %v16072_v43  ;;  %v10738_v45 = vor.u32 %v14787_v49, %v10737_v17 }
 0x296   :  { %7373 = vmatpush.bf16.msra.mxu2 %v11442_v5  ;;  %v14931_v42 = vld [vmem:[#allocation7 + $0xad4] sm:$0xf0] }
 0x297   :  { %7347 = vmatpush.bf16.msra.mxu0 %v10290_v2  ;;  %v11825_v46 = vld [vmem:[#allocation7 + $0xe98] sm:$0xf]  ;;  %7339 = vmatmul.bf16.vlgmr.msrb.gmra.mxu3 %v16074_v48  ;;  %v11314_v53 = vor.u32 %v14931_v42, %v11313_v13 }
 0x298   :  { %7387 = vmatpush.bf16.msra.mxu3 %v11954_v16  ;;  %v15059_v40 = vld [vmem:[#allocation7 + $0xed4] sm:$0xf0]  ;;  %v7075_v16 = vadd.f32 %v7074_v38, %v16190_v24 }
 0x299   :  { %7361 = vmatpush.bf16.msra.mxu1 %v10802_v19  ;;  %v10161_v6 = vld [vmem:[#allocation7 + $0x198] sm:$0xf]  ;;  %v11826_v5 = vor.u32 %v15059_v40, %v11825_v46 }
 0x29a   :  { %v14643_v50 = vld [vmem:[#allocation7 + $0x1d4] sm:$0xf0]  ;;  %7374 = vmatpush.bf16.msra.mxu2 %v11378_v33  ;;  %v7089_v29 = vadd.f32 %v7088_v61, %v7075_v16 }
 0x29b   :  { %v10673_v4 = vld [vmem:[#allocation7 + $0x598] sm:$0xf]  ;;  %7348 = vmatpush.bf16.msra.mxu0 %v10226_v63  ;;  %v10162_v54 = vor.u32 %v14643_v50, %v10161_v6  ;;  %v16203_v6 = vpop.f32.mrf.mxu3 }
 0x29c   :  { %v14771_v15 = vld [vmem:[#allocation7 + $0x5d4] sm:$0xf0]  ;;  %7388 = vmatpush.bf16.msra.mxu3 %v11890_v35  ;;  %v16201_v35 = vpop.f32.mrf.mxu2 }
 0x29d   :  { %v11249_v34 = vld [vmem:[#allocation7 + $0xa18] sm:$0xf]  ;;  %7362 = vmatpush.bf16.msra.mxu1 %v10738_v45  ;;  %v10674_v28 = vor.u32 %v14771_v15, %v10673_v4 }
 0x29e   :  { %v14915_v44 = vld [vmem:[#allocation7 + $0xa54] sm:$0xf0]  ;;  %7375 = vmatpush.bf16.msra.mxu2 %v11314_v53 }
 0x29f   :  { %v11761_v23 = vld [vmem:[#allocation7 + $0xe18] sm:$0xf]  ;;  %v11250_v33 = vor.u32 %v14915_v44, %v11249_v34  ;;  %7349 = vmatpush.bf16.msra.mxu0 %v10162_v54 }
 0x2a0   :  { %v15043_v2 = vld [vmem:[#allocation7 + $0xe54] sm:$0xf0]  ;;  %7389 = vmatpush.bf16.msra.mxu3 %v11826_v5 }
 0x2a1   :  { %v10097_v19 = vld [vmem:[#allocation7 + $0x118] sm:$0xf]  ;;  %v11762_v13 = vor.u32 %v15043_v2, %v11761_v23  ;;  %7363 = vmatpush.bf16.msra.mxu1 %v10674_v28 }
 0x2a2   :  { %v14627_v36 = vld [vmem:[#allocation7 + $0x154] sm:$0xf0]  ;;  %7376 = vmatpush.bf16.msra.mxu2 %v11250_v33 }
 0x2a3   :  { %v10609_v17 = vld [vmem:[#allocation7 + $0x518] sm:$0xf]  ;;  %v10098_v63 = vor.u32 %v14627_v36, %v10097_v19 }
 0x2a4   :  { %v14755_v49 = vld [vmem:[#allocation7 + $0x554] sm:$0xf0]  ;;  %7390 = vmatpush.bf16.msra.mxu3 %v11762_v13  ;;  %v7102_v13 = vpop.f32.mrf.mxu2 }
 0x2a5   :  { %v11185_v42 = vld [vmem:[#allocation7 + $0x998] sm:$0xf]  ;;  %v10610_v45 = vor.u32 %v14755_v49, %v10609_v17  ;;  %7350 = vmatpush.bf16.msra.mxu0 %v10098_v63 }
 0x2a6   :  { %v14899_v24 = vld [vmem:[#allocation7 + $0x9d4] sm:$0xf0] }
 0x2a7   :  { %v11697_v46 = vld [vmem:[#allocation7 + $0xd98] sm:$0xf]  ;;  %v11186_v53 = vor.u32 %v14899_v24, %v11185_v42  ;;  %7364 = vmatpush.bf16.msra.mxu1 %v10610_v45 }
 0x2a8   :  { %v15027_v40 = vld [vmem:[#allocation7 + $0xdd4] sm:$0xf0] }
 0x2a9   :  { %v10033_v50 = vld [vmem:[#allocation7 + $0x98] sm:$0xf]  ;;  %v11698_v34 = vor.u32 %v15027_v40, %v11697_v46  ;;  %7377 = vmatpush.bf16.msra.mxu2 %v11186_v53 }
 0x2aa   :  { %v14611_v4 = vld [vmem:[#allocation7 + $0xd4] sm:$0xf0] }
 0x2ab   :  { %v10545_v15 = vld [vmem:[#allocation7 + $0x498] sm:$0xf]  ;;  %v10034_v16 = vor.u32 %v14611_v4, %v10033_v50  ;;  %7391 = vmatpush.bf16.msra.mxu3 %v11698_v34  ;;  %v7103_v50 = vadd.f32 %v7102_v13, %v7089_v29 }
 0x2ac   :  { %v14739_v38 = vld [vmem:[#allocation7 + $0x4d4] sm:$0xf0] }
 0x2ad   :  { %v11121_v5 = vld [vmem:[#allocation7 + $0x918] sm:$0xf]  ;;  %v10546_v61 = vor.u32 %v14739_v38, %v10545_v15  ;;  %7351 = vmatpush.bf16.msra.mxu0 %v10034_v16  ;;  %v7116_v15 = vpop.f32.mrf.mxu3 }
 0x2ae   :  { %v14883_v44 = vld [vmem:[#allocation7 + $0x954] sm:$0xf0] }
 0x2af   :  { %v11633_v54 = vld [vmem:[#allocation7 + $0xd18] sm:$0xf]  ;;  %v11122_v17 = vor.u32 %v14883_v44, %v11121_v5  ;;  %7365 = vmatpush.bf16.msra.mxu1 %v10546_v61  ;;  %v16205_v5 = vadd.f32 %v7116_v15, %v7103_v50  ;;  %v16208_v50 = vpop.f32.mrf.mxu0 }
 0x2b0   :  { %v15011_v23 = vld [vmem:[#allocation7 + $0xd54] sm:$0xf0]  ;;  %16753 = vst [vmem:[#allocation29_spill] sm:$0xff] %v16208_v50 }
 0x2b1   :  { %v9969_v2 = vld [vmem:[#allocation7 + $0x18] sm:$0xf]  ;;  %v11634_v24 = vor.u32 %v15011_v23, %v11633_v54  ;;  %16752 = vst [vmem:[#allocation28_spill] sm:$0xff] %v16205_v5  ;;  %7378 = vmatpush.bf16.msra.mxu2 %v11122_v17 }
 0x2b2   :  { %v14595_v19 = vld [vmem:[#allocation7 + $0x54] sm:$0xf0] }
 0x2b3   :  { %v10481_v28 = vld [vmem:[#allocation7 + $0x418] sm:$0xf]  ;;  %v9970_v4 = vor.u32 %v14595_v19, %v9969_v2  ;;  %7392 = vmatpush.bf16.msra.mxu3 %v11634_v24 }
 0x2b4   :  { %v14723_v36 = vld [vmem:[#allocation7 + $0x454] sm:$0xf0] }
 0x2b5   :  { %v12465_v33 = vld [vmem:[#allocation7 + $0x1398] sm:$0xf]  ;;  %v10482_v38 = vor.u32 %v14723_v36, %v10481_v28  ;;  %7352 = vmatpush.bf16.msra.mxu0 %v9970_v4 }
 0x2b6   :  { %v15219_v49 = vld [vmem:[#allocation7 + $0x13d4] sm:$0xf0] }
 0x2b7   :  { %v12977_v42 = vld [vmem:[#allocation7 + $0x1798] sm:$0xf]  ;;  %v12466_v12 = vor.u32 %v15219_v49, %v12465_v33  ;;  %7366 = vmatpush.bf16.msra.mxu1 %v10482_v38 }
 0x2b8   :  { %v15347_v46 = vld [vmem:[#allocation7 + $0x17d4] sm:$0xf0]  ;;  %7353 = vmatmul.bf16.vlgmr.msra.gmra.mxu0 %v16050_v59 }
 0x2b9   :  { %v11057_v40 = vld [vmem:[#allocation7 + $0x898] sm:$0xf]  ;;  %v12978_v44 = vor.u32 %v15347_v46, %v12977_v42  ;;  %7401 = vmatpush.bf16.msrb.mxu0 %v12466_v12 }
 0x2ba   :  { %v14867_v63 = vld [vmem:[#allocation7 + $0x8d4] sm:$0xf0]  ;;  %7367 = vmatmul.bf16.vlgmr.msra.gmra.mxu1 %v16052_v0 }
 0x2bb   :  { %v14995_v45 = vld [vmem:[#allocation7 + $0xcd4] sm:$0xf0]  ;;  %v11058_v34 = vor.u32 %v14867_v63, %v11057_v40  ;;  %7415 = vmatpush.bf16.msrb.mxu1 %v12978_v44 }
 0x2bc   :  { %v12401_v53 = vld [vmem:[#allocation7 + $0x1318] sm:$0xf]  ;;  %v11570_v57 = vor.u32 %v14995_v45, %v11569_v58 }
 0x2bd   :  { %v12913_v54 = vld [vmem:[#allocation7 + $0x1718] sm:$0xf]  ;;  %v12402_v28 = vor.u32 %v15203_v41, %v12401_v53  ;;  %7379 = vmatpush.bf16.msra.mxu2 %v11058_v34  ;;  %v16211_v53 = vpop.f32.mrf.mxu1 }
 0x2be   :  { %v15331_v23 = vld [vmem:[#allocation7 + $0x1754] sm:$0xf0]  ;;  %7393 = vmatpush.bf16.msra.mxu3 %v11570_v57  ;;  %16754 = vst [vmem:[#allocation30_spill] sm:$0xff] %v16211_v53  ;;  %v10355_v53 = vld [vmem:[#allocation7 + $0x358] sm:$0xf0] }
 0x2bf   :  { %v10993_v29 = vld [vmem:[#allocation7 + $0x818] sm:$0xf]  ;;  %v12914_v17 = vor.u32 %v15331_v23, %v12913_v54  ;;  %7402 = vmatpush.bf16.msrb.mxu0 %v12402_v28 }
 0x2c0   :  { %v14851_v16 = vld [vmem:[#allocation7 + $0x854] sm:$0xf0] }
 0x2c1   :  { %v11505_v2 = vld [vmem:[#allocation7 + $0xc18] sm:$0xf]  ;;  %v10994_v49 = vor.u32 %v14851_v16, %v10993_v29  ;;  %7416 = vmatpush.bf16.msrb.mxu1 %v12914_v17 }
 0x2c2   :  { %v14979_v19 = vld [vmem:[#allocation7 + $0xc54] sm:$0xf0] }
 0x2c3   :  { %v13489_v13 = vld [vmem:[#allocation7 + $0x1b98] sm:$0xf]  ;;  %v11506_v58 = vor.u32 %v14979_v19, %v11505_v2  ;;  %7380 = vmatpush.bf16.msra.mxu2 %v10994_v49 }
 0x2c4   :  { %v15475_v61 = vld [vmem:[#allocation7 + $0x1bd4] sm:$0xf0] }
 0x2c5   :  { %v14001_v36 = vld [vmem:[#allocation7 + $0x1f98] sm:$0xf]  ;;  %v13490_v24 = vor.u32 %v15475_v61, %v13489_v13  ;;  %7394 = vmatpush.bf16.msra.mxu3 %v11506_v58  ;;  %v16727_v13 = vperm.slane %v16180_v11, 4 }
 0x2c6   :  { %v15603_v33 = vld [vmem:[#allocation7 + $0x1fd4] sm:$0xf0]  ;;  %7381 = vmatmul.bf16.vlgmr.msra.gmra.mxu2 %v16058_v26 }
 0x2c7   :  { %v12337_v42 = vld [vmem:[#allocation7 + $0x1298] sm:$0xf]  ;;  %v14002_v12 = vor.u32 %v15603_v33, %v14001_v36  ;;  %7429 = vmatpush.bf16.msrb.mxu2 %v13490_v24  ;;  %v7130_v24 = vpop.f32.mrf.mxu0 }
 0x2c8   :  { %v15187_v46 = vld [vmem:[#allocation7 + $0x12d4] sm:$0xf0]  ;;  %7395 = vmatmul.bf16.vlgmr.msra.gmra.mxu3 %v16060_v32 }
 0x2c9   :  { %v12849_v40 = vld [vmem:[#allocation7 + $0x1698] sm:$0xf]  ;;  %v12338_v45 = vor.u32 %v15187_v46, %v12337_v42  ;;  %7443 = vmatpush.bf16.msrb.mxu3 %v14002_v12 }
 0x2ca   :  { %v15315_v63 = vld [vmem:[#allocation7 + $0x16d4] sm:$0xf0] }
 0x2cb   :  { %v13425_v41 = vld [vmem:[#allocation7 + $0x1b18] sm:$0xf]  ;;  %v12850_v57 = vor.u32 %v15315_v63, %v12849_v40  ;;  %7403 = vmatpush.bf16.msrb.mxu0 %v12338_v45 }
 0x2cc   :  { %v15459_v4 = vld [vmem:[#allocation7 + $0x1b54] sm:$0xf0] }
 0x2cd   :  { %v13937_v15 = vld [vmem:[#allocation7 + $0x1f18] sm:$0xf]  ;;  %v13426_v54 = vor.u32 %v15459_v4, %v13425_v41  ;;  %7417 = vmatpush.bf16.msrb.mxu1 %v12850_v57  ;;  %v7131_v41 = vadd.f32 %v7130_v24, %v16727_v13  ;;  %v16220_v24 = vpop.f32.mrf.mxu3 }
 0x2ce   :  { %v15587_v38 = vld [vmem:[#allocation7 + $0x1f54] sm:$0xf0]  ;;  %16756 = vst [vmem:[#allocation32_spill] sm:$0xff] %v16220_v24 }
 0x2cf   :  { %v12273_v44 = vld [vmem:[#allocation7 + $0x1218] sm:$0xf]  ;;  %v13938_v16 = vor.u32 %v15587_v38, %v13937_v15  ;;  %7430 = vmatpush.bf16.msrb.mxu2 %v13426_v54  ;;  %v7144_v38 = vpop.f32.mrf.mxu1 }
 0x2d0   :  { %v15171_v34 = vld [vmem:[#allocation7 + $0x1254] sm:$0xf0]  ;;  %v7145_v54 = vadd.f32 %v7144_v38, %v7131_v41 }
 0x2d1   :  { %v12785_v23 = vld [vmem:[#allocation7 + $0x1618] sm:$0xf]  ;;  %v12274_v61 = vor.u32 %v15171_v34, %v12273_v44  ;;  %7444 = vmatpush.bf16.msrb.mxu3 %v13938_v16 }
 0x2d2   :  { %v15299_v29 = vld [vmem:[#allocation7 + $0x1654] sm:$0xf0] }
 0x2d3   :  { %v13361_v2 = vld [vmem:[#allocation7 + $0x1a98] sm:$0xf]  ;;  %v12786_v33 = vor.u32 %v15299_v29, %v12785_v23  ;;  %7404 = vmatpush.bf16.msrb.mxu0 %v12274_v61 }
 0x2d4   :  { %v15443_v19 = vld [vmem:[#allocation7 + $0x1ad4] sm:$0xf0] }
 0x2d5   :  { %v13873_v28 = vld [vmem:[#allocation7 + $0x1e98] sm:$0xf]  ;;  %v13362_v42 = vor.u32 %v15443_v19, %v13361_v2  ;;  %7418 = vmatpush.bf16.msrb.mxu1 %v12786_v33  ;;  %v16218_v2 = vpop.f32.mrf.mxu2 }
 0x2d6   :  { %v15571_v36 = vld [vmem:[#allocation7 + $0x1ed4] sm:$0xf0]  ;;  %16755 = vst [vmem:[#allocation31_spill] sm:$0xff] %v16218_v2 }
 0x2d7   :  { %v12209_v17 = vld [vmem:[#allocation7 + $0x1198] sm:$0xf]  ;;  %v13874_v40 = vor.u32 %v15571_v36, %v13873_v28  ;;  %7431 = vmatpush.bf16.msrb.mxu2 %v13362_v42 }
 0x2d8   :  { %v15155_v49 = vld [vmem:[#allocation7 + $0x11d4] sm:$0xf0] }
 0x2d9   :  { %v12721_v46 = vld [vmem:[#allocation7 + $0x1598] sm:$0xf]  ;;  %v12210_v4 = vor.u32 %v15155_v49, %v12209_v17  ;;  %7445 = vmatpush.bf16.msrb.mxu3 %v13874_v40 }
 0x2da   :  { %v15283_v58 = vld [vmem:[#allocation7 + $0x15d4] sm:$0xf0] }
 0x2db   :  { %v13297_v63 = vld [vmem:[#allocation7 + $0x1a18] sm:$0xf]  ;;  %v12722_v57 = vor.u32 %v15283_v58, %v12721_v46  ;;  %7405 = vmatpush.bf16.msrb.mxu0 %v12210_v4 }
 0x2dc   :  { %v15427_v12 = vld [vmem:[#allocation7 + $0x1a54] sm:$0xf0] }
 0x2dd   :  { %v13809_v45 = vld [vmem:[#allocation7 + $0x1e18] sm:$0xf]  ;;  %v13298_v23 = vor.u32 %v15427_v12, %v13297_v63  ;;  %7419 = vmatpush.bf16.msrb.mxu1 %v12722_v57 }
 0x2de   :  { %v15555_v15 = vld [vmem:[#allocation7 + $0x1e54] sm:$0xf0] }
 0x2df   :  { %v12145_v44 = vld [vmem:[#allocation7 + $0x1118] sm:$0xf]  ;;  %v13810_v19 = vor.u32 %v15555_v15, %v13809_v45  ;;  %7432 = vmatpush.bf16.msrb.mxu2 %v13298_v23  ;;  %v14699_v23 = vld [vmem:[#allocation7 + $0x39c] sm:$0xf] }
 0x2e0   :  { %v15139_v34 = vld [vmem:[#allocation7 + $0x1154] sm:$0xf0] }
 0x2e1   :  { %v12657_v29 = vld [vmem:[#allocation7 + $0x1518] sm:$0xf]  ;;  %v12146_v61 = vor.u32 %v15139_v34, %v12145_v44  ;;  %7446 = vmatpush.bf16.msrb.mxu3 %v13810_v19  ;;  %v7158_v19 = vpop.f32.mrf.mxu2 }
 0x2e2   :  { %v15267_v16 = vld [vmem:[#allocation7 + $0x1554] sm:$0xf0] }
 0x2e3   :  { %v13233_v28 = vld [vmem:[#allocation7 + $0x1998] sm:$0xf]  ;;  %v12658_v33 = vor.u32 %v15267_v16, %v12657_v29  ;;  %7406 = vmatpush.bf16.msrb.mxu0 %v12146_v61 }
 0x2e4   :  { %v15411_v36 = vld [vmem:[#allocation7 + $0x19d4] sm:$0xf0] }
 0x2e5   :  { %v13745_v17 = vld [vmem:[#allocation7 + $0x1d98] sm:$0xf]  ;;  %v13234_v42 = vor.u32 %v15411_v36, %v13233_v28  ;;  %7420 = vmatpush.bf16.msrb.mxu1 %v12658_v33  ;;  %v10419_v28 = vld [vmem:[#allocation7 + $0x3d8] sm:$0xf0] }
 0x2e6   :  { %v15539_v49 = vld [vmem:[#allocation7 + $0x1dd4] sm:$0xf0]  ;;  %v14827_v36 = vld [vmem:[#allocation7 + $0x79c] sm:$0xf]  ;;  %v10422_v2 = vor.u32 %v14699_v23, %v10419_v28 }
 0x2e7   :  { %v12081_v46 = vld [vmem:[#allocation7 + $0x1098] sm:$0xf]  ;;  %v13746_v41 = vor.u32 %v15539_v49, %v13745_v17  ;;  %7433 = vmatpush.bf16.msrb.mxu2 %v13234_v42  ;;  %v10931_v49 = vld [vmem:[#allocation7 + $0x7d8] sm:$0xf0] }
 0x2e8   :  { %v15123_v58 = vld [vmem:[#allocation7 + $0x10d4] sm:$0xf0]  ;;  %v14683_v42 = vld [vmem:[#allocation7 + $0x31c] sm:$0xf] }
 0x2e9   :  { %v12593_v63 = vld [vmem:[#allocation7 + $0x1498] sm:$0xf]  ;;  %v12082_v15 = vor.u32 %v15123_v58, %v12081_v46  ;;  %7447 = vmatpush.bf16.msrb.mxu3 %v13746_v41  ;;  %v7159_v46 = vadd.f32 %v7158_v19, %v7145_v54  ;;  %v14955_v19 = vld [vmem:[#allocation7 + $0xb9c] sm:$0xf] }
 0x2ea   :  { %v15251_v12 = vld [vmem:[#allocation7 + $0x14d4] sm:$0xf0]  ;;  %v11955_v23 = vld [vmem:[#allocation7 + $0xfd8] sm:$0xf0] }
 0x2eb   :  { %v13169_v40 = vld [vmem:[#allocation7 + $0x1918] sm:$0xf]  ;;  %v12594_v34 = vor.u32 %v15251_v12, %v12593_v63  ;;  %7407 = vmatpush.bf16.msrb.mxu0 %v12082_v15  ;;  %v7172_v63 = vpop.f32.mrf.mxu3  ;;  %v14667_v28 = vld [vmem:[#allocation7 + $0x29c] sm:$0xf] }
 0x2ec   :  { %v15395_v45 = vld [vmem:[#allocation7 + $0x1954] sm:$0xf0] }
 0x2ed   :  { %v13681_v4 = vld [vmem:[#allocation7 + $0x1d18] sm:$0xf]  ;;  %v13170_v16 = vor.u32 %v15395_v45, %v13169_v40  ;;  %7421 = vmatpush.bf16.msrb.mxu1 %v12594_v34  ;;  %v16222_v40 = vadd.f32 %v7172_v63, %v7159_v46  ;;  %v10934_v45 = vor.u32 %v14827_v36, %v10931_v49  ;;  %v11443_v34 = vld [vmem:[#allocation7 + $0xbd8] sm:$0xf0]  ;;  %v16225_v46 = vpop.f32.mrf.mxu0 }
 0x2ee   :  { %v15523_v38 = vld [vmem:[#allocation7 + $0x1d54] sm:$0xf0]  ;;  %v10291_v36 = vld [vmem:[#allocation7 + $0x2d8] sm:$0xf0]  ;;  %16757 = vst [vmem:[#allocation33_spill] sm:$0xff] %v16225_v46 }
 0x2ef   :  { %v12017_v44 = vld [vmem:[#allocation7 + $0x1018] sm:$0xf]  ;;  %v13682_v17 = vor.u32 %v15523_v38, %v13681_v4  ;;  %7434 = vmatpush.bf16.msrb.mxu2 %v13170_v16  ;;  %v14811_v4 = vld [vmem:[#allocation7 + $0x71c] sm:$0xf] }
 0x2f0   :  { %v15107_v13 = vld [vmem:[#allocation7 + $0x1054] sm:$0xf0]  ;;  %v10867_v38 = vld [vmem:[#allocation7 + $0x758] sm:$0xf0] }
 0x2f1   :  { %v12529_v57 = vld [vmem:[#allocation7 + $0x1418] sm:$0xf]  ;;  %v12018_v58 = vor.u32 %v15107_v13, %v12017_v44  ;;  %7448 = vmatpush.bf16.msrb.mxu3 %v13682_v17  ;;  %v11446_v17 = vor.u32 %v14955_v19, %v11443_v34  ;;  %v14795_v49 = vld [vmem:[#allocation7 + $0x69c] sm:$0xf] }
 0x2f2   :  { %v15235_v29 = vld [vmem:[#allocation7 + $0x1454] sm:$0xf0]  ;;  %v15067_v63 = vld [vmem:[#allocation7 + $0xf1c] sm:$0xf] }
 0x2f3   :  { %v13105_v5 = vld [vmem:[#allocation7 + $0x1898] sm:$0xf]  ;;  %v12530_v12 = vor.u32 %v15235_v29, %v12529_v57  ;;  %7408 = vmatpush.bf16.msrb.mxu0 %v12018_v58  ;;  %v10358_v57 = vor.u32 %v14683_v42, %v10355_v53  ;;  %v15083_v29 = vld [vmem:[#allocation7 + $0xf9c] sm:$0xf]  ;;  %v16228_v42 = vpop.f32.mrf.mxu1 }
 0x2f4   :  { %v15379_v61 = vld [vmem:[#allocation7 + $0x18d4] sm:$0xf0]  ;;  %v11958_v53 = vor.u32 %v15083_v29, %v11955_v23  ;;  %v11379_v58 = vld [vmem:[#allocation7 + $0xb58] sm:$0xf0]  ;;  %16758 = vst [vmem:[#allocation34_spill] sm:$0xff] %v16228_v42 }
 0x2f5   :  { %v13617_v24 = vld [vmem:[#allocation7 + $0x1c98] sm:$0xf]  ;;  %v13106_v41 = vor.u32 %v15379_v61, %v13105_v5  ;;  %7422 = vmatpush.bf16.msrb.mxu1 %v12530_v12  ;;  %v10870_v5 = vor.u32 %v14811_v4, %v10867_v38  ;;  %v10803_v61 = vld [vmem:[#allocation7 + $0x6d8] sm:$0xf0] }
 0x2f6   :  { %v15507_v33 = vld [vmem:[#allocation7 + $0x1cd4] sm:$0xf0]  ;;  %7409 = vmatmul.bf16.vlgmr.msrb.gmra.mxu0 %v16066_v8  ;;  %v11891_v12 = vld [vmem:[#allocation7 + $0xf58] sm:$0xf0] }
 0x2f7   :  { %v13618_v50 = vor.u32 %v15507_v33, %v13617_v24  ;;  %v13041_v54 = vld [vmem:[#allocation7 + $0x1818] sm:$0xf]  ;;  %7457 = vmatpush.bf16.msra.mxu0 %v10422_v2  ;;  %7435 = vmatpush.bf16.msrb.mxu2 %v13106_v41  ;;  %v14939_v2 = vld [vmem:[#allocation7 + $0xb1c] sm:$0xf]  ;;  %v10294_v33 = vor.u32 %v14667_v28, %v10291_v36 }
 0x2f8   :  { %v15363_v15 = vld [vmem:[#allocation7 + $0x1854] sm:$0xf0]  ;;  %7423 = vmatmul.bf16.vlgmr.msrb.gmra.mxu1 %v16068_v51  ;;  %v10227_v41 = vld [vmem:[#allocation7 + $0x258] sm:$0xf0]  ;;  %v11382_v4 = vor.u32 %v14939_v2, %v11379_v58 }
 0x2f9   :  { %v13553_v13 = vld [vmem:[#allocation7 + $0x1c18] sm:$0xf]  ;;  %7471 = vmatpush.bf16.msra.mxu1 %v10934_v45  ;;  %v13042_v16 = vor.u32 %v15363_v15, %v13041_v54  ;;  %7449 = vmatpush.bf16.msrb.mxu3 %v13618_v50  ;;  %v10806_v50 = vor.u32 %v14795_v49, %v10803_v61  ;;  %v14651_v45 = vld [vmem:[#allocation7 + $0x21c] sm:$0xf]  ;;  %v11894_v15 = vor.u32 %v15067_v63, %v11891_v12 }
 0x2fa   :  { %v15491_v44 = vld [vmem:[#allocation7 + $0x1c54] sm:$0xf0]  ;;  %v14779_v38 = vld [vmem:[#allocation7 + $0x61c] sm:$0xf]  ;;  %v10230_v19 = vor.u32 %v14651_v45, %v10227_v41 }
 0x2fb   :  { %v13554_v24 = vor.u32 %v15491_v44, %v13553_v13  ;;  %7458 = vmatpush.bf16.msra.mxu0 %v10358_v57  ;;  %7436 = vmatpush.bf16.msrb.mxu2 %v13042_v16  ;;  %v10739_v54 = vld [vmem:[#allocation7 + $0x658] sm:$0xf0]  ;;  %v7200_v63 = vpop.f32.mrf.mxu1 }
 0x2fc   :  { %v14923_v13 = vld [vmem:[#allocation7 + $0xa9c] sm:$0xf]  ;;  %v10742_v29 = vor.u32 %v14779_v38, %v10739_v54 }
 0x2fd   :  { %7472 = vmatpush.bf16.msra.mxu1 %v10870_v5  ;;  %7450 = vmatpush.bf16.msrb.mxu3 %v13554_v24  ;;  %v11315_v44 = vld [vmem:[#allocation7 + $0xad8] sm:$0xf0]  ;;  %v7186_v24 = vpop.f32.mrf.mxu0 }
 0x2fe   :  { %7437 = vmatmul.bf16.vlgmr.msrb.gmra.mxu2 %v16072_v43  ;;  %v15051_v34 = vld [vmem:[#allocation7 + $0xe9c] sm:$0xf]  ;;  %v11318_v16 = vor.u32 %v14923_v13, %v11315_v44 }
 0x2ff   :  { %7485 = vmatpush.bf16.msra.mxu2 %v11446_v17  ;;  %7459 = vmatpush.bf16.msra.mxu0 %v10294_v33  ;;  %v11827_v57 = vld [vmem:[#allocation7 + $0xed8] sm:$0xf0] }
 0x300   :  { %7451 = vmatmul.bf16.vlgmr.msrb.gmra.mxu3 %v16074_v48  ;;  %v14635_v23 = vld [vmem:[#allocation7 + $0x19c] sm:$0xf]  ;;  %v11830_v17 = vor.u32 %v15051_v34, %v11827_v57 }
 0x301   :  { %7499 = vmatpush.bf16.msra.mxu3 %v11958_v53  ;;  %7473 = vmatpush.bf16.msra.mxu1 %v10806_v50  ;;  %v10163_v5 = vld [vmem:[#allocation7 + $0x1d8] sm:$0xf0]  ;;  %v7187_v53 = vadd.f32 %v7186_v24, %v16222_v40 }
 0x302   :  { %v14763_v28 = vld [vmem:[#allocation7 + $0x59c] sm:$0xf]  ;;  %v10166_v2 = vor.u32 %v14635_v23, %v10163_v5  ;;  %v16235_v23 = vpop.f32.mrf.mxu3 }
 0x303   :  { %7486 = vmatpush.bf16.msra.mxu2 %v11382_v4  ;;  %v10675_v36 = vld [vmem:[#allocation7 + $0x5d8] sm:$0xf0]  ;;  %7460 = vmatpush.bf16.msra.mxu0 %v10230_v19  ;;  %v7201_v41 = vadd.f32 %v7200_v63, %v7187_v53  ;;  %16760 = vst [vmem:[#allocation36_spill] sm:$0xff] %v16235_v23 }
 0x304   :  { %v14907_v49 = vld [vmem:[#allocation7 + $0xa1c] sm:$0xf]  ;;  %v10678_v12 = vor.u32 %v14763_v28, %v10675_v36 }
 0x305   :  { %7500 = vmatpush.bf16.msra.mxu3 %v11894_v15  ;;  %v11251_v61 = vld [vmem:[#allocation7 + $0xa58] sm:$0xf0]  ;;  %7474 = vmatpush.bf16.msra.mxu1 %v10742_v29  ;;  %v16233_v15 = vpop.f32.mrf.mxu2 }
 0x306   :  { %v15035_v58 = vld [vmem:[#allocation7 + $0xe1c] sm:$0xf]  ;;  %v11254_v4 = vor.u32 %v14907_v49, %v11251_v61  ;;  %16759 = vst [vmem:[#allocation35_spill] sm:$0xff] %v16233_v15 }
 0x307   :  { %v11763_v33 = vld [vmem:[#allocation7 + $0xe58] sm:$0xf0]  ;;  %7487 = vmatpush.bf16.msra.mxu2 %v11318_v16  ;;  %7461 = vmatpush.bf16.msra.mxu0 %v10166_v2 }
 0x308   :  { %v14619_v50 = vld [vmem:[#allocation7 + $0x11c] sm:$0xf]  ;;  %v11766_v13 = vor.u32 %v15035_v58, %v11763_v33 }
 0x309   :  { %v10099_v45 = vld [vmem:[#allocation7 + $0x158] sm:$0xf0]  ;;  %7501 = vmatpush.bf16.msra.mxu3 %v11830_v17  ;;  %7475 = vmatpush.bf16.msra.mxu1 %v10678_v12 }
 0x30a   :  { %v14747_v38 = vld [vmem:[#allocation7 + $0x51c] sm:$0xf]  ;;  %v10102_v19 = vor.u32 %v14619_v50, %v10099_v45 }
 0x30b   :  { %v10611_v54 = vld [vmem:[#allocation7 + $0x558] sm:$0xf0]  ;;  %7488 = vmatpush.bf16.msra.mxu2 %v11254_v4 }
 0x30c   :  { %v14891_v44 = vld [vmem:[#allocation7 + $0x99c] sm:$0xf]  ;;  %v10614_v29 = vor.u32 %v14747_v38, %v10611_v54  ;;  %7462 = vmatpush.bf16.msra.mxu0 %v10102_v19 }
 0x30d   :  { %v11187_v40 = vld [vmem:[#allocation7 + $0x9d8] sm:$0xf0]  ;;  %7502 = vmatpush.bf16.msra.mxu3 %v11766_v13  ;;  %v7214_v13 = vpop.f32.mrf.mxu2 }
 0x30e   :  { %v15019_v34 = vld [vmem:[#allocation7 + $0xd9c] sm:$0xf]  ;;  %v11190_v16 = vor.u32 %v14891_v44, %v11187_v40  ;;  %7476 = vmatpush.bf16.msra.mxu1 %v10614_v29 }
 0x30f   :  { %v11699_v57 = vld [vmem:[#allocation7 + $0xdd8] sm:$0xf0] }
 0x310   :  { %v14603_v5 = vld [vmem:[#allocation7 + $0x9c] sm:$0xf]  ;;  %v11702_v49 = vor.u32 %v15019_v34, %v11699_v57  ;;  %7489 = vmatpush.bf16.msra.mxu2 %v11190_v16 }
 0x311   :  { %v10035_v28 = vld [vmem:[#allocation7 + $0xd8] sm:$0xf0] }
 0x312   :  { %v14731_v36 = vld [vmem:[#allocation7 + $0x49c] sm:$0xf]  ;;  %v10038_v53 = vor.u32 %v14603_v5, %v10035_v28  ;;  %7503 = vmatpush.bf16.msra.mxu3 %v11702_v49  ;;  %v7215_v5 = vadd.f32 %v7214_v13, %v7201_v41 }
 0x313   :  { %v10547_v24 = vld [vmem:[#allocation7 + $0x4d8] sm:$0xf0] }
 0x314   :  { %v14875_v17 = vld [vmem:[#allocation7 + $0x91c] sm:$0xf]  ;;  %v10550_v63 = vor.u32 %v14731_v36, %v10547_v24  ;;  %7463 = vmatpush.bf16.msra.mxu0 %v10038_v53  ;;  %v7228_v36 = vpop.f32.mrf.mxu3 }
 0x315   :  { %v11123_v61 = vld [vmem:[#allocation7 + $0x958] sm:$0xf0] }
 0x316   :  { %v15003_v2 = vld [vmem:[#allocation7 + $0xd1c] sm:$0xf]  ;;  %v11126_v38 = vor.u32 %v14875_v17, %v11123_v61  ;;  %7477 = vmatpush.bf16.msra.mxu1 %v10550_v63  ;;  %v16237_v17 = vadd.f32 %v7228_v36, %v7215_v5  ;;  %v16240_v5 = vpop.f32.mrf.mxu0 }
 0x317   :  { %v11635_v58 = vld [vmem:[#allocation7 + $0xd58] sm:$0xf0]  ;;  %16762 = vst [vmem:[#allocation38_spill] sm:$0xff] %v16240_v5  ;;  %v14692_v5 = vld [vmem:[#allocation7 + $0x35c] sm:$0xf0] }
 0x318   :  { %v14587_v33 = vld [vmem:[#allocation7 + $0x1c] sm:$0xf]  ;;  %v11638_v40 = vor.u32 %v15003_v2, %v11635_v58  ;;  %16761 = vst [vmem:[#allocation37_spill] sm:$0xff] %v16237_v17  ;;  %7490 = vmatpush.bf16.msra.mxu2 %v11126_v38 }
 0x319   :  { %v9971_v50 = vld [vmem:[#allocation7 + $0x58] sm:$0xf0] }
 0x31a   :  { %v14715_v12 = vld [vmem:[#allocation7 + $0x41c] sm:$0xf]  ;;  %v9974_v28 = vor.u32 %v14587_v33, %v9971_v50  ;;  %7504 = vmatpush.bf16.msra.mxu3 %v11638_v40 }
 0x31b   :  { %v10483_v45 = vld [vmem:[#allocation7 + $0x458] sm:$0xf0] }
 0x31c   :  { %v15211_v4 = vld [vmem:[#allocation7 + $0x139c] sm:$0xf]  ;;  %v10486_v24 = vor.u32 %v14715_v12, %v10483_v45  ;;  %7464 = vmatpush.bf16.msra.mxu0 %v9974_v28 }
 0x31d   :  { %v12467_v54 = vld [vmem:[#allocation7 + $0x13d8] sm:$0xf0] }
 0x31e   :  { %v15339_v44 = vld [vmem:[#allocation7 + $0x179c] sm:$0xf]  ;;  %v12470_v15 = vor.u32 %v15211_v4, %v12467_v54  ;;  %7478 = vmatpush.bf16.msra.mxu1 %v10486_v24 }
 0x31f   :  { %v12979_v34 = vld [vmem:[#allocation7 + $0x17d8] sm:$0xf0]  ;;  %7465 = vmatmul.bf16.vlgmr.msra.gmra.mxu0 %v16050_v59 }
 0x320   :  { %v14859_v57 = vld [vmem:[#allocation7 + $0x89c] sm:$0xf]  ;;  %v12982_v61 = vor.u32 %v15339_v44, %v12979_v34  ;;  %7513 = vmatpush.bf16.msrb.mxu0 %v12470_v15 }
 0x321   :  { %v11059_v19 = vld [vmem:[#allocation7 + $0x8d8] sm:$0xf0]  ;;  %7479 = vmatmul.bf16.vlgmr.msra.gmra.mxu1 %v16052_v0 }
 0x322   :  { %v14987_v23 = vld [vmem:[#allocation7 + $0xc9c] sm:$0xf]  ;;  %v11062_v49 = vor.u32 %v14859_v57, %v11059_v19  ;;  %7527 = vmatpush.bf16.msrb.mxu1 %v12982_v61 }
 0x323   :  { %v11571_v29 = vld [vmem:[#allocation7 + $0xcd8] sm:$0xf0] }
 0x324   :  { %v15195_v16 = vld [vmem:[#allocation7 + $0x131c] sm:$0xf]  ;;  %v11574_v46 = vor.u32 %v14987_v23, %v11571_v29  ;;  %7491 = vmatpush.bf16.msra.mxu2 %v11062_v49 }
 0x325   :  { %v12403_v42 = vld [vmem:[#allocation7 + $0x1358] sm:$0xf0] }
 0x326   :  { %v15323_v2 = vld [vmem:[#allocation7 + $0x171c] sm:$0xf]  ;;  %v12406_v12 = vor.u32 %v15195_v16, %v12403_v42  ;;  %7505 = vmatpush.bf16.msra.mxu3 %v11574_v46  ;;  %v16243_v16 = vpop.f32.mrf.mxu1 }
 0x327   :  { %v12915_v58 = vld [vmem:[#allocation7 + $0x1758] sm:$0xf0]  ;;  %16763 = vst [vmem:[#allocation39_spill] sm:$0xff] %v16243_v16 }
 0x328   :  { %v14843_v41 = vld [vmem:[#allocation7 + $0x81c] sm:$0xf]  ;;  %v12918_v38 = vor.u32 %v15323_v2, %v12915_v58  ;;  %7514 = vmatpush.bf16.msrb.mxu0 %v12406_v12 }
 0x329   :  { %v10995_v53 = vld [vmem:[#allocation7 + $0x858] sm:$0xf0] }
 0x32a   :  { %v14971_v33 = vld [vmem:[#allocation7 + $0xc1c] sm:$0xf]  ;;  %v10998_v54 = vor.u32 %v14843_v41, %v10995_v53  ;;  %7528 = vmatpush.bf16.msrb.mxu1 %v12918_v38 }
 0x32b   :  { %v11507_v50 = vld [vmem:[#allocation7 + $0xc58] sm:$0xf0] }
 0x32c   :  { %v15467_v13 = vld [vmem:[#allocation7 + $0x1b9c] sm:$0xf]  ;;  %v11510_v23 = vor.u32 %v14971_v33, %v11507_v50  ;;  %7492 = vmatpush.bf16.msra.mxu2 %v10998_v54 }
 0x32d   :  { %v13491_v63 = vld [vmem:[#allocation7 + $0x1bd8] sm:$0xf0] }
 0x32e   :  { %v15595_v45 = vld [vmem:[#allocation7 + $0x1f9c] sm:$0xf]  ;;  %v13494_v40 = vor.u32 %v15467_v13, %v13491_v63  ;;  %7506 = vmatpush.bf16.msra.mxu3 %v11510_v23  ;;  %v16246_v13 = vld [vmem:[#allocation8] sm:$0xff] }
 0x32f   :  { %v14003_v4 = vld [vmem:[#allocation7 + $0x1fd8] sm:$0xf0]  ;;  %7493 = vmatmul.bf16.vlgmr.msra.gmra.mxu2 %v16058_v26  ;;  %16764 = vst [vmem:[#allocation40_spill] sm:$0xff] %v16246_v13  ;;  %v16728_v63 = vperm.slane %v16246_v13, 5 }
 0x330   :  { %v15179_v44 = vld [vmem:[#allocation7 + $0x129c] sm:$0xf]  ;;  %v14006_v42 = vor.u32 %v15595_v45, %v14003_v4  ;;  %7541 = vmatpush.bf16.msrb.mxu2 %v13494_v40 }
 0x331   :  { %v12339_v34 = vld [vmem:[#allocation7 + $0x12d8] sm:$0xf0]  ;;  %7507 = vmatmul.bf16.vlgmr.msra.gmra.mxu3 %v16060_v32 }
 0x332   :  { %v15307_v57 = vld [vmem:[#allocation7 + $0x169c] sm:$0xf]  ;;  %v12342_v29 = vor.u32 %v15179_v44, %v12339_v34  ;;  %7555 = vmatpush.bf16.msrb.mxu3 %v14006_v42 }
 0x333   :  { %v12851_v19 = vld [vmem:[#allocation7 + $0x16d8] sm:$0xf0] }
 0x334   :  { %v15451_v15 = vld [vmem:[#allocation7 + $0x1b1c] sm:$0xf]  ;;  %v12854_v46 = vor.u32 %v15307_v57, %v12851_v19  ;;  %7515 = vmatpush.bf16.msrb.mxu0 %v12342_v29  ;;  %v7242_v57 = vpop.f32.mrf.mxu0 }
 0x335   :  { %v13427_v28 = vld [vmem:[#allocation7 + $0x1b58] sm:$0xf0] }
 0x336   :  { %v15579_v36 = vld [vmem:[#allocation7 + $0x1f1c] sm:$0xf]  ;;  %v13430_v2 = vor.u32 %v15451_v15, %v13427_v28  ;;  %7529 = vmatpush.bf16.msrb.mxu1 %v12854_v46  ;;  %v7243_v28 = vadd.f32 %v7242_v57, %v16728_v63  ;;  %v7256_v46 = vpop.f32.mrf.mxu1  ;;  %v16254_v63 = vpop.f32.mrf.mxu3 }
 0x337   :  { %v13939_v24 = vld [vmem:[#allocation7 + $0x1f58] sm:$0xf0]  ;;  %16766 = vst [vmem:[#allocation42_spill] sm:$0xff] %v16254_v63 }
 0x338   :  { %v15163_v61 = vld [vmem:[#allocation7 + $0x121c] sm:$0xf]  ;;  %v13942_v53 = vor.u32 %v15579_v36, %v13939_v24  ;;  %7542 = vmatpush.bf16.msrb.mxu2 %v13430_v2 }
 0x339   :  { %v12275_v49 = vld [vmem:[#allocation7 + $0x1258] sm:$0xf0] }
 0x33a   :  { %v15291_v58 = vld [vmem:[#allocation7 + $0x161c] sm:$0xf]  ;;  %v12278_v12 = vor.u32 %v15163_v61, %v12275_v49  ;;  %7556 = vmatpush.bf16.msrb.mxu3 %v13942_v53 }
 0x33b   :  { %v12787_v41 = vld [vmem:[#allocation7 + $0x1658] sm:$0xf0] }
 0x33c   :  { %v15435_v33 = vld [vmem:[#allocation7 + $0x1a9c] sm:$0xf]  ;;  %v12790_v38 = vor.u32 %v15291_v58, %v12787_v41  ;;  %7516 = vmatpush.bf16.msrb.mxu0 %v12278_v12  ;;  %v7257_v58 = vadd.f32 %v7256_v46, %v7243_v28 }
 0x33d   :  { %v13363_v50 = vld [vmem:[#allocation7 + $0x1ad8] sm:$0xf0] }
 0x33e   :  { %v15563_v45 = vld [vmem:[#allocation7 + $0x1e9c] sm:$0xf]  ;;  %v13366_v34 = vor.u32 %v15435_v33, %v13363_v50  ;;  %7530 = vmatpush.bf16.msrb.mxu1 %v12790_v38  ;;  %v16252_v50 = vpop.f32.mrf.mxu2 }
 0x33f   :  { %v13875_v4 = vld [vmem:[#allocation7 + $0x1ed8] sm:$0xf0]  ;;  %16765 = vst [vmem:[#allocation41_spill] sm:$0xff] %v16252_v50 }
 0x340   :  { %v15147_v54 = vld [vmem:[#allocation7 + $0x119c] sm:$0xf]  ;;  %v13878_v19 = vor.u32 %v15563_v45, %v13875_v4  ;;  %7543 = vmatpush.bf16.msrb.mxu2 %v13366_v34 }
 0x341   :  { %v12211_v44 = vld [vmem:[#allocation7 + $0x11d8] sm:$0xf0] }
 0x342   :  { %v15275_v23 = vld [vmem:[#allocation7 + $0x159c] sm:$0xf]  ;;  %v12214_v29 = vor.u32 %v15147_v54, %v12211_v44  ;;  %7557 = vmatpush.bf16.msrb.mxu3 %v13878_v19 }
 0x343   :  { %v12723_v40 = vld [vmem:[#allocation7 + $0x15d8] sm:$0xf0] }
 0x344   :  { %v15419_v42 = vld [vmem:[#allocation7 + $0x1a1c] sm:$0xf]  ;;  %v12726_v61 = vor.u32 %v15275_v23, %v12723_v40  ;;  %7517 = vmatpush.bf16.msrb.mxu0 %v12214_v29 }
 0x345   :  { %v13299_v15 = vld [vmem:[#allocation7 + $0x1a58] sm:$0xf0] }
 0x346   :  { %v15547_v36 = vld [vmem:[#allocation7 + $0x1e1c] sm:$0xf]  ;;  %v13302_v41 = vor.u32 %v15419_v42, %v13299_v15  ;;  %7531 = vmatpush.bf16.msrb.mxu1 %v12726_v61 }
 0x347   :  { %v13811_v24 = vld [vmem:[#allocation7 + $0x1e58] sm:$0xf0] }
 0x348   :  { %v15131_v49 = vld [vmem:[#allocation7 + $0x111c] sm:$0xf]  ;;  %v13814_v45 = vor.u32 %v15547_v36, %v13811_v24  ;;  %7544 = vmatpush.bf16.msrb.mxu2 %v13302_v41  ;;  %v10425_v41 = vld [vmem:[#allocation7 + $0x3a0] sm:$0xf] }
 0x349   :  { %v12147_v2 = vld [vmem:[#allocation7 + $0x1158] sm:$0xf0] }
 0x34a   :  { %v15259_v53 = vld [vmem:[#allocation7 + $0x151c] sm:$0xf]  ;;  %v12150_v12 = vor.u32 %v15131_v49, %v12147_v2  ;;  %7558 = vmatpush.bf16.msrb.mxu3 %v13814_v45  ;;  %v7270_v45 = vpop.f32.mrf.mxu2 }
 0x34b   :  { %v12659_v33 = vld [vmem:[#allocation7 + $0x1558] sm:$0xf0] }
 0x34c   :  { %v15403_v4 = vld [vmem:[#allocation7 + $0x199c] sm:$0xf]  ;;  %v12662_v38 = vor.u32 %v15259_v53, %v12659_v33  ;;  %7518 = vmatpush.bf16.msrb.mxu0 %v12150_v12 }
 0x34d   :  { %v13235_v57 = vld [vmem:[#allocation7 + $0x19d8] sm:$0xf0] }
 0x34e   :  { %v15531_v54 = vld [vmem:[#allocation7 + $0x1d9c] sm:$0xf]  ;;  %v13238_v34 = vor.u32 %v15403_v4, %v13235_v57  ;;  %7532 = vmatpush.bf16.msrb.mxu1 %v12662_v38  ;;  %v14708_v4 = vld [vmem:[#allocation7 + $0x3dc] sm:$0xf0] }
 0x34f   :  { %v13747_v44 = vld [vmem:[#allocation7 + $0x1dd8] sm:$0xf0]  ;;  %v10937_v57 = vld [vmem:[#allocation7 + $0x7a0] sm:$0xf]  ;;  %v10426_v16 = vor.u32 %v14708_v4, %v10425_v41 }
 0x350   :  { %v15115_v23 = vld [vmem:[#allocation7 + $0x109c] sm:$0xf]  ;;  %v13750_v28 = vor.u32 %v15531_v54, %v13747_v44  ;;  %7545 = vmatpush.bf16.msrb.mxu2 %v13238_v34  ;;  %v14836_v44 = vld [vmem:[#allocation7 + $0x7dc] sm:$0xf0] }
 0x351   :  { %v12083_v40 = vld [vmem:[#allocation7 + $0x10d8] sm:$0xf0]  ;;  %v10361_v34 = vld [vmem:[#allocation7 + $0x320] sm:$0xf] }
 0x352   :  { %v15243_v42 = vld [vmem:[#allocation7 + $0x149c] sm:$0xf]  ;;  %v12086_v24 = vor.u32 %v15115_v23, %v12083_v40  ;;  %7559 = vmatpush.bf16.msrb.mxu3 %v13750_v28  ;;  %v7271_v23 = vadd.f32 %v7270_v45, %v7257_v58  ;;  %v11449_v45 = vld [vmem:[#allocation7 + $0xba0] sm:$0xf] }
 0x353   :  { %v12595_v15 = vld [vmem:[#allocation7 + $0x14d8] sm:$0xf0]  ;;  %v15092_v41 = vld [vmem:[#allocation7 + $0xfdc] sm:$0xf0] }
 0x354   :  { %v15387_v19 = vld [vmem:[#allocation7 + $0x191c] sm:$0xf]  ;;  %v12598_v2 = vor.u32 %v15243_v42, %v12595_v15  ;;  %7519 = vmatpush.bf16.msrb.mxu0 %v12086_v24  ;;  %v7284_v42 = vpop.f32.mrf.mxu3  ;;  %v10297_v4 = vld [vmem:[#allocation7 + $0x2a0] sm:$0xf] }
 0x355   :  { %v13171_v36 = vld [vmem:[#allocation7 + $0x1958] sm:$0xf0] }
 0x356   :  { %v15515_v29 = vld [vmem:[#allocation7 + $0x1d1c] sm:$0xf]  ;;  %v13174_v33 = vor.u32 %v15387_v19, %v13171_v36  ;;  %7533 = vmatpush.bf16.msrb.mxu1 %v12598_v2  ;;  %v16256_v19 = vadd.f32 %v7284_v42, %v7271_v23  ;;  %v10938_v36 = vor.u32 %v14836_v44, %v10937_v57  ;;  %v14964_v2 = vld [vmem:[#allocation7 + $0xbdc] sm:$0xf0]  ;;  %v16259_v23 = vpop.f32.mrf.mxu0 }
 0x357   :  { %v13683_v46 = vld [vmem:[#allocation7 + $0x1d58] sm:$0xf0]  ;;  %v14676_v57 = vld [vmem:[#allocation7 + $0x2dc] sm:$0xf0]  ;;  %16767 = vst [vmem:[#allocation43_spill] sm:$0xff] %v16259_v23 }
 0x358   :  { %v15099_v49 = vld [vmem:[#allocation7 + $0x101c] sm:$0xf]  ;;  %v13686_v54 = vor.u32 %v15515_v29, %v13683_v46  ;;  %7546 = vmatpush.bf16.msrb.mxu2 %v13174_v33  ;;  %v10873_v29 = vld [vmem:[#allocation7 + $0x720] sm:$0xf] }
 0x359   :  { %v12019_v17 = vld [vmem:[#allocation7 + $0x1058] sm:$0xf0]  ;;  %v14820_v46 = vld [vmem:[#allocation7 + $0x75c] sm:$0xf0] }
 0x35a   :  { %v15227_v61 = vld [vmem:[#allocation7 + $0x141c] sm:$0xf]  ;;  %v12022_v40 = vor.u32 %v15099_v49, %v12019_v17  ;;  %7560 = vmatpush.bf16.msrb.mxu3 %v13686_v54  ;;  %v11450_v54 = vor.u32 %v14964_v2, %v11449_v45  ;;  %v10809_v44 = vld [vmem:[#allocation7 + $0x6a0] sm:$0xf] }
 0x35b   :  { %v12531_v53 = vld [vmem:[#allocation7 + $0x1458] sm:$0xf0]  ;;  %v11897_v42 = vld [vmem:[#allocation7 + $0xf20] sm:$0xf] }
 0x35c   :  { %v15371_v63 = vld [vmem:[#allocation7 + $0x189c] sm:$0xf]  ;;  %v12534_v15 = vor.u32 %v15227_v61, %v12531_v53  ;;  %7520 = vmatpush.bf16.msrb.mxu0 %v12022_v40  ;;  %v10362_v61 = vor.u32 %v14692_v5, %v10361_v34  ;;  %v11961_v53 = vld [vmem:[#allocation7 + $0xfa0] sm:$0xf]  ;;  %v16262_v34 = vpop.f32.mrf.mxu1 }
 0x35d   :  { %v13107_v12 = vld [vmem:[#allocation7 + $0x18d8] sm:$0xf0]  ;;  %v11962_v5 = vor.u32 %v15092_v41, %v11961_v53  ;;  %v14948_v40 = vld [vmem:[#allocation7 + $0xb5c] sm:$0xf0]  ;;  %16768 = vst [vmem:[#allocation44_spill] sm:$0xff] %v16262_v34 }
 0x35e   :  { %v15499_v50 = vld [vmem:[#allocation7 + $0x1c9c] sm:$0xf]  ;;  %v13110_v28 = vor.u32 %v15371_v63, %v13107_v12  ;;  %7534 = vmatpush.bf16.msrb.mxu1 %v12534_v15  ;;  %v10874_v63 = vor.u32 %v14820_v46, %v10873_v29  ;;  %v14804_v12 = vld [vmem:[#allocation7 + $0x6dc] sm:$0xf0] }
 0x35f   :  { %v13619_v38 = vld [vmem:[#allocation7 + $0x1cd8] sm:$0xf0]  ;;  %7521 = vmatmul.bf16.vlgmr.msrb.gmra.mxu0 %v16066_v8  ;;  %v15076_v15 = vld [vmem:[#allocation7 + $0xf5c] sm:$0xf0] }
 0x360   :  { %v13622_v1 = vor.u32 %v15499_v50, %v13619_v38  ;;  %v15355_v58 = vld [vmem:[#allocation7 + $0x181c] sm:$0xf]  ;;  %7569 = vmatpush.bf16.msra.mxu0 %v10426_v16  ;;  %7547 = vmatpush.bf16.msrb.mxu2 %v13110_v28  ;;  %v11385_v16 = vld [vmem:[#allocation7 + $0xb20] sm:$0xf]  ;;  %v10298_v38 = vor.u32 %v14676_v57, %v10297_v4 }
 0x361   :  { %v13043_v24 = vld [vmem:[#allocation7 + $0x1858] sm:$0xf0]  ;;  %7535 = vmatmul.bf16.vlgmr.msrb.gmra.mxu1 %v16068_v51  ;;  %v14660_v28 = vld [vmem:[#allocation7 + $0x25c] sm:$0xf0]  ;;  %v11386_v29 = vor.u32 %v14948_v40, %v11385_v16 }
 0x362   :  { %v15483_v17 = vld [vmem:[#allocation7 + $0x1c1c] sm:$0xf]  ;;  %7583 = vmatpush.bf16.msra.mxu1 %v10938_v36  ;;  %v13046_v33 = vor.u32 %v15355_v58, %v13043_v24  ;;  %7561 = vmatpush.bf16.msrb.mxu3 %v13622_v1  ;;  %v10810_v1 = vor.u32 %v14804_v12, %v10809_v44  ;;  %v10233_v36 = vld [vmem:[#allocation7 + $0x220] sm:$0xf]  ;;  %v11898_v24 = vor.u32 %v15076_v15, %v11897_v42 }
 0x363   :  { %v13555_v49 = vld [vmem:[#allocation7 + $0x1c58] sm:$0xf0]  ;;  %v10745_v46 = vld [vmem:[#allocation7 + $0x620] sm:$0xf]  ;;  %v10234_v45 = vor.u32 %v14660_v28, %v10233_v36 }
 0x364   :  { %v13558_v50 = vor.u32 %v15483_v17, %v13555_v49  ;;  %7570 = vmatpush.bf16.msra.mxu0 %v10362_v61  ;;  %7548 = vmatpush.bf16.msrb.mxu2 %v13046_v33  ;;  %v14788_v58 = vld [vmem:[#allocation7 + $0x65c] sm:$0xf0]  ;;  %v7312_v42 = vpop.f32.mrf.mxu1 }
 0x365   :  { %v11321_v17 = vld [vmem:[#allocation7 + $0xaa0] sm:$0xf]  ;;  %v10746_v53 = vor.u32 %v14788_v58, %v10745_v46 }
 0x366   :  { %7584 = vmatpush.bf16.msra.mxu1 %v10874_v63  ;;  %7562 = vmatpush.bf16.msrb.mxu3 %v13558_v50  ;;  %v14932_v49 = vld [vmem:[#allocation7 + $0xadc] sm:$0xf0]  ;;  %v7298_v50 = vpop.f32.mrf.mxu0 }
 0x367   :  { %7549 = vmatmul.bf16.vlgmr.msrb.gmra.mxu2 %v16072_v43  ;;  %v11833_v2 = vld [vmem:[#allocation7 + $0xea0] sm:$0xf]  ;;  %v11322_v33 = vor.u32 %v14932_v49, %v11321_v17 }
 0x368   :  { %7597 = vmatpush.bf16.msra.mxu2 %v11450_v54  ;;  %7571 = vmatpush.bf16.msra.mxu0 %v10298_v38  ;;  %v15060_v61 = vld [vmem:[#allocation7 + $0xedc] sm:$0xf0] }
 0x369   :  { %7563 = vmatmul.bf16.vlgmr.msrb.gmra.mxu3 %v16074_v48  ;;  %v10169_v41 = vld [vmem:[#allocation7 + $0x1a0] sm:$0xf]  ;;  %v11834_v54 = vor.u32 %v15060_v61, %v11833_v2 }
 0x36a   :  { %7611 = vmatpush.bf16.msra.mxu3 %v11962_v5  ;;  %7585 = vmatpush.bf16.msra.mxu1 %v10810_v1  ;;  %v14644_v63 = vld [vmem:[#allocation7 + $0x1dc] sm:$0xf0]  ;;  %v7299_v5 = vadd.f32 %v7298_v50, %v16256_v19 }
 0x36b   :  { %v10681_v4 = vld [vmem:[#allocation7 + $0x5a0] sm:$0xf]  ;;  %v10170_v16 = vor.u32 %v14644_v63, %v10169_v41  ;;  %v16269_v41 = vpop.f32.mrf.mxu3 }
 0x36c   :  { %7598 = vmatpush.bf16.msra.mxu2 %v11386_v29  ;;  %v14772_v57 = vld [vmem:[#allocation7 + $0x5dc] sm:$0xf0]  ;;  %7572 = vmatpush.bf16.msra.mxu0 %v10234_v45  ;;  %v7313_v28 = vadd.f32 %v7312_v42, %v7299_v5  ;;  %16770 = vst [vmem:[#allocation46_spill] sm:$0xff] %v16269_v41 }
 0x36d   :  { %v11257_v44 = vld [vmem:[#allocation7 + $0xa20] sm:$0xf]  ;;  %v10682_v15 = vor.u32 %v14772_v57, %v10681_v4 }
 0x36e   :  { %7612 = vmatpush.bf16.msra.mxu3 %v11898_v24  ;;  %v14916_v12 = vld [vmem:[#allocation7 + $0xa5c] sm:$0xf0]  ;;  %7586 = vmatpush.bf16.msra.mxu1 %v10746_v53  ;;  %v16267_v24 = vpop.f32.mrf.mxu2 }
 0x36f   :  { %v11769_v40 = vld [vmem:[#allocation7 + $0xe20] sm:$0xf]  ;;  %v11258_v29 = vor.u32 %v14916_v12, %v11257_v44  ;;  %16769 = vst [vmem:[#allocation45_spill] sm:$0xff] %v16267_v24 }
 0x370   :  { %v15044_v38 = vld [vmem:[#allocation7 + $0xe5c] sm:$0xf0]  ;;  %7599 = vmatpush.bf16.msra.mxu2 %v11322_v33  ;;  %7573 = vmatpush.bf16.msra.mxu0 %v10170_v16 }
 0x371   :  { %v10105_v1 = vld [vmem:[#allocation7 + $0x120] sm:$0xf]  ;;  %v11770_v17 = vor.u32 %v15044_v38, %v11769_v40 }
 0x372   :  { %v14628_v36 = vld [vmem:[#allocation7 + $0x15c] sm:$0xf0]  ;;  %7613 = vmatpush.bf16.msra.mxu3 %v11834_v54  ;;  %7587 = vmatpush.bf16.msra.mxu1 %v10682_v15 }
 0x373   :  { %v10617_v46 = vld [vmem:[#allocation7 + $0x520] sm:$0xf]  ;;  %v10106_v45 = vor.u32 %v14628_v36, %v10105_v1 }
 0x374   :  { %v14756_v58 = vld [vmem:[#allocation7 + $0x55c] sm:$0xf0]  ;;  %7600 = vmatpush.bf16.msra.mxu2 %v11258_v29 }
 0x375   :  { %v11193_v49 = vld [vmem:[#allocation7 + $0x9a0] sm:$0xf]  ;;  %v10618_v53 = vor.u32 %v14756_v58, %v10617_v46  ;;  %7574 = vmatpush.bf16.msra.mxu0 %v10106_v45 }
 0x376   :  { %v14900_v19 = vld [vmem:[#allocation7 + $0x9dc] sm:$0xf0]  ;;  %7614 = vmatpush.bf16.msra.mxu3 %v11770_v17  ;;  %v7326_v17 = vpop.f32.mrf.mxu2 }
 0x377   :  { %v11705_v2 = vld [vmem:[#allocation7 + $0xda0] sm:$0xf]  ;;  %v11194_v33 = vor.u32 %v14900_v19, %v11193_v49  ;;  %7588 = vmatpush.bf16.msra.mxu1 %v10618_v53 }
 0x378   :  { %v15028_v61 = vld [vmem:[#allocation7 + $0xddc] sm:$0xf0] }
 0x379   :  { %v10041_v63 = vld [vmem:[#allocation7 + $0xa0] sm:$0xf]  ;;  %v11706_v44 = vor.u32 %v15028_v61, %v11705_v2  ;;  %7601 = vmatpush.bf16.msra.mxu2 %v11194_v33 }
 0x37a   :  { %v14612_v4 = vld [vmem:[#allocation7 + $0xdc] sm:$0xf0] }
 0x37b   :  { %v10553_v57 = vld [vmem:[#allocation7 + $0x4a0] sm:$0xf]  ;;  %v10042_v5 = vor.u32 %v14612_v4, %v10041_v63  ;;  %7615 = vmatpush.bf16.msra.mxu3 %v11706_v44  ;;  %v7327_v63 = vadd.f32 %v7326_v17, %v7313_v28 }
 0x37c   :  { %v14740_v50 = vld [vmem:[#allocation7 + $0x4dc] sm:$0xf0] }
 0x37d   :  { %v11129_v54 = vld [vmem:[#allocation7 + $0x920] sm:$0xf]  ;;  %v10554_v42 = vor.u32 %v14740_v50, %v10553_v57  ;;  %7575 = vmatpush.bf16.msra.mxu0 %v10042_v5  ;;  %v7340_v57 = vpop.f32.mrf.mxu3 }
 0x37e   :  { %v14884_v12 = vld [vmem:[#allocation7 + $0x95c] sm:$0xf0] }
 0x37f   :  { %v11641_v16 = vld [vmem:[#allocation7 + $0xd20] sm:$0xf]  ;;  %v11130_v46 = vor.u32 %v14884_v12, %v11129_v54  ;;  %7589 = vmatpush.bf16.msra.mxu1 %v10554_v42  ;;  %v16271_v54 = vadd.f32 %v7340_v57, %v7327_v63  ;;  %v16274_v63 = vpop.f32.mrf.mxu0 }
 0x380   :  { %v15012_v40 = vld [vmem:[#allocation7 + $0xd5c] sm:$0xf0]  ;;  %16772 = vst [vmem:[#allocation48_spill] sm:$0xff] %v16274_v63 }
 0x381   :  { %v9977_v38 = vld [vmem:[#allocation7 + $0x20] sm:$0xf]  ;;  %v11642_v19 = vor.u32 %v15012_v40, %v11641_v16  ;;  %16771 = vst [vmem:[#allocation47_spill] sm:$0xff] %v16271_v54  ;;  %7602 = vmatpush.bf16.msra.mxu2 %v11130_v46 }
 0x382   :  { %v14596_v1 = vld [vmem:[#allocation7 + $0x5c] sm:$0xf0] }
 0x383   :  { %v10489_v15 = vld [vmem:[#allocation7 + $0x420] sm:$0xf]  ;;  %v9978_v4 = vor.u32 %v14596_v1, %v9977_v38  ;;  %7616 = vmatpush.bf16.msra.mxu3 %v11642_v19 }
 0x384   :  { %v14724_v36 = vld [vmem:[#allocation7 + $0x45c] sm:$0xf0] }
 0x385   :  { %v12473_v29 = vld [vmem:[#allocation7 + $0x13a0] sm:$0xf]  ;;  %v10490_v50 = vor.u32 %v14724_v36, %v10489_v15  ;;  %7576 = vmatpush.bf16.msra.mxu0 %v9978_v4 }
 0x386   :  { %v15220_v58 = vld [vmem:[#allocation7 + $0x13dc] sm:$0xf0] }
 0x387   :  { %v12985_v49 = vld [vmem:[#allocation7 + $0x17a0] sm:$0xf]  ;;  %v12474_v24 = vor.u32 %v15220_v58, %v12473_v29  ;;  %7590 = vmatpush.bf16.msra.mxu1 %v10490_v50 }
 0x388   :  { %v15348_v2 = vld [vmem:[#allocation7 + $0x17dc] sm:$0xf0]  ;;  %7577 = vmatmul.bf16.vlgmr.msra.gmra.mxu0 %v16050_v59 }
 0x389   :  { %v11065_v61 = vld [vmem:[#allocation7 + $0x8a0] sm:$0xf]  ;;  %v12986_v12 = vor.u32 %v15348_v2, %v12985_v49  ;;  %7625 = vmatpush.bf16.msrb.mxu0 %v12474_v24 }
 0x38a   :  { %v14868_v45 = vld [vmem:[#allocation7 + $0x8dc] sm:$0xf0]  ;;  %7591 = vmatmul.bf16.vlgmr.msra.gmra.mxu1 %v16052_v0 }
 0x38b   :  { %v11577_v41 = vld [vmem:[#allocation7 + $0xca0] sm:$0xf]  ;;  %v11066_v44 = vor.u32 %v14868_v45, %v11065_v61  ;;  %7639 = vmatpush.bf16.msrb.mxu1 %v12986_v12 }
 0x38c   :  { %v14996_v53 = vld [vmem:[#allocation7 + $0xcdc] sm:$0xf0] }
 0x38d   :  { %v12409_v33 = vld [vmem:[#allocation7 + $0x1320] sm:$0xf]  ;;  %v11578_v23 = vor.u32 %v14996_v53, %v11577_v41  ;;  %7603 = vmatpush.bf16.msra.mxu2 %v11066_v44 }
 0x38e   :  { %v15204_v34 = vld [vmem:[#allocation7 + $0x135c] sm:$0xf0] }
 0x38f   :  { %v12921_v16 = vld [vmem:[#allocation7 + $0x1720] sm:$0xf]  ;;  %v12410_v15 = vor.u32 %v15204_v34, %v12409_v33  ;;  %7617 = vmatpush.bf16.msra.mxu3 %v11578_v23  ;;  %v16277_v33 = vpop.f32.mrf.mxu1 }
 0x390   :  { %v15332_v40 = vld [vmem:[#allocation7 + $0x175c] sm:$0xf0]  ;;  %16773 = vst [vmem:[#allocation49_spill] sm:$0xff] %v16277_v33  ;;  %v10363_v33 = vld [vmem:[#allocation7 + $0x360] sm:$0xf0] }
 0x391   :  { %v11001_v28 = vld [vmem:[#allocation7 + $0x820] sm:$0xf]  ;;  %v12922_v46 = vor.u32 %v15332_v40, %v12921_v16  ;;  %7626 = vmatpush.bf16.msrb.mxu0 %v12410_v15 }
 0x392   :  { %v14852_v5 = vld [vmem:[#allocation7 + $0x85c] sm:$0xf0] }
 0x393   :  { %v11513_v38 = vld [vmem:[#allocation7 + $0xc20] sm:$0xf]  ;;  %v11002_v58 = vor.u32 %v14852_v5, %v11001_v28  ;;  %7640 = vmatpush.bf16.msrb.mxu1 %v12922_v46 }
 0x394   :  { %v14980_v1 = vld [vmem:[#allocation7 + $0xc5c] sm:$0xf0] }
 0x395   :  { %v13497_v17 = vld [vmem:[#allocation7 + $0x1ba0] sm:$0xf]  ;;  %v11514_v41 = vor.u32 %v14980_v1, %v11513_v38  ;;  %7604 = vmatpush.bf16.msra.mxu2 %v11002_v58 }
 0x396   :  { %v15476_v42 = vld [vmem:[#allocation7 + $0x1bdc] sm:$0xf0] }
 0x397   :  { %v14009_v36 = vld [vmem:[#allocation7 + $0x1fa0] sm:$0xf]  ;;  %v13498_v19 = vor.u32 %v15476_v42, %v13497_v17  ;;  %7618 = vmatpush.bf16.msra.mxu3 %v11514_v41  ;;  %v16729_v17 = vperm.slane %v16246_v13, 6 }
 0x398   :  { %v15604_v29 = vld [vmem:[#allocation7 + $0x1fdc] sm:$0xf0]  ;;  %7605 = vmatmul.bf16.vlgmr.msra.gmra.mxu2 %v16058_v26 }
 0x399   :  { %v12345_v49 = vld [vmem:[#allocation7 + $0x12a0] sm:$0xf]  ;;  %v14010_v34 = vor.u32 %v15604_v29, %v14009_v36  ;;  %7653 = vmatpush.bf16.msrb.mxu2 %v13498_v19  ;;  %v7354_v19 = vpop.f32.mrf.mxu0 }
 0x39a   :  { %v15188_v2 = vld [vmem:[#allocation7 + $0x12dc] sm:$0xf0]  ;;  %7619 = vmatmul.bf16.vlgmr.msra.gmra.mxu3 %v16060_v32 }
 0x39b   :  { %v12857_v61 = vld [vmem:[#allocation7 + $0x16a0] sm:$0xf]  ;;  %v12346_v53 = vor.u32 %v15188_v2, %v12345_v49  ;;  %7667 = vmatpush.bf16.msrb.mxu3 %v14010_v34 }
 0x39c   :  { %v15316_v45 = vld [vmem:[#allocation7 + $0x16dc] sm:$0xf0] }
 0x39d   :  { %v13433_v24 = vld [vmem:[#allocation7 + $0x1b20] sm:$0xf]  ;;  %v12858_v23 = vor.u32 %v15316_v45, %v12857_v61  ;;  %7627 = vmatpush.bf16.msrb.mxu0 %v12346_v53 }
 0x39e   :  { %v15460_v4 = vld [vmem:[#allocation7 + $0x1b5c] sm:$0xf0] }
 0x39f   :  { %v13945_v57 = vld [vmem:[#allocation7 + $0x1f20] sm:$0xf]  ;;  %v13434_v16 = vor.u32 %v15460_v4, %v13433_v24  ;;  %7641 = vmatpush.bf16.msrb.mxu1 %v12858_v23  ;;  %v7355_v24 = vadd.f32 %v7354_v19, %v16729_v17  ;;  %v16286_v19 = vpop.f32.mrf.mxu3 }
 0x3a0   :  { %v15588_v50 = vld [vmem:[#allocation7 + $0x1f5c] sm:$0xf0]  ;;  %16775 = vst [vmem:[#allocation51_spill] sm:$0xff] %v16286_v19 }
 0x3a1   :  { %v12281_v12 = vld [vmem:[#allocation7 + $0x1220] sm:$0xf]  ;;  %v13946_v5 = vor.u32 %v15588_v50, %v13945_v57  ;;  %7654 = vmatpush.bf16.msrb.mxu2 %v13434_v16  ;;  %v7368_v50 = vpop.f32.mrf.mxu1 }
 0x3a2   :  { %v15172_v44 = vld [vmem:[#allocation7 + $0x125c] sm:$0xf0]  ;;  %v7369_v16 = vadd.f32 %v7368_v50, %v7355_v24 }
 0x3a3   :  { %v12793_v40 = vld [vmem:[#allocation7 + $0x1620] sm:$0xf]  ;;  %v12282_v42 = vor.u32 %v15172_v44, %v12281_v12  ;;  %7668 = vmatpush.bf16.msrb.mxu3 %v13946_v5 }
 0x3a4   :  { %v15300_v28 = vld [vmem:[#allocation7 + $0x165c] sm:$0xf0] }
 0x3a5   :  { %v13369_v38 = vld [vmem:[#allocation7 + $0x1aa0] sm:$0xf]  ;;  %v12794_v29 = vor.u32 %v15300_v28, %v12793_v40  ;;  %7628 = vmatpush.bf16.msrb.mxu0 %v12282_v42 }
 0x3a6   :  { %v15444_v1 = vld [vmem:[#allocation7 + $0x1adc] sm:$0xf0] }
 0x3a7   :  { %v13881_v15 = vld [vmem:[#allocation7 + $0x1ea0] sm:$0xf]  ;;  %v13370_v49 = vor.u32 %v15444_v1, %v13369_v38  ;;  %7642 = vmatpush.bf16.msrb.mxu1 %v12794_v29  ;;  %v16284_v38 = vpop.f32.mrf.mxu2 }
 0x3a8   :  { %v15572_v36 = vld [vmem:[#allocation7 + $0x1edc] sm:$0xf0]  ;;  %16774 = vst [vmem:[#allocation50_spill] sm:$0xff] %v16284_v38 }
 0x3a9   :  { %v12217_v46 = vld [vmem:[#allocation7 + $0x11a0] sm:$0xf]  ;;  %v13882_v61 = vor.u32 %v15572_v36, %v13881_v15  ;;  %7655 = vmatpush.bf16.msrb.mxu2 %v13370_v49 }
 0x3aa   :  { %v15156_v58 = vld [vmem:[#allocation7 + $0x11dc] sm:$0xf0] }
 0x3ab   :  { %v12729_v2 = vld [vmem:[#allocation7 + $0x15a0] sm:$0xf]  ;;  %v12218_v4 = vor.u32 %v15156_v58, %v12217_v46  ;;  %7669 = vmatpush.bf16.msrb.mxu3 %v13882_v61 }
 0x3ac   :  { %v15284_v41 = vld [vmem:[#allocation7 + $0x15dc] sm:$0xf0] }
 0x3ad   :  { %v13305_v45 = vld [vmem:[#allocation7 + $0x1a20] sm:$0xf]  ;;  %v12730_v23 = vor.u32 %v15284_v41, %v12729_v2  ;;  %7629 = vmatpush.bf16.msrb.mxu0 %v12218_v4 }
 0x3ae   :  { %v15428_v34 = vld [vmem:[#allocation7 + $0x1a5c] sm:$0xf0] }
 0x3af   :  { %v13817_v53 = vld [vmem:[#allocation7 + $0x1e20] sm:$0xf]  ;;  %v13306_v40 = vor.u32 %v15428_v34, %v13305_v45  ;;  %7643 = vmatpush.bf16.msrb.mxu1 %v12730_v23 }
 0x3b0   :  { %v15556_v57 = vld [vmem:[#allocation7 + $0x1e5c] sm:$0xf0] }
 0x3b1   :  { %v12153_v12 = vld [vmem:[#allocation7 + $0x1120] sm:$0xf]  ;;  %v13818_v1 = vor.u32 %v15556_v57, %v13817_v53  ;;  %7656 = vmatpush.bf16.msrb.mxu2 %v13306_v40  ;;  %v14700_v40 = vld [vmem:[#allocation7 + $0x3a4] sm:$0xf] }
 0x3b2   :  { %v15140_v44 = vld [vmem:[#allocation7 + $0x115c] sm:$0xf0] }
 0x3b3   :  { %v12665_v28 = vld [vmem:[#allocation7 + $0x1520] sm:$0xf]  ;;  %v12154_v42 = vor.u32 %v15140_v44, %v12153_v12  ;;  %7670 = vmatpush.bf16.msrb.mxu3 %v13818_v1  ;;  %v7382_v1 = vpop.f32.mrf.mxu2 }
 0x3b4   :  { %v15268_v5 = vld [vmem:[#allocation7 + $0x155c] sm:$0xf0] }
 0x3b5   :  { %v13241_v15 = vld [vmem:[#allocation7 + $0x19a0] sm:$0xf]  ;;  %v12666_v29 = vor.u32 %v15268_v5, %v12665_v28  ;;  %7630 = vmatpush.bf16.msrb.mxu0 %v12154_v42 }
 0x3b6   :  { %v15412_v36 = vld [vmem:[#allocation7 + $0x19dc] sm:$0xf0] }
 0x3b7   :  { %v13753_v46 = vld [vmem:[#allocation7 + $0x1da0] sm:$0xf]  ;;  %v13242_v49 = vor.u32 %v15412_v36, %v13241_v15  ;;  %7644 = vmatpush.bf16.msrb.mxu1 %v12666_v29  ;;  %v10427_v15 = vld [vmem:[#allocation7 + $0x3e0] sm:$0xf0] }
 0x3b8   :  { %v15540_v58 = vld [vmem:[#allocation7 + $0x1ddc] sm:$0xf0]  ;;  %v14828_v36 = vld [vmem:[#allocation7 + $0x7a4] sm:$0xf]  ;;  %v10430_v38 = vor.u32 %v14700_v40, %v10427_v15 }
 0x3b9   :  { %v12089_v2 = vld [vmem:[#allocation7 + $0x10a0] sm:$0xf]  ;;  %v13754_v24 = vor.u32 %v15540_v58, %v13753_v46  ;;  %7657 = vmatpush.bf16.msrb.mxu2 %v13242_v49  ;;  %v10939_v58 = vld [vmem:[#allocation7 + $0x7e0] sm:$0xf0] }
 0x3ba   :  { %v15124_v41 = vld [vmem:[#allocation7 + $0x10dc] sm:$0xf0]  ;;  %v14684_v49 = vld [vmem:[#allocation7 + $0x324] sm:$0xf] }
 0x3bb   :  { %v12601_v45 = vld [vmem:[#allocation7 + $0x14a0] sm:$0xf]  ;;  %v12090_v57 = vor.u32 %v15124_v41, %v12089_v2  ;;  %7671 = vmatpush.bf16.msrb.mxu3 %v13754_v24  ;;  %v7383_v2 = vadd.f32 %v7382_v1, %v7369_v16  ;;  %v14956_v1 = vld [vmem:[#allocation7 + $0xba4] sm:$0xf] }
 0x3bc   :  { %v15252_v34 = vld [vmem:[#allocation7 + $0x14dc] sm:$0xf0]  ;;  %v11963_v40 = vld [vmem:[#allocation7 + $0xfe0] sm:$0xf0] }
 0x3bd   :  { %v13177_v61 = vld [vmem:[#allocation7 + $0x1920] sm:$0xf]  ;;  %v12602_v44 = vor.u32 %v15252_v34, %v12601_v45  ;;  %7631 = vmatpush.bf16.msrb.mxu0 %v12090_v57  ;;  %v7396_v45 = vpop.f32.mrf.mxu3  ;;  %v14668_v15 = vld [vmem:[#allocation7 + $0x2a4] sm:$0xf] }
 0x3be   :  { %v15396_v53 = vld [vmem:[#allocation7 + $0x195c] sm:$0xf0] }
 0x3bf   :  { %v13689_v4 = vld [vmem:[#allocation7 + $0x1d20] sm:$0xf]  ;;  %v13178_v5 = vor.u32 %v15396_v53, %v13177_v61  ;;  %7645 = vmatpush.bf16.msrb.mxu1 %v12602_v44  ;;  %v16288_v61 = vadd.f32 %v7396_v45, %v7383_v2  ;;  %v10942_v53 = vor.u32 %v14828_v36, %v10939_v58  ;;  %v11451_v44 = vld [vmem:[#allocation7 + $0xbe0] sm:$0xf0]  ;;  %v16291_v2 = vpop.f32.mrf.mxu0 }
 0x3c0   :  { %v15524_v50 = vld [vmem:[#allocation7 + $0x1d5c] sm:$0xf0]  ;;  %v10299_v36 = vld [vmem:[#allocation7 + $0x2e0] sm:$0xf0]  ;;  %16776 = vst [vmem:[#allocation52_spill] sm:$0xff] %v16291_v2 }
 0x3c1   :  { %v12025_v12 = vld [vmem:[#allocation7 + $0x1020] sm:$0xf]  ;;  %v13690_v46 = vor.u32 %v15524_v50, %v13689_v4  ;;  %7658 = vmatpush.bf16.msrb.mxu2 %v13178_v5  ;;  %v14812_v4 = vld [vmem:[#allocation7 + $0x724] sm:$0xf] }
 0x3c2   :  { %v15108_v17 = vld [vmem:[#allocation7 + $0x105c] sm:$0xf0]  ;;  %v10875_v50 = vld [vmem:[#allocation7 + $0x760] sm:$0xf0] }
 0x3c3   :  { %v12537_v23 = vld [vmem:[#allocation7 + $0x1420] sm:$0xf]  ;;  %v12026_v41 = vor.u32 %v15108_v17, %v12025_v12  ;;  %7672 = vmatpush.bf16.msrb.mxu3 %v13690_v46  ;;  %v11454_v46 = vor.u32 %v14956_v1, %v11451_v44  ;;  %v14796_v58 = vld [vmem:[#allocation7 + $0x6a4] sm:$0xf] }
 0x3c4   :  { %v15236_v28 = vld [vmem:[#allocation7 + $0x145c] sm:$0xf0]  ;;  %v15068_v45 = vld [vmem:[#allocation7 + $0xf24] sm:$0xf] }
 0x3c5   :  { %v13113_v54 = vld [vmem:[#allocation7 + $0x18a0] sm:$0xf]  ;;  %v12538_v34 = vor.u32 %v15236_v28, %v12537_v23  ;;  %7632 = vmatpush.bf16.msrb.mxu0 %v12026_v41  ;;  %v10366_v23 = vor.u32 %v14684_v49, %v10363_v33  ;;  %v15084_v28 = vld [vmem:[#allocation7 + $0xfa4] sm:$0xf]  ;;  %v16294_v49 = vpop.f32.mrf.mxu1 }
 0x3c6   :  { %v15380_v42 = vld [vmem:[#allocation7 + $0x18dc] sm:$0xf0]  ;;  %v11966_v33 = vor.u32 %v15084_v28, %v11963_v40  ;;  %v11387_v41 = vld [vmem:[#allocation7 + $0xb60] sm:$0xf0]  ;;  %16777 = vst [vmem:[#allocation53_spill] sm:$0xff] %v16294_v49 }
 0x3c7   :  { %v13625_v19 = vld [vmem:[#allocation7 + $0x1ca0] sm:$0xf]  ;;  %v13114_v24 = vor.u32 %v15380_v42, %v13113_v54  ;;  %7646 = vmatpush.bf16.msrb.mxu1 %v12538_v34  ;;  %v10878_v54 = vor.u32 %v14812_v4, %v10875_v50  ;;  %v10811_v42 = vld [vmem:[#allocation7 + $0x6e0] sm:$0xf0] }
 0x3c8   :  { %v15508_v29 = vld [vmem:[#allocation7 + $0x1cdc] sm:$0xf0]  ;;  %7633 = vmatmul.bf16.vlgmr.msrb.gmra.mxu0 %v16066_v8  ;;  %v11899_v34 = vld [vmem:[#allocation7 + $0xf60] sm:$0xf0] }
 0x3c9   :  { %v13626_v63 = vor.u32 %v15508_v29, %v13625_v19  ;;  %v13049_v16 = vld [vmem:[#allocation7 + $0x1820] sm:$0xf]  ;;  %7681 = vmatpush.bf16.msra.mxu0 %v10430_v38  ;;  %7659 = vmatpush.bf16.msrb.mxu2 %v13114_v24  ;;  %v14940_v38 = vld [vmem:[#allocation7 + $0xb24] sm:$0xf]  ;;  %v10302_v29 = vor.u32 %v14668_v15, %v10299_v36 }
 0x3ca   :  { %v15364_v57 = vld [vmem:[#allocation7 + $0x185c] sm:$0xf0]  ;;  %7647 = vmatmul.bf16.vlgmr.msrb.gmra.mxu1 %v16068_v51  ;;  %v10235_v24 = vld [vmem:[#allocation7 + $0x260] sm:$0xf0]  ;;  %v11390_v4 = vor.u32 %v14940_v38, %v11387_v41 }
 0x3cb   :  { %v13561_v17 = vld [vmem:[#allocation7 + $0x1c20] sm:$0xf]  ;;  %7695 = vmatpush.bf16.msra.mxu1 %v10942_v53  ;;  %v13050_v5 = vor.u32 %v15364_v57, %v13049_v16  ;;  %7673 = vmatpush.bf16.msrb.mxu3 %v13626_v63  ;;  %v10814_v63 = vor.u32 %v14796_v58, %v10811_v42  ;;  %v14652_v53 = vld [vmem:[#allocation7 + $0x224] sm:$0xf]  ;;  %v11902_v57 = vor.u32 %v15068_v45, %v11899_v34 }
 0x3cc   :  { %v15492_v12 = vld [vmem:[#allocation7 + $0x1c5c] sm:$0xf0]  ;;  %v14780_v50 = vld [vmem:[#allocation7 + $0x624] sm:$0xf]  ;;  %v10238_v1 = vor.u32 %v14652_v53, %v10235_v24 }
 0x3cd   :  { %v13562_v19 = vor.u32 %v15492_v12, %v13561_v17  ;;  %7682 = vmatpush.bf16.msra.mxu0 %v10366_v23  ;;  %7660 = vmatpush.bf16.msrb.mxu2 %v13050_v5  ;;  %v10747_v16 = vld [vmem:[#allocation7 + $0x660] sm:$0xf0]  ;;  %v7424_v45 = vpop.f32.mrf.mxu1 }
 0x3ce   :  { %v14924_v17 = vld [vmem:[#allocation7 + $0xaa4] sm:$0xf]  ;;  %v10750_v28 = vor.u32 %v14780_v50, %v10747_v16 }
 0x3cf   :  { %7696 = vmatpush.bf16.msra.mxu1 %v10878_v54  ;;  %7674 = vmatpush.bf16.msrb.mxu3 %v13562_v19  ;;  %v11323_v12 = vld [vmem:[#allocation7 + $0xae0] sm:$0xf0]  ;;  %v7410_v19 = vpop.f32.mrf.mxu0 }
 0x3d0   :  { %7661 = vmatmul.bf16.vlgmr.msrb.gmra.mxu2 %v16072_v43  ;;  %v15052_v44 = vld [vmem:[#allocation7 + $0xea4] sm:$0xf]  ;;  %v11326_v5 = vor.u32 %v14924_v17, %v11323_v12 }
 0x3d1   :  { %7709 = vmatpush.bf16.msra.mxu2 %v11454_v46  ;;  %7683 = vmatpush.bf16.msra.mxu0 %v10302_v29  ;;  %v11835_v23 = vld [vmem:[#allocation7 + $0xee0] sm:$0xf0] }
 0x3d2   :  { %7675 = vmatmul.bf16.vlgmr.msrb.gmra.mxu3 %v16074_v48  ;;  %v14636_v40 = vld [vmem:[#allocation7 + $0x1a4] sm:$0xf]  ;;  %v11838_v46 = vor.u32 %v15052_v44, %v11835_v23 }
 0x3d3   :  { %7723 = vmatpush.bf16.msra.mxu3 %v11966_v33  ;;  %7697 = vmatpush.bf16.msra.mxu1 %v10814_v63  ;;  %v10171_v54 = vld [vmem:[#allocation7 + $0x1e0] sm:$0xf0]  ;;  %v7411_v33 = vadd.f32 %v7410_v19, %v16288_v61 }
 0x3d4   :  { %v14764_v15 = vld [vmem:[#allocation7 + $0x5a4] sm:$0xf]  ;;  %v10174_v38 = vor.u32 %v14636_v40, %v10171_v54  ;;  %v16301_v40 = vpop.f32.mrf.mxu3 }
 0x3d5   :  { %7710 = vmatpush.bf16.msra.mxu2 %v11390_v4  ;;  %v10683_v36 = vld [vmem:[#allocation7 + $0x5e0] sm:$0xf0]  ;;  %7684 = vmatpush.bf16.msra.mxu0 %v10238_v1  ;;  %v7425_v24 = vadd.f32 %v7424_v45, %v7411_v33  ;;  %16779 = vst [vmem:[#allocation55_spill] sm:$0xff] %v16301_v40 }
 0x3d6   :  { %v14908_v58 = vld [vmem:[#allocation7 + $0xa24] sm:$0xf]  ;;  %v10686_v34 = vor.u32 %v14764_v15, %v10683_v36 }
 0x3d7   :  { %7724 = vmatpush.bf16.msra.mxu3 %v11902_v57  ;;  %v11259_v42 = vld [vmem:[#allocation7 + $0xa60] sm:$0xf0]  ;;  %7698 = vmatpush.bf16.msra.mxu1 %v10750_v28  ;;  %v16299_v57 = vpop.f32.mrf.mxu2 }
 0x3d8   :  { %v15036_v41 = vld [vmem:[#allocation7 + $0xe24] sm:$0xf]  ;;  %v11262_v4 = vor.u32 %v14908_v58, %v11259_v42  ;;  %16778 = vst [vmem:[#allocation54_spill] sm:$0xff] %v16299_v57 }
 0x3d9   :  { %v11771_v29 = vld [vmem:[#allocation7 + $0xe60] sm:$0xf0]  ;;  %7711 = vmatpush.bf16.msra.mxu2 %v11326_v5  ;;  %7685 = vmatpush.bf16.msra.mxu0 %v10174_v38 }
 0x3da   :  { %v14620_v63 = vld [vmem:[#allocation7 + $0x124] sm:$0xf]  ;;  %v11774_v17 = vor.u32 %v15036_v41, %v11771_v29 }
 0x3db   :  { %v10107_v53 = vld [vmem:[#allocation7 + $0x160] sm:$0xf0]  ;;  %7725 = vmatpush.bf16.msra.mxu3 %v11838_v46  ;;  %7699 = vmatpush.bf16.msra.mxu1 %v10686_v34 }
 0x3dc   :  { %v14748_v50 = vld [vmem:[#allocation7 + $0x524] sm:$0xf]  ;;  %v10110_v1 = vor.u32 %v14620_v63, %v10107_v53 }
 0x3dd   :  { %v10619_v16 = vld [vmem:[#allocation7 + $0x560] sm:$0xf0]  ;;  %7712 = vmatpush.bf16.msra.mxu2 %v11262_v4 }
 0x3de   :  { %v14892_v12 = vld [vmem:[#allocation7 + $0x9a4] sm:$0xf]  ;;  %v10622_v28 = vor.u32 %v14748_v50, %v10619_v16  ;;  %7686 = vmatpush.bf16.msra.mxu0 %v10110_v1 }
 0x3df   :  { %v11195_v61 = vld [vmem:[#allocation7 + $0x9e0] sm:$0xf0]  ;;  %7726 = vmatpush.bf16.msra.mxu3 %v11774_v17  ;;  %v7438_v17 = vpop.f32.mrf.mxu2 }
 0x3e0   :  { %v15020_v44 = vld [vmem:[#allocation7 + $0xda4] sm:$0xf]  ;;  %v11198_v5 = vor.u32 %v14892_v12, %v11195_v61  ;;  %7700 = vmatpush.bf16.msra.mxu1 %v10622_v28 }
 0x3e1   :  { %v11707_v23 = vld [vmem:[#allocation7 + $0xde0] sm:$0xf0] }
 0x3e2   :  { %v14604_v54 = vld [vmem:[#allocation7 + $0xa4] sm:$0xf]  ;;  %v11710_v58 = vor.u32 %v15020_v44, %v11707_v23  ;;  %7713 = vmatpush.bf16.msra.mxu2 %v11198_v5 }
 0x3e3   :  { %v10043_v15 = vld [vmem:[#allocation7 + $0xe0] sm:$0xf0] }
 0x3e4   :  { %v14732_v36 = vld [vmem:[#allocation7 + $0x4a4] sm:$0xf]  ;;  %v10046_v33 = vor.u32 %v14604_v54, %v10043_v15  ;;  %7727 = vmatpush.bf16.msra.mxu3 %v11710_v58  ;;  %v7439_v54 = vadd.f32 %v7438_v17, %v7425_v24 }
 0x3e5   :  { %v10555_v19 = vld [vmem:[#allocation7 + $0x4e0] sm:$0xf0] }
 0x3e6   :  { %v14876_v46 = vld [vmem:[#allocation7 + $0x924] sm:$0xf]  ;;  %v10558_v45 = vor.u32 %v14732_v36, %v10555_v19  ;;  %7687 = vmatpush.bf16.msra.mxu0 %v10046_v33  ;;  %v7452_v36 = vpop.f32.mrf.mxu3 }
 0x3e7   :  { %v11131_v42 = vld [vmem:[#allocation7 + $0x960] sm:$0xf0] }
 0x3e8   :  { %v15004_v38 = vld [vmem:[#allocation7 + $0xd24] sm:$0xf]  ;;  %v11134_v50 = vor.u32 %v14876_v46, %v11131_v42  ;;  %7701 = vmatpush.bf16.msra.mxu1 %v10558_v45  ;;  %v16303_v46 = vadd.f32 %v7452_v36, %v7439_v54  ;;  %v16306_v54 = vpop.f32.mrf.mxu0 }
 0x3e9   :  { %v11643_v41 = vld [vmem:[#allocation7 + $0xd60] sm:$0xf0]  ;;  %16781 = vst [vmem:[#allocation57_spill] sm:$0xff] %v16306_v54  ;;  %v14693_v54 = vld [vmem:[#allocation7 + $0x364] sm:$0xf0] }
 0x3ea   :  { %v14588_v29 = vld [vmem:[#allocation7 + $0x24] sm:$0xf]  ;;  %v11646_v61 = vor.u32 %v15004_v38, %v11643_v41  ;;  %16780 = vst [vmem:[#allocation56_spill] sm:$0xff] %v16303_v46  ;;  %7714 = vmatpush.bf16.msra.mxu2 %v11134_v50 }
 0x3eb   :  { %v9979_v63 = vld [vmem:[#allocation7 + $0x60] sm:$0xf0] }
 0x3ec   :  { %v14716_v34 = vld [vmem:[#allocation7 + $0x424] sm:$0xf]  ;;  %v9982_v15 = vor.u32 %v14588_v29, %v9979_v63  ;;  %7728 = vmatpush.bf16.msra.mxu3 %v11646_v61 }
 0x3ed   :  { %v10491_v53 = vld [vmem:[#allocation7 + $0x460] sm:$0xf0] }
 0x3ee   :  { %v15212_v4 = vld [vmem:[#allocation7 + $0x13a4] sm:$0xf]  ;;  %v10494_v19 = vor.u32 %v14716_v34, %v10491_v53  ;;  %7688 = vmatpush.bf16.msra.mxu0 %v9982_v15 }
 0x3ef   :  { %v12475_v16 = vld [vmem:[#allocation7 + $0x13e0] sm:$0xf0] }
 0x3f0   :  { %v15340_v12 = vld [vmem:[#allocation7 + $0x17a4] sm:$0xf]  ;;  %v12478_v57 = vor.u32 %v15212_v4, %v12475_v16  ;;  %7702 = vmatpush.bf16.msra.mxu1 %v10494_v19 }
 0x3f1   :  { %v12987_v44 = vld [vmem:[#allocation7 + $0x17e0] sm:$0xf0]  ;;  %7689 = vmatmul.bf16.vlgmr.msra.gmra.mxu0 %v16050_v59 }
 0x3f2   :  { %v14860_v23 = vld [vmem:[#allocation7 + $0x8a4] sm:$0xf]  ;;  %v12990_v42 = vor.u32 %v15340_v12, %v12987_v44  ;;  %7737 = vmatpush.bf16.msrb.mxu0 %v12478_v57 }
 0x3f3   :  { %v11067_v1 = vld [vmem:[#allocation7 + $0x8e0] sm:$0xf0]  ;;  %7703 = vmatmul.bf16.vlgmr.msra.gmra.mxu1 %v16052_v0 }
 0x3f4   :  { %v14988_v40 = vld [vmem:[#allocation7 + $0xca4] sm:$0xf]  ;;  %v11070_v58 = vor.u32 %v14860_v23, %v11067_v1  ;;  %7751 = vmatpush.bf16.msrb.mxu1 %v12990_v42 }
 0x3f5   :  { %v11579_v28 = vld [vmem:[#allocation7 + $0xce0] sm:$0xf0] }
 0x3f6   :  { %v15196_v5 = vld [vmem:[#allocation7 + $0x1324] sm:$0xf]  ;;  %v11582_v2 = vor.u32 %v14988_v40, %v11579_v28  ;;  %7715 = vmatpush.bf16.msra.mxu2 %v11070_v58 }
 0x3f7   :  { %v12411_v49 = vld [vmem:[#allocation7 + $0x1360] sm:$0xf0] }
 0x3f8   :  { %v15324_v38 = vld [vmem:[#allocation7 + $0x1724] sm:$0xf]  ;;  %v12414_v34 = vor.u32 %v15196_v5, %v12411_v49  ;;  %7729 = vmatpush.bf16.msra.mxu3 %v11582_v2  ;;  %v16309_v5 = vpop.f32.mrf.mxu1 }
 0x3f9   :  { %v12923_v41 = vld [vmem:[#allocation7 + $0x1760] sm:$0xf0]  ;;  %16782 = vst [vmem:[#allocation58_spill] sm:$0xff] %v16309_v5 }
 0x3fa   :  { %v14844_v24 = vld [vmem:[#allocation7 + $0x824] sm:$0xf]  ;;  %v12926_v50 = vor.u32 %v15324_v38, %v12923_v41  ;;  %7738 = vmatpush.bf16.msrb.mxu0 %v12414_v34 }
 0x3fb   :  { %v11003_v33 = vld [vmem:[#allocation7 + $0x860] sm:$0xf0] }
 0x3fc   :  { %v14972_v29 = vld [vmem:[#allocation7 + $0xc24] sm:$0xf]  ;;  %v11006_v16 = vor.u32 %v14844_v24, %v11003_v33  ;;  %7752 = vmatpush.bf16.msrb.mxu1 %v12926_v50 }
 0x3fd   :  { %v11515_v63 = vld [vmem:[#allocation7 + $0xc60] sm:$0xf0] }
 0x3fe   :  { %v15468_v17 = vld [vmem:[#allocation7 + $0x1ba4] sm:$0xf]  ;;  %v11518_v40 = vor.u32 %v14972_v29, %v11515_v63  ;;  %7716 = vmatpush.bf16.msra.mxu2 %v11006_v16 }
 0x3ff   :  { %v13499_v45 = vld [vmem:[#allocation7 + $0x1be0] sm:$0xf0] }
 0x400   :  { %v15596_v53 = vld [vmem:[#allocation7 + $0x1fa4] sm:$0xf]  ;;  %v13502_v61 = vor.u32 %v15468_v17, %v13499_v45  ;;  %7730 = vmatpush.bf16.msra.mxu3 %v11518_v40 }
 0x401   :  { %v14011_v4 = vld [vmem:[#allocation7 + $0x1fe0] sm:$0xf0]  ;;  %7717 = vmatmul.bf16.vlgmr.msra.gmra.mxu2 %v16058_v26 }
 0x402   :  { %v15180_v12 = vld [vmem:[#allocation7 + $0x12a4] sm:$0xf]  ;;  %v14014_v49 = vor.u32 %v15596_v53, %v14011_v4  ;;  %7765 = vmatpush.bf16.msrb.mxu2 %v13502_v61 }
 0x403   :  { %v12347_v44 = vld [vmem:[#allocation7 + $0x12e0] sm:$0xf0]  ;;  %7731 = vmatmul.bf16.vlgmr.msra.gmra.mxu3 %v16060_v32 }
 0x404   :  { %v15308_v23 = vld [vmem:[#allocation7 + $0x16a4] sm:$0xf]  ;;  %v12350_v28 = vor.u32 %v15180_v12, %v12347_v44  ;;  %7779 = vmatpush.bf16.msrb.mxu3 %v14014_v49 }
 0x405   :  { %v12859_v1 = vld [vmem:[#allocation7 + $0x16e0] sm:$0xf0] }
 0x406   :  { %v15452_v57 = vld [vmem:[#allocation7 + $0x1b24] sm:$0xf]  ;;  %v12862_v2 = vor.u32 %v15308_v23, %v12859_v1  ;;  %7739 = vmatpush.bf16.msrb.mxu0 %v12350_v28  ;;  %v7466_v23 = vpop.f32.mrf.mxu0 }
 0x407   :  { %v13435_v15 = vld [vmem:[#allocation7 + $0x1b60] sm:$0xf0] }
 0x408   :  { %v15580_v36 = vld [vmem:[#allocation7 + $0x1f24] sm:$0xf]  ;;  %v13438_v38 = vor.u32 %v15452_v57, %v13435_v15  ;;  %7753 = vmatpush.bf16.msrb.mxu1 %v12862_v2  ;;  %v7480_v2 = vpop.f32.mrf.mxu1 }
 0x409   :  { %v13947_v19 = vld [vmem:[#allocation7 + $0x1f60] sm:$0xf0] }
 0x40a   :  { %v15164_v42 = vld [vmem:[#allocation7 + $0x1224] sm:$0xf]  ;;  %v13950_v33 = vor.u32 %v15580_v36, %v13947_v19  ;;  %7766 = vmatpush.bf16.msrb.mxu2 %v13438_v38 }
 0x40b   :  { %v12283_v58 = vld [vmem:[#allocation7 + $0x1260] sm:$0xf0] }
 0x40c   :  { %v15292_v41 = vld [vmem:[#allocation7 + $0x1624] sm:$0xf]  ;;  %v12286_v34 = vor.u32 %v15164_v42, %v12283_v58  ;;  %7780 = vmatpush.bf16.msrb.mxu3 %v13950_v33 }
 0x40d   :  { %v12795_v24 = vld [vmem:[#allocation7 + $0x1660] sm:$0xf0] }
 0x40e   :  { %v15436_v29 = vld [vmem:[#allocation7 + $0x1aa4] sm:$0xf]  ;;  %v12798_v50 = vor.u32 %v15292_v41, %v12795_v24  ;;  %7740 = vmatpush.bf16.msrb.mxu0 %v12286_v34 }
 0x40f   :  { %v13371_v63 = vld [vmem:[#allocation7 + $0x1ae0] sm:$0xf0] }
 0x410   :  { %v16312_v17 = vld [vmem:[#allocation8] sm:$0xff]  ;;  %v13374_v44 = vor.u32 %v15436_v29, %v13371_v63  ;;  %7754 = vmatpush.bf16.msrb.mxu1 %v12798_v50  ;;  %v16318_v63 = vpop.f32.mrf.mxu2 }
 0x411   :  { %16783 = vst [vmem:[#allocation59_spill] sm:$0xff] %v16312_v17  ;;  %v16730_v45 = vperm.slane %v16312_v17, 7  ;;  %v15564_v53 = vld [vmem:[#allocation7 + $0x1ea4] sm:$0xf] }
 0x412   :  { %v13883_v4 = vld [vmem:[#allocation7 + $0x1ee0] sm:$0xf0]  ;;  %7767 = vmatpush.bf16.msrb.mxu2 %v13374_v44  ;;  %16784 = vst [vmem:[#allocation60_spill] sm:$0xff] %v16318_v63 }
 0x413   :  { %v15148_v16 = vld [vmem:[#allocation7 + $0x11a4] sm:$0xf]  ;;  %v13886_v1 = vor.u32 %v15564_v53, %v13883_v4  ;;  %v7467_v15 = vadd.f32 %v7466_v23, %v16730_v45  ;;  %v16320_v45 = vpop.f32.mrf.mxu3 }
 0x414   :  { %v12219_v12 = vld [vmem:[#allocation7 + $0x11e0] sm:$0xf0]  ;;  %16785 = vst [vmem:[#allocation61_spill] sm:$0xff] %v16320_v45 }
 0x415   :  { %v15276_v40 = vld [vmem:[#allocation7 + $0x15a4] sm:$0xf]  ;;  %v12222_v28 = vor.u32 %v15148_v16, %v12219_v12  ;;  %v7481_v41 = vadd.f32 %v7480_v2, %v7467_v15  ;;  %7781 = vmatpush.bf16.msrb.mxu3 %v13886_v1 }
 0x416   :  { %v12731_v61 = vld [vmem:[#allocation7 + $0x15e0] sm:$0xf0] }
 0x417   :  { %v15420_v49 = vld [vmem:[#allocation7 + $0x1a24] sm:$0xf]  ;;  %v12734_v42 = vor.u32 %v15276_v40, %v12731_v61  ;;  %7741 = vmatpush.bf16.msrb.mxu0 %v12222_v28 }
 0x418   :  { %v13307_v57 = vld [vmem:[#allocation7 + $0x1a60] sm:$0xf0] }
 0x419   :  { %v15548_v36 = vld [vmem:[#allocation7 + $0x1e24] sm:$0xf]  ;;  %v13310_v24 = vor.u32 %v15420_v49, %v13307_v57  ;;  %7755 = vmatpush.bf16.msrb.mxu1 %v12734_v42 }
 0x41a   :  { %v13819_v19 = vld [vmem:[#allocation7 + $0x1e60] sm:$0xf0] }
 0x41b   :  { %v15132_v58 = vld [vmem:[#allocation7 + $0x1124] sm:$0xf]  ;;  %v13822_v53 = vor.u32 %v15548_v36, %v13819_v19  ;;  %7768 = vmatpush.bf16.msrb.mxu2 %v13310_v24  ;;  %v10433_v24 = vld [vmem:[#allocation7 + $0x3a8] sm:$0xf] }
 0x41c   :  { %v12155_v38 = vld [vmem:[#allocation7 + $0x1160] sm:$0xf0] }
 0x41d   :  { %v15260_v33 = vld [vmem:[#allocation7 + $0x1524] sm:$0xf]  ;;  %v12158_v34 = vor.u32 %v15132_v58, %v12155_v38  ;;  %7782 = vmatpush.bf16.msrb.mxu3 %v13822_v53  ;;  %v7494_v53 = vpop.f32.mrf.mxu2 }
 0x41e   :  { %v12667_v29 = vld [vmem:[#allocation7 + $0x1560] sm:$0xf0] }
 0x41f   :  { %v15404_v4 = vld [vmem:[#allocation7 + $0x19a4] sm:$0xf]  ;;  %v12670_v50 = vor.u32 %v15260_v33, %v12667_v29  ;;  %7742 = vmatpush.bf16.msrb.mxu0 %v12158_v34 }
 0x420   :  { %v13243_v23 = vld [vmem:[#allocation7 + $0x19e0] sm:$0xf0] }
 0x421   :  { %v15532_v16 = vld [vmem:[#allocation7 + $0x1da4] sm:$0xf]  ;;  %v13246_v44 = vor.u32 %v15404_v4, %v13243_v23  ;;  %7756 = vmatpush.bf16.msrb.mxu1 %v12670_v50  ;;  %v14709_v4 = vld [vmem:[#allocation7 + $0x3e4] sm:$0xf0] }
 0x422   :  { %v13755_v12 = vld [vmem:[#allocation7 + $0x1de0] sm:$0xf0]  ;;  %v10945_v23 = vld [vmem:[#allocation7 + $0x7a8] sm:$0xf]  ;;  %v10434_v5 = vor.u32 %v14709_v4, %v10433_v24 }
 0x423   :  { %v15116_v40 = vld [vmem:[#allocation7 + $0x10a4] sm:$0xf]  ;;  %v13758_v15 = vor.u32 %v15532_v16, %v13755_v12  ;;  %7769 = vmatpush.bf16.msrb.mxu2 %v13246_v44  ;;  %v14837_v12 = vld [vmem:[#allocation7 + $0x7e4] sm:$0xf0] }
 0x424   :  { %v12091_v61 = vld [vmem:[#allocation7 + $0x10e0] sm:$0xf0]  ;;  %v10369_v44 = vld [vmem:[#allocation7 + $0x328] sm:$0xf] }
 0x425   :  { %v15244_v49 = vld [vmem:[#allocation7 + $0x14a4] sm:$0xf]  ;;  %v12094_v19 = vor.u32 %v15116_v40, %v12091_v61  ;;  %7783 = vmatpush.bf16.msrb.mxu3 %v13758_v15  ;;  %v7495_v40 = vadd.f32 %v7494_v53, %v7481_v41  ;;  %v11457_v53 = vld [vmem:[#allocation7 + $0xba8] sm:$0xf] }
 0x426   :  { %v12603_v57 = vld [vmem:[#allocation7 + $0x14e0] sm:$0xf0]  ;;  %v15093_v24 = vld [vmem:[#allocation7 + $0xfe4] sm:$0xf0] }
 0x427   :  { %v15388_v1 = vld [vmem:[#allocation7 + $0x1924] sm:$0xf]  ;;  %v12606_v38 = vor.u32 %v15244_v49, %v12603_v57  ;;  %7743 = vmatpush.bf16.msrb.mxu0 %v12094_v19  ;;  %v7508_v49 = vpop.f32.mrf.mxu3  ;;  %v10305_v4 = vld [vmem:[#allocation7 + $0x2a8] sm:$0xf] }
 0x428   :  { %v13179_v36 = vld [vmem:[#allocation7 + $0x1960] sm:$0xf0] }
 0x429   :  { %v15516_v28 = vld [vmem:[#allocation7 + $0x1d24] sm:$0xf]  ;;  %v13182_v29 = vor.u32 %v15388_v1, %v13179_v36  ;;  %7757 = vmatpush.bf16.msrb.mxu1 %v12606_v38  ;;  %v16322_v1 = vadd.f32 %v7508_v49, %v7495_v40  ;;  %v10946_v36 = vor.u32 %v14837_v12, %v10945_v23  ;;  %v14965_v38 = vld [vmem:[#allocation7 + $0xbe4] sm:$0xf0]  ;;  %v16325_v40 = vpop.f32.mrf.mxu0 }
 0x42a   :  { %v13691_v2 = vld [vmem:[#allocation7 + $0x1d60] sm:$0xf0]  ;;  %v14677_v23 = vld [vmem:[#allocation7 + $0x2e4] sm:$0xf0]  ;;  %16786 = vst [vmem:[#allocation62_spill] sm:$0xff] %v16325_v40 }
 0x42b   :  { %v15100_v58 = vld [vmem:[#allocation7 + $0x1024] sm:$0xf]  ;;  %v13694_v16 = vor.u32 %v15516_v28, %v13691_v2  ;;  %7770 = vmatpush.bf16.msrb.mxu2 %v13182_v29  ;;  %v10881_v28 = vld [vmem:[#allocation7 + $0x728] sm:$0xf] }
 0x42c   :  { %v12027_v46 = vld [vmem:[#allocation7 + $0x1060] sm:$0xf0]  ;;  %v14821_v2 = vld [vmem:[#allocation7 + $0x764] sm:$0xf0] }
 0x42d   :  { %v15228_v42 = vld [vmem:[#allocation7 + $0x1424] sm:$0xf]  ;;  %v12030_v61 = vor.u32 %v15100_v58, %v12027_v46  ;;  %7784 = vmatpush.bf16.msrb.mxu3 %v13694_v16  ;;  %v11458_v16 = vor.u32 %v14965_v38, %v11457_v53  ;;  %v10817_v12 = vld [vmem:[#allocation7 + $0x6a8] sm:$0xf] }
 0x42e   :  { %v12539_v33 = vld [vmem:[#allocation7 + $0x1460] sm:$0xf0]  ;;  %v11905_v49 = vld [vmem:[#allocation7 + $0xf28] sm:$0xf] }
 0x42f   :  { %v15372_v45 = vld [vmem:[#allocation7 + $0x18a4] sm:$0xf]  ;;  %v12542_v57 = vor.u32 %v15228_v42, %v12539_v33  ;;  %7744 = vmatpush.bf16.msrb.mxu0 %v12030_v61  ;;  %v10370_v42 = vor.u32 %v14693_v54, %v10369_v44  ;;  %v11969_v33 = vld [vmem:[#allocation7 + $0xfa8] sm:$0xf]  ;;  %v16328_v44 = vpop.f32.mrf.mxu1 }
 0x430   :  { %v13115_v34 = vld [vmem:[#allocation7 + $0x18e0] sm:$0xf0]  ;;  %v11970_v54 = vor.u32 %v15093_v24, %v11969_v33  ;;  %v14949_v61 = vld [vmem:[#allocation7 + $0xb64] sm:$0xf0]  ;;  %16787 = vst [vmem:[#allocation63_spill] sm:$0xff] %v16328_v44 }
 0x431   :  { %v15500_v63 = vld [vmem:[#allocation7 + $0x1ca4] sm:$0xf]  ;;  %v13118_v15 = vor.u32 %v15372_v45, %v13115_v34  ;;  %7758 = vmatpush.bf16.msrb.mxu1 %v12542_v57  ;;  %v10882_v45 = vor.u32 %v14821_v2, %v10881_v28  ;;  %v14805_v34 = vld [vmem:[#allocation7 + $0x6e4] sm:$0xf0] }
 0x432   :  { %v13627_v50 = vld [vmem:[#allocation7 + $0x1ce0] sm:$0xf0]  ;;  %7745 = vmatmul.bf16.vlgmr.msrb.gmra.mxu0 %v16066_v8  ;;  %v15077_v57 = vld [vmem:[#allocation7 + $0xf64] sm:$0xf0] }
 0x433   :  { %v13630_v17 = vor.u32 %v15500_v63, %v13627_v50  ;;  %v15356_v41 = vld [vmem:[#allocation7 + $0x1824] sm:$0xf]  ;;  %7793 = vmatpush.bf16.msra.mxu0 %v10434_v5  ;;  %7771 = vmatpush.bf16.msrb.mxu2 %v13118_v15  ;;  %v11393_v5 = vld [vmem:[#allocation7 + $0xb28] sm:$0xf]  ;;  %v10306_v50 = vor.u32 %v14677_v23, %v10305_v4 }
 0x434   :  { %v13051_v19 = vld [vmem:[#allocation7 + $0x1860] sm:$0xf0]  ;;  %7759 = vmatmul.bf16.vlgmr.msrb.gmra.mxu1 %v16068_v51  ;;  %v14661_v15 = vld [vmem:[#allocation7 + $0x264] sm:$0xf0]  ;;  %v11394_v28 = vor.u32 %v14949_v61, %v11393_v5 }
 0x435   :  { %v15484_v46 = vld [vmem:[#allocation7 + $0x1c24] sm:$0xf]  ;;  %7807 = vmatpush.bf16.msra.mxu1 %v10946_v36  ;;  %v13054_v29 = vor.u32 %v15356_v41, %v13051_v19  ;;  %7785 = vmatpush.bf16.msrb.mxu3 %v13630_v17  ;;  %v10818_v17 = vor.u32 %v14805_v34, %v10817_v12  ;;  %v10241_v36 = vld [vmem:[#allocation7 + $0x228] sm:$0xf]  ;;  %v11906_v19 = vor.u32 %v15077_v57, %v11905_v49 }
 0x436   :  { %v13563_v58 = vld [vmem:[#allocation7 + $0x1c60] sm:$0xf0]  ;;  %v10753_v2 = vld [vmem:[#allocation7 + $0x628] sm:$0xf]  ;;  %v10242_v53 = vor.u32 %v14661_v15, %v10241_v36 }
 0x437   :  { %v13566_v63 = vor.u32 %v15484_v46, %v13563_v58  ;;  %7794 = vmatpush.bf16.msra.mxu0 %v10370_v42  ;;  %7772 = vmatpush.bf16.msrb.mxu2 %v13054_v29  ;;  %v14789_v41 = vld [vmem:[#allocation7 + $0x664] sm:$0xf0]  ;;  %v7536_v49 = vpop.f32.mrf.mxu1 }
 0x438   :  { %v11329_v46 = vld [vmem:[#allocation7 + $0xaa8] sm:$0xf]  ;;  %v10754_v33 = vor.u32 %v14789_v41, %v10753_v2 }
 0x439   :  { %7808 = vmatpush.bf16.msra.mxu1 %v10882_v45  ;;  %7786 = vmatpush.bf16.msrb.mxu3 %v13566_v63  ;;  %v14933_v58 = vld [vmem:[#allocation7 + $0xae4] sm:$0xf0]  ;;  %v7522_v63 = vpop.f32.mrf.mxu0 }
 0x43a   :  { %7773 = vmatmul.bf16.vlgmr.msrb.gmra.mxu2 %v16072_v43  ;;  %v11841_v38 = vld [vmem:[#allocation7 + $0xea8] sm:$0xf]  ;;  %v11330_v29 = vor.u32 %v14933_v58, %v11329_v46 }
 0x43b   :  { %7821 = vmatpush.bf16.msra.mxu2 %v11458_v16  ;;  %7795 = vmatpush.bf16.msra.mxu0 %v10306_v50  ;;  %v15061_v42 = vld [vmem:[#allocation7 + $0xee4] sm:$0xf0] }
 0x43c   :  { %7787 = vmatmul.bf16.vlgmr.msrb.gmra.mxu3 %v16074_v48  ;;  %v10177_v24 = vld [vmem:[#allocation7 + $0x1a8] sm:$0xf]  ;;  %v11842_v16 = vor.u32 %v15061_v42, %v11841_v38 }
 0x43d   :  { %7835 = vmatpush.bf16.msra.mxu3 %v11970_v54  ;;  %7809 = vmatpush.bf16.msra.mxu1 %v10818_v17  ;;  %v14645_v45 = vld [vmem:[#allocation7 + $0x1e4] sm:$0xf0]  ;;  %v7523_v54 = vadd.f32 %v7522_v63, %v16322_v1 }
 0x43e   :  { %v10689_v4 = vld [vmem:[#allocation7 + $0x5a8] sm:$0xf]  ;;  %v10178_v5 = vor.u32 %v14645_v45, %v10177_v24  ;;  %v16335_v24 = vpop.f32.mrf.mxu3 }
 0x43f   :  { %7822 = vmatpush.bf16.msra.mxu2 %v11394_v28  ;;  %v14773_v23 = vld [vmem:[#allocation7 + $0x5e4] sm:$0xf0]  ;;  %7796 = vmatpush.bf16.msra.mxu0 %v10242_v53  ;;  %v7537_v15 = vadd.f32 %v7536_v49, %v7523_v54  ;;  %16789 = vst [vmem:[#allocation65_spill] sm:$0xff] %v16335_v24 }
 0x440   :  { %v11265_v12 = vld [vmem:[#allocation7 + $0xa28] sm:$0xf]  ;;  %v10690_v57 = vor.u32 %v14773_v23, %v10689_v4 }
 0x441   :  { %7836 = vmatpush.bf16.msra.mxu3 %v11906_v19  ;;  %v14917_v34 = vld [vmem:[#allocation7 + $0xa64] sm:$0xf0]  ;;  %7810 = vmatpush.bf16.msra.mxu1 %v10754_v33  ;;  %v16333_v19 = vpop.f32.mrf.mxu2 }
 0x442   :  { %v11777_v61 = vld [vmem:[#allocation7 + $0xe28] sm:$0xf]  ;;  %v11266_v28 = vor.u32 %v14917_v34, %v11265_v12  ;;  %16788 = vst [vmem:[#allocation64_spill] sm:$0xff] %v16333_v19 }
 0x443   :  { %v15045_v50 = vld [vmem:[#allocation7 + $0xe64] sm:$0xf0]  ;;  %7823 = vmatpush.bf16.msra.mxu2 %v11330_v29  ;;  %7797 = vmatpush.bf16.msra.mxu0 %v10178_v5 }
 0x444   :  { %v10113_v17 = vld [vmem:[#allocation7 + $0x128] sm:$0xf]  ;;  %v11778_v46 = vor.u32 %v15045_v50, %v11777_v61 }
 0x445   :  { %v14629_v36 = vld [vmem:[#allocation7 + $0x164] sm:$0xf0]  ;;  %7837 = vmatpush.bf16.msra.mxu3 %v11842_v16  ;;  %7811 = vmatpush.bf16.msra.mxu1 %v10690_v57 }
 0x446   :  { %v10625_v2 = vld [vmem:[#allocation7 + $0x528] sm:$0xf]  ;;  %v10114_v53 = vor.u32 %v14629_v36, %v10113_v17 }
 0x447   :  { %v14757_v41 = vld [vmem:[#allocation7 + $0x564] sm:$0xf0]  ;;  %7824 = vmatpush.bf16.msra.mxu2 %v11266_v28 }
 0x448   :  { %v11201_v58 = vld [vmem:[#allocation7 + $0x9a8] sm:$0xf]  ;;  %v10626_v33 = vor.u32 %v14757_v41, %v10625_v2  ;;  %7798 = vmatpush.bf16.msra.mxu0 %v10114_v53 }
 0x449   :  { %v14901_v1 = vld [vmem:[#allocation7 + $0x9e4] sm:$0xf0]  ;;  %7838 = vmatpush.bf16.msra.mxu3 %v11778_v46  ;;  %v7550_v46 = vpop.f32.mrf.mxu2 }
 0x44a   :  { %v11713_v38 = vld [vmem:[#allocation7 + $0xda8] sm:$0xf]  ;;  %v11202_v29 = vor.u32 %v14901_v1, %v11201_v58  ;;  %7812 = vmatpush.bf16.msra.mxu1 %v10626_v33 }
 0x44b   :  { %v15029_v42 = vld [vmem:[#allocation7 + $0xde4] sm:$0xf0] }
 0x44c   :  { %v10049_v45 = vld [vmem:[#allocation7 + $0xa8] sm:$0xf]  ;;  %v11714_v12 = vor.u32 %v15029_v42, %v11713_v38  ;;  %7825 = vmatpush.bf16.msra.mxu2 %v11202_v29 }
 0x44d   :  { %v14613_v4 = vld [vmem:[#allocation7 + $0xe4] sm:$0xf0] }
 0x44e   :  { %v10561_v23 = vld [vmem:[#allocation7 + $0x4a8] sm:$0xf]  ;;  %v10050_v54 = vor.u32 %v14613_v4, %v10049_v45  ;;  %7839 = vmatpush.bf16.msra.mxu3 %v11714_v12  ;;  %v7551_v45 = vadd.f32 %v7550_v46, %v7537_v15 }
 0x44f   :  { %v14741_v63 = vld [vmem:[#allocation7 + $0x4e4] sm:$0xf0] }
 0x450   :  { %v11137_v16 = vld [vmem:[#allocation7 + $0x928] sm:$0xf]  ;;  %v10562_v49 = vor.u32 %v14741_v63, %v10561_v23  ;;  %7799 = vmatpush.bf16.msra.mxu0 %v10050_v54  ;;  %v7564_v23 = vpop.f32.mrf.mxu3 }
 0x451   :  { %v14885_v34 = vld [vmem:[#allocation7 + $0x964] sm:$0xf0] }
 0x452   :  { %v11649_v5 = vld [vmem:[#allocation7 + $0xd28] sm:$0xf]  ;;  %v11138_v2 = vor.u32 %v14885_v34, %v11137_v16  ;;  %7813 = vmatpush.bf16.msra.mxu1 %v10562_v49  ;;  %v16337_v16 = vadd.f32 %v7564_v23, %v7551_v45  ;;  %v16340_v45 = vpop.f32.mrf.mxu0 }
 0x453   :  { %v15013_v61 = vld [vmem:[#allocation7 + $0xd64] sm:$0xf0]  ;;  %16791 = vst [vmem:[#allocation67_spill] sm:$0xff] %v16340_v45  ;;  %v10371_v45 = vld [vmem:[#allocation7 + $0x368] sm:$0xf0] }
 0x454   :  { %v9985_v50 = vld [vmem:[#allocation7 + $0x28] sm:$0xf]  ;;  %v11650_v1 = vor.u32 %v15013_v61, %v11649_v5  ;;  %16790 = vst [vmem:[#allocation66_spill] sm:$0xff] %v16337_v16  ;;  %7826 = vmatpush.bf16.msra.mxu2 %v11138_v2 }
 0x455   :  { %v14597_v17 = vld [vmem:[#allocation7 + $0x64] sm:$0xf0] }
 0x456   :  { %v10497_v57 = vld [vmem:[#allocation7 + $0x428] sm:$0xf]  ;;  %v9986_v4 = vor.u32 %v14597_v17, %v9985_v50  ;;  %7840 = vmatpush.bf16.msra.mxu3 %v11650_v1 }
 0x457   :  { %v14725_v36 = vld [vmem:[#allocation7 + $0x464] sm:$0xf0] }
 0x458   :  { %v12481_v28 = vld [vmem:[#allocation7 + $0x13a8] sm:$0xf]  ;;  %v10498_v63 = vor.u32 %v14725_v36, %v10497_v57  ;;  %7800 = vmatpush.bf16.msra.mxu0 %v9986_v4 }
 0x459   :  { %v15221_v41 = vld [vmem:[#allocation7 + $0x13e4] sm:$0xf0] }
 0x45a   :  { %v12993_v58 = vld [vmem:[#allocation7 + $0x17a8] sm:$0xf]  ;;  %v12482_v19 = vor.u32 %v15221_v41, %v12481_v28  ;;  %7814 = vmatpush.bf16.msra.mxu1 %v10498_v63 }
 0x45b   :  { %v15349_v38 = vld [vmem:[#allocation7 + $0x17e4] sm:$0xf0]  ;;  %7801 = vmatmul.bf16.vlgmr.msra.gmra.mxu0 %v16050_v59 }
 0x45c   :  { %v11073_v42 = vld [vmem:[#allocation7 + $0x8a8] sm:$0xf]  ;;  %v12994_v34 = vor.u32 %v15349_v38, %v12993_v58  ;;  %7849 = vmatpush.bf16.msrb.mxu0 %v12482_v19 }
 0x45d   :  { %v14869_v53 = vld [vmem:[#allocation7 + $0x8e4] sm:$0xf0]  ;;  %7815 = vmatmul.bf16.vlgmr.msra.gmra.mxu1 %v16052_v0 }
 0x45e   :  { %v11585_v24 = vld [vmem:[#allocation7 + $0xca8] sm:$0xf]  ;;  %v11074_v12 = vor.u32 %v14869_v53, %v11073_v42  ;;  %7863 = vmatpush.bf16.msrb.mxu1 %v12994_v34 }
 0x45f   :  { %v14997_v33 = vld [vmem:[#allocation7 + $0xce4] sm:$0xf0] }
 0x460   :  { %v12417_v29 = vld [vmem:[#allocation7 + $0x1328] sm:$0xf]  ;;  %v11586_v40 = vor.u32 %v14997_v33, %v11585_v24  ;;  %7827 = vmatpush.bf16.msra.mxu2 %v11074_v12 }
 0x461   :  { %v15205_v44 = vld [vmem:[#allocation7 + $0x1364] sm:$0xf0] }
 0x462   :  { %v12929_v5 = vld [vmem:[#allocation7 + $0x1728] sm:$0xf]  ;;  %v12418_v57 = vor.u32 %v15205_v44, %v12417_v29  ;;  %7841 = vmatpush.bf16.msra.mxu3 %v11586_v40  ;;  %v16343_v29 = vpop.f32.mrf.mxu1 }
 0x463   :  { %v15333_v61 = vld [vmem:[#allocation7 + $0x1764] sm:$0xf0]  ;;  %16792 = vst [vmem:[#allocation68_spill] sm:$0xff] %v16343_v29 }
 0x464   :  { %v11009_v15 = vld [vmem:[#allocation7 + $0x828] sm:$0xf]  ;;  %v12930_v2 = vor.u32 %v15333_v61, %v12929_v5  ;;  %7850 = vmatpush.bf16.msrb.mxu0 %v12418_v57 }
 0x465   :  { %v14853_v54 = vld [vmem:[#allocation7 + $0x864] sm:$0xf0] }
 0x466   :  { %v11521_v50 = vld [vmem:[#allocation7 + $0xc28] sm:$0xf]  ;;  %v11010_v41 = vor.u32 %v14853_v54, %v11009_v15  ;;  %7864 = vmatpush.bf16.msrb.mxu1 %v12930_v2 }
 0x467   :  { %v14981_v17 = vld [vmem:[#allocation7 + $0xc64] sm:$0xf0] }
 0x468   :  { %v13505_v46 = vld [vmem:[#allocation7 + $0x1ba8] sm:$0xf]  ;;  %v11522_v24 = vor.u32 %v14981_v17, %v11521_v50  ;;  %7828 = vmatpush.bf16.msra.mxu2 %v11010_v41 }
 0x469   :  { %v15477_v49 = vld [vmem:[#allocation7 + $0x1be4] sm:$0xf0] }
 0x46a   :  { %v14017_v36 = vld [vmem:[#allocation7 + $0x1fa8] sm:$0xf]  ;;  %v13506_v1 = vor.u32 %v15477_v49, %v13505_v46  ;;  %7842 = vmatpush.bf16.msra.mxu3 %v11522_v24 }
 0x46b   :  { %v15605_v28 = vld [vmem:[#allocation7 + $0x1fe4] sm:$0xf0]  ;;  %7829 = vmatmul.bf16.vlgmr.msra.gmra.mxu2 %v16058_v26 }
 0x46c   :  { %v12353_v58 = vld [vmem:[#allocation7 + $0x12a8] sm:$0xf]  ;;  %v14018_v44 = vor.u32 %v15605_v28, %v14017_v36  ;;  %7877 = vmatpush.bf16.msrb.mxu2 %v13506_v1 }
 0x46d   :  { %v15189_v38 = vld [vmem:[#allocation7 + $0x12e4] sm:$0xf0]  ;;  %7843 = vmatmul.bf16.vlgmr.msra.gmra.mxu3 %v16060_v32 }
 0x46e   :  { %v12865_v42 = vld [vmem:[#allocation7 + $0x16a8] sm:$0xf]  ;;  %v12354_v33 = vor.u32 %v15189_v38, %v12353_v58  ;;  %7891 = vmatpush.bf16.msrb.mxu3 %v14018_v44 }
 0x46f   :  { %v15317_v53 = vld [vmem:[#allocation7 + $0x16e4] sm:$0xf0] }
 0x470   :  { %v13441_v19 = vld [vmem:[#allocation7 + $0x1b28] sm:$0xf]  ;;  %v12866_v40 = vor.u32 %v15317_v53, %v12865_v42  ;;  %7851 = vmatpush.bf16.msrb.mxu0 %v12354_v33  ;;  %v7578_v42 = vpop.f32.mrf.mxu0 }
 0x471   :  { %v15461_v4 = vld [vmem:[#allocation7 + $0x1b64] sm:$0xf0] }
 0x472   :  { %v13953_v23 = vld [vmem:[#allocation7 + $0x1f28] sm:$0xf]  ;;  %v13442_v61 = vor.u32 %v15461_v4, %v13441_v19  ;;  %7865 = vmatpush.bf16.msrb.mxu1 %v12866_v40  ;;  %v7592_v40 = vpop.f32.mrf.mxu1 }
 0x473   :  { %v15589_v63 = vld [vmem:[#allocation7 + $0x1f64] sm:$0xf0] }
 0x474   :  { %v16345_v34 = vld [vmem:[#allocation8 + $0x8] sm:$0xff]  ;;  %v13954_v50 = vor.u32 %v15589_v63, %v13953_v23  ;;  %7878 = vmatpush.bf16.msrb.mxu2 %v13442_v61 }
 0x475   :  { %16793 = vst [vmem:[#allocation69_spill] sm:$0xff] %v16345_v34  ;;  %v12289_v12 = vld [vmem:[#allocation7 + $0x1228] sm:$0xf]  ;;  %v16732_v49 = vperm.slane %v16345_v34, 0 }
 0x476   :  { %v15173_v5 = vld [vmem:[#allocation7 + $0x1264] sm:$0xf0]  ;;  %7892 = vmatpush.bf16.msrb.mxu3 %v13954_v50 }
 0x477   :  { %v12801_v15 = vld [vmem:[#allocation7 + $0x1628] sm:$0xf]  ;;  %v12290_v57 = vor.u32 %v15173_v5, %v12289_v12  ;;  %v7579_v4 = vadd.f32 %v7578_v42, %v16732_v49  ;;  %v16354_v49 = vpop.f32.mrf.mxu3 }
 0x478   :  { %v15301_v54 = vld [vmem:[#allocation7 + $0x1664] sm:$0xf0]  ;;  %16795 = vst [vmem:[#allocation71_spill] sm:$0xff] %v16354_v49 }
 0x479   :  { %v13377_v17 = vld [vmem:[#allocation7 + $0x1aa8] sm:$0xf]  ;;  %v12802_v2 = vor.u32 %v15301_v54, %v12801_v15  ;;  %7852 = vmatpush.bf16.msrb.mxu0 %v12290_v57  ;;  %v7593_v15 = vadd.f32 %v7592_v40, %v7579_v4 }
 0x47a   :  { %v15445_v46 = vld [vmem:[#allocation7 + $0x1ae4] sm:$0xf0] }
 0x47b   :  { %v13889_v36 = vld [vmem:[#allocation7 + $0x1ea8] sm:$0xf]  ;;  %v13378_v38 = vor.u32 %v15445_v46, %v13377_v17  ;;  %7866 = vmatpush.bf16.msrb.mxu1 %v12802_v2  ;;  %v16352_v46 = vpop.f32.mrf.mxu2 }
 0x47c   :  { %v15573_v28 = vld [vmem:[#allocation7 + $0x1ee4] sm:$0xf0]  ;;  %16794 = vst [vmem:[#allocation70_spill] sm:$0xff] %v16352_v46 }
 0x47d   :  { %v12225_v41 = vld [vmem:[#allocation7 + $0x11a8] sm:$0xf]  ;;  %v13890_v53 = vor.u32 %v15573_v28, %v13889_v36  ;;  %7879 = vmatpush.bf16.msrb.mxu2 %v13378_v38 }
 0x47e   :  { %v15157_v58 = vld [vmem:[#allocation7 + $0x11e4] sm:$0xf0] }
 0x47f   :  { %v12737_v24 = vld [vmem:[#allocation7 + $0x15a8] sm:$0xf]  ;;  %v12226_v33 = vor.u32 %v15157_v58, %v12225_v41  ;;  %7893 = vmatpush.bf16.msrb.mxu3 %v13890_v53 }
 0x480   :  { %v15285_v1 = vld [vmem:[#allocation7 + $0x15e4] sm:$0xf0] }
 0x481   :  { %v13313_v44 = vld [vmem:[#allocation7 + $0x1a28] sm:$0xf]  ;;  %v12738_v12 = vor.u32 %v15285_v1, %v12737_v24  ;;  %7853 = vmatpush.bf16.msrb.mxu0 %v12226_v33 }
 0x482   :  { %v15429_v19 = vld [vmem:[#allocation7 + $0x1a64] sm:$0xf0] }
 0x483   :  { %v13825_v23 = vld [vmem:[#allocation7 + $0x1e28] sm:$0xf]  ;;  %v13314_v54 = vor.u32 %v15429_v19, %v13313_v44  ;;  %7867 = vmatpush.bf16.msrb.mxu1 %v12738_v12 }
 0x484   :  { %v15557_v63 = vld [vmem:[#allocation7 + $0x1e64] sm:$0xf0] }
 0x485   :  { %v12161_v5 = vld [vmem:[#allocation7 + $0x1128] sm:$0xf]  ;;  %v13826_v36 = vor.u32 %v15557_v63, %v13825_v23  ;;  %7880 = vmatpush.bf16.msrb.mxu2 %v13314_v54  ;;  %v14701_v54 = vld [vmem:[#allocation7 + $0x3ac] sm:$0xf] }
 0x486   :  { %v15141_v61 = vld [vmem:[#allocation7 + $0x1164] sm:$0xf0] }
 0x487   :  { %v12673_v50 = vld [vmem:[#allocation7 + $0x1528] sm:$0xf]  ;;  %v12162_v57 = vor.u32 %v15141_v61, %v12161_v5  ;;  %7894 = vmatpush.bf16.msrb.mxu3 %v13826_v36  ;;  %v7606_v36 = vpop.f32.mrf.mxu2 }
 0x488   :  { %v15269_v17 = vld [vmem:[#allocation7 + $0x1564] sm:$0xf0] }
 0x489   :  { %v13249_v28 = vld [vmem:[#allocation7 + $0x19a8] sm:$0xf]  ;;  %v12674_v2 = vor.u32 %v15269_v17, %v12673_v50  ;;  %7854 = vmatpush.bf16.msrb.mxu0 %v12162_v57 }
 0x48a   :  { %v15413_v42 = vld [vmem:[#allocation7 + $0x19e4] sm:$0xf0] }
 0x48b   :  { %v13761_v41 = vld [vmem:[#allocation7 + $0x1da8] sm:$0xf]  ;;  %v13250_v38 = vor.u32 %v15413_v42, %v13249_v28  ;;  %7868 = vmatpush.bf16.msrb.mxu1 %v12674_v2  ;;  %v10435_v28 = vld [vmem:[#allocation7 + $0x3e8] sm:$0xf0] }
 0x48c   :  { %v15541_v58 = vld [vmem:[#allocation7 + $0x1de4] sm:$0xf0]  ;;  %v14829_v42 = vld [vmem:[#allocation7 + $0x7ac] sm:$0xf]  ;;  %v10438_v29 = vor.u32 %v14701_v54, %v10435_v28 }
 0x48d   :  { %v12097_v24 = vld [vmem:[#allocation7 + $0x10a8] sm:$0xf]  ;;  %v13762_v4 = vor.u32 %v15541_v58, %v13761_v41  ;;  %7881 = vmatpush.bf16.msrb.mxu2 %v13250_v38  ;;  %v10947_v58 = vld [vmem:[#allocation7 + $0x7e8] sm:$0xf0] }
 0x48e   :  { %v15125_v1 = vld [vmem:[#allocation7 + $0x10e4] sm:$0xf0]  ;;  %v14685_v38 = vld [vmem:[#allocation7 + $0x32c] sm:$0xf] }
 0x48f   :  { %v12609_v44 = vld [vmem:[#allocation7 + $0x14a8] sm:$0xf]  ;;  %v12098_v63 = vor.u32 %v15125_v1, %v12097_v24  ;;  %7895 = vmatpush.bf16.msrb.mxu3 %v13762_v4  ;;  %v7607_v24 = vadd.f32 %v7606_v36, %v7593_v15  ;;  %v14957_v36 = vld [vmem:[#allocation7 + $0xbac] sm:$0xf] }
 0x490   :  { %v15253_v19 = vld [vmem:[#allocation7 + $0x14e4] sm:$0xf0]  ;;  %v11971_v54 = vld [vmem:[#allocation7 + $0xfe8] sm:$0xf0] }
 0x491   :  { %v13185_v53 = vld [vmem:[#allocation7 + $0x1928] sm:$0xf]  ;;  %v12610_v61 = vor.u32 %v15253_v19, %v12609_v44  ;;  %7855 = vmatpush.bf16.msrb.mxu0 %v12098_v63  ;;  %v7620_v44 = vpop.f32.mrf.mxu3  ;;  %v14669_v28 = vld [vmem:[#allocation7 + $0x2ac] sm:$0xf] }
 0x492   :  { %v15397_v23 = vld [vmem:[#allocation7 + $0x1964] sm:$0xf0] }
 0x493   :  { %v13697_v33 = vld [vmem:[#allocation7 + $0x1d28] sm:$0xf]  ;;  %v13186_v17 = vor.u32 %v15397_v23, %v13185_v53  ;;  %7869 = vmatpush.bf16.msrb.mxu1 %v12610_v61  ;;  %v16356_v53 = vadd.f32 %v7620_v44, %v7607_v24  ;;  %v10950_v23 = vor.u32 %v14829_v42, %v10947_v58  ;;  %v11459_v61 = vld [vmem:[#allocation7 + $0xbe8] sm:$0xf0]  ;;  %v16359_v24 = vpop.f32.mrf.mxu0 }
 0x494   :  { %v15525_v40 = vld [vmem:[#allocation7 + $0x1d64] sm:$0xf0]  ;;  %v10307_v42 = vld [vmem:[#allocation7 + $0x2e8] sm:$0xf0]  ;;  %16796 = vst [vmem:[#allocation72_spill] sm:$0xff] %v16359_v24 }
 0x495   :  { %v12033_v5 = vld [vmem:[#allocation7 + $0x1028] sm:$0xf]  ;;  %v13698_v41 = vor.u32 %v15525_v40, %v13697_v33  ;;  %7882 = vmatpush.bf16.msrb.mxu2 %v13186_v17  ;;  %v14813_v33 = vld [vmem:[#allocation7 + $0x72c] sm:$0xf] }
 0x496   :  { %v15109_v16 = vld [vmem:[#allocation7 + $0x1064] sm:$0xf0]  ;;  %v10883_v40 = vld [vmem:[#allocation7 + $0x768] sm:$0xf0] }
 0x497   :  { %v12545_v12 = vld [vmem:[#allocation7 + $0x1428] sm:$0xf]  ;;  %v12034_v1 = vor.u32 %v15109_v16, %v12033_v5  ;;  %7896 = vmatpush.bf16.msrb.mxu3 %v13698_v41  ;;  %v11462_v41 = vor.u32 %v14957_v36, %v11459_v61  ;;  %v14797_v58 = vld [vmem:[#allocation7 + $0x6ac] sm:$0xf] }
 0x498   :  { %v15237_v50 = vld [vmem:[#allocation7 + $0x1464] sm:$0xf0]  ;;  %v15069_v44 = vld [vmem:[#allocation7 + $0xf2c] sm:$0xf] }
 0x499   :  { %v13121_v49 = vld [vmem:[#allocation7 + $0x18a8] sm:$0xf]  ;;  %v12546_v19 = vor.u32 %v15237_v50, %v12545_v12  ;;  %7856 = vmatpush.bf16.msrb.mxu0 %v12034_v1  ;;  %v10374_v12 = vor.u32 %v14685_v38, %v10371_v45  ;;  %v15085_v50 = vld [vmem:[#allocation7 + $0xfac] sm:$0xf]  ;;  %v16362_v38 = vpop.f32.mrf.mxu1 }
 0x49a   :  { %v15381_v57 = vld [vmem:[#allocation7 + $0x18e4] sm:$0xf0]  ;;  %v11974_v45 = vor.u32 %v15085_v50, %v11971_v54  ;;  %v11395_v1 = vld [vmem:[#allocation7 + $0xb68] sm:$0xf0]  ;;  %16797 = vst [vmem:[#allocation73_spill] sm:$0xff] %v16362_v38 }
 0x49b   :  { %v13633_v46 = vld [vmem:[#allocation7 + $0x1ca8] sm:$0xf]  ;;  %v13122_v4 = vor.u32 %v15381_v57, %v13121_v49  ;;  %7870 = vmatpush.bf16.msrb.mxu1 %v12546_v19  ;;  %v10886_v49 = vor.u32 %v14813_v33, %v10883_v40  ;;  %v10819_v57 = vld [vmem:[#allocation7 + $0x6e8] sm:$0xf0] }
 0x49c   :  { %v15509_v2 = vld [vmem:[#allocation7 + $0x1ce4] sm:$0xf0]  ;;  %7857 = vmatmul.bf16.vlgmr.msrb.gmra.mxu0 %v16066_v8  ;;  %v11907_v19 = vld [vmem:[#allocation7 + $0xf68] sm:$0xf0] }
 0x49d   :  { %v13634_v13 = vor.u32 %v15509_v2, %v13633_v46  ;;  %v13057_v15 = vld [vmem:[#allocation7 + $0x1828] sm:$0xf]  ;;  %7905 = vmatpush.bf16.msra.mxu0 %v10438_v29  ;;  %7883 = vmatpush.bf16.msrb.mxu2 %v13122_v4  ;;  %v14941_v29 = vld [vmem:[#allocation7 + $0xb2c] sm:$0xf]  ;;  %v10310_v2 = vor.u32 %v14669_v28, %v10307_v42 }
 0x49e   :  { %v15365_v63 = vld [vmem:[#allocation7 + $0x1864] sm:$0xf0]  ;;  %7871 = vmatmul.bf16.vlgmr.msrb.gmra.mxu1 %v16068_v51  ;;  %v10243_v4 = vld [vmem:[#allocation7 + $0x268] sm:$0xf0]  ;;  %v11398_v33 = vor.u32 %v14941_v29, %v11395_v1 }
 0x49f   :  { %v13569_v16 = vld [vmem:[#allocation7 + $0x1c28] sm:$0xf]  ;;  %7919 = vmatpush.bf16.msra.mxu1 %v10950_v23  ;;  %v13058_v17 = vor.u32 %v15365_v63, %v13057_v15  ;;  %7897 = vmatpush.bf16.msrb.mxu3 %v13634_v13  ;;  %v10822_v13 = vor.u32 %v14797_v58, %v10819_v57  ;;  %v14653_v23 = vld [vmem:[#allocation7 + $0x22c] sm:$0xf]  ;;  %v11910_v63 = vor.u32 %v15069_v44, %v11907_v19 }
 0x4a0   :  { %v15493_v5 = vld [vmem:[#allocation7 + $0x1c64] sm:$0xf0]  ;;  %v14781_v40 = vld [vmem:[#allocation7 + $0x62c] sm:$0xf]  ;;  %v10246_v36 = vor.u32 %v14653_v23, %v10243_v4 }
 0x4a1   :  { %v13570_v46 = vor.u32 %v15493_v5, %v13569_v16  ;;  %7906 = vmatpush.bf16.msra.mxu0 %v10374_v12  ;;  %7884 = vmatpush.bf16.msrb.mxu2 %v13058_v17  ;;  %v10755_v15 = vld [vmem:[#allocation7 + $0x668] sm:$0xf0]  ;;  %v7648_v44 = vpop.f32.mrf.mxu1 }
 0x4a2   :  { %v14925_v16 = vld [vmem:[#allocation7 + $0xaac] sm:$0xf]  ;;  %v10758_v50 = vor.u32 %v14781_v40, %v10755_v15 }
 0x4a3   :  { %7920 = vmatpush.bf16.msra.mxu1 %v10886_v49  ;;  %7898 = vmatpush.bf16.msrb.mxu3 %v13570_v46  ;;  %v11331_v5 = vld [vmem:[#allocation7 + $0xae8] sm:$0xf0]  ;;  %v7634_v46 = vpop.f32.mrf.mxu0 }
 0x4a4   :  { %7885 = vmatmul.bf16.vlgmr.msrb.gmra.mxu2 %v16072_v43  ;;  %v15053_v61 = vld [vmem:[#allocation7 + $0xeac] sm:$0xf]  ;;  %v11334_v17 = vor.u32 %v14925_v16, %v11331_v5 }
 0x4a5   :  { %7933 = vmatpush.bf16.msra.mxu2 %v11462_v41  ;;  %7907 = vmatpush.bf16.msra.mxu0 %v10310_v2  ;;  %v11843_v12 = vld [vmem:[#allocation7 + $0xee8] sm:$0xf0] }
 0x4a6   :  { %7899 = vmatmul.bf16.vlgmr.msrb.gmra.mxu3 %v16074_v48  ;;  %v14637_v54 = vld [vmem:[#allocation7 + $0x1ac] sm:$0xf]  ;;  %v11846_v41 = vor.u32 %v15053_v61, %v11843_v12 }
 0x4a7   :  { %7947 = vmatpush.bf16.msra.mxu3 %v11974_v45  ;;  %7921 = vmatpush.bf16.msra.mxu1 %v10822_v13  ;;  %v10179_v49 = vld [vmem:[#allocation7 + $0x1e8] sm:$0xf0]  ;;  %v7635_v45 = vadd.f32 %v7634_v46, %v16356_v53 }
 0x4a8   :  { %v14765_v28 = vld [vmem:[#allocation7 + $0x5ac] sm:$0xf]  ;;  %v10182_v29 = vor.u32 %v14637_v54, %v10179_v49  ;;  %v16369_v54 = vpop.f32.mrf.mxu3 }
 0x4a9   :  { %7934 = vmatpush.bf16.msra.mxu2 %v11398_v33  ;;  %v10691_v42 = vld [vmem:[#allocation7 + $0x5e8] sm:$0xf0]  ;;  %7908 = vmatpush.bf16.msra.mxu0 %v10246_v36  ;;  %v7649_v4 = vadd.f32 %v7648_v44, %v7635_v45  ;;  %16799 = vst [vmem:[#allocation75_spill] sm:$0xff] %v16369_v54 }
 0x4aa   :  { %v14909_v58 = vld [vmem:[#allocation7 + $0xa2c] sm:$0xf]  ;;  %v10694_v19 = vor.u32 %v14765_v28, %v10691_v42 }
 0x4ab   :  { %7948 = vmatpush.bf16.msra.mxu3 %v11910_v63  ;;  %v11267_v57 = vld [vmem:[#allocation7 + $0xa68] sm:$0xf0]  ;;  %7922 = vmatpush.bf16.msra.mxu1 %v10758_v50  ;;  %v16367_v63 = vpop.f32.mrf.mxu2 }
 0x4ac   :  { %v15037_v1 = vld [vmem:[#allocation7 + $0xe2c] sm:$0xf]  ;;  %v11270_v33 = vor.u32 %v14909_v58, %v11267_v57  ;;  %16798 = vst [vmem:[#allocation74_spill] sm:$0xff] %v16367_v63 }
 0x4ad   :  { %v11779_v2 = vld [vmem:[#allocation7 + $0xe68] sm:$0xf0]  ;;  %7935 = vmatpush.bf16.msra.mxu2 %v11334_v17  ;;  %7909 = vmatpush.bf16.msra.mxu0 %v10182_v29 }
 0x4ae   :  { %v14621_v13 = vld [vmem:[#allocation7 + $0x12c] sm:$0xf]  ;;  %v11782_v16 = vor.u32 %v15037_v1, %v11779_v2 }
 0x4af   :  { %v10115_v23 = vld [vmem:[#allocation7 + $0x168] sm:$0xf0]  ;;  %7949 = vmatpush.bf16.msra.mxu3 %v11846_v41  ;;  %7923 = vmatpush.bf16.msra.mxu1 %v10694_v19 }
 0x4b0   :  { %v14749_v40 = vld [vmem:[#allocation7 + $0x52c] sm:$0xf]  ;;  %v10118_v36 = vor.u32 %v14621_v13, %v10115_v23 }
 0x4b1   :  { %v10627_v15 = vld [vmem:[#allocation7 + $0x568] sm:$0xf0]  ;;  %7936 = vmatpush.bf16.msra.mxu2 %v11270_v33 }
 0x4b2   :  { %v14893_v5 = vld [vmem:[#allocation7 + $0x9ac] sm:$0xf]  ;;  %v10630_v50 = vor.u32 %v14749_v40, %v10627_v15  ;;  %7910 = vmatpush.bf16.msra.mxu0 %v10118_v36 }
 0x4b3   :  { %v11203_v53 = vld [vmem:[#allocation7 + $0x9e8] sm:$0xf0]  ;;  %7950 = vmatpush.bf16.msra.mxu3 %v11782_v16  ;;  %v7662_v16 = vpop.f32.mrf.mxu2 }
 0x4b4   :  { %v15021_v61 = vld [vmem:[#allocation7 + $0xdac] sm:$0xf]  ;;  %v11206_v17 = vor.u32 %v14893_v5, %v11203_v53  ;;  %7924 = vmatpush.bf16.msra.mxu1 %v10630_v50 }
 0x4b5   :  { %v11715_v12 = vld [vmem:[#allocation7 + $0xde8] sm:$0xf0] }
 0x4b6   :  { %v14605_v49 = vld [vmem:[#allocation7 + $0xac] sm:$0xf]  ;;  %v11718_v58 = vor.u32 %v15021_v61, %v11715_v12  ;;  %7937 = vmatpush.bf16.msra.mxu2 %v11206_v17 }
 0x4b7   :  { %v10051_v28 = vld [vmem:[#allocation7 + $0xe8] sm:$0xf0] }
 0x4b8   :  { %v14733_v42 = vld [vmem:[#allocation7 + $0x4ac] sm:$0xf]  ;;  %v10054_v45 = vor.u32 %v14605_v49, %v10051_v28  ;;  %7951 = vmatpush.bf16.msra.mxu3 %v11718_v58  ;;  %v7663_v49 = vadd.f32 %v7662_v16, %v7649_v4 }
 0x4b9   :  { %v10563_v46 = vld [vmem:[#allocation7 + $0x4e8] sm:$0xf0] }
 0x4ba   :  { %v14877_v41 = vld [vmem:[#allocation7 + $0x92c] sm:$0xf]  ;;  %v10566_v44 = vor.u32 %v14733_v42, %v10563_v46  ;;  %7911 = vmatpush.bf16.msra.mxu0 %v10054_v45  ;;  %v7676_v42 = vpop.f32.mrf.mxu3 }
 0x4bb   :  { %v11139_v57 = vld [vmem:[#allocation7 + $0x968] sm:$0xf0] }
 0x4bc   :  { %v15005_v29 = vld [vmem:[#allocation7 + $0xd2c] sm:$0xf]  ;;  %v11142_v40 = vor.u32 %v14877_v41, %v11139_v57  ;;  %7925 = vmatpush.bf16.msra.mxu1 %v10566_v44  ;;  %v16371_v41 = vadd.f32 %v7676_v42, %v7663_v49  ;;  %v16374_v49 = vpop.f32.mrf.mxu0 }
 0x4bd   :  { %v11651_v1 = vld [vmem:[#allocation7 + $0xd68] sm:$0xf0]  ;;  %16801 = vst [vmem:[#allocation77_spill] sm:$0xff] %v16374_v49 }
 0x4be   :  { %v14589_v2 = vld [vmem:[#allocation7 + $0x2c] sm:$0xf]  ;;  %v11654_v53 = vor.u32 %v15005_v29, %v11651_v1  ;;  %16800 = vst [vmem:[#allocation76_spill] sm:$0xff] %v16371_v41  ;;  %7938 = vmatpush.bf16.msra.mxu2 %v11142_v40 }
 0x4bf   :  { %v9987_v13 = vld [vmem:[#allocation7 + $0x68] sm:$0xf0] }
 0x4c0   :  { %v14717_v19 = vld [vmem:[#allocation7 + $0x42c] sm:$0xf]  ;;  %v9990_v28 = vor.u32 %v14589_v2, %v9987_v13  ;;  %7952 = vmatpush.bf16.msra.mxu3 %v11654_v53 }
 0x4c1   :  { %v10499_v23 = vld [vmem:[#allocation7 + $0x468] sm:$0xf0] }
 0x4c2   :  { %v15213_v33 = vld [vmem:[#allocation7 + $0x13ac] sm:$0xf]  ;;  %v10502_v46 = vor.u32 %v14717_v19, %v10499_v23  ;;  %7912 = vmatpush.bf16.msra.mxu0 %v9990_v28 }
 0x4c3   :  { %v12483_v15 = vld [vmem:[#allocation7 + $0x13e8] sm:$0xf0] }
 0x4c4   :  { %v15341_v5 = vld [vmem:[#allocation7 + $0x17ac] sm:$0xf]  ;;  %v12486_v63 = vor.u32 %v15213_v33, %v12483_v15  ;;  %7926 = vmatpush.bf16.msra.mxu1 %v10502_v46 }
 0x4c5   :  { %v12995_v61 = vld [vmem:[#allocation7 + $0x17e8] sm:$0xf0]  ;;  %7913 = vmatmul.bf16.vlgmr.msra.gmra.mxu0 %v16050_v59 }
 0x4c6   :  { %v14861_v12 = vld [vmem:[#allocation7 + $0x8ac] sm:$0xf]  ;;  %v12998_v57 = vor.u32 %v15341_v5, %v12995_v61  ;;  %7961 = vmatpush.bf16.msrb.mxu0 %v12486_v63 }
 0x4c7   :  { %v11075_v36 = vld [vmem:[#allocation7 + $0x8e8] sm:$0xf0]  ;;  %7927 = vmatmul.bf16.vlgmr.msra.gmra.mxu1 %v16052_v0 }
 0x4c8   :  { %v14989_v54 = vld [vmem:[#allocation7 + $0xcac] sm:$0xf]  ;;  %v11078_v58 = vor.u32 %v14861_v12, %v11075_v36  ;;  %7975 = vmatpush.bf16.msrb.mxu1 %v12998_v57 }
 0x4c9   :  { %v11587_v50 = vld [vmem:[#allocation7 + $0xce8] sm:$0xf0] }
 0x4ca   :  { %v15197_v17 = vld [vmem:[#allocation7 + $0x132c] sm:$0xf]  ;;  %v11590_v24 = vor.u32 %v14989_v54, %v11587_v50  ;;  %7939 = vmatpush.bf16.msra.mxu2 %v11078_v58 }
 0x4cb   :  { %v12419_v38 = vld [vmem:[#allocation7 + $0x1368] sm:$0xf0] }
 0x4cc   :  { %v15325_v29 = vld [vmem:[#allocation7 + $0x172c] sm:$0xf]  ;;  %v12422_v19 = vor.u32 %v15197_v17, %v12419_v38  ;;  %7953 = vmatpush.bf16.msra.mxu3 %v11590_v24  ;;  %v16377_v17 = vpop.f32.mrf.mxu1 }
 0x4cd   :  { %v12931_v1 = vld [vmem:[#allocation7 + $0x1768] sm:$0xf0]  ;;  %16802 = vst [vmem:[#allocation78_spill] sm:$0xff] %v16377_v17  ;;  %v14694_v17 = vld [vmem:[#allocation7 + $0x36c] sm:$0xf0] }
 0x4ce   :  { %v14845_v4 = vld [vmem:[#allocation7 + $0x82c] sm:$0xf]  ;;  %v12934_v40 = vor.u32 %v15325_v29, %v12931_v1  ;;  %7962 = vmatpush.bf16.msrb.mxu0 %v12422_v19 }
 0x4cf   :  { %v11011_v45 = vld [vmem:[#allocation7 + $0x868] sm:$0xf0] }
 0x4d0   :  { %v14973_v2 = vld [vmem:[#allocation7 + $0xc2c] sm:$0xf]  ;;  %v11014_v15 = vor.u32 %v14845_v4, %v11011_v45  ;;  %7976 = vmatpush.bf16.msrb.mxu1 %v12934_v40 }
 0x4d1   :  { %v11523_v13 = vld [vmem:[#allocation7 + $0xc68] sm:$0xf0] }
 0x4d2   :  { %v15469_v16 = vld [vmem:[#allocation7 + $0x1bac] sm:$0xf]  ;;  %v11526_v54 = vor.u32 %v14973_v2, %v11523_v13  ;;  %7940 = vmatpush.bf16.msra.mxu2 %v11014_v15 }
 0x4d3   :  { %v13507_v44 = vld [vmem:[#allocation7 + $0x1be8] sm:$0xf0] }
 0x4d4   :  { %v15597_v23 = vld [vmem:[#allocation7 + $0x1fac] sm:$0xf]  ;;  %v13510_v53 = vor.u32 %v15469_v16, %v13507_v44  ;;  %7954 = vmatpush.bf16.msra.mxu3 %v11526_v54  ;;  %v16735_v16 = vperm.slane %v16345_v34, 1 }
 0x4d5   :  { %v14019_v33 = vld [vmem:[#allocation7 + $0x1fe8] sm:$0xf0]  ;;  %7941 = vmatmul.bf16.vlgmr.msra.gmra.mxu2 %v16058_v26 }
 0x4d6   :  { %v15181_v5 = vld [vmem:[#allocation7 + $0x12ac] sm:$0xf]  ;;  %v14022_v38 = vor.u32 %v15597_v23, %v14019_v33  ;;  %7989 = vmatpush.bf16.msrb.mxu2 %v13510_v53  ;;  %v7690_v53 = vpop.f32.mrf.mxu0 }
 0x4d7   :  { %v12355_v61 = vld [vmem:[#allocation7 + $0x12e8] sm:$0xf0]  ;;  %7955 = vmatmul.bf16.vlgmr.msra.gmra.mxu3 %v16060_v32 }
 0x4d8   :  { %v15309_v12 = vld [vmem:[#allocation7 + $0x16ac] sm:$0xf]  ;;  %v12358_v50 = vor.u32 %v15181_v5, %v12355_v61  ;;  %8003 = vmatpush.bf16.msrb.mxu3 %v14022_v38 }
 0x4d9   :  { %v12867_v36 = vld [vmem:[#allocation7 + $0x16e8] sm:$0xf0] }
 0x4da   :  { %v15453_v63 = vld [vmem:[#allocation7 + $0x1b2c] sm:$0xf]  ;;  %v12870_v24 = vor.u32 %v15309_v12, %v12867_v36  ;;  %7963 = vmatpush.bf16.msrb.mxu0 %v12358_v50 }
 0x4db   :  { %v13443_v28 = vld [vmem:[#allocation7 + $0x1b68] sm:$0xf0] }
 0x4dc   :  { %v15581_v42 = vld [vmem:[#allocation7 + $0x1f2c] sm:$0xf]  ;;  %v13446_v29 = vor.u32 %v15453_v63, %v13443_v28  ;;  %7977 = vmatpush.bf16.msrb.mxu1 %v12870_v24  ;;  %v7691_v63 = vadd.f32 %v7690_v53, %v16735_v16  ;;  %v16386_v53 = vpop.f32.mrf.mxu3 }
 0x4dd   :  { %v13955_v46 = vld [vmem:[#allocation7 + $0x1f68] sm:$0xf0]  ;;  %16804 = vst [vmem:[#allocation80_spill] sm:$0xff] %v16386_v53 }
 0x4de   :  { %v15165_v57 = vld [vmem:[#allocation7 + $0x122c] sm:$0xf]  ;;  %v13958_v45 = vor.u32 %v15581_v42, %v13955_v46  ;;  %7990 = vmatpush.bf16.msrb.mxu2 %v13446_v29  ;;  %v7704_v46 = vpop.f32.mrf.mxu1 }
 0x4df   :  { %v12291_v58 = vld [vmem:[#allocation7 + $0x1268] sm:$0xf0]  ;;  %v7705_v29 = vadd.f32 %v7704_v46, %v7691_v63 }
 0x4e0   :  { %v15293_v1 = vld [vmem:[#allocation7 + $0x162c] sm:$0xf]  ;;  %v12294_v44 = vor.u32 %v15165_v57, %v12291_v58  ;;  %8004 = vmatpush.bf16.msrb.mxu3 %v13958_v45 }
 0x4e1   :  { %v12803_v4 = vld [vmem:[#allocation7 + $0x1668] sm:$0xf0] }
 0x4e2   :  { %v15437_v2 = vld [vmem:[#allocation7 + $0x1aac] sm:$0xf]  ;;  %v12806_v33 = vor.u32 %v15293_v1, %v12803_v4  ;;  %7964 = vmatpush.bf16.msrb.mxu0 %v12294_v44 }
 0x4e3   :  { %v13379_v13 = vld [vmem:[#allocation7 + $0x1ae8] sm:$0xf0] }
 0x4e4   :  { %v15565_v19 = vld [vmem:[#allocation7 + $0x1eac] sm:$0xf]  ;;  %v13382_v5 = vor.u32 %v15437_v2, %v13379_v13  ;;  %7978 = vmatpush.bf16.msrb.mxu1 %v12806_v33  ;;  %v16384_v2 = vpop.f32.mrf.mxu2 }
 0x4e5   :  { %v13891_v23 = vld [vmem:[#allocation7 + $0x1ee8] sm:$0xf0]  ;;  %16803 = vst [vmem:[#allocation79_spill] sm:$0xff] %v16384_v2 }
 0x4e6   :  { %v15149_v40 = vld [vmem:[#allocation7 + $0x11ac] sm:$0xf]  ;;  %v13894_v12 = vor.u32 %v15565_v19, %v13891_v23  ;;  %7991 = vmatpush.bf16.msrb.mxu2 %v13382_v5 }
 0x4e7   :  { %v12227_v15 = vld [vmem:[#allocation7 + $0x11e8] sm:$0xf0] }
 0x4e8   :  { %v15277_v61 = vld [vmem:[#allocation7 + $0x15ac] sm:$0xf]  ;;  %v12230_v28 = vor.u32 %v15149_v40, %v12227_v15  ;;  %8005 = vmatpush.bf16.msrb.mxu3 %v13894_v12 }
 0x4e9   :  { %v12739_v54 = vld [vmem:[#allocation7 + $0x15e8] sm:$0xf0] }
 0x4ea   :  { %v15421_v36 = vld [vmem:[#allocation7 + $0x1a2c] sm:$0xf]  ;;  %v12742_v24 = vor.u32 %v15277_v61, %v12739_v54  ;;  %7965 = vmatpush.bf16.msrb.mxu0 %v12230_v28 }
 0x4eb   :  { %v13315_v38 = vld [vmem:[#allocation7 + $0x1a68] sm:$0xf0] }
 0x4ec   :  { %v15549_v50 = vld [vmem:[#allocation7 + $0x1e2c] sm:$0xf]  ;;  %v13318_v1 = vor.u32 %v15421_v36, %v13315_v38  ;;  %7979 = vmatpush.bf16.msrb.mxu1 %v12742_v24 }
 0x4ed   :  { %v13827_v42 = vld [vmem:[#allocation7 + $0x1e68] sm:$0xf0] }
 0x4ee   :  { %v15133_v57 = vld [vmem:[#allocation7 + $0x112c] sm:$0xf]  ;;  %v13830_v13 = vor.u32 %v15549_v50, %v13827_v42  ;;  %7992 = vmatpush.bf16.msrb.mxu2 %v13318_v1  ;;  %v10441_v1 = vld [vmem:[#allocation7 + $0x3b0] sm:$0xf] }
 0x4ef   :  { %v12163_v58 = vld [vmem:[#allocation7 + $0x1168] sm:$0xf0] }
 0x4f0   :  { %v15261_v4 = vld [vmem:[#allocation7 + $0x152c] sm:$0xf]  ;;  %v12166_v44 = vor.u32 %v15133_v57, %v12163_v58  ;;  %8006 = vmatpush.bf16.msrb.mxu3 %v13830_v13  ;;  %v7718_v13 = vpop.f32.mrf.mxu2 }
 0x4f1   :  { %v12675_v45 = vld [vmem:[#allocation7 + $0x1568] sm:$0xf0] }
 0x4f2   :  { %v15405_v19 = vld [vmem:[#allocation7 + $0x19ac] sm:$0xf]  ;;  %v12678_v33 = vor.u32 %v15261_v4, %v12675_v45  ;;  %7966 = vmatpush.bf16.msrb.mxu0 %v12166_v44 }
 0x4f3   :  { %v13251_v23 = vld [vmem:[#allocation7 + $0x19e8] sm:$0xf0] }
 0x4f4   :  { %v15533_v40 = vld [vmem:[#allocation7 + $0x1dac] sm:$0xf]  ;;  %v13254_v5 = vor.u32 %v15405_v19, %v13251_v23  ;;  %7980 = vmatpush.bf16.msrb.mxu1 %v12678_v33  ;;  %v14710_v19 = vld [vmem:[#allocation7 + $0x3ec] sm:$0xf0] }
 0x4f5   :  { %v13763_v15 = vld [vmem:[#allocation7 + $0x1de8] sm:$0xf0]  ;;  %v10953_v23 = vld [vmem:[#allocation7 + $0x7b0] sm:$0xf]  ;;  %v10442_v2 = vor.u32 %v14710_v19, %v10441_v1 }
 0x4f6   :  { %v15117_v61 = vld [vmem:[#allocation7 + $0x10ac] sm:$0xf]  ;;  %v13766_v63 = vor.u32 %v15533_v40, %v13763_v15  ;;  %7993 = vmatpush.bf16.msrb.mxu2 %v13254_v5  ;;  %v14838_v15 = vld [vmem:[#allocation7 + $0x7ec] sm:$0xf0] }
 0x4f7   :  { %v12099_v54 = vld [vmem:[#allocation7 + $0x10e8] sm:$0xf0]  ;;  %v10377_v5 = vld [vmem:[#allocation7 + $0x330] sm:$0xf] }
 0x4f8   :  { %v15245_v36 = vld [vmem:[#allocation7 + $0x14ac] sm:$0xf]  ;;  %v12102_v42 = vor.u32 %v15117_v61, %v12099_v54  ;;  %8007 = vmatpush.bf16.msrb.mxu3 %v13766_v63  ;;  %v7719_v61 = vadd.f32 %v7718_v13, %v7705_v29  ;;  %v11465_v13 = vld [vmem:[#allocation7 + $0xbb0] sm:$0xf] }
 0x4f9   :  { %v12611_v38 = vld [vmem:[#allocation7 + $0x14e8] sm:$0xf0]  ;;  %v15094_v1 = vld [vmem:[#allocation7 + $0xfec] sm:$0xf0] }
 0x4fa   :  { %v15389_v12 = vld [vmem:[#allocation7 + $0x192c] sm:$0xf]  ;;  %v12614_v58 = vor.u32 %v15245_v36, %v12611_v38  ;;  %7967 = vmatpush.bf16.msrb.mxu0 %v12102_v42  ;;  %v7732_v36 = vpop.f32.mrf.mxu3  ;;  %v10313_v19 = vld [vmem:[#allocation7 + $0x2b0] sm:$0xf] }
 0x4fb   :  { %v13187_v50 = vld [vmem:[#allocation7 + $0x1968] sm:$0xf0] }
 0x4fc   :  { %v15517_v28 = vld [vmem:[#allocation7 + $0x1d2c] sm:$0xf]  ;;  %v13190_v45 = vor.u32 %v15389_v12, %v13187_v50  ;;  %7981 = vmatpush.bf16.msrb.mxu1 %v12614_v58  ;;  %v16388_v12 = vadd.f32 %v7732_v36, %v7719_v61  ;;  %v10954_v50 = vor.u32 %v14838_v15, %v10953_v23  ;;  %v14966_v58 = vld [vmem:[#allocation7 + $0xbec] sm:$0xf0]  ;;  %v16391_v61 = vpop.f32.mrf.mxu0 }
 0x4fd   :  { %v13699_v46 = vld [vmem:[#allocation7 + $0x1d68] sm:$0xf0]  ;;  %v14678_v23 = vld [vmem:[#allocation7 + $0x2ec] sm:$0xf0]  ;;  %16805 = vst [vmem:[#allocation81_spill] sm:$0xff] %v16391_v61 }
 0x4fe   :  { %v15101_v57 = vld [vmem:[#allocation7 + $0x102c] sm:$0xf]  ;;  %v13702_v40 = vor.u32 %v15517_v28, %v13699_v46  ;;  %7994 = vmatpush.bf16.msrb.mxu2 %v13190_v45  ;;  %v10889_v28 = vld [vmem:[#allocation7 + $0x730] sm:$0xf] }
 0x4ff   :  { %v12035_v16 = vld [vmem:[#allocation7 + $0x1068] sm:$0xf0]  ;;  %v14822_v46 = vld [vmem:[#allocation7 + $0x76c] sm:$0xf0] }
 0x500   :  { %v15229_v24 = vld [vmem:[#allocation7 + $0x142c] sm:$0xf]  ;;  %v12038_v54 = vor.u32 %v15101_v57, %v12035_v16  ;;  %8008 = vmatpush.bf16.msrb.mxu3 %v13702_v40  ;;  %v11466_v40 = vor.u32 %v14966_v58, %v11465_v13  ;;  %v10825_v15 = vld [vmem:[#allocation7 + $0x6b0] sm:$0xf] }
 0x501   :  { %v12547_v4 = vld [vmem:[#allocation7 + $0x1468] sm:$0xf0]  ;;  %v11913_v36 = vld [vmem:[#allocation7 + $0xf30] sm:$0xf] }
 0x502   :  { %v15373_v41 = vld [vmem:[#allocation7 + $0x18ac] sm:$0xf]  ;;  %v12550_v38 = vor.u32 %v15229_v24, %v12547_v4  ;;  %7968 = vmatpush.bf16.msrb.mxu0 %v12038_v54  ;;  %v10378_v24 = vor.u32 %v14694_v17, %v10377_v5  ;;  %v11977_v4 = vld [vmem:[#allocation7 + $0xfb0] sm:$0xf]  ;;  %v16394_v5 = vpop.f32.mrf.mxu1 }
 0x503   :  { %v13123_v44 = vld [vmem:[#allocation7 + $0x18e8] sm:$0xf0]  ;;  %v11978_v17 = vor.u32 %v15094_v1, %v11977_v4  ;;  %v14950_v54 = vld [vmem:[#allocation7 + $0xb6c] sm:$0xf0]  ;;  %16806 = vst [vmem:[#allocation82_spill] sm:$0xff] %v16394_v5 }
 0x504   :  { %v15501_v53 = vld [vmem:[#allocation7 + $0x1cac] sm:$0xf]  ;;  %v13126_v63 = vor.u32 %v15373_v41, %v13123_v44  ;;  %7982 = vmatpush.bf16.msrb.mxu1 %v12550_v38  ;;  %v10890_v41 = vor.u32 %v14822_v46, %v10889_v28  ;;  %v14806_v44 = vld [vmem:[#allocation7 + $0x6ec] sm:$0xf0] }
 0x505   :  { %v13635_v33 = vld [vmem:[#allocation7 + $0x1ce8] sm:$0xf0]  ;;  %7969 = vmatmul.bf16.vlgmr.msrb.gmra.mxu0 %v16066_v8  ;;  %v15078_v38 = vld [vmem:[#allocation7 + $0xf6c] sm:$0xf0] }
 0x506   :  { %v13638_v49 = vor.u32 %v15501_v53, %v13635_v33  ;;  %v15357_v29 = vld [vmem:[#allocation7 + $0x182c] sm:$0xf]  ;;  %8017 = vmatpush.bf16.msra.mxu0 %v10442_v2  ;;  %7995 = vmatpush.bf16.msrb.mxu2 %v13126_v63  ;;  %v11401_v2 = vld [vmem:[#allocation7 + $0xb30] sm:$0xf]  ;;  %v10314_v33 = vor.u32 %v14678_v23, %v10313_v19 }
 0x507   :  { %v13059_v42 = vld [vmem:[#allocation7 + $0x1868] sm:$0xf0]  ;;  %7983 = vmatmul.bf16.vlgmr.msrb.gmra.mxu1 %v16068_v51  ;;  %v14662_v63 = vld [vmem:[#allocation7 + $0x26c] sm:$0xf0]  ;;  %v11402_v28 = vor.u32 %v14950_v54, %v11401_v2 }
 0x508   :  { %v15485_v16 = vld [vmem:[#allocation7 + $0x1c2c] sm:$0xf]  ;;  %8031 = vmatpush.bf16.msra.mxu1 %v10954_v50  ;;  %v13062_v45 = vor.u32 %v15357_v29, %v13059_v42  ;;  %8009 = vmatpush.bf16.msrb.mxu3 %v13638_v49  ;;  %v10826_v49 = vor.u32 %v14806_v44, %v10825_v15  ;;  %v10249_v50 = vld [vmem:[#allocation7 + $0x230] sm:$0xf]  ;;  %v11914_v42 = vor.u32 %v15078_v38, %v11913_v36 }
 0x509   :  { %v13571_v57 = vld [vmem:[#allocation7 + $0x1c68] sm:$0xf0]  ;;  %v10761_v46 = vld [vmem:[#allocation7 + $0x630] sm:$0xf]  ;;  %v10250_v13 = vor.u32 %v14662_v63, %v10249_v50 }
 0x50a   :  { %v13574_v53 = vor.u32 %v15485_v16, %v13571_v57  ;;  %8018 = vmatpush.bf16.msra.mxu0 %v10378_v24  ;;  %7996 = vmatpush.bf16.msrb.mxu2 %v13062_v45  ;;  %v14790_v29 = vld [vmem:[#allocation7 + $0x66c] sm:$0xf0]  ;;  %v7760_v36 = vpop.f32.mrf.mxu1 }
 0x50b   :  { %v11337_v16 = vld [vmem:[#allocation7 + $0xab0] sm:$0xf]  ;;  %v10762_v4 = vor.u32 %v14790_v29, %v10761_v46 }
 0x50c   :  { %8032 = vmatpush.bf16.msra.mxu1 %v10890_v41  ;;  %8010 = vmatpush.bf16.msrb.mxu3 %v13574_v53  ;;  %v14934_v57 = vld [vmem:[#allocation7 + $0xaec] sm:$0xf0]  ;;  %v7746_v53 = vpop.f32.mrf.mxu0 }
 0x50d   :  { %7997 = vmatmul.bf16.vlgmr.msrb.gmra.mxu2 %v16072_v43  ;;  %v11849_v58 = vld [vmem:[#allocation7 + $0xeb0] sm:$0xf]  ;;  %v11338_v45 = vor.u32 %v14934_v57, %v11337_v16 }
 0x50e   :  { %8045 = vmatpush.bf16.msra.mxu2 %v11466_v40  ;;  %8019 = vmatpush.bf16.msra.mxu0 %v10314_v33  ;;  %v15062_v24 = vld [vmem:[#allocation7 + $0xeec] sm:$0xf0] }
 0x50f   :  { %8011 = vmatmul.bf16.vlgmr.msrb.gmra.mxu3 %v16074_v48  ;;  %v10185_v1 = vld [vmem:[#allocation7 + $0x1b0] sm:$0xf]  ;;  %v11850_v40 = vor.u32 %v15062_v24, %v11849_v58 }
 0x510   :  { %8059 = vmatpush.bf16.msra.mxu3 %v11978_v17  ;;  %8033 = vmatpush.bf16.msra.mxu1 %v10826_v49  ;;  %v14646_v41 = vld [vmem:[#allocation7 + $0x1ec] sm:$0xf0]  ;;  %v7747_v17 = vadd.f32 %v7746_v53, %v16388_v12 }
 0x511   :  { %v10697_v19 = vld [vmem:[#allocation7 + $0x5b0] sm:$0xf]  ;;  %v10186_v2 = vor.u32 %v14646_v41, %v10185_v1  ;;  %v16401_v1 = vpop.f32.mrf.mxu3 }
 0x512   :  { %8046 = vmatpush.bf16.msra.mxu2 %v11402_v28  ;;  %v14774_v23 = vld [vmem:[#allocation7 + $0x5ec] sm:$0xf0]  ;;  %8020 = vmatpush.bf16.msra.mxu0 %v10250_v13  ;;  %v7761_v63 = vadd.f32 %v7760_v36, %v7747_v17  ;;  %16808 = vst [vmem:[#allocation84_spill] sm:$0xff] %v16401_v1 }
 0x513   :  { %v11273_v15 = vld [vmem:[#allocation7 + $0xa30] sm:$0xf]  ;;  %v10698_v38 = vor.u32 %v14774_v23, %v10697_v19 }
 0x514   :  { %8060 = vmatpush.bf16.msra.mxu3 %v11914_v42  ;;  %v14918_v44 = vld [vmem:[#allocation7 + $0xa6c] sm:$0xf0]  ;;  %8034 = vmatpush.bf16.msra.mxu1 %v10762_v4  ;;  %v16399_v42 = vpop.f32.mrf.mxu2 }
 0x515   :  { %v11785_v54 = vld [vmem:[#allocation7 + $0xe30] sm:$0xf]  ;;  %v11274_v28 = vor.u32 %v14918_v44, %v11273_v15  ;;  %16807 = vst [vmem:[#allocation83_spill] sm:$0xff] %v16399_v42 }
 0x516   :  { %v15046_v33 = vld [vmem:[#allocation7 + $0xe6c] sm:$0xf0]  ;;  %8047 = vmatpush.bf16.msra.mxu2 %v11338_v45  ;;  %8021 = vmatpush.bf16.msra.mxu0 %v10186_v2 }
 0x517   :  { %v10121_v49 = vld [vmem:[#allocation7 + $0x130] sm:$0xf]  ;;  %v11786_v16 = vor.u32 %v15046_v33, %v11785_v54 }
 0x518   :  { %v14630_v50 = vld [vmem:[#allocation7 + $0x16c] sm:$0xf0]  ;;  %8061 = vmatpush.bf16.msra.mxu3 %v11850_v40  ;;  %8035 = vmatpush.bf16.msra.mxu1 %v10698_v38 }
 0x519   :  { %v10633_v46 = vld [vmem:[#allocation7 + $0x530] sm:$0xf]  ;;  %v10122_v13 = vor.u32 %v14630_v50, %v10121_v49 }
 0x51a   :  { %v14758_v29 = vld [vmem:[#allocation7 + $0x56c] sm:$0xf0]  ;;  %8048 = vmatpush.bf16.msra.mxu2 %v11274_v28 }
 0x51b   :  { %v11209_v57 = vld [vmem:[#allocation7 + $0x9b0] sm:$0xf]  ;;  %v10634_v4 = vor.u32 %v14758_v29, %v10633_v46  ;;  %8022 = vmatpush.bf16.msra.mxu0 %v10122_v13 }
 0x51c   :  { %v14902_v12 = vld [vmem:[#allocation7 + $0x9ec] sm:$0xf0]  ;;  %8062 = vmatpush.bf16.msra.mxu3 %v11786_v16  ;;  %v7774_v16 = vpop.f32.mrf.mxu2 }
 0x51d   :  { %v11721_v58 = vld [vmem:[#allocation7 + $0xdb0] sm:$0xf]  ;;  %v11210_v45 = vor.u32 %v14902_v12, %v11209_v57  ;;  %8036 = vmatpush.bf16.msra.mxu1 %v10634_v4 }
 0x51e   :  { %v15030_v24 = vld [vmem:[#allocation7 + $0xdec] sm:$0xf0] }
 0x51f   :  { %v10057_v41 = vld [vmem:[#allocation7 + $0xb0] sm:$0xf]  ;;  %v11722_v15 = vor.u32 %v15030_v24, %v11721_v58  ;;  %8049 = vmatpush.bf16.msra.mxu2 %v11210_v45 }
 0x520   :  { %v14614_v19 = vld [vmem:[#allocation7 + $0xec] sm:$0xf0] }
 0x521   :  { %v10569_v23 = vld [vmem:[#allocation7 + $0x4b0] sm:$0xf]  ;;  %v10058_v17 = vor.u32 %v14614_v19, %v10057_v41  ;;  %8063 = vmatpush.bf16.msra.mxu3 %v11722_v15  ;;  %v7775_v41 = vadd.f32 %v7774_v16, %v7761_v63 }
 0x522   :  { %v14742_v53 = vld [vmem:[#allocation7 + $0x4ec] sm:$0xf0] }
 0x523   :  { %v11145_v40 = vld [vmem:[#allocation7 + $0x930] sm:$0xf]  ;;  %v10570_v36 = vor.u32 %v14742_v53, %v10569_v23  ;;  %8023 = vmatpush.bf16.msra.mxu0 %v10058_v17  ;;  %v7788_v23 = vpop.f32.mrf.mxu3 }
 0x524   :  { %v14886_v44 = vld [vmem:[#allocation7 + $0x96c] sm:$0xf0] }
 0x525   :  { %v11657_v2 = vld [vmem:[#allocation7 + $0xd30] sm:$0xf]  ;;  %v11146_v46 = vor.u32 %v14886_v44, %v11145_v40  ;;  %8037 = vmatpush.bf16.msra.mxu1 %v10570_v36  ;;  %v16403_v40 = vadd.f32 %v7788_v23, %v7775_v41  ;;  %v16406_v41 = vpop.f32.mrf.mxu0 }
 0x526   :  { %v15014_v54 = vld [vmem:[#allocation7 + $0xd6c] sm:$0xf0]  ;;  %16810 = vst [vmem:[#allocation86_spill] sm:$0xff] %v16406_v41  ;;  %v10379_v41 = vld [vmem:[#allocation7 + $0x370] sm:$0xf0] }
 0x527   :  { %v9993_v33 = vld [vmem:[#allocation7 + $0x30] sm:$0xf]  ;;  %v11658_v12 = vor.u32 %v15014_v54, %v11657_v2  ;;  %16809 = vst [vmem:[#allocation85_spill] sm:$0xff] %v16403_v40  ;;  %8050 = vmatpush.bf16.msra.mxu2 %v11146_v46 }
 0x528   :  { %v14598_v49 = vld [vmem:[#allocation7 + $0x6c] sm:$0xf0] }
 0x529   :  { %v10505_v38 = vld [vmem:[#allocation7 + $0x430] sm:$0xf]  ;;  %v9994_v19 = vor.u32 %v14598_v49, %v9993_v33  ;;  %8064 = vmatpush.bf16.msra.mxu3 %v11658_v12 }
 0x52a   :  { %v14726_v50 = vld [vmem:[#allocation7 + $0x46c] sm:$0xf0] }
 0x52b   :  { %v12489_v28 = vld [vmem:[#allocation7 + $0x13b0] sm:$0xf]  ;;  %v10506_v53 = vor.u32 %v14726_v50, %v10505_v38  ;;  %8024 = vmatpush.bf16.msra.mxu0 %v9994_v19 }
 0x52c   :  { %v15222_v29 = vld [vmem:[#allocation7 + $0x13ec] sm:$0xf0] }
 0x52d   :  { %v13001_v57 = vld [vmem:[#allocation7 + $0x17b0] sm:$0xf]  ;;  %v12490_v42 = vor.u32 %v15222_v29, %v12489_v28  ;;  %8038 = vmatpush.bf16.msra.mxu1 %v10506_v53 }
 0x52e   :  { %v15350_v58 = vld [vmem:[#allocation7 + $0x17ec] sm:$0xf0]  ;;  %8025 = vmatmul.bf16.vlgmr.msra.gmra.mxu0 %v16050_v59 }
 0x52f   :  { %v11081_v24 = vld [vmem:[#allocation7 + $0x8b0] sm:$0xf]  ;;  %v13002_v44 = vor.u32 %v15350_v58, %v13001_v57  ;;  %8073 = vmatpush.bf16.msrb.mxu0 %v12490_v42 }
 0x530   :  { %v14870_v13 = vld [vmem:[#allocation7 + $0x8ec] sm:$0xf0]  ;;  %8039 = vmatmul.bf16.vlgmr.msra.gmra.mxu1 %v16052_v0 }
 0x531   :  { %v11593_v1 = vld [vmem:[#allocation7 + $0xcb0] sm:$0xf]  ;;  %v11082_v15 = vor.u32 %v14870_v13, %v11081_v24  ;;  %8087 = vmatpush.bf16.msrb.mxu1 %v13002_v44 }
 0x532   :  { %v14998_v4 = vld [vmem:[#allocation7 + $0xcec] sm:$0xf0] }
 0x533   :  { %v12425_v45 = vld [vmem:[#allocation7 + $0x1330] sm:$0xf]  ;;  %v11594_v61 = vor.u32 %v14998_v4, %v11593_v1  ;;  %8051 = vmatpush.bf16.msra.mxu2 %v11082_v15 }
 0x534   :  { %v15206_v5 = vld [vmem:[#allocation7 + $0x136c] sm:$0xf0] }
 0x535   :  { %v12937_v2 = vld [vmem:[#allocation7 + $0x1730] sm:$0xf]  ;;  %v12426_v38 = vor.u32 %v15206_v5, %v12425_v45  ;;  %8065 = vmatpush.bf16.msra.mxu3 %v11594_v61  ;;  %v16409_v45 = vpop.f32.mrf.mxu1 }
 0x536   :  { %v15334_v54 = vld [vmem:[#allocation7 + $0x176c] sm:$0xf0]  ;;  %16811 = vst [vmem:[#allocation87_spill] sm:$0xff] %v16409_v45 }
 0x537   :  { %v11017_v63 = vld [vmem:[#allocation7 + $0x830] sm:$0xf]  ;;  %v12938_v46 = vor.u32 %v15334_v54, %v12937_v2  ;;  %8074 = vmatpush.bf16.msrb.mxu0 %v12426_v38 }
 0x538   :  { %v14854_v17 = vld [vmem:[#allocation7 + $0x86c] sm:$0xf0] }
 0x539   :  { %v11529_v33 = vld [vmem:[#allocation7 + $0xc30] sm:$0xf]  ;;  %v11018_v29 = vor.u32 %v14854_v17, %v11017_v63  ;;  %8088 = vmatpush.bf16.msrb.mxu1 %v12938_v46 }
 0x53a   :  { %v14982_v49 = vld [vmem:[#allocation7 + $0xc6c] sm:$0xf0] }
 0x53b   :  { %v13513_v16 = vld [vmem:[#allocation7 + $0x1bb0] sm:$0xf]  ;;  %v11530_v1 = vor.u32 %v14982_v49, %v11529_v33  ;;  %8052 = vmatpush.bf16.msra.mxu2 %v11018_v29 }
 0x53c   :  { %v15478_v36 = vld [vmem:[#allocation7 + $0x1bec] sm:$0xf0] }
 0x53d   :  { %v14025_v50 = vld [vmem:[#allocation7 + $0x1fb0] sm:$0xf]  ;;  %v13514_v12 = vor.u32 %v15478_v36, %v13513_v16  ;;  %8066 = vmatpush.bf16.msra.mxu3 %v11530_v1  ;;  %v16412_v16 = vld [vmem:[#allocation8 + $0x8] sm:$0xff] }
 0x53e   :  { %v15606_v28 = vld [vmem:[#allocation7 + $0x1fec] sm:$0xf0]  ;;  %8053 = vmatmul.bf16.vlgmr.msra.gmra.mxu2 %v16058_v26  ;;  %16812 = vst [vmem:[#allocation88_spill] sm:$0xff] %v16412_v16  ;;  %v16736_v36 = vperm.slane %v16412_v16, 2 }
 0x53f   :  { %v12361_v57 = vld [vmem:[#allocation7 + $0x12b0] sm:$0xf]  ;;  %v14026_v5 = vor.u32 %v15606_v28, %v14025_v50  ;;  %8101 = vmatpush.bf16.msrb.mxu2 %v13514_v12 }
 0x540   :  { %v15190_v58 = vld [vmem:[#allocation7 + $0x12ec] sm:$0xf0]  ;;  %8067 = vmatmul.bf16.vlgmr.msra.gmra.mxu3 %v16060_v32 }
 0x541   :  { %v12873_v24 = vld [vmem:[#allocation7 + $0x16b0] sm:$0xf]  ;;  %v12362_v4 = vor.u32 %v15190_v58, %v12361_v57  ;;  %8115 = vmatpush.bf16.msrb.mxu3 %v14026_v5 }
 0x542   :  { %v15318_v13 = vld [vmem:[#allocation7 + $0x16ec] sm:$0xf0] }
 0x543   :  { %v13449_v42 = vld [vmem:[#allocation7 + $0x1b30] sm:$0xf]  ;;  %v12874_v61 = vor.u32 %v15318_v13, %v12873_v24  ;;  %8075 = vmatpush.bf16.msrb.mxu0 %v12362_v4  ;;  %v7802_v24 = vpop.f32.mrf.mxu0 }
 0x544   :  { %v15462_v19 = vld [vmem:[#allocation7 + $0x1b6c] sm:$0xf0] }
 0x545   :  { %v13961_v23 = vld [vmem:[#allocation7 + $0x1f30] sm:$0xf]  ;;  %v13450_v2 = vor.u32 %v15462_v19, %v13449_v42  ;;  %8089 = vmatpush.bf16.msrb.mxu1 %v12874_v61  ;;  %v7803_v19 = vadd.f32 %v7802_v24, %v16736_v36  ;;  %v7816_v61 = vpop.f32.mrf.mxu1  ;;  %v16420_v36 = vpop.f32.mrf.mxu3 }
 0x546   :  { %v15590_v53 = vld [vmem:[#allocation7 + $0x1f6c] sm:$0xf0]  ;;  %16814 = vst [vmem:[#allocation90_spill] sm:$0xff] %v16420_v36 }
 0x547   :  { %v12297_v44 = vld [vmem:[#allocation7 + $0x1230] sm:$0xf]  ;;  %v13962_v17 = vor.u32 %v15590_v53, %v13961_v23  ;;  %8102 = vmatpush.bf16.msrb.mxu2 %v13450_v2 }
 0x548   :  { %v15174_v15 = vld [vmem:[#allocation7 + $0x126c] sm:$0xf0] }
 0x549   :  { %v12809_v54 = vld [vmem:[#allocation7 + $0x1630] sm:$0xf]  ;;  %v12298_v38 = vor.u32 %v15174_v15, %v12297_v44  ;;  %8116 = vmatpush.bf16.msrb.mxu3 %v13962_v17 }
 0x54a   :  { %v15302_v63 = vld [vmem:[#allocation7 + $0x166c] sm:$0xf0] }
 0x54b   :  { %v13385_v33 = vld [vmem:[#allocation7 + $0x1ab0] sm:$0xf]  ;;  %v12810_v46 = vor.u32 %v15302_v63, %v12809_v54  ;;  %8076 = vmatpush.bf16.msrb.mxu0 %v12298_v38  ;;  %v7817_v54 = vadd.f32 %v7816_v61, %v7803_v19 }
 0x54c   :  { %v15446_v49 = vld [vmem:[#allocation7 + $0x1aec] sm:$0xf0] }
 0x54d   :  { %v13897_v50 = vld [vmem:[#allocation7 + $0x1eb0] sm:$0xf]  ;;  %v13386_v58 = vor.u32 %v15446_v49, %v13385_v33  ;;  %8090 = vmatpush.bf16.msrb.mxu1 %v12810_v46  ;;  %v16418_v49 = vpop.f32.mrf.mxu2 }
 0x54e   :  { %v15574_v28 = vld [vmem:[#allocation7 + $0x1eec] sm:$0xf0]  ;;  %16813 = vst [vmem:[#allocation89_spill] sm:$0xff] %v16418_v49 }
 0x54f   :  { %v12233_v29 = vld [vmem:[#allocation7 + $0x11b0] sm:$0xf]  ;;  %v13898_v13 = vor.u32 %v15574_v28, %v13897_v50  ;;  %8103 = vmatpush.bf16.msrb.mxu2 %v13386_v58 }
 0x550   :  { %v15158_v57 = vld [vmem:[#allocation7 + $0x11ec] sm:$0xf0] }
 0x551   :  { %v12745_v1 = vld [vmem:[#allocation7 + $0x15b0] sm:$0xf]  ;;  %v12234_v4 = vor.u32 %v15158_v57, %v12233_v29  ;;  %8117 = vmatpush.bf16.msrb.mxu3 %v13898_v13 }
 0x552   :  { %v15286_v12 = vld [vmem:[#allocation7 + $0x15ec] sm:$0xf0] }
 0x553   :  { %v13321_v5 = vld [vmem:[#allocation7 + $0x1a30] sm:$0xf]  ;;  %v12746_v44 = vor.u32 %v15286_v12, %v12745_v1  ;;  %8077 = vmatpush.bf16.msrb.mxu0 %v12234_v4 }
 0x554   :  { %v15430_v42 = vld [vmem:[#allocation7 + $0x1a6c] sm:$0xf0] }
 0x555   :  { %v13833_v23 = vld [vmem:[#allocation7 + $0x1e30] sm:$0xf]  ;;  %v13322_v63 = vor.u32 %v15430_v42, %v13321_v5  ;;  %8091 = vmatpush.bf16.msrb.mxu1 %v12746_v44 }
 0x556   :  { %v15558_v53 = vld [vmem:[#allocation7 + $0x1e6c] sm:$0xf0] }
 0x557   :  { %v12169_v15 = vld [vmem:[#allocation7 + $0x1130] sm:$0xf]  ;;  %v13834_v50 = vor.u32 %v15558_v53, %v13833_v23  ;;  %8104 = vmatpush.bf16.msrb.mxu2 %v13322_v63  ;;  %v14702_v63 = vld [vmem:[#allocation7 + $0x3b4] sm:$0xf] }
 0x558   :  { %v15142_v2 = vld [vmem:[#allocation7 + $0x116c] sm:$0xf0] }
 0x559   :  { %v12681_v17 = vld [vmem:[#allocation7 + $0x1530] sm:$0xf]  ;;  %v12170_v38 = vor.u32 %v15142_v2, %v12169_v15  ;;  %8118 = vmatpush.bf16.msrb.mxu3 %v13834_v50  ;;  %v7830_v50 = vpop.f32.mrf.mxu2 }
 0x55a   :  { %v15270_v33 = vld [vmem:[#allocation7 + $0x156c] sm:$0xf0] }
 0x55b   :  { %v13257_v28 = vld [vmem:[#allocation7 + $0x19b0] sm:$0xf]  ;;  %v12682_v46 = vor.u32 %v15270_v33, %v12681_v17  ;;  %8078 = vmatpush.bf16.msrb.mxu0 %v12170_v38 }
 0x55c   :  { %v15414_v24 = vld [vmem:[#allocation7 + $0x19ec] sm:$0xf0] }
 0x55d   :  { %v13769_v29 = vld [vmem:[#allocation7 + $0x1db0] sm:$0xf]  ;;  %v13258_v58 = vor.u32 %v15414_v24, %v13257_v28  ;;  %8092 = vmatpush.bf16.msrb.mxu1 %v12682_v46  ;;  %v10443_v28 = vld [vmem:[#allocation7 + $0x3f0] sm:$0xf0] }
 0x55e   :  { %v15542_v57 = vld [vmem:[#allocation7 + $0x1dec] sm:$0xf0]  ;;  %v14830_v24 = vld [vmem:[#allocation7 + $0x7b4] sm:$0xf]  ;;  %v10446_v45 = vor.u32 %v14702_v63, %v10443_v28 }
 0x55f   :  { %v12105_v1 = vld [vmem:[#allocation7 + $0x10b0] sm:$0xf]  ;;  %v13770_v19 = vor.u32 %v15542_v57, %v13769_v29  ;;  %8105 = vmatpush.bf16.msrb.mxu2 %v13258_v58  ;;  %v10955_v57 = vld [vmem:[#allocation7 + $0x7f0] sm:$0xf0] }
 0x560   :  { %v15126_v12 = vld [vmem:[#allocation7 + $0x10ec] sm:$0xf0]  ;;  %v14686_v58 = vld [vmem:[#allocation7 + $0x334] sm:$0xf] }
 0x561   :  { %v12617_v5 = vld [vmem:[#allocation7 + $0x14b0] sm:$0xf]  ;;  %v12106_v53 = vor.u32 %v15126_v12, %v12105_v1  ;;  %8119 = vmatpush.bf16.msrb.mxu3 %v13770_v19  ;;  %v7831_v1 = vadd.f32 %v7830_v50, %v7817_v54  ;;  %v14958_v50 = vld [vmem:[#allocation7 + $0xbb4] sm:$0xf] }
 0x562   :  { %v15254_v42 = vld [vmem:[#allocation7 + $0x14ec] sm:$0xf0]  ;;  %v11979_v63 = vld [vmem:[#allocation7 + $0xff0] sm:$0xf0] }
 0x563   :  { %v13193_v13 = vld [vmem:[#allocation7 + $0x1930] sm:$0xf]  ;;  %v12618_v2 = vor.u32 %v15254_v42, %v12617_v5  ;;  %8079 = vmatpush.bf16.msrb.mxu0 %v12106_v53  ;;  %v7844_v5 = vpop.f32.mrf.mxu3  ;;  %v14670_v28 = vld [vmem:[#allocation7 + $0x2b4] sm:$0xf] }
 0x564   :  { %v15398_v23 = vld [vmem:[#allocation7 + $0x196c] sm:$0xf0] }
 0x565   :  { %v13705_v4 = vld [vmem:[#allocation7 + $0x1d30] sm:$0xf]  ;;  %v13194_v33 = vor.u32 %v15398_v23, %v13193_v13  ;;  %8093 = vmatpush.bf16.msrb.mxu1 %v12618_v2  ;;  %v16422_v13 = vadd.f32 %v7844_v5, %v7831_v1  ;;  %v10958_v23 = vor.u32 %v14830_v24, %v10955_v57  ;;  %v11467_v2 = vld [vmem:[#allocation7 + $0xbf0] sm:$0xf0]  ;;  %v16425_v1 = vpop.f32.mrf.mxu0 }
 0x566   :  { %v15526_v61 = vld [vmem:[#allocation7 + $0x1d6c] sm:$0xf0]  ;;  %v10315_v24 = vld [vmem:[#allocation7 + $0x2f0] sm:$0xf0]  ;;  %16815 = vst [vmem:[#allocation91_spill] sm:$0xff] %v16425_v1 }
 0x567   :  { %v12041_v15 = vld [vmem:[#allocation7 + $0x1030] sm:$0xf]  ;;  %v13706_v29 = vor.u32 %v15526_v61, %v13705_v4  ;;  %8106 = vmatpush.bf16.msrb.mxu2 %v13194_v33  ;;  %v14814_v4 = vld [vmem:[#allocation7 + $0x734] sm:$0xf] }
 0x568   :  { %v15110_v40 = vld [vmem:[#allocation7 + $0x106c] sm:$0xf0]  ;;  %v10891_v61 = vld [vmem:[#allocation7 + $0x770] sm:$0xf0] }
 0x569   :  { %v12553_v44 = vld [vmem:[#allocation7 + $0x1430] sm:$0xf]  ;;  %v12042_v12 = vor.u32 %v15110_v40, %v12041_v15  ;;  %8120 = vmatpush.bf16.msrb.mxu3 %v13706_v29  ;;  %v11470_v29 = vor.u32 %v14958_v50, %v11467_v2  ;;  %v14798_v57 = vld [vmem:[#allocation7 + $0x6b4] sm:$0xf] }
 0x56a   :  { %v15238_v17 = vld [vmem:[#allocation7 + $0x146c] sm:$0xf0]  ;;  %v15070_v5 = vld [vmem:[#allocation7 + $0xf34] sm:$0xf] }
 0x56b   :  { %v13129_v36 = vld [vmem:[#allocation7 + $0x18b0] sm:$0xf]  ;;  %v12554_v42 = vor.u32 %v15238_v17, %v12553_v44  ;;  %8080 = vmatpush.bf16.msrb.mxu0 %v12042_v12  ;;  %v10382_v44 = vor.u32 %v14686_v58, %v10379_v41  ;;  %v15086_v17 = vld [vmem:[#allocation7 + $0xfb4] sm:$0xf]  ;;  %v16428_v58 = vpop.f32.mrf.mxu1 }
 0x56c   :  { %v15382_v38 = vld [vmem:[#allocation7 + $0x18ec] sm:$0xf0]  ;;  %v11982_v41 = vor.u32 %v15086_v17, %v11979_v63  ;;  %v11403_v12 = vld [vmem:[#allocation7 + $0xb70] sm:$0xf0]  ;;  %16816 = vst [vmem:[#allocation92_spill] sm:$0xff] %v16428_v58 }
 0x56d   :  { %v13641_v49 = vld [vmem:[#allocation7 + $0x1cb0] sm:$0xf]  ;;  %v13130_v19 = vor.u32 %v15382_v38, %v13129_v36  ;;  %8094 = vmatpush.bf16.msrb.mxu1 %v12554_v42  ;;  %v10894_v36 = vor.u32 %v14814_v4, %v10891_v61  ;;  %v10827_v38 = vld [vmem:[#allocation7 + $0x6f0] sm:$0xf0] }
 0x56e   :  { %v15510_v46 = vld [vmem:[#allocation7 + $0x1cec] sm:$0xf0]  ;;  %8081 = vmatmul.bf16.vlgmr.msrb.gmra.mxu0 %v16066_v8  ;;  %v11915_v42 = vld [vmem:[#allocation7 + $0xf70] sm:$0xf0] }
 0x56f   :  { %v13642_v34 = vor.u32 %v15510_v46, %v13641_v49  ;;  %v13065_v54 = vld [vmem:[#allocation7 + $0x1830] sm:$0xf]  ;;  %8129 = vmatpush.bf16.msra.mxu0 %v10446_v45  ;;  %8107 = vmatpush.bf16.msrb.mxu2 %v13130_v19  ;;  %v14942_v45 = vld [vmem:[#allocation7 + $0xb34] sm:$0xf]  ;;  %v10318_v46 = vor.u32 %v14670_v28, %v10315_v24 }
 0x570   :  { %v15366_v53 = vld [vmem:[#allocation7 + $0x186c] sm:$0xf0]  ;;  %8095 = vmatmul.bf16.vlgmr.msrb.gmra.mxu1 %v16068_v51  ;;  %v10251_v19 = vld [vmem:[#allocation7 + $0x270] sm:$0xf0]  ;;  %v11406_v4 = vor.u32 %v14942_v45, %v11403_v12 }
 0x571   :  { %v13577_v40 = vld [vmem:[#allocation7 + $0x1c30] sm:$0xf]  ;;  %8143 = vmatpush.bf16.msra.mxu1 %v10958_v23  ;;  %v13066_v33 = vor.u32 %v15366_v53, %v13065_v54  ;;  %8121 = vmatpush.bf16.msrb.mxu3 %v13642_v34  ;;  %v10830_v34 = vor.u32 %v14798_v57, %v10827_v38  ;;  %v14654_v23 = vld [vmem:[#allocation7 + $0x234] sm:$0xf]  ;;  %v11918_v53 = vor.u32 %v15070_v5, %v11915_v42 }
 0x572   :  { %v15494_v15 = vld [vmem:[#allocation7 + $0x1c6c] sm:$0xf0]  ;;  %v14782_v61 = vld [vmem:[#allocation7 + $0x634] sm:$0xf]  ;;  %v10254_v50 = vor.u32 %v14654_v23, %v10251_v19 }
 0x573   :  { %v13578_v49 = vor.u32 %v15494_v15, %v13577_v40  ;;  %8130 = vmatpush.bf16.msra.mxu0 %v10382_v44  ;;  %8108 = vmatpush.bf16.msrb.mxu2 %v13066_v33  ;;  %v10763_v54 = vld [vmem:[#allocation7 + $0x670] sm:$0xf0]  ;;  %v7872_v5 = vpop.f32.mrf.mxu1 }
 0x574   :  { %v14926_v40 = vld [vmem:[#allocation7 + $0xab4] sm:$0xf]  ;;  %v10766_v17 = vor.u32 %v14782_v61, %v10763_v54 }
 0x575   :  { %8144 = vmatpush.bf16.msra.mxu1 %v10894_v36  ;;  %8122 = vmatpush.bf16.msrb.mxu3 %v13578_v49  ;;  %v11339_v15 = vld [vmem:[#allocation7 + $0xaf0] sm:$0xf0]  ;;  %v7858_v49 = vpop.f32.mrf.mxu0 }
 0x576   :  { %8109 = vmatmul.bf16.vlgmr.msrb.gmra.mxu2 %v16072_v43  ;;  %v15054_v2 = vld [vmem:[#allocation7 + $0xeb4] sm:$0xf]  ;;  %v11342_v33 = vor.u32 %v14926_v40, %v11339_v15 }
 0x577   :  { %8157 = vmatpush.bf16.msra.mxu2 %v11470_v29  ;;  %8131 = vmatpush.bf16.msra.mxu0 %v10318_v46  ;;  %v11851_v44 = vld [vmem:[#allocation7 + $0xef0] sm:$0xf0] }
 0x578   :  { %8123 = vmatmul.bf16.vlgmr.msrb.gmra.mxu3 %v16074_v48  ;;  %v14638_v63 = vld [vmem:[#allocation7 + $0x1b4] sm:$0xf]  ;;  %v11854_v29 = vor.u32 %v15054_v2, %v11851_v44 }
 0x579   :  { %8171 = vmatpush.bf16.msra.mxu3 %v11982_v41  ;;  %8145 = vmatpush.bf16.msra.mxu1 %v10830_v34  ;;  %v10187_v36 = vld [vmem:[#allocation7 + $0x1f0] sm:$0xf0]  ;;  %v7859_v41 = vadd.f32 %v7858_v49, %v16422_v13 }
 0x57a   :  { %v14766_v28 = vld [vmem:[#allocation7 + $0x5b4] sm:$0xf]  ;;  %v10190_v45 = vor.u32 %v14638_v63, %v10187_v36  ;;  %v16435_v63 = vpop.f32.mrf.mxu3 }
 0x57b   :  { %8158 = vmatpush.bf16.msra.mxu2 %v11406_v4  ;;  %v10699_v24 = vld [vmem:[#allocation7 + $0x5f0] sm:$0xf0]  ;;  %8132 = vmatpush.bf16.msra.mxu0 %v10254_v50  ;;  %v7873_v19 = vadd.f32 %v7872_v5, %v7859_v41  ;;  %16818 = vst [vmem:[#allocation94_spill] sm:$0xff] %v16435_v63 }
 0x57c   :  { %v14910_v57 = vld [vmem:[#allocation7 + $0xa34] sm:$0xf]  ;;  %v10702_v42 = vor.u32 %v14766_v28, %v10699_v24 }
 0x57d   :  { %8172 = vmatpush.bf16.msra.mxu3 %v11918_v53  ;;  %v11275_v38 = vld [vmem:[#allocation7 + $0xa70] sm:$0xf0]  ;;  %8146 = vmatpush.bf16.msra.mxu1 %v10766_v17  ;;  %v16433_v53 = vpop.f32.mrf.mxu2 }
 0x57e   :  { %v15038_v12 = vld [vmem:[#allocation7 + $0xe34] sm:$0xf]  ;;  %v11278_v4 = vor.u32 %v14910_v57, %v11275_v38  ;;  %16817 = vst [vmem:[#allocation93_spill] sm:$0xff] %v16433_v53 }
 0x57f   :  { %v11787_v46 = vld [vmem:[#allocation7 + $0xe70] sm:$0xf0]  ;;  %8159 = vmatpush.bf16.msra.mxu2 %v11342_v33  ;;  %8133 = vmatpush.bf16.msra.mxu0 %v10190_v45 }
 0x580   :  { %v14622_v34 = vld [vmem:[#allocation7 + $0x134] sm:$0xf]  ;;  %v11790_v40 = vor.u32 %v15038_v12, %v11787_v46 }
 0x581   :  { %v10123_v23 = vld [vmem:[#allocation7 + $0x170] sm:$0xf0]  ;;  %8173 = vmatpush.bf16.msra.mxu3 %v11854_v29  ;;  %8147 = vmatpush.bf16.msra.mxu1 %v10702_v42 }
 0x582   :  { %v14750_v61 = vld [vmem:[#allocation7 + $0x534] sm:$0xf]  ;;  %v10126_v50 = vor.u32 %v14622_v34, %v10123_v23 }
 0x583   :  { %v10635_v54 = vld [vmem:[#allocation7 + $0x570] sm:$0xf0]  ;;  %8160 = vmatpush.bf16.msra.mxu2 %v11278_v4 }
 0x584   :  { %v14894_v15 = vld [vmem:[#allocation7 + $0x9b4] sm:$0xf]  ;;  %v10638_v17 = vor.u32 %v14750_v61, %v10635_v54  ;;  %8134 = vmatpush.bf16.msra.mxu0 %v10126_v50 }
 0x585   :  { %v11211_v13 = vld [vmem:[#allocation7 + $0x9f0] sm:$0xf0]  ;;  %8174 = vmatpush.bf16.msra.mxu3 %v11790_v40  ;;  %v7886_v40 = vpop.f32.mrf.mxu2 }
 0x586   :  { %v15022_v2 = vld [vmem:[#allocation7 + $0xdb4] sm:$0xf]  ;;  %v11214_v33 = vor.u32 %v14894_v15, %v11211_v13  ;;  %8148 = vmatpush.bf16.msra.mxu1 %v10638_v17 }
 0x587   :  { %v11723_v44 = vld [vmem:[#allocation7 + $0xdf0] sm:$0xf0] }
 0x588   :  { %v14606_v36 = vld [vmem:[#allocation7 + $0xb4] sm:$0xf]  ;;  %v11726_v57 = vor.u32 %v15022_v2, %v11723_v44  ;;  %8161 = vmatpush.bf16.msra.mxu2 %v11214_v33 }
 0x589   :  { %v10059_v28 = vld [vmem:[#allocation7 + $0xf0] sm:$0xf0] }
 0x58a   :  { %v14734_v24 = vld [vmem:[#allocation7 + $0x4b4] sm:$0xf]  ;;  %v10062_v41 = vor.u32 %v14606_v36, %v10059_v28  ;;  %8175 = vmatpush.bf16.msra.mxu3 %v11726_v57  ;;  %v7887_v36 = vadd.f32 %v7886_v40, %v7873_v19 }
 0x58b   :  { %v10571_v49 = vld [vmem:[#allocation7 + $0x4f0] sm:$0xf0] }
 0x58c   :  { %v14878_v29 = vld [vmem:[#allocation7 + $0x934] sm:$0xf]  ;;  %v10574_v5 = vor.u32 %v14734_v24, %v10571_v49  ;;  %8135 = vmatpush.bf16.msra.mxu0 %v10062_v41  ;;  %v7900_v24 = vpop.f32.mrf.mxu3 }
 0x58d   :  { %v11147_v38 = vld [vmem:[#allocation7 + $0x970] sm:$0xf0] }
 0x58e   :  { %v15006_v45 = vld [vmem:[#allocation7 + $0xd34] sm:$0xf]  ;;  %v11150_v61 = vor.u32 %v14878_v29, %v11147_v38  ;;  %8149 = vmatpush.bf16.msra.mxu1 %v10574_v5  ;;  %v16437_v29 = vadd.f32 %v7900_v24, %v7887_v36  ;;  %v16440_v36 = vpop.f32.mrf.mxu0 }
 0x58f   :  { %v11659_v12 = vld [vmem:[#allocation7 + $0xd70] sm:$0xf0]  ;;  %16820 = vst [vmem:[#allocation96_spill] sm:$0xff] %v16440_v36 }
 0x590   :  { %v14590_v46 = vld [vmem:[#allocation7 + $0x34] sm:$0xf]  ;;  %v11662_v13 = vor.u32 %v15006_v45, %v11659_v12  ;;  %16819 = vst [vmem:[#allocation95_spill] sm:$0xff] %v16437_v29  ;;  %8162 = vmatpush.bf16.msra.mxu2 %v11150_v61 }
 0x591   :  { %v9995_v34 = vld [vmem:[#allocation7 + $0x70] sm:$0xf0] }
 0x592   :  { %v14718_v42 = vld [vmem:[#allocation7 + $0x434] sm:$0xf]  ;;  %v9998_v28 = vor.u32 %v14590_v46, %v9995_v34  ;;  %8176 = vmatpush.bf16.msra.mxu3 %v11662_v13 }
 0x593   :  { %v10507_v23 = vld [vmem:[#allocation7 + $0x470] sm:$0xf0] }
 0x594   :  { %v15214_v4 = vld [vmem:[#allocation7 + $0x13b4] sm:$0xf]  ;;  %v10510_v49 = vor.u32 %v14718_v42, %v10507_v23  ;;  %8136 = vmatpush.bf16.msra.mxu0 %v9998_v28 }
 0x595   :  { %v12491_v54 = vld [vmem:[#allocation7 + $0x13f0] sm:$0xf0] }
 0x596   :  { %v15342_v15 = vld [vmem:[#allocation7 + $0x17b4] sm:$0xf]  ;;  %v12494_v53 = vor.u32 %v15214_v4, %v12491_v54  ;;  %8150 = vmatpush.bf16.msra.mxu1 %v10510_v49 }
 0x597   :  { %v13003_v2 = vld [vmem:[#allocation7 + $0x17f0] sm:$0xf0]  ;;  %8137 = vmatmul.bf16.vlgmr.msra.gmra.mxu0 %v16050_v59 }
 0x598   :  { %v14862_v44 = vld [vmem:[#allocation7 + $0x8b4] sm:$0xf]  ;;  %v13006_v38 = vor.u32 %v15342_v15, %v13003_v2  ;;  %8185 = vmatpush.bf16.msrb.mxu0 %v12494_v53 }
 0x599   :  { %v11083_v50 = vld [vmem:[#allocation7 + $0x8f0] sm:$0xf0]  ;;  %8151 = vmatmul.bf16.vlgmr.msra.gmra.mxu1 %v16052_v0 }
 0x59a   :  { %v14990_v63 = vld [vmem:[#allocation7 + $0xcb4] sm:$0xf]  ;;  %v11086_v57 = vor.u32 %v14862_v44, %v11083_v50  ;;  %8199 = vmatpush.bf16.msrb.mxu1 %v13006_v38 }
 0x59b   :  { %v11595_v17 = vld [vmem:[#allocation7 + $0xcf0] sm:$0xf0] }
 0x59c   :  { %v15198_v33 = vld [vmem:[#allocation7 + $0x1334] sm:$0xf]  ;;  %v11598_v1 = vor.u32 %v14990_v63, %v11595_v17  ;;  %8163 = vmatpush.bf16.msra.mxu2 %v11086_v57 }
 0x59d   :  { %v12427_v58 = vld [vmem:[#allocation7 + $0x1370] sm:$0xf0] }
 0x59e   :  { %v15326_v45 = vld [vmem:[#allocation7 + $0x1734] sm:$0xf]  ;;  %v12430_v42 = vor.u32 %v15198_v33, %v12427_v58  ;;  %8177 = vmatpush.bf16.msra.mxu3 %v11598_v1  ;;  %v16443_v33 = vpop.f32.mrf.mxu1 }
 0x59f   :  { %v12939_v12 = vld [vmem:[#allocation7 + $0x1770] sm:$0xf0]  ;;  %16821 = vst [vmem:[#allocation97_spill] sm:$0xff] %v16443_v33  ;;  %v14695_v33 = vld [vmem:[#allocation7 + $0x374] sm:$0xf0] }
 0x5a0   :  { %v14846_v19 = vld [vmem:[#allocation7 + $0x834] sm:$0xf]  ;;  %v12942_v61 = vor.u32 %v15326_v45, %v12939_v12  ;;  %8186 = vmatpush.bf16.msrb.mxu0 %v12430_v42 }
 0x5a1   :  { %v11019_v41 = vld [vmem:[#allocation7 + $0x870] sm:$0xf0] }
 0x5a2   :  { %v14974_v46 = vld [vmem:[#allocation7 + $0xc34] sm:$0xf]  ;;  %v11022_v54 = vor.u32 %v14846_v19, %v11019_v41  ;;  %8200 = vmatpush.bf16.msrb.mxu1 %v12942_v61 }
 0x5a3   :  { %v11531_v34 = vld [vmem:[#allocation7 + $0xc70] sm:$0xf0] }
 0x5a4   :  { %v15470_v40 = vld [vmem:[#allocation7 + $0x1bb4] sm:$0xf]  ;;  %v11534_v63 = vor.u32 %v14974_v46, %v11531_v34  ;;  %8164 = vmatpush.bf16.msra.mxu2 %v11022_v54 }
 0x5a5   :  { %v13515_v5 = vld [vmem:[#allocation7 + $0x1bf0] sm:$0xf0] }
 0x5a6   :  { %v15598_v23 = vld [vmem:[#allocation7 + $0x1fb4] sm:$0xf]  ;;  %v13518_v13 = vor.u32 %v15470_v40, %v13515_v5  ;;  %8178 = vmatpush.bf16.msra.mxu3 %v11534_v63  ;;  %v16739_v40 = vperm.slane %v16412_v16, 3 }
 0x5a7   :  { %v14027_v4 = vld [vmem:[#allocation7 + $0x1ff0] sm:$0xf0]  ;;  %8165 = vmatmul.bf16.vlgmr.msra.gmra.mxu2 %v16058_v26 }
 0x5a8   :  { %v15182_v15 = vld [vmem:[#allocation7 + $0x12b4] sm:$0xf]  ;;  %v14030_v58 = vor.u32 %v15598_v23, %v14027_v4  ;;  %8213 = vmatpush.bf16.msrb.mxu2 %v13518_v13  ;;  %v7914_v13 = vpop.f32.mrf.mxu0 }
 0x5a9   :  { %v12363_v2 = vld [vmem:[#allocation7 + $0x12f0] sm:$0xf0]  ;;  %8179 = vmatmul.bf16.vlgmr.msra.gmra.mxu3 %v16060_v32 }
 0x5aa   :  { %v15310_v44 = vld [vmem:[#allocation7 + $0x16b4] sm:$0xf]  ;;  %v12366_v17 = vor.u32 %v15182_v15, %v12363_v2  ;;  %8227 = vmatpush.bf16.msrb.mxu3 %v14030_v58 }
 0x5ab   :  { %v12875_v50 = vld [vmem:[#allocation7 + $0x16f0] sm:$0xf0] }
 0x5ac   :  { %v15454_v53 = vld [vmem:[#allocation7 + $0x1b34] sm:$0xf]  ;;  %v12878_v1 = vor.u32 %v15310_v44, %v12875_v50  ;;  %8187 = vmatpush.bf16.msrb.mxu0 %v12366_v17 }
 0x5ad   :  { %v13451_v28 = vld [vmem:[#allocation7 + $0x1b70] sm:$0xf0] }
 0x5ae   :  { %v15582_v24 = vld [vmem:[#allocation7 + $0x1f34] sm:$0xf]  ;;  %v13454_v45 = vor.u32 %v15454_v53, %v13451_v28  ;;  %8201 = vmatpush.bf16.msrb.mxu1 %v12878_v1  ;;  %v7915_v53 = vadd.f32 %v7914_v13, %v16739_v40  ;;  %v16452_v13 = vpop.f32.mrf.mxu3 }
 0x5af   :  { %v13963_v49 = vld [vmem:[#allocation7 + $0x1f70] sm:$0xf0]  ;;  %16823 = vst [vmem:[#allocation99_spill] sm:$0xff] %v16452_v13 }
 0x5b0   :  { %v15166_v38 = vld [vmem:[#allocation7 + $0x1234] sm:$0xf]  ;;  %v13966_v41 = vor.u32 %v15582_v24, %v13963_v49  ;;  %8214 = vmatpush.bf16.msrb.mxu2 %v13454_v45  ;;  %v7928_v49 = vpop.f32.mrf.mxu1 }
 0x5b1   :  { %v12299_v57 = vld [vmem:[#allocation7 + $0x1270] sm:$0xf0]  ;;  %v7929_v45 = vadd.f32 %v7928_v49, %v7915_v53 }
 0x5b2   :  { %v15294_v12 = vld [vmem:[#allocation7 + $0x1634] sm:$0xf]  ;;  %v12302_v5 = vor.u32 %v15166_v38, %v12299_v57  ;;  %8228 = vmatpush.bf16.msrb.mxu3 %v13966_v41 }
 0x5b3   :  { %v12811_v19 = vld [vmem:[#allocation7 + $0x1670] sm:$0xf0] }
 0x5b4   :  { %v15438_v46 = vld [vmem:[#allocation7 + $0x1ab4] sm:$0xf]  ;;  %v12814_v4 = vor.u32 %v15294_v12, %v12811_v19  ;;  %8188 = vmatpush.bf16.msrb.mxu0 %v12302_v5 }
 0x5b5   :  { %v13387_v34 = vld [vmem:[#allocation7 + $0x1af0] sm:$0xf0] }
 0x5b6   :  { %v15566_v42 = vld [vmem:[#allocation7 + $0x1eb4] sm:$0xf]  ;;  %v13390_v15 = vor.u32 %v15438_v46, %v13387_v34  ;;  %8202 = vmatpush.bf16.msrb.mxu1 %v12814_v4  ;;  %v16450_v46 = vpop.f32.mrf.mxu2 }
 0x5b7   :  { %v13899_v23 = vld [vmem:[#allocation7 + $0x1ef0] sm:$0xf0]  ;;  %16822 = vst [vmem:[#allocation98_spill] sm:$0xff] %v16450_v46 }
 0x5b8   :  { %v15150_v61 = vld [vmem:[#allocation7 + $0x11b4] sm:$0xf]  ;;  %v13902_v44 = vor.u32 %v15566_v42, %v13899_v23  ;;  %8215 = vmatpush.bf16.msrb.mxu2 %v13390_v15 }
 0x5b9   :  { %v12235_v54 = vld [vmem:[#allocation7 + $0x11f0] sm:$0xf0] }
 0x5ba   :  { %v15278_v2 = vld [vmem:[#allocation7 + $0x15b4] sm:$0xf]  ;;  %v12238_v28 = vor.u32 %v15150_v61, %v12235_v54  ;;  %8229 = vmatpush.bf16.msrb.mxu3 %v13902_v44 }
 0x5bb   :  { %v12747_v63 = vld [vmem:[#allocation7 + $0x15f0] sm:$0xf0] }
 0x5bc   :  { %v15422_v50 = vld [vmem:[#allocation7 + $0x1a34] sm:$0xf]  ;;  %v12750_v1 = vor.u32 %v15278_v2, %v12747_v63  ;;  %8189 = vmatpush.bf16.msrb.mxu0 %v12238_v28 }
 0x5bd   :  { %v13323_v58 = vld [vmem:[#allocation7 + $0x1a70] sm:$0xf0] }
 0x5be   :  { %v15550_v17 = vld [vmem:[#allocation7 + $0x1e34] sm:$0xf]  ;;  %v13326_v12 = vor.u32 %v15422_v50, %v13323_v58  ;;  %8203 = vmatpush.bf16.msrb.mxu1 %v12750_v1 }
 0x5bf   :  { %v13835_v24 = vld [vmem:[#allocation7 + $0x1e70] sm:$0xf0] }
 0x5c0   :  { %v15134_v38 = vld [vmem:[#allocation7 + $0x1134] sm:$0xf]  ;;  %v13838_v34 = vor.u32 %v15550_v17, %v13835_v24  ;;  %8216 = vmatpush.bf16.msrb.mxu2 %v13326_v12  ;;  %v10449_v12 = vld [vmem:[#allocation7 + $0x3b8] sm:$0xf] }
 0x5c1   :  { %v12171_v57 = vld [vmem:[#allocation7 + $0x1170] sm:$0xf0] }
 0x5c2   :  { %v15262_v19 = vld [vmem:[#allocation7 + $0x1534] sm:$0xf]  ;;  %v12174_v5 = vor.u32 %v15134_v38, %v12171_v57  ;;  %8230 = vmatpush.bf16.msrb.mxu3 %v13838_v34  ;;  %v7942_v34 = vpop.f32.mrf.mxu2 }
 0x5c3   :  { %v12683_v41 = vld [vmem:[#allocation7 + $0x1570] sm:$0xf0] }
 0x5c4   :  { %v15406_v42 = vld [vmem:[#allocation7 + $0x19b4] sm:$0xf]  ;;  %v12686_v4 = vor.u32 %v15262_v19, %v12683_v41  ;;  %8190 = vmatpush.bf16.msrb.mxu0 %v12174_v5 }
 0x5c5   :  { %v13259_v23 = vld [vmem:[#allocation7 + $0x19f0] sm:$0xf0] }
 0x5c6   :  { %v15534_v61 = vld [vmem:[#allocation7 + $0x1db4] sm:$0xf]  ;;  %v13262_v15 = vor.u32 %v15406_v42, %v13259_v23  ;;  %8204 = vmatpush.bf16.msrb.mxu1 %v12686_v4  ;;  %v14711_v42 = vld [vmem:[#allocation7 + $0x3f4] sm:$0xf0] }
 0x5c7   :  { %v13771_v54 = vld [vmem:[#allocation7 + $0x1df0] sm:$0xf0]  ;;  %v10961_v23 = vld [vmem:[#allocation7 + $0x7b8] sm:$0xf]  ;;  %v10450_v46 = vor.u32 %v14711_v42, %v10449_v12 }
 0x5c8   :  { %v15118_v2 = vld [vmem:[#allocation7 + $0x10b4] sm:$0xf]  ;;  %v13774_v53 = vor.u32 %v15534_v61, %v13771_v54  ;;  %8217 = vmatpush.bf16.msrb.mxu2 %v13262_v15  ;;  %v14839_v54 = vld [vmem:[#allocation7 + $0x7f4] sm:$0xf0] }
 0x5c9   :  { %v12107_v63 = vld [vmem:[#allocation7 + $0x10f0] sm:$0xf0]  ;;  %v10385_v15 = vld [vmem:[#allocation7 + $0x338] sm:$0xf] }
 0x5ca   :  { %v15246_v50 = vld [vmem:[#allocation7 + $0x14b4] sm:$0xf]  ;;  %v12110_v24 = vor.u32 %v15118_v2, %v12107_v63  ;;  %8231 = vmatpush.bf16.msrb.mxu3 %v13774_v53  ;;  %v7943_v2 = vadd.f32 %v7942_v34, %v7929_v45  ;;  %v11473_v34 = vld [vmem:[#allocation7 + $0xbb8] sm:$0xf] }
 0x5cb   :  { %v12619_v58 = vld [vmem:[#allocation7 + $0x14f0] sm:$0xf0]  ;;  %v15095_v12 = vld [vmem:[#allocation7 + $0xff4] sm:$0xf0] }
 0x5cc   :  { %v15390_v44 = vld [vmem:[#allocation7 + $0x1934] sm:$0xf]  ;;  %v12622_v57 = vor.u32 %v15246_v50, %v12619_v58  ;;  %8191 = vmatpush.bf16.msrb.mxu0 %v12110_v24  ;;  %v7956_v50 = vpop.f32.mrf.mxu3  ;;  %v10321_v42 = vld [vmem:[#allocation7 + $0x2b8] sm:$0xf] }
 0x5cd   :  { %v13195_v17 = vld [vmem:[#allocation7 + $0x1970] sm:$0xf0] }
 0x5ce   :  { %v15518_v28 = vld [vmem:[#allocation7 + $0x1d34] sm:$0xf]  ;;  %v13198_v41 = vor.u32 %v15390_v44, %v13195_v17  ;;  %8205 = vmatpush.bf16.msrb.mxu1 %v12622_v57  ;;  %v16454_v44 = vadd.f32 %v7956_v50, %v7943_v2  ;;  %v10962_v17 = vor.u32 %v14839_v54, %v10961_v23  ;;  %v14967_v57 = vld [vmem:[#allocation7 + $0xbf4] sm:$0xf0]  ;;  %v16457_v2 = vpop.f32.mrf.mxu0 }
 0x5cf   :  { %v13707_v49 = vld [vmem:[#allocation7 + $0x1d70] sm:$0xf0]  ;;  %v14679_v23 = vld [vmem:[#allocation7 + $0x2f4] sm:$0xf0]  ;;  %16824 = vst [vmem:[#allocation100_spill] sm:$0xff] %v16457_v2 }
 0x5d0   :  { %v15102_v38 = vld [vmem:[#allocation7 + $0x1034] sm:$0xf]  ;;  %v13710_v61 = vor.u32 %v15518_v28, %v13707_v49  ;;  %8218 = vmatpush.bf16.msrb.mxu2 %v13198_v41  ;;  %v10897_v28 = vld [vmem:[#allocation7 + $0x738] sm:$0xf] }
 0x5d1   :  { %v12043_v40 = vld [vmem:[#allocation7 + $0x1070] sm:$0xf0]  ;;  %v14823_v49 = vld [vmem:[#allocation7 + $0x774] sm:$0xf0] }
 0x5d2   :  { %v15230_v1 = vld [vmem:[#allocation7 + $0x1434] sm:$0xf]  ;;  %v12046_v63 = vor.u32 %v15102_v38, %v12043_v40  ;;  %8232 = vmatpush.bf16.msrb.mxu3 %v13710_v61  ;;  %v11474_v61 = vor.u32 %v14967_v57, %v11473_v34  ;;  %v10833_v54 = vld [vmem:[#allocation7 + $0x6b8] sm:$0xf] }
 0x5d3   :  { %v12555_v19 = vld [vmem:[#allocation7 + $0x1470] sm:$0xf0]  ;;  %v11921_v50 = vld [vmem:[#allocation7 + $0xf38] sm:$0xf] }
 0x5d4   :  { %v15374_v29 = vld [vmem:[#allocation7 + $0x18b4] sm:$0xf]  ;;  %v12558_v58 = vor.u32 %v15230_v1, %v12555_v19  ;;  %8192 = vmatpush.bf16.msrb.mxu0 %v12046_v63  ;;  %v10386_v1 = vor.u32 %v14695_v33, %v10385_v15  ;;  %v11985_v19 = vld [vmem:[#allocation7 + $0xfb8] sm:$0xf]  ;;  %v16460_v15 = vpop.f32.mrf.mxu1 }
 0x5d5   :  { %v13131_v5 = vld [vmem:[#allocation7 + $0x18f0] sm:$0xf0]  ;;  %v11986_v33 = vor.u32 %v15095_v12, %v11985_v19  ;;  %v14951_v63 = vld [vmem:[#allocation7 + $0xb74] sm:$0xf0]  ;;  %16825 = vst [vmem:[#allocation101_spill] sm:$0xff] %v16460_v15 }
 0x5d6   :  { %v15502_v13 = vld [vmem:[#allocation7 + $0x1cb4] sm:$0xf]  ;;  %v13134_v53 = vor.u32 %v15374_v29, %v13131_v5  ;;  %8206 = vmatpush.bf16.msrb.mxu1 %v12558_v58  ;;  %v10898_v29 = vor.u32 %v14823_v49, %v10897_v28  ;;  %v14807_v5 = vld [vmem:[#allocation7 + $0x6f4] sm:$0xf0] }
 0x5d7   :  { %v13643_v4 = vld [vmem:[#allocation7 + $0x1cf0] sm:$0xf0]  ;;  %8193 = vmatmul.bf16.vlgmr.msrb.gmra.mxu0 %v16066_v8  ;;  %v15079_v58 = vld [vmem:[#allocation7 + $0xf74] sm:$0xf0] }
 0x5d8   :  { %v13646_v36 = vor.u32 %v15502_v13, %v13643_v4  ;;  %v15358_v45 = vld [vmem:[#allocation7 + $0x1834] sm:$0xf]  ;;  %8241 = vmatpush.bf16.msra.mxu0 %v10450_v46  ;;  %8219 = vmatpush.bf16.msrb.mxu2 %v13134_v53  ;;  %v11409_v46 = vld [vmem:[#allocation7 + $0xb38] sm:$0xf]  ;;  %v10322_v4 = vor.u32 %v14679_v23, %v10321_v42 }
 0x5d9   :  { %v13067_v24 = vld [vmem:[#allocation7 + $0x1870] sm:$0xf0]  ;;  %8207 = vmatmul.bf16.vlgmr.msrb.gmra.mxu1 %v16068_v51  ;;  %v14663_v53 = vld [vmem:[#allocation7 + $0x274] sm:$0xf0]  ;;  %v11410_v28 = vor.u32 %v14951_v63, %v11409_v46 }
 0x5da   :  { %v15486_v40 = vld [vmem:[#allocation7 + $0x1c34] sm:$0xf]  ;;  %8255 = vmatpush.bf16.msra.mxu1 %v10962_v17  ;;  %v13070_v41 = vor.u32 %v15358_v45, %v13067_v24  ;;  %8233 = vmatpush.bf16.msrb.mxu3 %v13646_v36  ;;  %v10834_v36 = vor.u32 %v14807_v5, %v10833_v54  ;;  %v10257_v17 = vld [vmem:[#allocation7 + $0x238] sm:$0xf]  ;;  %v11922_v24 = vor.u32 %v15079_v58, %v11921_v50 }
 0x5db   :  { %v13579_v38 = vld [vmem:[#allocation7 + $0x1c70] sm:$0xf0]  ;;  %v10769_v49 = vld [vmem:[#allocation7 + $0x638] sm:$0xf]  ;;  %v10258_v34 = vor.u32 %v14663_v53, %v10257_v17 }
 0x5dc   :  { %v13582_v13 = vor.u32 %v15486_v40, %v13579_v38  ;;  %8242 = vmatpush.bf16.msra.mxu0 %v10386_v1  ;;  %8220 = vmatpush.bf16.msrb.mxu2 %v13070_v41  ;;  %v14791_v45 = vld [vmem:[#allocation7 + $0x674] sm:$0xf0]  ;;  %v7984_v50 = vpop.f32.mrf.mxu1 }
 0x5dd   :  { %v11345_v40 = vld [vmem:[#allocation7 + $0xab8] sm:$0xf]  ;;  %v10770_v19 = vor.u32 %v14791_v45, %v10769_v49 }
 0x5de   :  { %8256 = vmatpush.bf16.msra.mxu1 %v10898_v29  ;;  %8234 = vmatpush.bf16.msrb.mxu3 %v13582_v13  ;;  %v14935_v38 = vld [vmem:[#allocation7 + $0xaf4] sm:$0xf0]  ;;  %v7970_v13 = vpop.f32.mrf.mxu0 }
 0x5df   :  { %8221 = vmatmul.bf16.vlgmr.msrb.gmra.mxu2 %v16072_v43  ;;  %v11857_v57 = vld [vmem:[#allocation7 + $0xeb8] sm:$0xf]  ;;  %v11346_v41 = vor.u32 %v14935_v38, %v11345_v40 }
 0x5e0   :  { %8269 = vmatpush.bf16.msra.mxu2 %v11474_v61  ;;  %8243 = vmatpush.bf16.msra.mxu0 %v10322_v4  ;;  %v15063_v1 = vld [vmem:[#allocation7 + $0xef4] sm:$0xf0] }
 0x5e1   :  { %8235 = vmatmul.bf16.vlgmr.msrb.gmra.mxu3 %v16074_v48  ;;  %v10193_v12 = vld [vmem:[#allocation7 + $0x1b8] sm:$0xf]  ;;  %v11858_v61 = vor.u32 %v15063_v1, %v11857_v57 }
 0x5e2   :  { %8283 = vmatpush.bf16.msra.mxu3 %v11986_v33  ;;  %8257 = vmatpush.bf16.msra.mxu1 %v10834_v36  ;;  %v14647_v29 = vld [vmem:[#allocation7 + $0x1f4] sm:$0xf0]  ;;  %v7971_v33 = vadd.f32 %v7970_v13, %v16454_v44 }
 0x5e3   :  { %v10705_v42 = vld [vmem:[#allocation7 + $0x5b8] sm:$0xf]  ;;  %v10194_v46 = vor.u32 %v14647_v29, %v10193_v12  ;;  %v16467_v12 = vpop.f32.mrf.mxu3 }
 0x5e4   :  { %8270 = vmatpush.bf16.msra.mxu2 %v11410_v28  ;;  %v14775_v23 = vld [vmem:[#allocation7 + $0x5f4] sm:$0xf0]  ;;  %8244 = vmatpush.bf16.msra.mxu0 %v10258_v34  ;;  %v7985_v53 = vadd.f32 %v7984_v50, %v7971_v33  ;;  %16827 = vst [vmem:[#allocation103_spill] sm:$0xff] %v16467_v12 }
 0x5e5   :  { %v11281_v54 = vld [vmem:[#allocation7 + $0xa38] sm:$0xf]  ;;  %v10706_v58 = vor.u32 %v14775_v23, %v10705_v42 }
 0x5e6   :  { %8284 = vmatpush.bf16.msra.mxu3 %v11922_v24  ;;  %v14919_v5 = vld [vmem:[#allocation7 + $0xa74] sm:$0xf0]  ;;  %8258 = vmatpush.bf16.msra.mxu1 %v10770_v19  ;;  %v16465_v24 = vpop.f32.mrf.mxu2 }
 0x5e7   :  { %v11793_v63 = vld [vmem:[#allocation7 + $0xe38] sm:$0xf]  ;;  %v11282_v28 = vor.u32 %v14919_v5, %v11281_v54  ;;  %16826 = vst [vmem:[#allocation102_spill] sm:$0xff] %v16465_v24 }
 0x5e8   :  { %v15047_v4 = vld [vmem:[#allocation7 + $0xe74] sm:$0xf0]  ;;  %8271 = vmatpush.bf16.msra.mxu2 %v11346_v41  ;;  %8245 = vmatpush.bf16.msra.mxu0 %v10194_v46 }
 0x5e9   :  { %v10129_v36 = vld [vmem:[#allocation7 + $0x138] sm:$0xf]  ;;  %v11794_v40 = vor.u32 %v15047_v4, %v11793_v63 }
 0x5ea   :  { %v14631_v17 = vld [vmem:[#allocation7 + $0x174] sm:$0xf0]  ;;  %8285 = vmatpush.bf16.msra.mxu3 %v11858_v61  ;;  %8259 = vmatpush.bf16.msra.mxu1 %v10706_v58 }
 0x5eb   :  { %v10641_v49 = vld [vmem:[#allocation7 + $0x538] sm:$0xf]  ;;  %v10130_v34 = vor.u32 %v14631_v17, %v10129_v36 }
 0x5ec   :  { %v14759_v45 = vld [vmem:[#allocation7 + $0x574] sm:$0xf0]  ;;  %8272 = vmatpush.bf16.msra.mxu2 %v11282_v28 }
 0x5ed   :  { %v11217_v38 = vld [vmem:[#allocation7 + $0x9b8] sm:$0xf]  ;;  %v10642_v19 = vor.u32 %v14759_v45, %v10641_v49  ;;  %8246 = vmatpush.bf16.msra.mxu0 %v10130_v34 }
 0x5ee   :  { %v14903_v44 = vld [vmem:[#allocation7 + $0x9f4] sm:$0xf0]  ;;  %8286 = vmatpush.bf16.msra.mxu3 %v11794_v40  ;;  %v7998_v40 = vpop.f32.mrf.mxu2 }
 0x5ef   :  { %v11729_v57 = vld [vmem:[#allocation7 + $0xdb8] sm:$0xf]  ;;  %v11218_v41 = vor.u32 %v14903_v44, %v11217_v38  ;;  %8260 = vmatpush.bf16.msra.mxu1 %v10642_v19 }
 0x5f0   :  { %v15031_v1 = vld [vmem:[#allocation7 + $0xdf4] sm:$0xf0] }
 0x5f1   :  { %v10065_v29 = vld [vmem:[#allocation7 + $0xb8] sm:$0xf]  ;;  %v11730_v54 = vor.u32 %v15031_v1, %v11729_v57  ;;  %8273 = vmatpush.bf16.msra.mxu2 %v11218_v41 }
 0x5f2   :  { %v14615_v42 = vld [vmem:[#allocation7 + $0xf4] sm:$0xf0] }
 0x5f3   :  { %v10577_v23 = vld [vmem:[#allocation7 + $0x4b8] sm:$0xf]  ;;  %v10066_v33 = vor.u32 %v14615_v42, %v10065_v29  ;;  %8287 = vmatpush.bf16.msra.mxu3 %v11730_v54  ;;  %v7999_v29 = vadd.f32 %v7998_v40, %v7985_v53 }
 0x5f4   :  { %v14743_v13 = vld [vmem:[#allocation7 + $0x4f4] sm:$0xf0] }
 0x5f5   :  { %v11153_v61 = vld [vmem:[#allocation7 + $0x938] sm:$0xf]  ;;  %v10578_v50 = vor.u32 %v14743_v13, %v10577_v23  ;;  %8247 = vmatpush.bf16.msra.mxu0 %v10066_v33  ;;  %v8012_v23 = vpop.f32.mrf.mxu3 }
 0x5f6   :  { %v14887_v5 = vld [vmem:[#allocation7 + $0x974] sm:$0xf0] }
 0x5f7   :  { %v11665_v46 = vld [vmem:[#allocation7 + $0xd38] sm:$0xf]  ;;  %v11154_v49 = vor.u32 %v14887_v5, %v11153_v61  ;;  %8261 = vmatpush.bf16.msra.mxu1 %v10578_v50  ;;  %v16469_v61 = vadd.f32 %v8012_v23, %v7999_v29  ;;  %v16472_v29 = vpop.f32.mrf.mxu0 }
 0x5f8   :  { %v15015_v63 = vld [vmem:[#allocation7 + $0xd74] sm:$0xf0]  ;;  %16829 = vst [vmem:[#allocation105_spill] sm:$0xff] %v16472_v29 }
 0x5f9   :  { %v10001_v4 = vld [vmem:[#allocation7 + $0x38] sm:$0xf]  ;;  %v11666_v44 = vor.u32 %v15015_v63, %v11665_v46  ;;  %16828 = vst [vmem:[#allocation104_spill] sm:$0xff] %v16469_v61  ;;  %8274 = vmatpush.bf16.msra.mxu2 %v11154_v49 }
 0x5fa   :  { %v14599_v36 = vld [vmem:[#allocation7 + $0x74] sm:$0xf0] }
 0x5fb   :  { %v10513_v58 = vld [vmem:[#allocation7 + $0x438] sm:$0xf]  ;;  %v10002_v42 = vor.u32 %v14599_v36, %v10001_v4  ;;  %8288 = vmatpush.bf16.msra.mxu3 %v11666_v44 }
 0x5fc   :  { %v14727_v17 = vld [vmem:[#allocation7 + $0x474] sm:$0xf0] }
 0x5fd   :  { %v12497_v28 = vld [vmem:[#allocation7 + $0x13b8] sm:$0xf]  ;;  %v10514_v13 = vor.u32 %v14727_v17, %v10513_v58  ;;  %8248 = vmatpush.bf16.msra.mxu0 %v10002_v42 }
 0x5fe   :  { %v15223_v45 = vld [vmem:[#allocation7 + $0x13f4] sm:$0xf0] }
 0x5ff   :  { %v13009_v38 = vld [vmem:[#allocation7 + $0x17b8] sm:$0xf]  ;;  %v12498_v24 = vor.u32 %v15223_v45, %v12497_v28  ;;  %8262 = vmatpush.bf16.msra.mxu1 %v10514_v13 }
 0x600   :  { %v15351_v57 = vld [vmem:[#allocation7 + $0x17f4] sm:$0xf0]  ;;  %8249 = vmatmul.bf16.vlgmr.msra.gmra.mxu0 %v16050_v59 }
 0x601   :  { %v11089_v1 = vld [vmem:[#allocation7 + $0x8b8] sm:$0xf]  ;;  %v13010_v5 = vor.u32 %v15351_v57, %v13009_v38  ;;  %8297 = vmatpush.bf16.msrb.mxu0 %v12498_v24 }
 0x602   :  { %v14871_v34 = vld [vmem:[#allocation7 + $0x8f4] sm:$0xf0]  ;;  %8263 = vmatmul.bf16.vlgmr.msra.gmra.mxu1 %v16052_v0 }
 0x603   :  { %v11601_v12 = vld [vmem:[#allocation7 + $0xcb8] sm:$0xf]  ;;  %v11090_v54 = vor.u32 %v14871_v34, %v11089_v1  ;;  %8311 = vmatpush.bf16.msrb.mxu1 %v13010_v5 }
 0x604   :  { %v14999_v19 = vld [vmem:[#allocation7 + $0xcf4] sm:$0xf0] }
 0x605   :  { %v12433_v41 = vld [vmem:[#allocation7 + $0x1338] sm:$0xf]  ;;  %v11602_v2 = vor.u32 %v14999_v19, %v11601_v12  ;;  %8275 = vmatpush.bf16.msra.mxu2 %v11090_v54  ;;  %v16475_v19 = vpop.f32.mrf.mxu1 }
 0x606   :  { %v15207_v15 = vld [vmem:[#allocation7 + $0x1374] sm:$0xf0]  ;;  %16830 = vst [vmem:[#allocation106_spill] sm:$0xff] %v16475_v19 }
 0x607   :  { %v12945_v46 = vld [vmem:[#allocation7 + $0x1738] sm:$0xf]  ;;  %v12434_v58 = vor.u32 %v15207_v15, %v12433_v41  ;;  %8289 = vmatpush.bf16.msra.mxu3 %v11602_v2 }
 0x608   :  { %v15335_v63 = vld [vmem:[#allocation7 + $0x1774] sm:$0xf0] }
 0x609   :  { %v11025_v53 = vld [vmem:[#allocation7 + $0x838] sm:$0xf]  ;;  %v12946_v49 = vor.u32 %v15335_v63, %v12945_v46  ;;  %8298 = vmatpush.bf16.msrb.mxu0 %v12434_v58 }
 0x60a   :  { %v14855_v33 = vld [vmem:[#allocation7 + $0x874] sm:$0xf0] }
 0x60b   :  { %v11537_v4 = vld [vmem:[#allocation7 + $0xc38] sm:$0xf]  ;;  %v11026_v45 = vor.u32 %v14855_v33, %v11025_v53  ;;  %8312 = vmatpush.bf16.msrb.mxu1 %v12946_v49 }
 0x60c   :  { %v14983_v36 = vld [vmem:[#allocation7 + $0xc74] sm:$0xf0] }
 0x60d   :  { %v13521_v40 = vld [vmem:[#allocation7 + $0x1bb8] sm:$0xf]  ;;  %v11538_v12 = vor.u32 %v14983_v36, %v11537_v4  ;;  %8276 = vmatpush.bf16.msra.mxu2 %v11026_v45 }
 0x60e   :  { %v15479_v50 = vld [vmem:[#allocation7 + $0x1bf4] sm:$0xf0] }
 0x60f   :  { %v14033_v17 = vld [vmem:[#allocation7 + $0x1fb8] sm:$0xf]  ;;  %v13522_v44 = vor.u32 %v15479_v50, %v13521_v40  ;;  %8290 = vmatpush.bf16.msra.mxu3 %v11538_v12  ;;  %v15758_v40 = vld [vmem:[#allocation8 + $0x8] sm:$0xff] }
 0x610   :  { %v15607_v28 = vld [vmem:[#allocation7 + $0x1ff4] sm:$0xf0]  ;;  %8277 = vmatmul.bf16.vlgmr.msra.gmra.mxu2 %v16058_v26  ;;  %v1533_v50 = vperm.slane %v15758_v40, 4 }
 0x611   :  { %v12369_v38 = vld [vmem:[#allocation7 + $0x12b8] sm:$0xf]  ;;  %v14034_v15 = vor.u32 %v15607_v28, %v14033_v17  ;;  %8325 = vmatpush.bf16.msrb.mxu2 %v13522_v44 }
 0x612   :  { %v15191_v57 = vld [vmem:[#allocation7 + $0x12f4] sm:$0xf0]  ;;  %8291 = vmatmul.bf16.vlgmr.msra.gmra.mxu3 %v16060_v32 }
 0x613   :  { %v12881_v1 = vld [vmem:[#allocation7 + $0x16b8] sm:$0xf]  ;;  %v12370_v23 = vor.u32 %v15191_v57, %v12369_v38  ;;  %8339 = vmatpush.bf16.msrb.mxu3 %v14034_v15 }
 0x614   :  { %v15319_v34 = vld [vmem:[#allocation7 + $0x16f4] sm:$0xf0] }
 0x615   :  { %v13457_v24 = vld [vmem:[#allocation7 + $0x1b38] sm:$0xf]  ;;  %v12882_v2 = vor.u32 %v15319_v34, %v12881_v1  ;;  %8299 = vmatpush.bf16.msrb.mxu0 %v12370_v23  ;;  %v8026_v1 = vpop.f32.mrf.mxu0  ;;  %v8040_v23 = vpop.f32.mrf.mxu1 }
 0x616   :  { %v15463_v42 = vld [vmem:[#allocation7 + $0x1b74] sm:$0xf0] }
 0x617   :  { %v13969_v13 = vld [vmem:[#allocation7 + $0x1f38] sm:$0xf]  ;;  %v13458_v46 = vor.u32 %v15463_v42, %v13457_v24  ;;  %8313 = vmatpush.bf16.msrb.mxu1 %v12882_v2  ;;  %v8027_v42 = vadd.f32 %v8026_v1, %v1533_v50  ;;  %v16481_v1 = vpop.f32.mrf.mxu3 }
 0x618   :  { %v15591_v41 = vld [vmem:[#allocation7 + $0x1f74] sm:$0xf0]  ;;  %16832 = vst [vmem:[#allocation108_spill] sm:$0xff] %v16481_v1 }
 0x619   :  { %v12305_v5 = vld [vmem:[#allocation7 + $0x1238] sm:$0xf]  ;;  %v13970_v33 = vor.u32 %v15591_v41, %v13969_v13  ;;  %8326 = vmatpush.bf16.msrb.mxu2 %v13458_v46 }
 0x61a   :  { %v15175_v54 = vld [vmem:[#allocation7 + $0x1274] sm:$0xf0] }
 0x61b   :  { %v12817_v63 = vld [vmem:[#allocation7 + $0x1638] sm:$0xf]  ;;  %v12306_v58 = vor.u32 %v15175_v54, %v12305_v5  ;;  %8340 = vmatpush.bf16.msrb.mxu3 %v13970_v33  ;;  %v16479_v33 = vpop.f32.mrf.mxu2 }
 0x61c   :  { %v15303_v53 = vld [vmem:[#allocation7 + $0x1674] sm:$0xf0]  ;;  %16831 = vst [vmem:[#allocation107_spill] sm:$0xff] %v16479_v33  ;;  %v10451_v33 = vld [vmem:[#allocation7 + $0x3f8] sm:$0xf0] }
 0x61d   :  { %v13393_v4 = vld [vmem:[#allocation7 + $0x1ab8] sm:$0xf]  ;;  %v12818_v49 = vor.u32 %v15303_v53, %v12817_v63  ;;  %8300 = vmatpush.bf16.msrb.mxu0 %v12306_v58  ;;  %v8041_v53 = vadd.f32 %v8040_v23, %v8027_v42  ;;  %v8028_v42 = vpop.f32.mrf.mxu0  ;;  %v8042_v1 = vpop.f32.mrf.mxu1 }
 0x61e   :  { %v15447_v36 = vld [vmem:[#allocation7 + $0x1af4] sm:$0xf0] }
 0x61f   :  { %v13905_v17 = vld [vmem:[#allocation7 + $0x1eb8] sm:$0xf]  ;;  %v13394_v57 = vor.u32 %v15447_v36, %v13393_v4  ;;  %8314 = vmatpush.bf16.msrb.mxu1 %v12818_v49  ;;  %v8068_v19 = vpop.f32.mrf.mxu3 }
 0x620   :  { %v15575_v28 = vld [vmem:[#allocation7 + $0x1ef4] sm:$0xf0] }
 0x621   :  { %v12241_v45 = vld [vmem:[#allocation7 + $0x11b8] sm:$0xf]  ;;  %v13906_v34 = vor.u32 %v15575_v28, %v13905_v17  ;;  %8327 = vmatpush.bf16.msrb.mxu2 %v13394_v57 }
 0x622   :  { %v15159_v38 = vld [vmem:[#allocation7 + $0x11f4] sm:$0xf0] }
 0x623   :  { %v12753_v12 = vld [vmem:[#allocation7 + $0x15b8] sm:$0xf]  ;;  %v12242_v13 = vor.u32 %v15159_v38, %v12241_v45  ;;  %8341 = vmatpush.bf16.msrb.mxu3 %v13906_v34 }
 0x624   :  { %v15287_v44 = vld [vmem:[#allocation7 + $0x15f4] sm:$0xf0] }
 0x625   :  { %v13329_v15 = vld [vmem:[#allocation7 + $0x1a38] sm:$0xf]  ;;  %v12754_v2 = vor.u32 %v15287_v44, %v12753_v12  ;;  %8301 = vmatpush.bf16.msrb.mxu0 %v12242_v13 }
 0x626   :  { %v15431_v24 = vld [vmem:[#allocation7 + $0x1a74] sm:$0xf0] }
 0x627   :  { %v13841_v41 = vld [vmem:[#allocation7 + $0x1e38] sm:$0xf]  ;;  %v13330_v46 = vor.u32 %v15431_v24, %v13329_v15  ;;  %8315 = vmatpush.bf16.msrb.mxu1 %v12754_v2 }
 0x628   :  { %v15559_v5 = vld [vmem:[#allocation7 + $0x1e74] sm:$0xf0] }
 0x629   :  { %v12177_v54 = vld [vmem:[#allocation7 + $0x1138] sm:$0xf]  ;;  %v13842_v40 = vor.u32 %v15559_v5, %v13841_v41  ;;  %8328 = vmatpush.bf16.msrb.mxu2 %v13330_v46  ;;  %v8029_v5 = vadd.f32 %v8028_v42, %v1533_v50 }
 0x62a   :  { %v15143_v63 = vld [vmem:[#allocation7 + $0x1174] sm:$0xf0] }
 0x62b   :  { %v12689_v4 = vld [vmem:[#allocation7 + $0x1538] sm:$0xf]  ;;  %v12178_v58 = vor.u32 %v15143_v63, %v12177_v54  ;;  %8342 = vmatpush.bf16.msrb.mxu3 %v13842_v40  ;;  %v14703_v40 = vld [vmem:[#allocation7 + $0x3bc] sm:$0xf] }
 0x62c   :  { %v15271_v36 = vld [vmem:[#allocation7 + $0x1574] sm:$0xf0] }
 0x62d   :  { %v13265_v17 = vld [vmem:[#allocation7 + $0x19b8] sm:$0xf]  ;;  %v12690_v38 = vor.u32 %v15271_v36, %v12689_v4  ;;  %8302 = vmatpush.bf16.msrb.mxu0 %v12178_v58  ;;  %v10963_v58 = vld [vmem:[#allocation7 + $0x7f8] sm:$0xf0] }
 0x62e   :  { %v15415_v28 = vld [vmem:[#allocation7 + $0x19f4] sm:$0xf0] }
 0x62f   :  { %v13777_v45 = vld [vmem:[#allocation7 + $0x1db8] sm:$0xf]  ;;  %v13266_v57 = vor.u32 %v15415_v28, %v13265_v17  ;;  %8316 = vmatpush.bf16.msrb.mxu1 %v12690_v38  ;;  %v8043_v17 = vadd.f32 %v8042_v1, %v8029_v5  ;;  %v10454_v1 = vor.u32 %v14703_v40, %v10451_v33  ;;  %v10387_v5 = vld [vmem:[#allocation7 + $0x378] sm:$0xf0] }
 0x630   :  { %v15543_v49 = vld [vmem:[#allocation7 + $0x1df4] sm:$0xf0]  ;;  %v14671_v40 = vld [vmem:[#allocation7 + $0x2bc] sm:$0xf] }
 0x631   :  { %v12113_v12 = vld [vmem:[#allocation7 + $0x10b8] sm:$0xf]  ;;  %v13778_v34 = vor.u32 %v15543_v49, %v13777_v45  ;;  %8329 = vmatpush.bf16.msrb.mxu2 %v13266_v57  ;;  %v14831_v45 = vld [vmem:[#allocation7 + $0x7bc] sm:$0xf]  ;;  %v8054_v49 = vpop.f32.mrf.mxu2 }
 0x632   :  { %v15127_v44 = vld [vmem:[#allocation7 + $0x10f4] sm:$0xf0]  ;;  %v8055_v42 = vadd.f32 %v8054_v49, %v8041_v53  ;;  %v14687_v57 = vld [vmem:[#allocation7 + $0x33c] sm:$0xf] }
 0x633   :  { %v12625_v15 = vld [vmem:[#allocation7 + $0x14b8] sm:$0xf]  ;;  %v12114_v61 = vor.u32 %v15127_v44, %v12113_v12  ;;  %8343 = vmatpush.bf16.msrb.mxu3 %v13778_v34  ;;  %v10390_v33 = vor.u32 %v14687_v57, %v10387_v5 }
 0x634   :  { %v15255_v24 = vld [vmem:[#allocation7 + $0x14f4] sm:$0xf0] }
 0x635   :  { %v13201_v23 = vld [vmem:[#allocation7 + $0x1938] sm:$0xf]  ;;  %v12626_v2 = vor.u32 %v15255_v24, %v12625_v15  ;;  %8303 = vmatpush.bf16.msrb.mxu0 %v12114_v61 }
 0x636   :  { %v15399_v41 = vld [vmem:[#allocation7 + $0x1974] sm:$0xf0] }
 0x637   :  { %v13713_v13 = vld [vmem:[#allocation7 + $0x1d38] sm:$0xf]  ;;  %v13202_v28 = vor.u32 %v15399_v41, %v13201_v23  ;;  %8317 = vmatpush.bf16.msrb.mxu1 %v12626_v2  ;;  %v16483_v23 = vadd.f32 %v8068_v19, %v8055_v42  ;;  %v10966_v41 = vor.u32 %v14831_v45, %v10963_v58  ;;  %v11475_v2 = vld [vmem:[#allocation7 + $0xbf8] sm:$0xf0] }
 0x638   :  { %v15527_v54 = vld [vmem:[#allocation7 + $0x1d74] sm:$0xf0]  ;;  %v15087_v19 = vld [vmem:[#allocation7 + $0xfbc] sm:$0xf] }
 0x639   :  { %v12049_v63 = vld [vmem:[#allocation7 + $0x1038] sm:$0xf]  ;;  %v13714_v50 = vor.u32 %v15527_v54, %v13713_v13  ;;  %8330 = vmatpush.bf16.msrb.mxu2 %v13202_v28  ;;  %v14815_v13 = vld [vmem:[#allocation7 + $0x73c] sm:$0xf] }
 0x63a   :  { %v15111_v4 = vld [vmem:[#allocation7 + $0x1074] sm:$0xf0]  ;;  %v10899_v54 = vld [vmem:[#allocation7 + $0x778] sm:$0xf0] }
 0x63b   :  { %v12561_v36 = vld [vmem:[#allocation7 + $0x1438] sm:$0xf]  ;;  %v12050_v38 = vor.u32 %v15111_v4, %v12049_v63  ;;  %8344 = vmatpush.bf16.msrb.mxu3 %v13714_v50  ;;  %v14959_v4 = vld [vmem:[#allocation7 + $0xbbc] sm:$0xf]  ;;  %v8056_v50 = vpop.f32.mrf.mxu2 }
 0x63c   :  { %v15239_v46 = vld [vmem:[#allocation7 + $0x1474] sm:$0xf0]  ;;  %v10323_v45 = vld [vmem:[#allocation7 + $0x2f8] sm:$0xf0] }
 0x63d   :  { %v13137_v12 = vld [vmem:[#allocation7 + $0x18b8] sm:$0xf]  ;;  %v12562_v29 = vor.u32 %v15239_v46, %v12561_v36  ;;  %8304 = vmatpush.bf16.msrb.mxu0 %v12050_v38  ;;  %v11987_v36 = vld [vmem:[#allocation7 + $0xff8] sm:$0xf0]  ;;  %v10902_v46 = vor.u32 %v14815_v13, %v10899_v54  ;;  %v8057_v38 = vadd.f32 %v8056_v50, %v8043_v17  ;;  %v10326_v57 = vor.u32 %v14671_v40, %v10323_v45 }
 0x63e   :  { %v15383_v44 = vld [vmem:[#allocation7 + $0x18f4] sm:$0xf0]  ;;  %v10835_v42 = vld [vmem:[#allocation7 + $0x6f8] sm:$0xf0] }
 0x63f   :  { %v13649_v15 = vld [vmem:[#allocation7 + $0x1cb8] sm:$0xf]  ;;  %v13138_v34 = vor.u32 %v15383_v44, %v13137_v12  ;;  %8318 = vmatpush.bf16.msrb.mxu1 %v12562_v29  ;;  %v11478_v12 = vor.u32 %v14959_v4, %v11475_v2  ;;  %v14799_v44 = vld [vmem:[#allocation7 + $0x6bc] sm:$0xf]  ;;  %v11990_v29 = vor.u32 %v15087_v19, %v11987_v36 }
 0x640   :  { %v15511_v24 = vld [vmem:[#allocation7 + $0x1cf4] sm:$0xf0]  ;;  %8305 = vmatmul.bf16.vlgmr.msrb.gmra.mxu0 %v16066_v8  ;;  %v14655_v13 = vld [vmem:[#allocation7 + $0x23c] sm:$0xf] }
 0x641   :  { %v13650_v16 = vor.u32 %v15511_v24, %v13649_v15  ;;  %v13073_v53 = vld [vmem:[#allocation7 + $0x1838] sm:$0xf]  ;;  %8353 = vmatpush.bf16.msra.mxu0 %v10454_v1  ;;  %8331 = vmatpush.bf16.msrb.mxu2 %v13138_v34  ;;  %v14943_v15 = vld [vmem:[#allocation7 + $0xb3c] sm:$0xf]  ;;  %v8070_v1 = vpop.f32.mrf.mxu3 }
 0x642   :  { %v15367_v49 = vld [vmem:[#allocation7 + $0x1874] sm:$0xf0]  ;;  %8319 = vmatmul.bf16.vlgmr.msrb.gmra.mxu1 %v16068_v51  ;;  %v11411_v24 = vld [vmem:[#allocation7 + $0xb78] sm:$0xf0]  ;;  %v16487_v5 = vadd.f32 %v8070_v1, %v8057_v38  ;;  %v8096_v1 = vpop.f32.mrf.mxu1 }
 0x643   :  { %v13585_v61 = vld [vmem:[#allocation7 + $0x1c38] sm:$0xf]  ;;  %8367 = vmatpush.bf16.msra.mxu1 %v10966_v41  ;;  %v13074_v28 = vor.u32 %v15367_v49, %v13073_v53  ;;  %8345 = vmatpush.bf16.msrb.mxu3 %v13650_v16  ;;  %v15071_v41 = vld [vmem:[#allocation7 + $0xf3c] sm:$0xf]  ;;  %v10838_v16 = vor.u32 %v14799_v44, %v10835_v42  ;;  %v11414_v17 = vor.u32 %v14943_v15, %v11411_v24 }
 0x644   :  { %v15495_v63 = vld [vmem:[#allocation7 + $0x1c74] sm:$0xf0]  ;;  %v11923_v34 = vld [vmem:[#allocation7 + $0xf78] sm:$0xf0] }
 0x645   :  { %v13586_v58 = vor.u32 %v15495_v63, %v13585_v61  ;;  %8354 = vmatpush.bf16.msra.mxu0 %v10390_v33  ;;  %8332 = vmatpush.bf16.msrb.mxu2 %v13074_v28  ;;  %v10259_v54 = vld [vmem:[#allocation7 + $0x278] sm:$0xf0]  ;;  %v11926_v61 = vor.u32 %v15071_v41, %v11923_v34 }
 0x646   :  { %v14783_v53 = vld [vmem:[#allocation7 + $0x63c] sm:$0xf]  ;;  %v10262_v2 = vor.u32 %v14655_v13, %v10259_v54 }
 0x647   :  { %8368 = vmatpush.bf16.msra.mxu1 %v10902_v46  ;;  %8346 = vmatpush.bf16.msrb.mxu3 %v13586_v58  ;;  %v10771_v49 = vld [vmem:[#allocation7 + $0x678] sm:$0xf0]  ;;  %v8082_v58 = vpop.f32.mrf.mxu0 }
 0x648   :  { %v14927_v63 = vld [vmem:[#allocation7 + $0xabc] sm:$0xf]  ;;  %8333 = vmatmul.bf16.vlgmr.msrb.gmra.mxu2 %v16072_v43  ;;  %v10774_v36 = vor.u32 %v14783_v53, %v10771_v49  ;;  %v8083_v38 = vadd.f32 %v8082_v58, %v16483_v23 }
 0x649   :  { %8381 = vmatpush.bf16.msra.mxu2 %v11478_v12  ;;  %v11347_v4 = vld [vmem:[#allocation7 + $0xaf8] sm:$0xf0]  ;;  %8355 = vmatpush.bf16.msra.mxu0 %v10326_v57 }
 0x64a   :  { %v15055_v33 = vld [vmem:[#allocation7 + $0xebc] sm:$0xf]  ;;  %8347 = vmatmul.bf16.vlgmr.msrb.gmra.mxu3 %v16074_v48  ;;  %v11350_v40 = vor.u32 %v14927_v63, %v11347_v4 }
 0x64b   :  { %8395 = vmatpush.bf16.msra.mxu3 %v11990_v29  ;;  %v11859_v19 = vld [vmem:[#allocation7 + $0xef8] sm:$0xf0]  ;;  %8369 = vmatpush.bf16.msra.mxu1 %v10838_v16  ;;  %v8097_v16 = vadd.f32 %v8096_v1, %v8083_v38 }
 0x64c   :  { %v14639_v46 = vld [vmem:[#allocation7 + $0x1bc] sm:$0xf]  ;;  %v11862_v12 = vor.u32 %v15055_v33, %v11859_v19 }
 0x64d   :  { %v10195_v28 = vld [vmem:[#allocation7 + $0x1f8] sm:$0xf0]  ;;  %8382 = vmatpush.bf16.msra.mxu2 %v11414_v17  ;;  %8356 = vmatpush.bf16.msra.mxu0 %v10262_v2 }
 0x64e   :  { %v14767_v45 = vld [vmem:[#allocation7 + $0x5bc] sm:$0xf]  ;;  %v10198_v29 = vor.u32 %v14639_v46, %v10195_v28 }
 0x64f   :  { %v10707_v50 = vld [vmem:[#allocation7 + $0x5f8] sm:$0xf0]  ;;  %8396 = vmatpush.bf16.msra.mxu3 %v11926_v61  ;;  %8370 = vmatpush.bf16.msra.mxu1 %v10774_v36 }
 0x650   :  { %v14911_v44 = vld [vmem:[#allocation7 + $0xa3c] sm:$0xf]  ;;  %v10710_v57 = vor.u32 %v14767_v45, %v10707_v50 }
 0x651   :  { %v11283_v42 = vld [vmem:[#allocation7 + $0xa78] sm:$0xf0]  ;;  %8383 = vmatpush.bf16.msra.mxu2 %v11350_v40  ;;  %8357 = vmatpush.bf16.msra.mxu0 %v10198_v29 }
 0x652   :  { %v15039_v15 = vld [vmem:[#allocation7 + $0xe3c] sm:$0xf]  ;;  %v11286_v13 = vor.u32 %v14911_v44, %v11283_v42 }
 0x653   :  { %v11795_v24 = vld [vmem:[#allocation7 + $0xe78] sm:$0xf0]  ;;  %8397 = vmatpush.bf16.msra.mxu3 %v11862_v12  ;;  %8371 = vmatpush.bf16.msra.mxu1 %v10710_v57 }
 0x654   :  { %v14623_v41 = vld [vmem:[#allocation7 + $0x13c] sm:$0xf]  ;;  %v11798_v53 = vor.u32 %v15039_v15, %v11795_v24 }
 0x655   :  { %v10131_v34 = vld [vmem:[#allocation7 + $0x178] sm:$0xf0]  ;;  %8384 = vmatpush.bf16.msra.mxu2 %v11286_v13  ;;  %v8084_v13 = vpop.f32.mrf.mxu0 }
 0x656   :  { %v14751_v54 = vld [vmem:[#allocation7 + $0x53c] sm:$0xf]  ;;  %v10134_v23 = vor.u32 %v14623_v41, %v10131_v34 }
 0x657   :  { %v10643_v17 = vld [vmem:[#allocation7 + $0x578] sm:$0xf0]  ;;  %8398 = vmatpush.bf16.msra.mxu3 %v11798_v53 }
 0x658   :  { %v14895_v49 = vld [vmem:[#allocation7 + $0x9bc] sm:$0xf]  ;;  %v10646_v2 = vor.u32 %v14751_v54, %v10643_v17  ;;  %8358 = vmatpush.bf16.msra.mxu0 %v10134_v23  ;;  %v8110_v54 = vpop.f32.mrf.mxu2 }
 0x659   :  { %v11219_v61 = vld [vmem:[#allocation7 + $0x9f8] sm:$0xf0]  ;;  %v8111_v23 = vadd.f32 %v8110_v54, %v8097_v16 }
 0x65a   :  { %v15023_v63 = vld [vmem:[#allocation7 + $0xdbc] sm:$0xf]  ;;  %v11222_v36 = vor.u32 %v14895_v49, %v11219_v61  ;;  %8372 = vmatpush.bf16.msra.mxu1 %v10646_v2 }
 0x65b   :  { %v11731_v4 = vld [vmem:[#allocation7 + $0xdf8] sm:$0xf0] }
 0x65c   :  { %v14607_v33 = vld [vmem:[#allocation7 + $0xbc] sm:$0xf]  ;;  %v11734_v40 = vor.u32 %v15023_v63, %v11731_v4  ;;  %8385 = vmatpush.bf16.msra.mxu2 %v11222_v36  ;;  %v8124_v63 = vpop.f32.mrf.mxu3 }
 0x65d   :  { %v10067_v19 = vld [vmem:[#allocation7 + $0xf8] sm:$0xf0] }
 0x65e   :  { %v14735_v46 = vld [vmem:[#allocation7 + $0x4bc] sm:$0xf]  ;;  %v10070_v58 = vor.u32 %v14607_v33, %v10067_v19  ;;  %8399 = vmatpush.bf16.msra.mxu3 %v11734_v40 }
 0x65f   :  { %v10579_v28 = vld [vmem:[#allocation7 + $0x4f8] sm:$0xf0] }
 0x660   :  { %v14879_v45 = vld [vmem:[#allocation7 + $0x93c] sm:$0xf]  ;;  %v10582_v38 = vor.u32 %v14735_v46, %v10579_v28  ;;  %8359 = vmatpush.bf16.msra.mxu0 %v10070_v58  ;;  %v8085_v28 = vadd.f32 %v8084_v13, %v16487_v5 }
 0x661   :  { %v11155_v50 = vld [vmem:[#allocation7 + $0x978] sm:$0xf0] }
 0x662   :  { %v15007_v12 = vld [vmem:[#allocation7 + $0xd3c] sm:$0xf]  ;;  %v11158_v1 = vor.u32 %v14879_v45, %v11155_v50  ;;  %8373 = vmatpush.bf16.msra.mxu1 %v10582_v38  ;;  %v16493_v45 = vadd.f32 %v8124_v63, %v8111_v23 }
 0x663   :  { %v11667_v44 = vld [vmem:[#allocation7 + $0xd78] sm:$0xf0] }
 0x664   :  { %v14591_v42 = vld [vmem:[#allocation7 + $0x3c] sm:$0xf]  ;;  %v11670_v17 = vor.u32 %v15007_v12, %v11667_v44  ;;  %8386 = vmatpush.bf16.msra.mxu2 %v11158_v1 }
 0x665   :  { %v10003_v29 = vld [vmem:[#allocation7 + $0x78] sm:$0xf0] }
 0x666   :  { %v14719_v15 = vld [vmem:[#allocation7 + $0x43c] sm:$0xf]  ;;  %v10006_v4 = vor.u32 %v14591_v42, %v10003_v29  ;;  %8400 = vmatpush.bf16.msra.mxu3 %v11670_v17 }
 0x667   :  { %v10515_v24 = vld [vmem:[#allocation7 + $0x478] sm:$0xf0] }
 0x668   :  { %v15215_v57 = vld [vmem:[#allocation7 + $0x13bc] sm:$0xf]  ;;  %v10518_v19 = vor.u32 %v14719_v15, %v10515_v24  ;;  %8360 = vmatpush.bf16.msra.mxu0 %v10006_v4 }
 0x669   :  { %v12499_v41 = vld [vmem:[#allocation7 + $0x13f8] sm:$0xf0] }
 0x66a   :  { %v15343_v34 = vld [vmem:[#allocation7 + $0x17bc] sm:$0xf]  ;;  %v12502_v36 = vor.u32 %v15215_v57, %v12499_v41  ;;  %v8098_v57 = vpop.f32.mrf.mxu1  ;;  %8374 = vmatpush.bf16.msra.mxu1 %v10518_v19 }
 0x66b   :  { %v13011_v53 = vld [vmem:[#allocation7 + $0x17f8] sm:$0xf0]  ;;  %8361 = vmatmul.bf16.vlgmr.msra.gmra.mxu0 %v16050_v59 }
 0x66c   :  { %v14863_v49 = vld [vmem:[#allocation7 + $0x8bc] sm:$0xf]  ;;  %v13014_v40 = vor.u32 %v15343_v34, %v13011_v53  ;;  %8409 = vmatpush.bf16.msrb.mxu0 %v12502_v36  ;;  %v8099_v34 = vadd.f32 %v8098_v57, %v8085_v28 }
 0x66d   :  { %v11091_v61 = vld [vmem:[#allocation7 + $0x8f8] sm:$0xf0]  ;;  %8375 = vmatmul.bf16.vlgmr.msra.gmra.mxu1 %v16052_v0  ;;  %v8477_v0 = vmax.f32 %v16493_v45, 0.0 }
 0x66e   :  { %v14991_v2 = vld [vmem:[#allocation7 + $0xcbc] sm:$0xf]  ;;  %v11094_v50 = vor.u32 %v14863_v49, %v11091_v61  ;;  %8423 = vmatpush.bf16.msrb.mxu1 %v13014_v40  ;;  %v8112_v49 = vpop.f32.mrf.mxu2 }
 0x66f   :  { %v11603_v33 = vld [vmem:[#allocation7 + $0xcf8] sm:$0xf0] }
 0x670   :  { %v15199_v46 = vld [vmem:[#allocation7 + $0x133c] sm:$0xf]  ;;  %v11606_v16 = vor.u32 %v14991_v2, %v11603_v33  ;;  %8387 = vmatpush.bf16.msra.mxu2 %v11094_v50  ;;  %v8113_v2 = vadd.f32 %v8112_v49, %v8099_v34 }
 0x671   :  { %v12435_v12 = vld [vmem:[#allocation7 + $0x1378] sm:$0xf0] }
 0x672   :  { %v15327_v44 = vld [vmem:[#allocation7 + $0x173c] sm:$0xf]  ;;  %v12438_v5 = vor.u32 %v15199_v46, %v12435_v12  ;;  %8401 = vmatpush.bf16.msra.mxu3 %v11606_v16  ;;  %v8126_v46 = vpop.f32.mrf.mxu3 }
 0x673   :  { %v14847_v58 = vld [vmem:[#allocation7 + $0x83c] sm:$0xf]  ;;  %v12950_v13 = vor.u32 %v15327_v44, %v12947_v9  ;;  %v8127_v50 = vadd.f32 %v8126_v46, %v8113_v2 }
 0x674   :  { %v11027_v42 = vld [vmem:[#allocation7 + $0x878] sm:$0xf0]  ;;  %8410 = vmatpush.bf16.msrb.mxu0 %v12438_v5 }
 0x675   :  { %v14975_v29 = vld [vmem:[#allocation7 + $0xc3c] sm:$0xf]  ;;  %v11030_v54 = vor.u32 %v14847_v58, %v11027_v42  ;;  %8424 = vmatpush.bf16.msrb.mxu1 %v12950_v13 }
 0x676   :  { %v11539_v38 = vld [vmem:[#allocation7 + $0xc78] sm:$0xf0] }
 0x677   :  { %v15471_v15 = vld [vmem:[#allocation7 + $0x1bbc] sm:$0xf]  ;;  %v11542_v61 = vor.u32 %v14975_v29, %v11539_v38  ;;  %8388 = vmatpush.bf16.msra.mxu2 %v11030_v54  ;;  %v8493_v29 = vmax.f32 %v8127_v50, 0.0 }
 0x678   :  { %v13523_v24 = vld [vmem:[#allocation7 + $0x1bf8] sm:$0xf0] }
 0x679   :  { %v15599_v41 = vld [vmem:[#allocation7 + $0x1fbc] sm:$0xf]  ;;  %v13526_v23 = vor.u32 %v15471_v15, %v13523_v24  ;;  %8402 = vmatpush.bf16.msra.mxu3 %v11542_v61 }
 0x67a   :  { %v14035_v1 = vld [vmem:[#allocation7 + $0x1ff8] sm:$0xf0]  ;;  %8389 = vmatmul.bf16.vlgmr.msra.gmra.mxu2 %v16058_v26 }
 0x67b   :  { %v15183_v17 = vld [vmem:[#allocation7 + $0x12bc] sm:$0xf]  ;;  %v14038_v33 = vor.u32 %v15599_v41, %v14035_v1  ;;  %8437 = vmatpush.bf16.msrb.mxu2 %v13526_v23  ;;  %v16499_v1 = vpack.c.bf16 %v8493_v29, %v8477_v0 }
 0x67c   :  { %v12371_v53 = vld [vmem:[#allocation7 + $0x12f8] sm:$0xf0]  ;;  %8403 = vmatmul.bf16.vlgmr.msra.gmra.mxu3 %v16060_v32 }
 0x67d   :  { %v15311_v63 = vld [vmem:[#allocation7 + $0x16bc] sm:$0xf]  ;;  %v12374_v9 = vor.u32 %v15183_v17, %v12371_v53  ;;  %8451 = vmatpush.bf16.msrb.mxu3 %v14038_v33 }
 0x67e   :  { %v12883_v4 = vld [vmem:[#allocation7 + $0x16f8] sm:$0xf0] }
 0x67f   :  { %v15455_v19 = vld [vmem:[#allocation7 + $0x1b3c] sm:$0xf]  ;;  %v12886_v12 = vor.u32 %v15311_v63, %v12883_v4  ;;  %8411 = vmatpush.bf16.msrb.mxu0 %v12374_v9 }
 0x680   :  { %v13459_v36 = vld [vmem:[#allocation7 + $0x1b78] sm:$0xf0] }
 0x681   :  { %v15583_v28 = vld [vmem:[#allocation7 + $0x1f3c] sm:$0xf]  ;;  %v13462_v16 = vor.u32 %v15455_v19, %v13459_v36  ;;  %8425 = vmatpush.bf16.msrb.mxu1 %v12886_v12 }
 0x682   :  { %v13971_v40 = vld [vmem:[#allocation7 + $0x1f78] sm:$0xf0] }
 0x683   :  { %v15167_v59 = vld [vmem:[#allocation7 + $0x123c] sm:$0xf]  ;;  %v13974_v38 = vor.u32 %v15583_v28, %v13971_v40  ;;  %8438 = vmatpush.bf16.msrb.mxu2 %v13462_v16 }
 0x684   :  { %v12307_v44 = vld [vmem:[#allocation7 + $0x1278] sm:$0xf0] }
 0x685   :  { %v15295_v58 = vld [vmem:[#allocation7 + $0x163c] sm:$0xf]  ;;  %v12310_v57 = vor.u32 %v15167_v59, %v12307_v44  ;;  %8452 = vmatpush.bf16.msrb.mxu3 %v13974_v38 }
 0x686   :  { %v12819_v42 = vld [vmem:[#allocation7 + $0x1678] sm:$0xf0] }
 0x687   :  { %v15439_v15 = vld [vmem:[#allocation7 + $0x1abc] sm:$0xf]  ;;  %v12822_v34 = vor.u32 %v15295_v58, %v12819_v42  ;;  %8412 = vmatpush.bf16.msrb.mxu0 %v12310_v57 }
 0x688   :  { %v13395_v24 = vld [vmem:[#allocation7 + $0x1af8] sm:$0xf0] }
 0x689   :  { %v15567_v5 = vld [vmem:[#allocation7 + $0x1ebc] sm:$0xf]  ;;  %v13398_v45 = vor.u32 %v15439_v15, %v13395_v24  ;;  %8426 = vmatpush.bf16.msrb.mxu1 %v12822_v34 }
 0x68a   :  { %v13907_v41 = vld [vmem:[#allocation7 + $0x1ef8] sm:$0xf0] }
 0x68b   :  { %v15151_v13 = vld [vmem:[#allocation7 + $0x11bc] sm:$0xf]  ;;  %v13910_v49 = vor.u32 %v15567_v5, %v13907_v41  ;;  %8439 = vmatpush.bf16.msrb.mxu2 %v13398_v45 }
 0x68c   :  { %v12243_v54 = vld [vmem:[#allocation7 + $0x11f8] sm:$0xf0] }
 0x68d   :  { %v15279_v17 = vld [vmem:[#allocation7 + $0x15bc] sm:$0xf]  ;;  %v12246_v23 = vor.u32 %v15151_v13, %v12243_v54  ;;  %8453 = vmatpush.bf16.msrb.mxu3 %v13910_v49 }
 0x68e   :  { %v12755_v53 = vld [vmem:[#allocation7 + $0x15f8] sm:$0xf0] }
 0x68f   :  { %v15423_v61 = vld [vmem:[#allocation7 + $0x1a3c] sm:$0xf]  ;;  %v12758_v2 = vor.u32 %v15279_v17, %v12755_v53  ;;  %8413 = vmatpush.bf16.msrb.mxu0 %v12246_v23 }
 0x690   :  { %v13331_v26 = vld [vmem:[#allocation7 + $0x1a78] sm:$0xf0] }
 0x691   :  { %v15551_v63 = vld [vmem:[#allocation7 + $0x1e3c] sm:$0xf]  ;;  %v13334_v19 = vor.u32 %v15423_v61, %v13331_v26  ;;  %8427 = vmatpush.bf16.msrb.mxu1 %v12758_v2 }
 0x692   :  { %v13843_v4 = vld [vmem:[#allocation7 + $0x1e78] sm:$0xf0] }
 0x693   :  { %v15135_v33 = vld [vmem:[#allocation7 + $0x113c] sm:$0xf]  ;;  %v13846_v9 = vor.u32 %v15551_v63, %v13843_v4  ;;  %8440 = vmatpush.bf16.msrb.mxu2 %v13334_v19 }
 0x694   :  { %v12179_v32 = vld [vmem:[#allocation7 + $0x1178] sm:$0xf0] }
 0x695   :  { %v15263_v36 = vld [vmem:[#allocation7 + $0x153c] sm:$0xf]  ;;  %v12182_v50 = vor.u32 %v15135_v33, %v12179_v32  ;;  %8454 = vmatpush.bf16.msrb.mxu3 %v13846_v9  ;;  %v15615_v33 = vld [vmem:[#allocation10 + $0x38] sm:$0xff]  ;;  %v16833_v32 = vperm.slane %v16090_v39, 0 }
 0x696   :  { %v12691_v46 = vld [vmem:[#allocation7 + $0x1578] sm:$0xf0] }
 0x697   :  { %v15407_v28 = vld [vmem:[#allocation7 + $0x19bc] sm:$0xf]  ;;  %v12694_v44 = vor.u32 %v15263_v36, %v12691_v46  ;;  %8414 = vmatpush.bf16.msrb.mxu0 %v12182_v50  ;;  %v6685_v19 = vadd.f32 %v16099_v27, %v16833_v32  ;;  %v15623_v36 = vld [vmem:[#allocation10 + $0x78] sm:$0xff]  ;;  %v15622_v27 = vld [vmem:[#allocation10 + $0x70] sm:$0xff] }
 0x698   :  { %v13267_v40 = vld [vmem:[#allocation7 + $0x19f8] sm:$0xf0]  ;;  %v15635_v32 = vld [vmem:[#allocation10 + $0xd8] sm:$0xff] }
 0x699   :  { %v15535_v12 = vld [vmem:[#allocation7 + $0x1dbc] sm:$0xf]  ;;  %v13270_v42 = vor.u32 %v15407_v28, %v13267_v40  ;;  %8428 = vmatpush.bf16.msrb.mxu1 %v12694_v44 }
 0x69a   :  { %v13779_v59 = vld [vmem:[#allocation7 + $0x1df8] sm:$0xf0] }
 0x69b   :  { %v15119_v16 = vld [vmem:[#allocation7 + $0x10bc] sm:$0xf]  ;;  %v13782_v38 = vor.u32 %v15535_v12, %v13779_v59  ;;  %8441 = vmatpush.bf16.msrb.mxu2 %v13270_v42  ;;  %v16834_v59 = vperm.slane %v16090_v39, 1 }
 0x69c   :  { %v12115_v58 = vld [vmem:[#allocation7 + $0x10f8] sm:$0xf0] }
 0x69d   :  { %v15247_v0 = vld [vmem:[#allocation7 + $0x14bc] sm:$0xf]  ;;  %v12118_v57 = vor.u32 %v15119_v16, %v12115_v58  ;;  %8455 = vmatpush.bf16.msrb.mxu3 %v13782_v38  ;;  %v6797_v44 = vadd.f32 %v16127_v10, %v16834_v59  ;;  %v15614_v16 = vld [vmem:[#allocation10 + $0x30] sm:$0xff]  ;;  %v6699_v58 = vadd.f32 %v16101_v31, %v6685_v19  ;;  %v16835_v31 = vperm.slane %v16090_v39, 2  ;;  %v15612_v39 = vld [vmem:[#allocation10 + $0x20] sm:$0xff] }
 0x69e   :  { %v12627_v29 = vld [vmem:[#allocation7 + $0x14f8] sm:$0xf0]  ;;  %v16844_v59 = vld [vmem:[#allocation26_spill] sm:$0xff] }
 0x69f   :  { %v15391_v15 = vld [vmem:[#allocation7 + $0x193c] sm:$0xf]  ;;  %v12630_v34 = vor.u32 %v15247_v0, %v12627_v29  ;;  %8415 = vmatpush.bf16.msrb.mxu0 %v12118_v57  ;;  %v15631_v29 = vld [vmem:[#allocation10 + $0xb8] sm:$0xff]  ;;  %v6713_v38 = vadd.f32 %v16103_v30, %v6699_v58  ;;  %v6811_v10 = vadd.f32 %v16130_v22, %v6797_v44  ;;  %v6909_v57 = vadd.f32 %v16159_v62, %v16835_v31  ;;  %v16846_v31 = vld [vmem:[#allocation18_spill] sm:$0xff] }
 0x6a0   :  { %v13203_v24 = vld [vmem:[#allocation7 + $0x1978] sm:$0xf0] }
 0x6a1   :  { %v15519_v5 = vld [vmem:[#allocation7 + $0x1d3c] sm:$0xf]  ;;  %v13206_v45 = vor.u32 %v15391_v15, %v13203_v24  ;;  %8429 = vmatpush.bf16.msrb.mxu1 %v12630_v34  ;;  %v15639_v15 = vld [vmem:[#allocation10 + $0xf8] sm:$0xff]  ;;  %v6727_v22 = vadd.f32 %v16105_v37, %v6713_v38  ;;  %v15638_v34 = vld [vmem:[#allocation10 + $0xf0] sm:$0xff]  ;;  %v6923_v62 = vadd.f32 %v16162_v7, %v6909_v57  ;;  %v8465_v57 = vmax.f32 %v16846_v31, 0.0 }
 0x6a2   :  { %v13715_v41 = vld [vmem:[#allocation7 + $0x1d78] sm:$0xf0]  ;;  %v15647_v38 = vld [vmem:[#allocation10 + $0x138] sm:$0xff]  ;;  %v16870_v31 = vld [vmem:[#allocation38_spill] sm:$0xff] }
 0x6a3   :  { %v15103_v13 = vld [vmem:[#allocation7 + $0x103c] sm:$0xf]  ;;  %v13718_v49 = vor.u32 %v15519_v5, %v13715_v41  ;;  %8442 = vmatpush.bf16.msrb.mxu2 %v13206_v45  ;;  %v16836_v41 = vperm.slane %v16180_v11, 3  ;;  %v6741_v37 = vadd.f32 %v16108_v47, %v6727_v22  ;;  %v6937_v45 = vadd.f32 %v16167_v18, %v6923_v62  ;;  %v15636_v47 = vld [vmem:[#allocation10 + $0xe0] sm:$0xff]  ;;  %v16849_v22 = vld [vmem:[#allocation32_spill] sm:$0xff] }
 0x6a4   :  { %v12051_v54 = vld [vmem:[#allocation7 + $0x1078] sm:$0xf0]  ;;  %v16851_v62 = vld [vmem:[#allocation33_spill] sm:$0xff] }
 0x6a5   :  { %v15231_v17 = vld [vmem:[#allocation7 + $0x143c] sm:$0xf]  ;;  %v12054_v23 = vor.u32 %v15103_v13, %v12051_v54  ;;  %8456 = vmatpush.bf16.msrb.mxu3 %v13718_v49  ;;  %v7021_v30 = vadd.f32 %v16193_v56, %v16836_v41  ;;  %v6951_v49 = vadd.f32 %v16169_v25, %v6937_v45  ;;  %v15627_v25 = vld [vmem:[#allocation10 + $0x98] sm:$0xff] }
 0x6a6   :  { %v12563_v53 = vld [vmem:[#allocation7 + $0x1478] sm:$0xf0] }
 0x6a7   :  { %v15375_v61 = vld [vmem:[#allocation7 + $0x18bc] sm:$0xf]  ;;  %v12566_v2 = vor.u32 %v15231_v17, %v12563_v53  ;;  %8416 = vmatpush.bf16.msrb.mxu0 %v12054_v23  ;;  %v7035_v56 = vadd.f32 %v16196_v20, %v7021_v30  ;;  %v15619_v53 = vld [vmem:[#allocation10 + $0x58] sm:$0xff]  ;;  %v6755_v20 = vadd.f32 %v16111_v55, %v6741_v37 }
 0x6a8   :  { %v13139_v26 = vld [vmem:[#allocation7 + $0x18f8] sm:$0xf0]  ;;  %v16848_v30 = vld [vmem:[#allocation20_spill] sm:$0xff] }
 0x6a9   :  { %v15503_v63 = vld [vmem:[#allocation7 + $0x1cbc] sm:$0xf]  ;;  %v13142_v46 = vor.u32 %v15375_v61, %v13139_v26  ;;  %8430 = vmatpush.bf16.msrb.mxu1 %v12566_v2  ;;  %v7049_v7 = vadd.f32 %v16201_v35, %v7035_v56  ;;  %v6769_v35 = vadd.f32 %v16120_v52, %v6755_v20  ;;  %v16837_v26 = vld [vmem:[#allocation24_spill] sm:$0xff] }
 0x6aa   :  { %v13651_v4 = vld [vmem:[#allocation7 + $0x1cf8] sm:$0xf0]  ;;  %8417 = vmatmul.bf16.vlgmr.msrb.gmra.mxu0 %v16066_v8  ;;  %v6825_v8 = vadd.f32 %v16135_v14, %v6811_v10  ;;  %v15620_v14 = vld [vmem:[#allocation10 + $0x60] sm:$0xff]  ;;  %v6965_v23 = vadd.f32 %v16837_v26, %v6951_v49  ;;  %v15655_v10 = vld [vmem:[#allocation10 + $0x178] sm:$0xff] }
 0x6ab   :  { %v13654_v9 = vor.u32 %v15503_v63, %v13651_v4  ;;  %v15359_v28 = vld [vmem:[#allocation7 + $0x183c] sm:$0xf]  ;;  %9541 = vmatpush.bf16.msra.mxu0 %v15615_v33  ;;  %8443 = vmatpush.bf16.msrb.mxu2 %v13142_v46  ;;  %v7063_v61 = vadd.f32 %v16203_v6, %v7049_v7  ;;  %v15618_v63 = vld [vmem:[#allocation10 + $0x50] sm:$0xff]  ;;  %v16838_v4 = vld [vmem:[#allocation21_spill] sm:$0xff] }
 0x6ac   :  { %v13075_v40 = vld [vmem:[#allocation7 + $0x1878] sm:$0xf0]  ;;  %8431 = vmatmul.bf16.vlgmr.msrb.gmra.mxu1 %v16068_v51  ;;  %v15630_v51 = vld [vmem:[#allocation10 + $0xb0] sm:$0xff]  ;;  %v6839_v13 = vadd.f32 %v16137_v21, %v6825_v8  ;;  %v15628_v21 = vld [vmem:[#allocation10 + $0xa0] sm:$0xff] }
 0x6ad   :  { %v15487_v50 = vld [vmem:[#allocation7 + $0x1c3c] sm:$0xf]  ;;  %9555 = vmatpush.bf16.msra.mxu1 %v15623_v36  ;;  %v13078_v42 = vor.u32 %v15359_v28, %v13075_v40  ;;  %8457 = vmatpush.bf16.msrb.mxu3 %v13654_v9  ;;  %v16839_v33 = vld [vmem:[#allocation29_spill] sm:$0xff]  ;;  %v16842_v9 = vld [vmem:[#allocation22_spill] sm:$0xff] }
 0x6ae   :  { %v13587_v12 = vld [vmem:[#allocation7 + $0x1c78] sm:$0xf0]  ;;  %v6853_v17 = vadd.f32 %v16142_v60, %v6839_v13  ;;  %v15610_v60 = vld [vmem:[#allocation10 + $0x10] sm:$0xff]  ;;  %v7077_v55 = vadd.f32 %v16839_v33, %v7063_v61  ;;  %v16841_v36 = vld [vmem:[#allocation25_spill] sm:$0xff] }
 0x6af   :  { %v13590_v0 = vor.u32 %v15487_v50, %v13587_v12  ;;  %9542 = vmatpush.bf16.msra.mxu0 %v15614_v16  ;;  %v15613_v24 = vld [vmem:[#allocation10 + $0x28] sm:$0xff]  ;;  %8444 = vmatpush.bf16.msrb.mxu2 %v13078_v42  ;;  %v6979_v46 = vadd.f32 %v16841_v36, %v6965_v23  ;;  %v15626_v12 = vld [vmem:[#allocation10 + $0x90] sm:$0xff]  ;;  %v15608_v42 = vld [vmem:[#allocation10] sm:$0xff] }
 0x6b0   :  { %v15621_v5 = vld [vmem:[#allocation10 + $0x68] sm:$0xff]  ;;  %v6867_v18 = vadd.f32 %v16145_v3, %v6853_v17  ;;  %v15634_v16 = vld [vmem:[#allocation10 + $0xd0] sm:$0xff] }
 0x6b1   :  { %9556 = vmatpush.bf16.msra.mxu1 %v15622_v27  ;;  %8458 = vmatpush.bf16.msrb.mxu3 %v13590_v0  ;;  %v15629_v54 = vld [vmem:[#allocation10 + $0xa8] sm:$0xff]  ;;  %v6993_v44 = vadd.f32 %v16844_v59, %v6979_v46  ;;  %v16852_v56 = vld [vmem:[#allocation40_spill] sm:$0xff]  ;;  %v16566_v59 = vpop.f32.mrf.mxu0 }
 0x6b2   :  { %8445 = vmatmul.bf16.vlgmr.msrb.gmra.mxu2 %v16072_v43  ;;  %v15637_v43 = vld [vmem:[#allocation10 + $0xe8] sm:$0xff]  ;;  %v6881_v2 = vadd.f32 %v16838_v4, %v6867_v18  ;;  %v15654_v7 = vld [vmem:[#allocation10 + $0x170] sm:$0xff]  ;;  %v15671_v18 = vld [vmem:[#allocation10 + $0x1f8] sm:$0xff] }
 0x6b3   :  { %9569 = vmatpush.bf16.msra.mxu2 %v15631_v29  ;;  %9543 = vmatpush.bf16.msra.mxu0 %v15613_v24  ;;  %v15609_v3 = vld [vmem:[#allocation10 + $0x8] sm:$0xff]  ;;  %v15616_v29 = vld [vmem:[#allocation10 + $0x40] sm:$0xff] }
 0x6b4   :  { %8459 = vmatmul.bf16.vlgmr.msrb.gmra.mxu3 %v16074_v48  ;;  %v15611_v48 = vld [vmem:[#allocation10 + $0x18] sm:$0xff]  ;;  %v16840_v19 = vld [vmem:[#allocation19_spill] sm:$0xff]  ;;  %v6895_v28 = vadd.f32 %v16842_v9, %v6881_v2  ;;  %v16843_v40 = vld [vmem:[#allocation30_spill] sm:$0xff] }
 0x6b5   :  { %9583 = vmatpush.bf16.msra.mxu3 %v15639_v15  ;;  %9557 = vmatpush.bf16.msra.mxu1 %v15621_v5  ;;  %v6783_v6 = vadd.f32 %v16840_v19, %v6769_v35  ;;  %v15617_v52 = vld [vmem:[#allocation10 + $0x48] sm:$0xff]  ;;  %v7091_v50 = vadd.f32 %v16843_v40, %v7077_v55  ;;  %v16857_v35 = vld [vmem:[#allocation44_spill] sm:$0xff]  ;;  %v16860_v55 = vperm.slane %v16852_v56, 6 }
 0x6b6   :  { %v16845_v58 = vld [vmem:[#allocation31_spill] sm:$0xff]  ;;  %v8482_v15 = vmax.f32 %v6895_v28, 0.0  ;;  %v16855_v49 = vld [vmem:[#allocation34_spill] sm:$0xff] }
 0x6b7   :  { %9570 = vmatpush.bf16.msra.mxu2 %v15630_v51  ;;  %9544 = vmatpush.bf16.msra.mxu0 %v15612_v39  ;;  %v7105_v27 = vadd.f32 %v16845_v58, %v7091_v50  ;;  %v8481_v0 = vmax.f32 %v6783_v6, 0.0  ;;  %v15625_v24 = vld [vmem:[#allocation10 + $0x88] sm:$0xff]  ;;  %v8466_v51 = vmax.f32 %v16848_v30, 0.0  ;;  %v16850_v39 = vperm.slane %v16180_v11, 4  ;;  %v15632_v11 = vld [vmem:[#allocation10 + $0xc0] sm:$0xff]  ;;  %v15662_v40 = vld [vmem:[#allocation10 + $0x1b0] sm:$0xff] }
 0x6b8   :  { %v16847_v5 = vld [vmem:[#allocation27_spill] sm:$0xff]  ;;  %v16862_v6 = vld [vmem:[#allocation45_spill] sm:$0xff]  ;;  %v16865_v9 = vld [vmem:[#allocation62_spill] sm:$0xff] }
 0x6b9   :  { %9584 = vmatpush.bf16.msra.mxu3 %v15638_v34  ;;  %9558 = vmatpush.bf16.msra.mxu1 %v15620_v14  ;;  %v7007_v8 = vadd.f32 %v16847_v5, %v6993_v44  ;;  %v15633_v41 = vld [vmem:[#allocation10 + $0xc8] sm:$0xff]  ;;  %v7119_v34 = vadd.f32 %v16849_v22, %v7105_v27  ;;  %v7133_v14 = vadd.f32 %v16851_v62, %v16850_v39  ;;  %v15644_v44 = vld [vmem:[#allocation10 + $0x120] sm:$0xff]  ;;  %v16872_v30 = vld [vmem:[#allocation48_spill] sm:$0xff] }
 0x6ba   :  { %v8497_v13 = vpack.c.bf16 %v8481_v0, %v8465_v57  ;;  %v16854_v37 = vld [vmem:[#allocation43_spill] sm:$0xff]  ;;  %v8498_v17 = vpack.c.bf16 %v8482_v15, %v8466_v51  ;;  %v16867_v27 = vld [vmem:[#allocation53_spill] sm:$0xff]  ;;  %v16871_v5 = vld [vmem:[#allocation54_spill] sm:$0xff] }
 0x6bb   :  { %9571 = vmatpush.bf16.msra.mxu2 %v15629_v54  ;;  %9545 = vmatpush.bf16.msra.mxu0 %v15611_v48  ;;  %v16853_v54 = vperm.slane %v16852_v56, 5  ;;  %v15624_v48 = vld [vmem:[#allocation10 + $0x80] sm:$0xff]  ;;  %v8484_v20 = vmax.f32 %v7119_v34, 0.0  ;;  %v16856_v61 = vld [vmem:[#allocation23_spill] sm:$0xff]  ;;  %v16873_v22 = vld [vmem:[#allocation64_spill] sm:$0xff] }
 0x6bc   :  { %v15645_v23 = vld [vmem:[#allocation10 + $0x128] sm:$0xff]  ;;  %v15652_v0 = vld [vmem:[#allocation10 + $0x160] sm:$0xff]  ;;  %v15643_v39 = vld [vmem:[#allocation10 + $0x118] sm:$0xff] }
 0x6bd   :  { %9585 = vmatpush.bf16.msra.mxu3 %v15637_v43  ;;  %9559 = vmatpush.bf16.msra.mxu1 %v15619_v53  ;;  %v7245_v45 = vadd.f32 %v16854_v37, %v16853_v54  ;;  %v15646_v43 = vld [vmem:[#allocation10 + $0x130] sm:$0xff]  ;;  %v8483_v53 = vmax.f32 %v7007_v8, 0.0  ;;  %v15651_v62 = vld [vmem:[#allocation10 + $0x158] sm:$0xff]  ;;  %v15660_v56 = vld [vmem:[#allocation10 + $0x1a0] sm:$0xff] }
 0x6be   :  { %v16859_v2 = vld [vmem:[#allocation35_spill] sm:$0xff] }
 0x6bf   :  { %9572 = vmatpush.bf16.msra.mxu2 %v15628_v21  ;;  %9546 = vmatpush.bf16.msra.mxu0 %v15610_v60  ;;  %v15663_v21 = vld [vmem:[#allocation10 + $0x1b8] sm:$0xff]  ;;  %v8467_v60 = vmax.f32 %v16856_v61, 0.0  ;;  %v7259_v26 = vadd.f32 %v16857_v35, %v7245_v45  ;;  %v16863_v46 = vld [vmem:[#allocation59_spill] sm:$0xff] }
 0x6c0   :  { %v16869_v15 = vld [vmem:[#allocation63_spill] sm:$0xff] }
 0x6c1   :  { %9586 = vmatpush.bf16.msra.mxu3 %v15636_v47  ;;  %9560 = vmatpush.bf16.msra.mxu1 %v15618_v63  ;;  %v7147_v47 = vadd.f32 %v16855_v49, %v7133_v14  ;;  %v16858_v63 = vld [vmem:[#allocation28_spill] sm:$0xff]  ;;  %v8499_v19 = vpack.c.bf16 %v8483_v53, %v8467_v60  ;;  %v7273_v36 = vadd.f32 %v16862_v6, %v7259_v26  ;;  %v16576_v14 = vpop.f32.mrf.mxu1  ;;  %v16874_v54 = vld [vmem:[#allocation39_spill] sm:$0xff]  ;;  %v16877_v53 = vld [vmem:[#allocation65_spill] sm:$0xff] }
 0x6c2   :  { %v8468_v4 = vmax.f32 %v16858_v63, 0.0  ;;  %v16875_v45 = vld [vmem:[#allocation55_spill] sm:$0xff]  ;;  %v16880_v60 = vld [vmem:[#allocation50_spill] sm:$0xff]  ;;  %v16588_v63 = vpop.f32.mrf.mxu0 }
 0x6c3   :  { %9573 = vmatpush.bf16.msra.mxu2 %v15627_v25  ;;  %9547 = vmatpush.bf16.msra.mxu0 %v15609_v3  ;;  %v7161_v33 = vadd.f32 %v16859_v2, %v7147_v47  ;;  %v16861_v25 = vld [vmem:[#allocation52_spill] sm:$0xff]  ;;  %v15653_v3 = vld [vmem:[#allocation10 + $0x168] sm:$0xff]  ;;  %v16879_v47 = vld [vmem:[#allocation57_spill] sm:$0xff] }
 0x6c4   :  { %v8500_v50 = vpack.c.bf16 %v8484_v20, %v8468_v4  ;;  %v16878_v20 = vld [vmem:[#allocation41_spill] sm:$0xff]  ;;  %v15650_v61 = vld [vmem:[#allocation10 + $0x150] sm:$0xff]  ;;  %v15649_v6 = vld [vmem:[#allocation10 + $0x148] sm:$0xff] }
 0x6c5   :  { %9587 = vmatpush.bf16.msra.mxu3 %v15635_v32  ;;  %9561 = vmatpush.bf16.msra.mxu1 %v15617_v52  ;;  %v7357_v32 = vadd.f32 %v16861_v25, %v16860_v55  ;;  %v16864_v52 = vperm.slane %v16863_v46, 7  ;;  %v16881_v26 = vld [vmem:[#allocation67_spill] sm:$0xff]  ;;  %v15659_v4 = vld [vmem:[#allocation10 + $0x198] sm:$0xff]  ;;  %v16882_v25 = vld [vmem:[#allocation42_spill] sm:$0xff] }
 0x6c6   :  { %v15667_v2 = vld [vmem:[#allocation10 + $0x1d8] sm:$0xff]  ;;  %v15641_v55 = vld [vmem:[#allocation10 + $0x108] sm:$0xff] }
 0x6c7   :  { %9574 = vmatpush.bf16.msra.mxu2 %v15626_v12  ;;  %9548 = vmatpush.bf16.msra.mxu0 %v15608_v42  ;;  %v7469_v28 = vadd.f32 %v16865_v9, %v16864_v52  ;;  %v15670_v12 = vld [vmem:[#allocation10 + $0x1f0] sm:$0xff]  ;;  %v7371_v42 = vadd.f32 %v16867_v27, %v7357_v32 }
 0x6c8   :  { %v16885_v52 = vld [vmem:[#allocation68_spill] sm:$0xff] }
 0x6c9   :  { %9588 = vmatpush.bf16.msra.mxu3 %v15634_v16  ;;  %9562 = vmatpush.bf16.msra.mxu1 %v15616_v29  ;;  %v16866_v16 = vld [vmem:[#allocation36_spill] sm:$0xff]  ;;  %v16868_v29 = vld [vmem:[#allocation46_spill] sm:$0xff]  ;;  %v7385_v8 = vadd.f32 %v16871_v5, %v7371_v42 }
 0x6ca   :  { %9549 = vmatmul.bf16.vlgmr.msra.gmra.mxu0 %v8497_v13  ;;  %v7175_v58 = vadd.f32 %v16866_v16, %v7161_v33  ;;  %v16578_v13 = vpop.f32.mrf.mxu2  ;;  %v16590_v33 = vpop.f32.mrf.mxu3  ;;  %v15640_v42 = vld [vmem:[#allocation10 + $0x100] sm:$0xff] }
 0x6cb   :  { %9597 = vmatpush.bf16.msrb.mxu0 %v15647_v38  ;;  %9575 = vmatpush.bf16.msra.mxu2 %v15625_v24  ;;  %v7287_v38 = vadd.f32 %v16868_v29, %v7273_v36  ;;  %v15661_v24 = vld [vmem:[#allocation10 + $0x1a8] sm:$0xff]  ;;  %v15648_v29 = vld [vmem:[#allocation10 + $0x140] sm:$0xff] }
 0x6cc   :  { %9563 = vmatmul.bf16.vlgmr.msra.gmra.mxu1 %v8498_v17  ;;  %v7189_v57 = vadd.f32 %v16870_v31, %v7175_v58  ;;  %v15668_v17 = vld [vmem:[#allocation10 + $0x1e0] sm:$0xff]  ;;  %v16884_v36 = vld [vmem:[#allocation51_spill] sm:$0xff]  ;;  %v16598_v58 = vpop.f32.mrf.mxu1 }
 0x6cd   :  { %9611 = vmatpush.bf16.msrb.mxu1 %v15655_v10  ;;  %9589 = vmatpush.bf16.msra.mxu3 %v15633_v41  ;;  %v7483_v10 = vadd.f32 %v16869_v15, %v7469_v28  ;;  %v15669_v41 = vld [vmem:[#allocation10 + $0x1e8] sm:$0xff]  ;;  %v7301_v51 = vadd.f32 %v16872_v30, %v7287_v38  ;;  %v15658_v28 = vld [vmem:[#allocation10 + $0x190] sm:$0xff]  ;;  %v15679_v38 = vld [vmem:[#allocation10 + $0x238] sm:$0xff] }
 0x6ce   :  { %v7203_v37 = vadd.f32 %v16874_v54, %v7189_v57  ;;  %v15657_v31 = vld [vmem:[#allocation10 + $0x188] sm:$0xff]  ;;  %v16888_v57 = vld [vmem:[#allocation37_spill] sm:$0xff]  ;;  %v16894_v54 = vld [vmem:[#allocation72_spill] sm:$0xff] }
 0x6cf   :  { %9598 = vmatpush.bf16.msrb.mxu0 %v15646_v43  ;;  %9576 = vmatpush.bf16.msra.mxu2 %v15624_v48  ;;  %v7497_v34 = vadd.f32 %v16873_v22, %v7483_v10  ;;  %v7399_v43 = vadd.f32 %v16875_v45, %v7385_v8  ;;  %v16602_v10 = vpop.f32.mrf.mxu0  ;;  %v8469_v5 = vmax.f32 %v16888_v57, 0.0  ;;  %v16889_v8 = vld [vmem:[#allocation61_spill] sm:$0xff]  ;;  %v15665_v30 = vld [vmem:[#allocation10 + $0x1c8] sm:$0xff] }
 0x6d0   :  { %v7217_v49 = vadd.f32 %v16878_v20, %v7203_v37  ;;  %v15656_v20 = vld [vmem:[#allocation10 + $0x180] sm:$0xff] }
 0x6d1   :  { %9612 = vmatpush.bf16.msrb.mxu1 %v15654_v7  ;;  %9590 = vmatpush.bf16.msra.mxu3 %v15632_v11  ;;  %v16876_v7 = vld [vmem:[#allocation49_spill] sm:$0xff]  ;;  %v7511_v11 = vadd.f32 %v16877_v53, %v7497_v34  ;;  %v16891_v34 = vld [vmem:[#allocation71_spill] sm:$0xff] }
 0x6d2   :  { %9577 = vmatmul.bf16.vlgmr.msra.gmra.mxu2 %v8499_v19  ;;  %v7315_v48 = vadd.f32 %v16876_v7, %v7301_v51  ;;  %v7231_v32 = vadd.f32 %v16882_v25, %v7217_v49  ;;  %v16600_v27 = vpop.f32.mrf.mxu2  ;;  %v16890_v51 = vld [vmem:[#allocation47_spill] sm:$0xff]  ;;  %v16899_v25 = vld [vmem:[#allocation82_spill] sm:$0xff] }
 0x6d3   :  { %9625 = vmatpush.bf16.msrb.mxu2 %v15663_v21  ;;  %9599 = vmatpush.bf16.msrb.mxu0 %v15645_v23  ;;  %v15642_v21 = vld [vmem:[#allocation10 + $0x110] sm:$0xff]  ;;  %v7525_v23 = vadd.f32 %v16881_v26, %v7511_v11  ;;  %v8470_v22 = vmax.f32 %v16890_v51, 0.0  ;;  %v16614_v11 = vpop.f32.mrf.mxu3  ;;  %v15676_v57 = vld [vmem:[#allocation10 + $0x220] sm:$0xff] }
 0x6d4   :  { %9591 = vmatmul.bf16.vlgmr.msra.gmra.mxu3 %v8500_v50  ;;  %v7329_v35 = vadd.f32 %v16880_v60, %v7315_v48  ;;  %v15678_v48 = vld [vmem:[#allocation10 + $0x230] sm:$0xff]  ;;  %v16897_v60 = vld [vmem:[#allocation73_spill] sm:$0xff]  ;;  %v16617_v26 = vpop.f32.mrf.mxu1 }
 0x6d5   :  { %9639 = vmatpush.bf16.msrb.mxu3 %v15671_v18  ;;  %9613 = vmatpush.bf16.msrb.mxu1 %v15653_v3  ;;  %v7413_v18 = vadd.f32 %v16879_v47, %v7399_v43  ;;  %v16883_v3 = vld [vmem:[#allocation58_spill] sm:$0xff]  ;;  %v7539_v9 = vadd.f32 %v16885_v52, %v7525_v23  ;;  %v16902_v52 = vld [vmem:[#allocation88_spill] sm:$0xff] }
 0x6d6   :  { %v7343_v46 = vadd.f32 %v16884_v36, %v7329_v35  ;;  %v15664_v47 = vld [vmem:[#allocation10 + $0x1c0] sm:$0xff] }
 0x6d7   :  { %9626 = vmatpush.bf16.msrb.mxu2 %v15662_v40  ;;  %9600 = vmatpush.bf16.msrb.mxu0 %v15644_v44  ;;  %v7427_v19 = vadd.f32 %v16883_v3, %v7413_v18  ;;  %v16886_v40 = vld [vmem:[#allocation60_spill] sm:$0xff]  ;;  %v16887_v44 = vld [vmem:[#allocation70_spill] sm:$0xff] }
 0x6d8   :  { %v7553_v16 = vadd.f32 %v16887_v44, %v7539_v9  ;;  %v8486_v15 = vmax.f32 %v7343_v46, 0.0  ;;  %v15695_v18 = vld [vmem:[#allocation10 + $0x2b8] sm:$0xff]  ;;  %v15677_v3 = vld [vmem:[#allocation10 + $0x228] sm:$0xff]  ;;  %v16903_v9 = vperm.slane %v16902_v52, 2 }
 0x6d9   :  { %9640 = vmatpush.bf16.msrb.mxu3 %v15670_v12  ;;  %9614 = vmatpush.bf16.msrb.mxu1 %v15652_v0  ;;  %v7441_v50 = vadd.f32 %v16886_v40, %v7427_v19  ;;  %v15666_v12 = vld [vmem:[#allocation10 + $0x1d0] sm:$0xff]  ;;  %v8485_v0 = vmax.f32 %v7231_v32, 0.0  ;;  %v16900_v19 = vld [vmem:[#allocation66_spill] sm:$0xff] }
 0x6da   :  { %v8502_v53 = vpack.c.bf16 %v8486_v15, %v8470_v22  ;;  %v16619_v23 = vpop.f32.mrf.mxu2  ;;  %v16901_v36 = vld [vmem:[#allocation74_spill] sm:$0xff]  ;;  %v16905_v44 = vld [vmem:[#allocation83_spill] sm:$0xff] }
 0x6db   :  { %9627 = vmatpush.bf16.msrb.mxu2 %v15661_v24  ;;  %9601 = vmatpush.bf16.msrb.mxu0 %v15643_v39  ;;  %v15687_v24 = vld [vmem:[#allocation10 + $0x278] sm:$0xff]  ;;  %v7567_v39 = vadd.f32 %v16891_v34, %v7553_v16  ;;  %v8501_v45 = vpack.c.bf16 %v8485_v0, %v8469_v5  ;;  %v16908_v5 = vld [vmem:[#allocation75_spill] sm:$0xff]  ;;  %v16636_v51 = vpop.f32.mrf.mxu3  ;;  %v15684_v22 = vld [vmem:[#allocation10 + $0x260] sm:$0xff] }
 0x6dc   :  { %v16907_v0 = vld [vmem:[#allocation100_spill] sm:$0xff] }
 0x6dd   :  { %9641 = vmatpush.bf16.msrb.mxu3 %v15669_v41  ;;  %9615 = vmatpush.bf16.msrb.mxu1 %v15651_v62  ;;  %v7455_v41 = vadd.f32 %v16889_v8, %v7441_v50  ;;  %v16892_v62 = vld [vmem:[#allocation69_spill] sm:$0xff]  ;;  %v15685_v50 = vld [vmem:[#allocation10 + $0x268] sm:$0xff]  ;;  %v16910_v34 = vld [vmem:[#allocation84_spill] sm:$0xff] }
 0x6de   :  { %v16895_v43 = vperm.slane %v16892_v62, 1 }
 0x6df   :  { %9628 = vmatpush.bf16.msrb.mxu2 %v15660_v56  ;;  %9602 = vmatpush.bf16.msrb.mxu0 %v15642_v21  ;;  %v16893_v56 = vperm.slane %v16892_v62, 0  ;;  %v15686_v21 = vld [vmem:[#allocation10 + $0x270] sm:$0xff]  ;;  %v8487_v49 = vmax.f32 %v7455_v41, 0.0  ;;  %v16911_v62 = vld [vmem:[#allocation101_spill] sm:$0xff] }
 0x6e0   :  { %v16909_v41 = vld [vmem:[#allocation92_spill] sm:$0xff] }
 0x6e1   :  { %9642 = vmatpush.bf16.msrb.mxu3 %v15668_v17  ;;  %9616 = vmatpush.bf16.msrb.mxu1 %v15650_v61  ;;  %v7581_v37 = vadd.f32 %v16894_v54, %v16893_v56  ;;  %v16896_v17 = vld [vmem:[#allocation81_spill] sm:$0xff]  ;;  %v8488_v61 = vmax.f32 %v7567_v39, 0.0  ;;  %v15693_v54 = vld [vmem:[#allocation10 + $0x2a8] sm:$0xff] }
 0x6e2   :  { %v7693_v7 = vadd.f32 %v16896_v17, %v16895_v43  ;;  %v16913_v43 = vld [vmem:[#allocation93_spill] sm:$0xff] }
 0x6e3   :  { %9629 = vmatpush.bf16.msrb.mxu2 %v15659_v4  ;;  %9603 = vmatpush.bf16.msrb.mxu0 %v15641_v55  ;;  %v7595_v35 = vadd.f32 %v16897_v60, %v7581_v37  ;;  %v15703_v4 = vld [vmem:[#allocation10 + $0x2f8] sm:$0xff]  ;;  %v15692_v60 = vld [vmem:[#allocation10 + $0x2a0] sm:$0xff] }
 0x6e4   :  { %v7707_v32 = vadd.f32 %v16899_v25, %v7693_v7  ;;  %v16912_v37 = vld [vmem:[#allocation77_spill] sm:$0xff]  ;;  %v15701_v7 = vld [vmem:[#allocation10 + $0x2e8] sm:$0xff] }
 0x6e5   :  { %9643 = vmatpush.bf16.msrb.mxu3 %v15667_v2  ;;  %9617 = vmatpush.bf16.msrb.mxu1 %v15649_v6  ;;  %v16898_v2 = vld [vmem:[#allocation56_spill] sm:$0xff]  ;;  %v8472_v6 = vmax.f32 %v16900_v19, 0.0  ;;  %v7609_v46 = vadd.f32 %v16901_v36, %v7595_v35  ;;  %v16916_v35 = vld [vmem:[#allocation78_spill] sm:$0xff] }
 0x6e6   :  { %v8471_v55 = vmax.f32 %v16898_v2, 0.0  ;;  %v7721_v16 = vadd.f32 %v16905_v44, %v7707_v32  ;;  %v16917_v2 = vld [vmem:[#allocation94_spill] sm:$0xff] }
 0x6e7   :  { %9630 = vmatpush.bf16.msrb.mxu2 %v15658_v28  ;;  %9604 = vmatpush.bf16.msrb.mxu0 %v15640_v42  ;;  %v16904_v28 = vld [vmem:[#allocation91_spill] sm:$0xff]  ;;  %v16906_v42 = vperm.slane %v16902_v52, 3  ;;  %v8504_v15 = vpack.c.bf16 %v8488_v61, %v8472_v6  ;;  %v7623_v8 = vadd.f32 %v16908_v5, %v7609_v46  ;;  %v15683_v61 = vld [vmem:[#allocation10 + $0x258] sm:$0xff]  ;;  %v15700_v32 = vld [vmem:[#allocation10 + $0x2e0] sm:$0xff] }
 0x6e8   :  { %v7805_v40 = vadd.f32 %v16904_v28, %v16903_v9  ;;  %v7735_v39 = vadd.f32 %v16910_v34, %v7721_v16  ;;  %v16919_v6 = vld [vmem:[#allocation103_spill] sm:$0xff]  ;;  %v16921_v28 = vld [vmem:[#allocation96_spill] sm:$0xff]  ;;  %v16923_v16 = vld [vmem:[#allocation105_spill] sm:$0xff] }
 0x6e9   :  { %9644 = vmatpush.bf16.msrb.mxu3 %v15666_v12  ;;  %9618 = vmatpush.bf16.msrb.mxu1 %v15648_v29  ;;  %v8503_v12 = vpack.c.bf16 %v8487_v49, %v8471_v55  ;;  %v7917_v29 = vadd.f32 %v16907_v0, %v16906_v42  ;;  %v15675_v49 = vld [vmem:[#allocation10 + $0x218] sm:$0xff]  ;;  %v15674_v46 = vld [vmem:[#allocation10 + $0x210] sm:$0xff]  ;;  %v16926_v34 = vld [vmem:[#allocation90_spill] sm:$0xff] }
 0x6ea   :  { %9605 = vmatmul.bf16.vlgmr.msrb.gmra.mxu0 %v8501_v45  ;;  %v7637_v45 = vadd.f32 %v16912_v37, %v7623_v8  ;;  %v16920_v52 = vld [vmem:[#allocation79_spill] sm:$0xff]  ;;  %v15691_v0 = vld [vmem:[#allocation10 + $0x298] sm:$0xff]  ;;  %v16928_v37 = vld [vmem:[#allocation98_spill] sm:$0xff] }
 0x6eb   :  { %9653 = vmatpush.bf16.msra.mxu0 %v15679_v38  ;;  %9631 = vmatpush.bf16.msrb.mxu2 %v15657_v31  ;;  %v15694_v38 = vld [vmem:[#allocation10 + $0x2b0] sm:$0xff]  ;;  %v7931_v56 = vadd.f32 %v16911_v62, %v7917_v29  ;;  %v16658_v29 = vpop.f32.mrf.mxu3  ;;  %v16925_v5 = vld [vmem:[#allocation97_spill] sm:$0xff]  ;;  %v16927_v62 = vld [vmem:[#allocation106_spill] sm:$0xff] }
 0x6ec   :  { %9619 = vmatmul.bf16.vlgmr.msrb.gmra.mxu1 %v8502_v53  ;;  %v15702_v31 = vld [vmem:[#allocation10 + $0x2f0] sm:$0xff] }
 0x6ed   :  { %9667 = vmatpush.bf16.msra.mxu1 %v15687_v24  ;;  %9645 = vmatpush.bf16.msrb.mxu3 %v15665_v30  ;;  %v16632_v24 = vpop.f32.mrf.mxu0  ;;  %v7819_v30 = vadd.f32 %v16909_v41, %v7805_v40 }
 0x6ef   :  { %9654 = vmatpush.bf16.msra.mxu0 %v15678_v48  ;;  %9632 = vmatpush.bf16.msrb.mxu2 %v15656_v20  ;;  %v7833_v17 = vadd.f32 %v16913_v43, %v7819_v30  ;;  %v16914_v48 = vld [vmem:[#allocation86_spill] sm:$0xff]  ;;  %v15698_v43 = vld [vmem:[#allocation10 + $0x2d0] sm:$0xff] }
 0x6f0   :  { %v7749_v53 = vadd.f32 %v16914_v48, %v7735_v39  ;;  %v15672_v48 = vld [vmem:[#allocation10 + $0x200] sm:$0xff] }
 0x6f1   :  { %9668 = vmatpush.bf16.msra.mxu1 %v15686_v21  ;;  %9646 = vmatpush.bf16.msrb.mxu3 %v15664_v47  ;;  %v16915_v21 = vld [vmem:[#allocation102_spill] sm:$0xff]  ;;  %v16644_v47 = vpop.f32.mrf.mxu1  ;;  %v7847_v55 = vadd.f32 %v16917_v2, %v7833_v17  ;;  %v16929_v17 = vld [vmem:[#allocation107_spill] sm:$0xff] }
 0x6f2   :  { %9633 = vmatmul.bf16.vlgmr.msrb.gmra.mxu2 %v8503_v12  ;;  %v7945_v20 = vadd.f32 %v16915_v21, %v7931_v56  ;;  %v16922_v12 = vld [vmem:[#allocation89_spill] sm:$0xff] }
 0x6f3   :  { %9681 = vmatpush.bf16.msra.mxu2 %v15695_v18  ;;  %9655 = vmatpush.bf16.msra.mxu0 %v15677_v3  ;;  %v16646_v18 = vpop.f32.mrf.mxu2  ;;  %v16918_v3 = vld [vmem:[#allocation87_spill] sm:$0xff]  ;;  %v7861_v40 = vadd.f32 %v16921_v28, %v7847_v55 }
 0x6f4   :  { %9647 = vmatmul.bf16.vlgmr.msrb.gmra.mxu3 %v8504_v15  ;;  %v7763_v19 = vadd.f32 %v16918_v3, %v7749_v53  ;;  %v7959_v36 = vadd.f32 %v16919_v6, %v7945_v20  ;;  %v15673_v15 = vld [vmem:[#allocation10 + $0x208] sm:$0xff]  ;;  %v15680_v20 = vld [vmem:[#allocation10 + $0x240] sm:$0xff]  ;;  %v16672_v3 = vld [vmem:[#allocation8 + $0x8] sm:$0xff]  ;;  %v16675_v6 = vpop.f32.mrf.mxu3 }
 0x6f5   :  { %9695 = vmatpush.bf16.msra.mxu3 %v15703_v4  ;;  %9669 = vmatpush.bf16.msra.mxu1 %v15685_v50  ;;  %v7651_v4 = vadd.f32 %v16916_v35, %v7637_v45  ;;  %v16650_v25 = vpop.f32.mrf.mxu0  ;;  %v15682_v50 = vld [vmem:[#allocation10 + $0x250] sm:$0xff]  ;;  %v7875_v8 = vadd.f32 %v16925_v5, %v7861_v40  ;;  %v15689_v35 = vld [vmem:[#allocation10 + $0x288] sm:$0xff]  ;;  %v15727_v5 = vld [vmem:[#allocation10 + $0x3b8] sm:$0xff] }
 0x6f6   :  { %v7777_v44 = vadd.f32 %v16922_v12, %v7763_v19  ;;  %v7973_v42 = vadd.f32 %v16923_v16, %v7959_v36  ;;  %v16931_v55 = vld [vmem:[#allocation99_spill] sm:$0xff]  ;;  %v1534_v19 = vperm.slane %v16672_v3, 5 }
 0x6f7   :  { %9682 = vmatpush.bf16.msra.mxu2 %v15694_v38  ;;  %9656 = vmatpush.bf16.msra.mxu0 %v15676_v57  ;;  %v7665_v9 = vadd.f32 %v16920_v52, %v7651_v4  ;;  %v15699_v38 = vld [vmem:[#allocation10 + $0x2d8] sm:$0xff]  ;;  %v7889_v45 = vadd.f32 %v16928_v37, %v7875_v8  ;;  %v15697_v36 = vld [vmem:[#allocation10 + $0x2c8] sm:$0xff]  ;;  %v15710_v12 = vld [vmem:[#allocation10 + $0x330] sm:$0xff] }
 0x6f8   :  { %v7791_v39 = vadd.f32 %v16926_v34, %v7777_v44  ;;  %v7987_v56 = vadd.f32 %v16927_v62, %v7973_v42  ;;  %v16930_v4 = vld [vmem:[#allocation76_spill] sm:$0xff]  ;;  %v15688_v42 = vld [vmem:[#allocation10 + $0x280] sm:$0xff] }
 0x6f9   :  { %9696 = vmatpush.bf16.msra.mxu3 %v15702_v31  ;;  %9670 = vmatpush.bf16.msra.mxu1 %v15684_v22  ;;  %v16924_v31 = vld [vmem:[#allocation80_spill] sm:$0xff]  ;;  %v16662_v41 = vpop.f32.mrf.mxu1  ;;  %v15681_v22 = vld [vmem:[#allocation10 + $0x248] sm:$0xff]  ;;  %v8473_v2 = vmax.f32 %v16930_v4, 0.0 }
 0x6fa   :  { %v7679_v57 = vadd.f32 %v16924_v31, %v7665_v9  ;;  %v16933_v9 = vld [vmem:[#allocation108_spill] sm:$0xff] }
 0x6fb   :  { %9683 = vmatpush.bf16.msra.mxu2 %v15693_v54  ;;  %9657 = vmatpush.bf16.msra.mxu0 %v15675_v49  ;;  %v16664_v30 = vpop.f32.mrf.mxu2  ;;  %v15690_v54 = vld [vmem:[#allocation10 + $0x290] sm:$0xff]  ;;  %v15711_v49 = vld [vmem:[#allocation10 + $0x338] sm:$0xff] }
 0x6fc   :  { %v8489_v53 = vmax.f32 %v7679_v57, 0.0  ;;  %v15718_v16 = vld [vmem:[#allocation10 + $0x370] sm:$0xff]  ;;  %v15696_v57 = vld [vmem:[#allocation10 + $0x2c0] sm:$0xff] }
 0x6fd   :  { %9697 = vmatpush.bf16.msra.mxu3 %v15701_v7  ;;  %9671 = vmatpush.bf16.msra.mxu1 %v15683_v61  ;;  %v8001_v7 = vadd.f32 %v16929_v17, %v7987_v56  ;;  %v8252_v21 = vpop.f32.mrf.mxu0  ;;  %v8490_v61 = vmax.f32 %v7791_v39, 0.0  ;;  %v15709_v56 = vld [vmem:[#allocation10 + $0x328] sm:$0xff] }
 0x6fe   :  { %v8505_v40 = vpack.c.bf16 %v8489_v53, %v8473_v2  ;;  %v15726_v53 = vld [vmem:[#allocation10 + $0x3b0] sm:$0xff] }
 0x6ff   :  { %9684 = vmatpush.bf16.msra.mxu2 %v15692_v60  ;;  %9658 = vmatpush.bf16.msra.mxu0 %v15674_v46  ;;  %v15719_v60 = vld [vmem:[#allocation10 + $0x378] sm:$0xff]  ;;  %v8015_v28 = vadd.f32 %v16933_v9, %v8001_v7 }
 0x700   :  { %v16932_v46 = vld [vmem:[#allocation85_spill] sm:$0xff] }
 0x701   :  { %9698 = vmatpush.bf16.msra.mxu3 %v15700_v32  ;;  %9672 = vmatpush.bf16.msra.mxu1 %v15682_v50  ;;  %v7903_v32 = vadd.f32 %v16931_v55, %v7889_v45  ;;  %v8474_v52 = vmax.f32 %v16932_v46, 0.0  ;;  %v8141_v50 = vadd.f32 %v16588_v63, %v1534_v19  ;;  %v8492_v8 = vmax.f32 %v8015_v28, 0.0  ;;  %v15717_v45 = vld [vmem:[#allocation10 + $0x368] sm:$0xff]  ;;  %v15707_v46 = vld [vmem:[#allocation10 + $0x318] sm:$0xff] }
 0x702   :  { %v1535_v63 = vperm.slane %v16672_v3, 6  ;;  %v15725_v55 = vld [vmem:[#allocation10 + $0x3a8] sm:$0xff]  ;;  %v15715_v9 = vld [vmem:[#allocation10 + $0x358] sm:$0xff] }
 0x703   :  { %9685 = vmatpush.bf16.msra.mxu2 %v15691_v0  ;;  %9659 = vmatpush.bf16.msra.mxu0 %v15673_v15  ;;  %v8506_v44 = vpack.c.bf16 %v8490_v61, %v8474_v52  ;;  %v8491_v0 = vmax.f32 %v7903_v32, 0.0  ;;  %v8266_v15 = vpop.f32.mrf.mxu1  ;;  %v8280_v31 = vpop.f32.mrf.mxu2  ;;  %v8155_v39 = vadd.f32 %v16598_v58, %v8141_v50 }
 0x704   :  { %v8253_v37 = vadd.f32 %v8252_v21, %v1535_v63  ;;  %v8294_v61 = vpop.f32.mrf.mxu3  ;;  %v15708_v21 = vld [vmem:[#allocation10 + $0x320] sm:$0xff] }
 0x705   :  { %9699 = vmatpush.bf16.msra.mxu3 %v15699_v38  ;;  %9673 = vmatpush.bf16.msra.mxu1 %v15681_v22  ;;  %v8139_v38 = vadd.f32 %v16566_v59, %v1534_v19  ;;  %v16934_v22 = vld [vmem:[#allocation95_spill] sm:$0xff]  ;;  %v16684_v62 = vpop.f32.mrf.mxu0 }
 0x706   :  { %v8475_v34 = vmax.f32 %v16934_v22, 0.0 }
 0x707   :  { %9686 = vmatpush.bf16.msra.mxu2 %v15690_v54  ;;  %9660 = vmatpush.bf16.msra.mxu0 %v15672_v48  ;;  %v16935_v54 = vld [vmem:[#allocation104_spill] sm:$0xff]  ;;  %v8153_v7 = vadd.f32 %v16576_v14, %v8139_v38  ;;  %v8169_v48 = vadd.f32 %v16600_v27, %v8155_v39 }
 0x708   :  { %v8476_v59 = vmax.f32 %v16935_v54, 0.0  ;;  %v8507_v17 = vpack.c.bf16 %v8491_v0, %v8475_v34  ;;  %v15734_v14 = vld [vmem:[#allocation10 + $0x3f0] sm:$0xff]  ;;  %v15723_v0 = vld [vmem:[#allocation10 + $0x398] sm:$0xff] }
 0x709   :  { %9700 = vmatpush.bf16.msra.mxu3 %v15698_v43  ;;  %9674 = vmatpush.bf16.msra.mxu1 %v15680_v20  ;;  %v15735_v43 = vld [vmem:[#allocation10 + $0x3f8] sm:$0xff]  ;;  %v8251_v20 = vadd.f32 %v16650_v25, %v1535_v63  ;;  %v8183_v27 = vadd.f32 %v16614_v11, %v8169_v48  ;;  %v15730_v54 = vld [vmem:[#allocation10 + $0x3d0] sm:$0xff] }
 0x70a   :  { %9661 = vmatmul.bf16.vlgmr.msra.gmra.mxu0 %v8505_v40  ;;  %v8508_v58 = vpack.c.bf16 %v8492_v8, %v8476_v59  ;;  %v15724_v40 = vld [vmem:[#allocation10 + $0x3a0] sm:$0xff]  ;;  %v15731_v8 = vld [vmem:[#allocation10 + $0x3d8] sm:$0xff] }
 0x70b   :  { %9709 = vmatpush.bf16.msrb.mxu0 %v15711_v49  ;;  %9687 = vmatpush.bf16.msra.mxu2 %v15689_v35  ;;  %v8167_v49 = vadd.f32 %v16578_v13, %v8153_v7  ;;  %v15716_v35 = vld [vmem:[#allocation10 + $0x360] sm:$0xff]  ;;  %v8320_v4 = vpop.f32.mrf.mxu1  ;;  %v8334_v2 = vpop.f32.mrf.mxu2  ;;  %v8265_v25 = vadd.f32 %v16662_v41, %v8251_v20  ;;  %v15733_v13 = vld [vmem:[#allocation10 + $0x3e8] sm:$0xff] }
 0x70c   :  { %9675 = vmatmul.bf16.vlgmr.msra.gmra.mxu1 %v8506_v44  ;;  %v15729_v7 = vld [vmem:[#allocation10 + $0x3c8] sm:$0xff] }
 0x70d   :  { %9723 = vmatpush.bf16.msrb.mxu1 %v15719_v60  ;;  %9701 = vmatpush.bf16.msra.mxu3 %v15697_v36  ;;  %v8267_v60 = vadd.f32 %v8266_v15, %v8253_v37  ;;  %v8181_v19 = vadd.f32 %v16590_v33, %v8167_v49  ;;  %v8197_v36 = vadd.f32 %v16632_v24, %v8183_v27  ;;  %v8308_v28 = vpop.f32.mrf.mxu0  ;;  %v15706_v33 = vld [vmem:[#allocation10 + $0x310] sm:$0xff]  ;;  %v15728_v49 = vld [vmem:[#allocation10 + $0x3c0] sm:$0xff] }
 0x70e   :  { %v8279_v52 = vadd.f32 %v16664_v30, %v8265_v25  ;;  %v15732_v30 = vld [vmem:[#allocation10 + $0x3e0] sm:$0xff] }
 0x70f   :  { %9710 = vmatpush.bf16.msrb.mxu0 %v15710_v12  ;;  %9688 = vmatpush.bf16.msra.mxu2 %v15688_v42  ;;  %v8281_v32 = vadd.f32 %v8280_v31, %v8267_v60  ;;  %v8195_v11 = vadd.f32 %v16602_v10, %v8181_v19  ;;  %v8211_v41 = vadd.f32 %v16644_v47, %v8197_v36  ;;  %v8348_v12 = vpop.f32.mrf.mxu3 }
 0x710   :  { %v8293_v24 = vadd.f32 %v16675_v6, %v8279_v52 }
 0x711   :  { %9724 = vmatpush.bf16.msrb.mxu1 %v15718_v16  ;;  %9702 = vmatpush.bf16.msra.mxu3 %v15696_v57  ;;  %v8295_v50 = vadd.f32 %v8294_v61, %v8281_v32  ;;  %v15714_v16 = vld [vmem:[#allocation10 + $0x350] sm:$0xff]  ;;  %v8209_v42 = vadd.f32 %v16617_v26, %v8195_v11  ;;  %v8225_v10 = vadd.f32 %v16646_v18, %v8211_v41  ;;  %v15705_v57 = vld [vmem:[#allocation10 + $0x308] sm:$0xff] }
 0x712   :  { %9689 = vmatmul.bf16.vlgmr.msra.gmra.mxu2 %v8507_v17  ;;  %v8307_v38 = vadd.f32 %v16684_v62, %v8293_v24  ;;  %v15722_v26 = vld [vmem:[#allocation10 + $0x390] sm:$0xff] }
 0x713   :  { %9737 = vmatpush.bf16.msrb.mxu2 %v15727_v5  ;;  %9711 = vmatpush.bf16.msrb.mxu0 %v15709_v56  ;;  %v8309_v44 = vadd.f32 %v8308_v28, %v8295_v50  ;;  %v8223_v47 = vadd.f32 %v16619_v23, %v8209_v42  ;;  %v8322_v15 = vpop.f32.mrf.mxu1  ;;  %v8336_v31 = vpop.f32.mrf.mxu2  ;;  %v15713_v5 = vld [vmem:[#allocation10 + $0x348] sm:$0xff]  ;;  %v8239_v63 = vadd.f32 %v16658_v29, %v8225_v10  ;;  %v15704_v23 = vld [vmem:[#allocation10 + $0x300] sm:$0xff] }
 0x714   :  { %9703 = vmatmul.bf16.vlgmr.msra.gmra.mxu3 %v8508_v58  ;;  %v8321_v18 = vadd.f32 %v8320_v4, %v8307_v38  ;;  %v15712_v56 = vld [vmem:[#allocation10 + $0x340] sm:$0xff] }
 0x715   :  { %9751 = vmatpush.bf16.msrb.mxu3 %v15735_v43  ;;  %9725 = vmatpush.bf16.msrb.mxu1 %v15717_v45  ;;  %v8323_v6 = vadd.f32 %v8322_v15, %v8309_v44  ;;  %v8237_v34 = vadd.f32 %v16636_v51, %v8223_v47  ;;  %v8362_v39 = vpop.f32.mrf.mxu0  ;;  %v8494_v59 = vmax.f32 %v8239_v63, 0.0  ;;  %v15721_v45 = vld [vmem:[#allocation10 + $0x388] sm:$0xff] }
 0x716   :  { %v8335_v62 = vadd.f32 %v8334_v2, %v8321_v18  ;;  %v15751_v18 = vld [vmem:[#allocation11] ss:$0 sm:$0xff] }
 0x717   :  { %9738 = vmatpush.bf16.msrb.mxu2 %v15726_v53  ;;  %9712 = vmatpush.bf16.msrb.mxu0 %v15708_v21  ;;  %v8337_v22 = vadd.f32 %v8336_v31, %v8323_v6  ;;  %v8350_v37 = vpop.f32.mrf.mxu3  ;;  %v8478_v29 = vmax.f32 %v8237_v34, 0.0  ;;  %v15720_v53 = vld [vmem:[#allocation10 + $0x380] sm:$0xff] }
 0x718   :  { %v8349_v17 = vadd.f32 %v8348_v12, %v8335_v62 }
 0x719   :  { %9752 = vmatpush.bf16.msrb.mxu3 %v15734_v14  ;;  %9726 = vmatpush.bf16.msrb.mxu1 %v15716_v35  ;;  %v8351_v43 = vadd.f32 %v8350_v37, %v8337_v22  ;;  %v8510_v48 = vpack.c.bf16 %v8494_v59, %v8478_v29  ;;  %v1536_v35 = vperm.slane %v16672_v3, 7 }
 0x71a   :  { %v8479_v20 = vmax.f32 %v8349_v17, 0.0 }
 0x71b   :  { %9739 = vmatpush.bf16.msrb.mxu2 %v15725_v55  ;;  %9713 = vmatpush.bf16.msrb.mxu0 %v15707_v46  ;;  %v8376_v51 = vpop.f32.mrf.mxu1  ;;  %v8495_v58 = vmax.f32 %v8351_v43, 0.0  ;;  %v8390_v21 = vpop.f32.mrf.mxu2  ;;  %v8363_v27 = vadd.f32 %v8362_v39, %v1536_v35 }
 0x71d   :  { %9753 = vmatpush.bf16.msrb.mxu3 %v15733_v13  ;;  %9727 = vmatpush.bf16.msrb.mxu1 %v15715_v9  ;;  %v8364_v61 = vpop.f32.mrf.mxu0  ;;  %v8511_v60 = vpack.c.bf16 %v8495_v58, %v8479_v20  ;;  %v8377_v55 = vadd.f32 %v8376_v51, %v8363_v27 }
 0x71e   :  { %v8365_v25 = vadd.f32 %v8364_v61, %v1536_v35 }
 0x71f   :  { %9740 = vmatpush.bf16.msrb.mxu2 %v15724_v40  ;;  %9714 = vmatpush.bf16.msrb.mxu0 %v15706_v33  ;;  %v8404_v14 = vpop.f32.mrf.mxu3 }
 0x721   :  { %9754 = vmatpush.bf16.msrb.mxu3 %v15732_v30  ;;  %9728 = vmatpush.bf16.msrb.mxu1 %v15714_v16 }
 0x723   :  { %9741 = vmatpush.bf16.msrb.mxu2 %v15723_v0  ;;  %9715 = vmatpush.bf16.msrb.mxu0 %v15705_v57  ;;  %v8378_v4 = vpop.f32.mrf.mxu1  ;;  %v8392_v32 = vpop.f32.mrf.mxu2 }
 0x724   :  { %v8379_v19 = vadd.f32 %v8378_v4, %v8365_v25 }
 0x725   :  { %9755 = vmatpush.bf16.msrb.mxu3 %v15731_v8  ;;  %9729 = vmatpush.bf16.msrb.mxu1 %v15713_v5 }
 0x726   :  { %v8393_v52 = vadd.f32 %v8392_v32, %v8379_v19 }
 0x727   :  { %9742 = vmatpush.bf16.msrb.mxu2 %v15722_v26  ;;  %9716 = vmatpush.bf16.msrb.mxu0 %v15704_v23  ;;  %v8418_v2 = vpop.f32.mrf.mxu0  ;;  %v8406_v13 = vpop.f32.mrf.mxu3 }
 0x728   :  { %v8407_v40 = vadd.f32 %v8406_v13, %v8393_v52 }
 0x729   :  { %9756 = vmatpush.bf16.msrb.mxu3 %v15730_v54  ;;  %9730 = vmatpush.bf16.msrb.mxu1 %v15712_v56 }
 0x72a   :  { %9717 = vmatmul.bf16.vlgmr.msrb.gmra.mxu0 %v16499_v1  ;;  %v8391_v1 = vadd.f32 %v8390_v21, %v8377_v55 }
 0x72b   :  { %9743 = vmatpush.bf16.msrb.mxu2 %v15721_v45  ;;  %v8432_v36 = vpop.f32.mrf.mxu1 }
 0x72c   :  { %9731 = vmatmul.bf16.vlgmr.msrb.gmra.mxu1 %v8510_v48  ;;  %v8405_v46 = vadd.f32 %v8404_v14, %v8391_v1 }
 0x72d   :  { %9757 = vmatpush.bf16.msrb.mxu3 %v15729_v7 }
 0x72e   :  { %v8419_v9 = vadd.f32 %v8418_v2, %v8405_v46 }
 0x72f   :  { %9744 = vmatpush.bf16.msrb.mxu2 %v15720_v53  ;;  %v8420_v11 = vpop.f32.mrf.mxu0 }
 0x730   :  { %v8433_v50 = vadd.f32 %v8432_v36, %v8419_v9  ;;  %v8421_v41 = vadd.f32 %v8420_v11, %v8407_v40 }
 0x731   :  { %9758 = vmatpush.bf16.msrb.mxu3 %v15728_v49 }
 0x732   :  { %9745 = vmatmul.bf16.vlgmr.msrb.gmra.mxu2 %v8511_v60 }
 0x733   :  { %v8434_v33 = vpop.f32.mrf.mxu1 }
 0x734   :  { %v8435_v24 = vadd.f32 %v8434_v33, %v8421_v41 }
 0x735   :  { %v8446_v28 = vpop.f32.mrf.mxu2 }
 0x736   :  { %v8447_v12 = vadd.f32 %v8446_v28, %v8433_v50 }
 0x737   :  { %v8460_v3 = vpop.f32.mrf.mxu3 }
 0x738   :  { %v8461_v16 = vadd.f32 %v8460_v3, %v8447_v12 }
 0x73a   :  { %v8480_v0 = vmax.f32 %v8461_v16, 0.0 }
 0x73d   :  { %v8448_v44 = vpop.f32.mrf.mxu2 }
 0x73e   :  { %v8449_v30 = vadd.f32 %v8448_v44, %v8435_v24 }
 0x73f   :  { %v8462_v42 = vpop.f32.mrf.mxu3 }
 0x740   :  { %v8463_v10 = vadd.f32 %v8462_v42, %v8449_v30  ;;  %v15752_v42 = vld [vmem:[#allocation13] ss:$0 sm:$0xff] }
 0x742   :  { %v8496_v38 = vmax.f32 %v8463_v10, 0.0 }
 0x744   :  { %v8512_v47 = vpack.c.bf16 %v8496_v38, %v8480_v0 }
 0x746   :  { %9759 = vmatmul.bf16.vlgmr.msrb.gmra.mxu3 %v8512_v47 }
 0x747   :  { %v9550_v15 = vpop.f32.mrf.mxu0 }
 0x748   :  { %v9551_v34 = vadd.f32 %v15751_v18, %v9550_v15 }
 0x749   :  { %v9564_v31 = vpop.f32.mrf.mxu1 }
 0x74a   :  { %v9565_v62 = vadd.f32 %v9564_v31, %v9551_v34 }
 0x74f   :  { %v9552_v6 = vpop.f32.mrf.mxu0 }
 0x750   :  { %v9553_v37 = vadd.f32 %v15751_v18, %v9552_v6 }
 0x751   :  { %v9566_v8 = vpop.f32.mrf.mxu1 }
 0x752   :  { %v9567_v17 = vadd.f32 %v9566_v8, %v9553_v37 }
 0x755   :  { %v9578_v57 = vpop.f32.mrf.mxu2 }
 0x756   :  { %v9579_v54 = vadd.f32 %v9578_v57, %v9565_v62 }
 0x757   :  { %v9592_v5 = vpop.f32.mrf.mxu3 }
 0x758   :  { %v9593_v45 = vadd.f32 %v9592_v5, %v9579_v54 }
 0x75d   :  { %v9580_v63 = vpop.f32.mrf.mxu2 }
 0x75e   :  { %v9581_v51 = vadd.f32 %v9580_v63, %v9567_v17  ;;  %v15948_v63 = vmov 0  }
 0x75f   :  { %v9594_v22 = vpop.f32.mrf.mxu3  ;;  %15749 = vset.pattern.permute.xlu1 %v15948_v63  ;;  %15750 = vset.pattern.permute.xlu0 %v15948_v63 }
 0x760   :  { %v9595_v20 = vadd.f32 %v9594_v22, %v9581_v51 }
 0x767   :  { %v9606_v26 = vpop.f32.mrf.mxu0 }
 0x768   :  { %v9607_v7 = vadd.f32 %v9606_v26, %v9593_v45  ;;  %v15753_v26 = vld [vmem:[#allocation2] ss:$0 sm:$0xff] }
 0x769   :  { %v9620_v39 = vpop.f32.mrf.mxu1 }
 0x76a   :  { %v9621_v53 = vadd.f32 %v9620_v39, %v9607_v7 }
 0x76f   :  { %v9608_v56 = vpop.f32.mrf.mxu0 }
 0x770   :  { %v9609_v60 = vadd.f32 %v9608_v56, %v9595_v20 }
 0x771   :  { %v9622_v43 = vpop.f32.mrf.mxu1 }
 0x772   :  { %v9623_v27 = vadd.f32 %v9622_v43, %v9609_v60 }
 0x775   :  { %v9634_v23 = vpop.f32.mrf.mxu2 }
 0x776   :  { %v9635_v49 = vadd.f32 %v9634_v23, %v9621_v53 }
 0x777   :  { %v9648_v59 = vpop.f32.mrf.mxu3 }
 0x778   :  { %v9649_v35 = vadd.f32 %v9648_v59, %v9635_v49 }
 0x77d   :  { %v9636_v29 = vpop.f32.mrf.mxu2 }
 0x77e   :  { %v9637_v55 = vadd.f32 %v9636_v29, %v9623_v27 }
 0x77f   :  { %v9650_v58 = vpop.f32.mrf.mxu3 }
 0x780   :  { %v9651_v13 = vadd.f32 %v9650_v58, %v9637_v55 }
 0x787   :  { %v9662_v48 = vpop.f32.mrf.mxu0 }
 0x788   :  { %v9663_v4 = vadd.f32 %v9662_v48, %v9649_v35 }
 0x789   :  { %v9676_v61 = vpop.f32.mrf.mxu1 }
 0x78a   :  { %v9677_v25 = vadd.f32 %v9676_v61, %v9663_v4 }
 0x78f   :  { %v9664_v14 = vpop.f32.mrf.mxu0 }
 0x790   :  { %v9665_v46 = vadd.f32 %v9664_v14, %v9651_v13 }
 0x791   :  { %v9678_v32 = vpop.f32.mrf.mxu1 }
 0x792   :  { %v9679_v11 = vadd.f32 %v9678_v32, %v9665_v46 }
 0x795   :  { %v9690_v21 = vpop.f32.mrf.mxu2 }
 0x796   :  { %v9691_v19 = vadd.f32 %v9690_v21, %v9677_v25 }
 0x797   :  { %v9704_v2 = vpop.f32.mrf.mxu3 }
 0x798   :  { %v9705_v52 = vadd.f32 %v9704_v2, %v9691_v19 }
 0x79d   :  { %v9692_v1 = vpop.f32.mrf.mxu2 }
 0x79e   :  { %v9693_v50 = vadd.f32 %v9692_v1, %v9679_v11 }
 0x79f   :  { %v9706_v9 = vpop.f32.mrf.mxu3 }
 0x7a0   :  { %v9707_v33 = vadd.f32 %v9706_v9, %v9693_v50 }
 0x7a7   :  { %v9718_v36 = vpop.f32.mrf.mxu0 }
 0x7a8   :  { %v9719_v28 = vadd.f32 %v9718_v36, %v9705_v52 }
 0x7a9   :  { %v9732_v40 = vpop.f32.mrf.mxu1 }
 0x7aa   :  { %v9733_v41 = vadd.f32 %v9732_v40, %v9719_v28 }
 0x7af   :  { %v9720_v12 = vpop.f32.mrf.mxu0 }
 0x7b0   :  { %v9721_v16 = vadd.f32 %v9720_v12, %v9707_v33 }
 0x7b1   :  { %v9734_v0 = vpop.f32.mrf.mxu1 }
 0x7b2   :  { %v9735_v47 = vadd.f32 %v9734_v0, %v9721_v16 }
 0x7b5   :  { %v9746_v3 = vpop.f32.mrf.mxu2 }
 0x7b6   :  { %v9747_v24 = vadd.f32 %v9746_v3, %v9733_v41 }
 0x7bd   :  { %v9748_v38 = vpop.f32.mrf.mxu2 }
 0x7be   :  { %v9749_v31 = vadd.f32 %v9748_v38, %v9735_v47 }
 0x7c9   :  { %v9760_v44 = vpop.f32.mrf.mxu3 }
 0x7ca   :  { %v9761_v30 = vadd.f32 %v9760_v44, %v9747_v24 }
 0x7cc   :  { %v9765_v10 = vmax.f32 %v9761_v30, 0.0 }
 0x7ce   :  { %v9771_v15 = vmul.f32 %v15752_v42, %v9765_v10 }
 0x7d0   :  { %9773 = vadd.xlane.f32.xlu0 %v9771_v15 }
 0x7d1   :  { %v9762_v57 = vpop.f32.mrf.mxu3 }
 0x7d2   :  { %v9763_v6 = vadd.f32 %v9762_v57, %v9749_v31 }
 0x7d4   :  { %v9766_v5 = vmax.f32 %v9763_v6, 0.0 }
 0x7d6   :  { %v9772_v8 = vmul.f32 %v15752_v42, %v9766_v5 }
 0x7d8   :  { %9775 = vadd.xlane.f32.xlu0 %v9772_v8 }
 0x843   :  { %v9774_v18 = vpop.xlane.xlu0 %9773 }
 0x844   :  { %v9781_v22 = vadd.f32 %v15753_v26, %v9774_v18 }
 0x846   :  { %9785 = vperm.xlu1 %15749, %v9781_v22  }
 0x84b   :  { %v9776_v34 = vpop.xlane.xlu0 %9775 }
 0x84c   :  { %v9782_v39 = vadd.f32 %v15753_v26, %v9776_v34 }
 0x84e   :  { %9790 = vperm.xlu1 %15749, %v9782_v39  }
 0x8b8   :  { %v9786_v23 = vpop.permute.xlu1 %9785 }
 0x8b9   :  { %9793 = vst [vmem:[%s16722_s9] sm:$0xff] %v9786_v23 }
 0x8c0   :  { %v9791_v62 = vpop.permute.xlu1 %9790 }
 0x8c1   :  { %9794 = vst [vmem:[%s16722_s9 + $0x8] sm:$0xff] %v9791_v62 }
 0x8c2   :  { %9799 = vsyncpa [#allocation4], 1 }
 0x8c3   :  { %9800 = vsyncpa [#allocation6], 1 }
 0x8c4   :  { %9801 = vsyncpa [#allocation9], 1 }
 0x8c5   :  { %9802 = vsyncpa [#allocation12], 1 }

</bundles_post_ra>
